<compile_context>
chip_gen: v7x
topology: tpu7x:2x2x1
jax: 0.10.0
libtpu: 0.0.40
codegen_flags: <defaults>
</compile_context>

<pallas_src>
import jax
import jax.numpy as jnp
from jax.experimental import pallas as pl
from jax.experimental.pallas import tpu as pltpu

_LANE = 128
_BN_EPS = 1e-5


def _mish(x):
    # Mish(x) = x * tanh(softplus(x)) with a single exp:
    #   tanh(softplus(x)) = (t^2 + 2t) / (t^2 + 2t + 2),   t = exp(x)
    # exp clamped at 20 so t^2 cannot overflow f32 (the ratio is already 1.0
    # to f32 precision there).
    t = jnp.exp(jnp.minimum(x, 20.0))
    u = t * (t + 2.0)
    return x * u * pl.reciprocal(u + 2.0, approx=True)


def _cspblock2_kernel(
    x_ref,                     # (1, H, W, Cip)
    w1_ref, b1_ref,            # cv1 (1x1 + BN folded):      (Cip, Chp), (1, Chp)
    w12_ref, br1_ref,          # [ResBlock 1x1 | cv2] fused: (Chp, 2*Chp), (1, Chp)
    wr3_ref, br3_ref,          # ResBlock 3x3 folded, im2col:(9*Chp, Chp), (1, Chp)
    bns1_ref, bnb1_ref,        # self.bn scale/bias, y1 half:(1, Chp)
    bns2_ref, bnb2_ref,        # self.bn scale/bias, y2 half:(1, Chp)
    w3a_ref, w3b_ref, b3_ref,  # cv3 folded, split over halves: (Chp,Cop)x2, (1,Cop)
    out_ref,                   # (1, H, W, Cop)
    pad_ref,                   # scratch: (H+2, W+2, Chp) zero-halo buffer
    col_ref,                   # scratch: (H*W, 9*Chp) im2col slab
):
    _, H, W, Cip = x_ref.shape
    Chp = b1_ref.shape[1]
    HW = H * W

    # cv1: 1x1 conv + folded BN + Mish
    x = x_ref[...].reshape(HW, Cip)
    x1 = _mish(jnp.dot(x, w1_ref[...], preferred_element_type=jnp.float32)
               + b1_ref[...])

    # ResBlock 1x1 and cv2 fused into one matmul over x1.
    rz = jnp.dot(x1, w12_ref[...], preferred_element_type=jnp.float32)
    r1 = _mish(rz[:, :Chp] + br1_ref[...])
    y2 = rz[:, Chp:]

    # Consume y2 immediately (self.bn + Mish + its half of cv3) so it does not
    # stay live across the 3x3 stage.
    z2 = _mish(y2 * bns2_ref[...] + bnb2_ref[...])
    pre_b = jnp.dot(z2, w3b_ref[...], preferred_element_type=jnp.float32)

    # Zero-pad buffer for the 3x3 conv (padding=1): zero ONLY the 1-wide halo;
    # the interior is fully overwritten every grid step.
    pad_ref[0:1] = jnp.zeros((1, W + 2, Chp), jnp.float32)
    pad_ref[H + 1:H + 2] = jnp.zeros((1, W + 2, Chp), jnp.float32)
    pad_ref[1:H + 1, 0:1, :] = jnp.zeros((H, 1, Chp), jnp.float32)
    pad_ref[1:H + 1, W + 1:W + 2, :] = jnp.zeros((H, 1, Chp), jnp.float32)
    pad_ref[1:H + 1, 1:W + 1, :] = r1.reshape(H, W, Chp)

    # im2col: pack the 9 shifted taps along the lane axis, then one matmul
    # with K = 9*Chp instead of 9 tiny-K matmuls.
    for dy in range(3):
        for dx in range(3):
            k = dy * 3 + dx
            col_ref[:, k * Chp:(k + 1) * Chp] = (
                pad_ref[dy:dy + H, dx:dx + W, :].reshape(HW, Chp))

    acc = jnp.dot(col_ref[...], wr3_ref[...], preferred_element_type=jnp.float32)
    y1 = _mish(acc + br3_ref[...])

    # self.bn + Mish on the y1 half, then cv3 (split matmul over concat halves).
    z1 = _mish(y1 * bns1_ref[...] + bnb1_ref[...])
    out = _mish(jnp.dot(z1, w3a_ref[...], preferred_element_type=jnp.float32)
                + pre_b + b3_ref[...])
    out_ref[...] = out.reshape(1, H, W, -1).astype(out_ref.dtype)


def csp_block2_pallas(x_nhwc_padded, kp):
    N, H, W, Cip = x_nhwc_padded.shape
    Chp = kp["b1"].shape[1]
    Cop = kp["b3"].shape[1]

    weights = (kp["w1"], kp["b1"], kp["w12"], kp["br1"], kp["wr3"], kp["br3"],
               kp["bns1"], kp["bnb1"], kp["bns2"], kp["bnb2"],
               kp["w3a"], kp["w3b"], kp["b3"])

    def _resident(arr):
        nd = arr.ndim
        return pl.BlockSpec(arr.shape, lambda n: (0,) * nd)

    in_specs = [pl.BlockSpec((1, H, W, Cip), lambda n: (n, 0, 0, 0))]
    in_specs += [_resident(w) for w in weights]

    return pl.pallas_call(
        _cspblock2_kernel,
        out_shape=jax.ShapeDtypeStruct((N, H, W, Cop), jnp.float32),
        grid=(N,),
        in_specs=in_specs,
        out_specs=pl.BlockSpec((1, H, W, Cop), lambda n: (n, 0, 0, 0)),
        scratch_shapes=[
            pltpu.VMEM((H + 2, W + 2, Chp), jnp.float32),   # padded r1
            pltpu.VMEM((H * W, 9 * Chp), jnp.float32),      # im2col slab
        ],
        compiler_params=pltpu.CompilerParams(
            dimension_semantics=("parallel",),
            vmem_limit_bytes=32 * 1024 * 1024,
        ),
    )(x_nhwc_padded, *weights)


# ---------------- parameter construction (deterministic, synthetic) ----------


def _bn_params(key, c):
    k1, k2, k3, k4 = jax.random.split(key, 4)
    gamma = 1.0 + 0.1 * jax.random.normal(k1, (c,), jnp.float32)
    beta = 0.1 * jax.random.normal(k2, (c,), jnp.float32)
    mean = 0.1 * jax.random.normal(k3, (c,), jnp.float32)
    var = 1.0 + 0.1 * jax.random.uniform(k4, (c,), jnp.float32)
    return gamma, beta, mean, var


def _fold(wmat, bn):
    # fold inference-mode BatchNorm into conv weight / bias
    gamma, beta, mean, var = bn
    scale = gamma / jnp.sqrt(var + _BN_EPS)
    return wmat * scale, beta - mean * scale


def make_params(key, cin, cout):
    ch = int(cout)  # hidden_channels = int(out_channels)
    ks = jax.random.split(key, 10)

    def conv_w(k, co, ci, kh, kw):  # torch layout (Cout, Cin, kh, kw)
        return 0.1 * jax.random.normal(k, (co, ci, kh, kw), jnp.float32)

    # cv1 (1x1 + BN + Mish)
    w1, b1 = _fold(conv_w(ks[0], ch, cin, 1, 1)[:, :, 0, 0].T, _bn_params(ks[1], ch))
    # ResBlock conv #1 (1x1 + BN + Mish)
    wr1, br1 = _fold(conv_w(ks[2], ch, ch, 1, 1)[:, :, 0, 0].T, _bn_params(ks[3], ch))
    # ResBlock conv #2 (3x3, pad=1, + BN + Mish)
    w = conv_w(ks[4], ch, ch, 3, 3)                        # (Cout, Cin, 3, 3)
    w = jnp.transpose(w, (2, 3, 1, 0)).reshape(9, ch, ch)  # (dy*3+dx, Cin, Cout)
    wr3, br3 = _fold(w, _bn_params(ks[5], ch))
    # cv2 (plain 1x1 conv, no bias)
    w2 = conv_w(ks[6], ch, ch, 1, 1)[:, :, 0, 0].T
    # self.bn on 2*ch channels
    gamma, beta, mean, var = _bn_params(ks[7], 2 * ch)
    scale = gamma / jnp.sqrt(var + _BN_EPS)
    bias = beta - mean * scale
    bns1, bns2 = scale[:ch], scale[ch:]
    bnb1, bnb2 = bias[:ch], bias[ch:]
    # cv3 (1x1 on 2*ch + BN + Mish)
    w3, b3 = _fold(conv_w(ks[8], cout, 2 * ch, 1, 1)[:, :, 0, 0].T,
                   _bn_params(ks[9], cout))
    w3a, w3b = w3[:ch], w3[ch:]

    as2d = lambda v: v.reshape(1, -1)
    return dict(w1=w1, b1=as2d(b1), wr1=wr1, br1=as2d(br1),
                wr3=wr3, br3=as2d(br3), w2=w2,
                bns1=as2d(bns1), bnb1=as2d(bnb1),
                bns2=as2d(bns2), bnb2=as2d(bnb2),
                w3a=w3a, w3b=w3b, b3=as2d(b3))


def _round_up(c, m=_LANE):
    return ((c + m - 1) // m) * m


def _pad2(m, rows, cols):
    return jnp.zeros((rows, cols), m.dtype).at[:m.shape[0], :m.shape[1]].set(m)


def _padrow(v, cols):
    v = v.reshape(1, -1)
    return jnp.zeros((1, cols), v.dtype).at[:, :v.shape[1]].set(v)


def pack_params(p, cin, cout):
    """Zero-pad all channel dims to lane width (128) and fuse weights."""
    ch = p["w1"].shape[1]
    cip, chp, cop = _round_up(cin), _round_up(ch), _round_up(cout)

    w1 = _pad2(p["w1"], cip, chp)
    b1 = _padrow(p["b1"], chp)
    # fuse ResBlock 1x1 and cv2 into one (chp, 2*chp) weight
    w12 = jnp.concatenate([_pad2(p["wr1"], chp, chp),
                           _pad2(p["w2"], chp, chp)], axis=1)
    br1 = _padrow(p["br1"], chp)
    # im2col weight: (9*chp, chp), tap order dy*3+dx
    wr3 = jnp.concatenate([_pad2(p["wr3"][k], chp, chp) for k in range(9)], axis=0)
    br3 = _padrow(p["br3"], chp)
    return dict(
        w1=w1, b1=b1, w12=w12, br1=br1, wr3=wr3, br3=br3,
        bns1=_padrow(p["bns1"], chp), bnb1=_padrow(p["bnb1"], chp),
        bns2=_padrow(p["bns2"], chp), bnb2=_padrow(p["bnb2"], chp),
        w3a=_pad2(p["w3a"], chp, cop), w3b=_pad2(p["w3b"], chp, cop),
        b3=_padrow(p["b3"], cop))


# ---------------- plain-JAX reference (same math, NHWC, unpadded) ------------


def _mish_ref(x):
    return x * jnp.tanh(jax.nn.softplus(x))


def csp_block2_ref(x_nhwc, p):
    N, H, W, Cin = x_nhwc.shape
    ch = p["w1"].shape[1]
    mm = lambda a, wmat: jnp.einsum("nhwc,cd->nhwd", a, wmat)
    x1 = _mish_ref(mm(x_nhwc, p["w1"]) + p["b1"][0])
    r1 = _mish_ref(mm(x1, p["wr1"]) + p["br1"][0])
    rp = jnp.pad(r1, ((0, 0), (1, 1), (1, 1), (0, 0)))
    acc = jnp.zeros((N, H, W, ch), jnp.float32)
    for dy in range(3):
        for dx in range(3):
            acc = acc + mm(rp[:, dy:dy + H, dx:dx + W, :], p["wr3"][dy * 3 + dx])
    y1 = _mish_ref(acc + p["br3"][0])
    y2 = mm(x1, p["w2"])
    z1 = _mish_ref(y1 * p["bns1"][0] + p["bnb1"][0])
    z2 = _mish_ref(y2 * p["bns2"][0] + p["bnb2"][0])
    return _mish_ref(mm(z1, p["w3a"]) + mm(z2, p["w3b"]) + p["b3"][0])


if __name__ == "__main__":
    key = jax.random.PRNGKey(0)
    kx, kp = jax.random.split(key)

    N, Cin, H, W = 2, 4, 16, 16
    Cout = 4  # hidden_channels == out_channels
    x_nchw = jax.random.normal(kx, (N, Cin, H, W), jnp.float32)

    params = make_params(kp, Cin, Cout)
    kparams = pack_params(params, Cin, Cout)

    # NCHW -> NHWC, zero-pad channels to lane width for the kernel.
    x_nhwc = jnp.transpose(x_nchw, (0, 2, 3, 1))
    cip = kparams["w1"].shape[0]
    x_pad = jnp.zeros((N, H, W, cip), jnp.float32).at[..., :Cin].set(x_nhwc)

    out_pad = csp_block2_pallas(x_pad, kparams)
    out_nchw = jnp.transpose(out_pad[..., :Cout], (0, 3, 1, 2))  # back to NCHW
    jax.block_until_ready(out_nchw)

    ref_nchw = jnp.transpose(csp_block2_ref(x_nhwc, params), (0, 3, 1, 2))
    err = float(jnp.max(jnp.abs(out_nchw - ref_nchw)))
    assert err < 2e-2, f"kernel/reference mismatch: max abs err = {err}"
    print("KERNEL_OK")
</pallas_src>

<mosaic_0001>
module attributes {stable_mosaic.version = 11 : i64} {
  func.func @_cspblock2_kernel(%arg0: i32, %arg1: memref<1x16x16x128xf32, #tpu.memory_space<vmem>>, %arg2: memref<128x128xf32, #tpu.memory_space<vmem>>, %arg3: memref<1x128xf32, #tpu.memory_space<vmem>>, %arg4: memref<128x256xf32, #tpu.memory_space<vmem>>, %arg5: memref<1x128xf32, #tpu.memory_space<vmem>>, %arg6: memref<1152x128xf32, #tpu.memory_space<vmem>>, %arg7: memref<1x128xf32, #tpu.memory_space<vmem>>, %arg8: memref<1x128xf32, #tpu.memory_space<vmem>>, %arg9: memref<1x128xf32, #tpu.memory_space<vmem>>, %arg10: memref<1x128xf32, #tpu.memory_space<vmem>>, %arg11: memref<1x128xf32, #tpu.memory_space<vmem>>, %arg12: memref<128x128xf32, #tpu.memory_space<vmem>>, %arg13: memref<128x128xf32, #tpu.memory_space<vmem>>, %arg14: memref<1x128xf32, #tpu.memory_space<vmem>>, %arg15: memref<1x16x16x128xf32, #tpu.memory_space<vmem>>, %arg16: memref<18x18x128xf32, #tpu.memory_space<vmem>>, %arg17: memref<256x1152xf32, #tpu.memory_space<vmem>>) attributes {dimension_semantics = [#tpu.dimension_semantics<parallel>], iteration_bounds = array<i64: 2>, scalar_prefetch = 0 : i64, scratch_operands = 2 : i64, tpu.core_type = #tpu.core_type<tc>, window_params = [{transform_indices = @transform_0, window_bounds = array<i64: 1, 16, 16, 128>}, {pipeline_mode = #tpu.pipeline_mode<synchronous>, transform_indices = @transform_1, window_bounds = array<i64: 128, 128>}, {pipeline_mode = #tpu.pipeline_mode<synchronous>, transform_indices = @transform_2, window_bounds = array<i64: 1, 128>}, {pipeline_mode = #tpu.pipeline_mode<synchronous>, transform_indices = @transform_3, window_bounds = array<i64: 128, 256>}, {pipeline_mode = #tpu.pipeline_mode<synchronous>, transform_indices = @transform_4, window_bounds = array<i64: 1, 128>}, {pipeline_mode = #tpu.pipeline_mode<synchronous>, transform_indices = @transform_5, window_bounds = array<i64: 1152, 128>}, {pipeline_mode = #tpu.pipeline_mode<synchronous>, transform_indices = @transform_6, window_bounds = array<i64: 1, 128>}, {pipeline_mode = #tpu.pipeline_mode<synchronous>, transform_indices = @transform_7, window_bounds = array<i64: 1, 128>}, {pipeline_mode = #tpu.pipeline_mode<synchronous>, transform_indices = @transform_8, window_bounds = array<i64: 1, 128>}, {pipeline_mode = #tpu.pipeline_mode<synchronous>, transform_indices = @transform_9, window_bounds = array<i64: 1, 128>}, {pipeline_mode = #tpu.pipeline_mode<synchronous>, transform_indices = @transform_10, window_bounds = array<i64: 1, 128>}, {pipeline_mode = #tpu.pipeline_mode<synchronous>, transform_indices = @transform_11, window_bounds = array<i64: 128, 128>}, {pipeline_mode = #tpu.pipeline_mode<synchronous>, transform_indices = @transform_12, window_bounds = array<i64: 128, 128>}, {pipeline_mode = #tpu.pipeline_mode<synchronous>, transform_indices = @transform_13, window_bounds = array<i64: 1, 128>}, {transform_indices = @transform_14, window_bounds = array<i64: 1, 16, 16, 128>}]} {
    %c0 = arith.constant 0 : index
    %c0_0 = arith.constant 0 : index
    %c0_1 = arith.constant 0 : index
    %c0_2 = arith.constant 0 : index
    %0 = vector.load %arg1[%c0, %c0_0, %c0_1, %c0_2] : memref<1x16x16x128xf32, #tpu.memory_space<vmem>>, vector<1x16x16x128xf32>
    %1 = vector.shape_cast %0 : vector<1x16x16x128xf32> to vector<256x128xf32>
    %c0_3 = arith.constant 0 : index
    %c0_4 = arith.constant 0 : index
    %2 = vector.load %arg2[%c0_3, %c0_4] : memref<128x128xf32, #tpu.memory_space<vmem>>, vector<128x128xf32>
    %cst = arith.constant dense<0.000000e+00> : vector<256x128xf32>
    %3 = tpu.matmul %1, %2, %cst {dimension_numbers = #tpu.dot_dimension_numbers<[1], [0], [0], [1], [0, 0, 1, 1], [], []>} : vector<256x128xf32>, vector<128x128xf32>, vector<256x128xf32> -> vector<256x128xf32>
    %c0_5 = arith.constant 0 : index
    %c0_6 = arith.constant 0 : index
    %4 = vector.load %arg3[%c0_5, %c0_6] : memref<1x128xf32, #tpu.memory_space<vmem>>, vector<1x128xf32>
    %5 = vector.broadcast %4 : vector<1x128xf32> to vector<256x128xf32>
    %6 = arith.addf %3, %5 : vector<256x128xf32>
    %cst_7 = arith.constant 2.000000e+01 : f32
    %7 = vector.broadcast %cst_7 : f32 to vector<256x128xf32>
    %8 = arith.minimumf %6, %7 : vector<256x128xf32>
    %9 = math.exp %8 : vector<256x128xf32>
    %cst_8 = arith.constant 2.000000e+00 : f32
    %10 = vector.broadcast %cst_8 : f32 to vector<256x128xf32>
    %11 = arith.addf %9, %10 : vector<256x128xf32>
    %12 = arith.mulf %9, %11 : vector<256x128xf32>
    %13 = arith.mulf %6, %12 : vector<256x128xf32>
    %cst_9 = arith.constant 2.000000e+00 : f32
    %14 = vector.broadcast %cst_9 : f32 to vector<256x128xf32>
    %15 = arith.addf %12, %14 : vector<256x128xf32>
    %16 = tpu.reciprocal %15 {approx = true} : vector<256x128xf32> -> vector<256x128xf32>
    %17 = arith.mulf %13, %16 : vector<256x128xf32>
    %c0_10 = arith.constant 0 : index
    %c0_11 = arith.constant 0 : index
    %18 = vector.load %arg4[%c0_10, %c0_11] : memref<128x256xf32, #tpu.memory_space<vmem>>, vector<128x256xf32>
    %cst_12 = arith.constant dense<0.000000e+00> : vector<256x256xf32>
    %19 = tpu.matmul %17, %18, %cst_12 {dimension_numbers = #tpu.dot_dimension_numbers<[1], [0], [0], [1], [0, 0, 1, 1], [], []>} : vector<256x128xf32>, vector<128x256xf32>, vector<256x256xf32> -> vector<256x256xf32>
    %20 = vector.extract_strided_slice %19 {offsets = [0, 0], sizes = [256, 128], strides = [1, 1]} : vector<256x256xf32> to vector<256x128xf32>
    %c0_13 = arith.constant 0 : index
    %c0_14 = arith.constant 0 : index
    %21 = vector.load %arg5[%c0_13, %c0_14] : memref<1x128xf32, #tpu.memory_space<vmem>>, vector<1x128xf32>
    %22 = vector.broadcast %21 : vector<1x128xf32> to vector<256x128xf32>
    %23 = arith.addf %20, %22 : vector<256x128xf32>
    %cst_15 = arith.constant 2.000000e+01 : f32
    %24 = vector.broadcast %cst_15 : f32 to vector<256x128xf32>
    %25 = arith.minimumf %23, %24 : vector<256x128xf32>
    %26 = math.exp %25 : vector<256x128xf32>
    %cst_16 = arith.constant 2.000000e+00 : f32
    %27 = vector.broadcast %cst_16 : f32 to vector<256x128xf32>
    %28 = arith.addf %26, %27 : vector<256x128xf32>
    %29 = arith.mulf %26, %28 : vector<256x128xf32>
    %30 = arith.mulf %23, %29 : vector<256x128xf32>
    %cst_17 = arith.constant 2.000000e+00 : f32
    %31 = vector.broadcast %cst_17 : f32 to vector<256x128xf32>
    %32 = arith.addf %29, %31 : vector<256x128xf32>
    %33 = tpu.reciprocal %32 {approx = true} : vector<256x128xf32> -> vector<256x128xf32>
    %34 = arith.mulf %30, %33 : vector<256x128xf32>
    %35 = vector.extract_strided_slice %19 {offsets = [0, 128], sizes = [256, 128], strides = [1, 1]} : vector<256x256xf32> to vector<256x128xf32>
    %c0_18 = arith.constant 0 : index
    %c0_19 = arith.constant 0 : index
    %36 = vector.load %arg10[%c0_18, %c0_19] : memref<1x128xf32, #tpu.memory_space<vmem>>, vector<1x128xf32>
    %37 = vector.broadcast %36 : vector<1x128xf32> to vector<256x128xf32>
    %38 = arith.mulf %35, %37 : vector<256x128xf32>
    %c0_20 = arith.constant 0 : index
    %c0_21 = arith.constant 0 : index
    %39 = vector.load %arg11[%c0_20, %c0_21] : memref<1x128xf32, #tpu.memory_space<vmem>>, vector<1x128xf32>
    %40 = vector.broadcast %39 : vector<1x128xf32> to vector<256x128xf32>
    %41 = arith.addf %38, %40 : vector<256x128xf32>
    %cst_22 = arith.constant 2.000000e+01 : f32
    %42 = vector.broadcast %cst_22 : f32 to vector<256x128xf32>
    %43 = arith.minimumf %41, %42 : vector<256x128xf32>
    %44 = math.exp %43 : vector<256x128xf32>
    %cst_23 = arith.constant 2.000000e+00 : f32
    %45 = vector.broadcast %cst_23 : f32 to vector<256x128xf32>
    %46 = arith.addf %44, %45 : vector<256x128xf32>
    %47 = arith.mulf %44, %46 : vector<256x128xf32>
    %48 = arith.mulf %41, %47 : vector<256x128xf32>
    %cst_24 = arith.constant 2.000000e+00 : f32
    %49 = vector.broadcast %cst_24 : f32 to vector<256x128xf32>
    %50 = arith.addf %47, %49 : vector<256x128xf32>
    %51 = tpu.reciprocal %50 {approx = true} : vector<256x128xf32> -> vector<256x128xf32>
    %52 = arith.mulf %48, %51 : vector<256x128xf32>
    %c0_25 = arith.constant 0 : index
    %c0_26 = arith.constant 0 : index
    %53 = vector.load %arg13[%c0_25, %c0_26] : memref<128x128xf32, #tpu.memory_space<vmem>>, vector<128x128xf32>
    %cst_27 = arith.constant dense<0.000000e+00> : vector<256x128xf32>
    %54 = tpu.matmul %52, %53, %cst_27 {dimension_numbers = #tpu.dot_dimension_numbers<[1], [0], [0], [1], [0, 0, 1, 1], [], []>} : vector<256x128xf32>, vector<128x128xf32>, vector<256x128xf32> -> vector<256x128xf32>
    %cst_28 = arith.constant 0.000000e+00 : f32
    %55 = vector.broadcast %cst_28 : f32 to vector<1x18x128xf32>
    %c0_29 = arith.constant 0 : index
    %c0_30 = arith.constant 0 : index
    %c0_31 = arith.constant 0 : index
    %56 = vector.load %arg16[%c0_29, %c0_30, %c0_31] : memref<18x18x128xf32, #tpu.memory_space<vmem>>, vector<1x18x128xf32>
    tpu.vector_store %arg16[%c0_29, %c0_30, %c0_31], %55 {strides = array<i32>} : memref<18x18x128xf32, #tpu.memory_space<vmem>>, vector<1x18x128xf32>,
    %cst_32 = arith.constant 0.000000e+00 : f32
    %57 = vector.broadcast %cst_32 : f32 to vector<1x18x128xf32>
    %c17 = arith.constant 17 : index
    %c0_33 = arith.constant 0 : index
    %c0_34 = arith.constant 0 : index
    %58 = vector.load %arg16[%c17, %c0_33, %c0_34] : memref<18x18x128xf32, #tpu.memory_space<vmem>>, vector<1x18x128xf32>
    tpu.vector_store %arg16[%c17, %c0_33, %c0_34], %57 {strides = array<i32>} : memref<18x18x128xf32, #tpu.memory_space<vmem>>, vector<1x18x128xf32>,
    %cst_35 = arith.constant 0.000000e+00 : f32
    %59 = vector.broadcast %cst_35 : f32 to vector<16x1x128xf32>
    %c1 = arith.constant 1 : index
    %c0_36 = arith.constant 0 : index
    %c0_37 = arith.constant 0 : index
    %60 = vector.load %arg16[%c1, %c0_36, %c0_37] : memref<18x18x128xf32, #tpu.memory_space<vmem>>, vector<16x1x128xf32>
    tpu.vector_store %arg16[%c1, %c0_36, %c0_37], %59 {strides = array<i32>} : memref<18x18x128xf32, #tpu.memory_space<vmem>>, vector<16x1x128xf32>,
    %cst_38 = arith.constant 0.000000e+00 : f32
    %61 = vector.broadcast %cst_38 : f32 to vector<16x1x128xf32>
    %c1_39 = arith.constant 1 : index
    %c17_40 = arith.constant 17 : index
    %c0_41 = arith.constant 0 : index
    %62 = vector.load %arg16[%c1_39, %c17_40, %c0_41] : memref<18x18x128xf32, #tpu.memory_space<vmem>>, vector<16x1x128xf32>
    tpu.vector_store %arg16[%c1_39, %c17_40, %c0_41], %61 {strides = array<i32>} : memref<18x18x128xf32, #tpu.memory_space<vmem>>, vector<16x1x128xf32>,
    %63 = vector.shape_cast %34 : vector<256x128xf32> to vector<16x16x128xf32>
    %c1_42 = arith.constant 1 : index
    %c1_43 = arith.constant 1 : index
    %c0_44 = arith.constant 0 : index
    %64 = vector.load %arg16[%c1_42, %c1_43, %c0_44] : memref<18x18x128xf32, #tpu.memory_space<vmem>>, vector<16x16x128xf32>
    tpu.vector_store %arg16[%c1_42, %c1_43, %c0_44], %63 {strides = array<i32>} : memref<18x18x128xf32, #tpu.memory_space<vmem>>, vector<16x16x128xf32>,
    %c0_45 = arith.constant 0 : index
    %c0_46 = arith.constant 0 : index
    %c0_47 = arith.constant 0 : index
    %65 = vector.load %arg16[%c0_45, %c0_46, %c0_47] : memref<18x18x128xf32, #tpu.memory_space<vmem>>, vector<16x16x128xf32>
    %66 = vector.shape_cast %65 : vector<16x16x128xf32> to vector<256x128xf32>
    %c0_48 = arith.constant 0 : index
    %c0_49 = arith.constant 0 : index
    %67 = vector.load %arg17[%c0_48, %c0_49] : memref<256x1152xf32, #tpu.memory_space<vmem>>, vector<256x128xf32>
    tpu.vector_store %arg17[%c0_48, %c0_49], %66 {strides = array<i32>} : memref<256x1152xf32, #tpu.memory_space<vmem>>, vector<256x128xf32>,
    %c0_50 = arith.constant 0 : index
    %c1_51 = arith.constant 1 : index
    %c0_52 = arith.constant 0 : index
    %68 = vector.load %arg16[%c0_50, %c1_51, %c0_52] : memref<18x18x128xf32, #tpu.memory_space<vmem>>, vector<16x16x128xf32>
    %69 = vector.shape_cast %68 : vector<16x16x128xf32> to vector<256x128xf32>
    %c0_53 = arith.constant 0 : index
    %c128 = arith.constant 128 : index
    %70 = vector.load %arg17[%c0_53, %c128] : memref<256x1152xf32, #tpu.memory_space<vmem>>, vector<256x128xf32>
    tpu.vector_store %arg17[%c0_53, %c128], %69 {strides = array<i32>} : memref<256x1152xf32, #tpu.memory_space<vmem>>, vector<256x128xf32>,
    %c0_54 = arith.constant 0 : index
    %c2 = arith.constant 2 : index
    %c0_55 = arith.constant 0 : index
    %71 = vector.load %arg16[%c0_54, %c2, %c0_55] : memref<18x18x128xf32, #tpu.memory_space<vmem>>, vector<16x16x128xf32>
    %72 = vector.shape_cast %71 : vector<16x16x128xf32> to vector<256x128xf32>
    %c0_56 = arith.constant 0 : index
    %c256 = arith.constant 256 : index
    %73 = vector.load %arg17[%c0_56, %c256] : memref<256x1152xf32, #tpu.memory_space<vmem>>, vector<256x128xf32>
    tpu.vector_store %arg17[%c0_56, %c256], %72 {strides = array<i32>} : memref<256x1152xf32, #tpu.memory_space<vmem>>, vector<256x128xf32>,
    %c1_57 = arith.constant 1 : index
    %c0_58 = arith.constant 0 : index
    %c0_59 = arith.constant 0 : index
    %74 = vector.load %arg16[%c1_57, %c0_58, %c0_59] : memref<18x18x128xf32, #tpu.memory_space<vmem>>, vector<16x16x128xf32>
    %75 = vector.shape_cast %74 : vector<16x16x128xf32> to vector<256x128xf32>
    %c0_60 = arith.constant 0 : index
    %c384 = arith.constant 384 : index
    %76 = vector.load %arg17[%c0_60, %c384] : memref<256x1152xf32, #tpu.memory_space<vmem>>, vector<256x128xf32>
    tpu.vector_store %arg17[%c0_60, %c384], %75 {strides = array<i32>} : memref<256x1152xf32, #tpu.memory_space<vmem>>, vector<256x128xf32>,
    %c1_61 = arith.constant 1 : index
    %c1_62 = arith.constant 1 : index
    %c0_63 = arith.constant 0 : index
    %77 = vector.load %arg16[%c1_61, %c1_62, %c0_63] : memref<18x18x128xf32, #tpu.memory_space<vmem>>, vector<16x16x128xf32>
    %78 = vector.shape_cast %77 : vector<16x16x128xf32> to vector<256x128xf32>
    %c0_64 = arith.constant 0 : index
    %c512 = arith.constant 512 : index
    %79 = vector.load %arg17[%c0_64, %c512] : memref<256x1152xf32, #tpu.memory_space<vmem>>, vector<256x128xf32>
    tpu.vector_store %arg17[%c0_64, %c512], %78 {strides = array<i32>} : memref<256x1152xf32, #tpu.memory_space<vmem>>, vector<256x128xf32>,
    %c1_65 = arith.constant 1 : index
    %c2_66 = arith.constant 2 : index
    %c0_67 = arith.constant 0 : index
    %80 = vector.load %arg16[%c1_65, %c2_66, %c0_67] : memref<18x18x128xf32, #tpu.memory_space<vmem>>, vector<16x16x128xf32>
    %81 = vector.shape_cast %80 : vector<16x16x128xf32> to vector<256x128xf32>
    %c0_68 = arith.constant 0 : index
    %c640 = arith.constant 640 : index
    %82 = vector.load %arg17[%c0_68, %c640] : memref<256x1152xf32, #tpu.memory_space<vmem>>, vector<256x128xf32>
    tpu.vector_store %arg17[%c0_68, %c640], %81 {strides = array<i32>} : memref<256x1152xf32, #tpu.memory_space<vmem>>, vector<256x128xf32>,
    %c2_69 = arith.constant 2 : index
    %c0_70 = arith.constant 0 : index
    %c0_71 = arith.constant 0 : index
    %83 = vector.load %arg16[%c2_69, %c0_70, %c0_71] : memref<18x18x128xf32, #tpu.memory_space<vmem>>, vector<16x16x128xf32>
    %84 = vector.shape_cast %83 : vector<16x16x128xf32> to vector<256x128xf32>
    %c0_72 = arith.constant 0 : index
    %c768 = arith.constant 768 : index
    %85 = vector.load %arg17[%c0_72, %c768] : memref<256x1152xf32, #tpu.memory_space<vmem>>, vector<256x128xf32>
    tpu.vector_store %arg17[%c0_72, %c768], %84 {strides = array<i32>} : memref<256x1152xf32, #tpu.memory_space<vmem>>, vector<256x128xf32>,
    %c2_73 = arith.constant 2 : index
    %c1_74 = arith.constant 1 : index
    %c0_75 = arith.constant 0 : index
    %86 = vector.load %arg16[%c2_73, %c1_74, %c0_75] : memref<18x18x128xf32, #tpu.memory_space<vmem>>, vector<16x16x128xf32>
    %87 = vector.shape_cast %86 : vector<16x16x128xf32> to vector<256x128xf32>
    %c0_76 = arith.constant 0 : index
    %c896 = arith.constant 896 : index
    %88 = vector.load %arg17[%c0_76, %c896] : memref<256x1152xf32, #tpu.memory_space<vmem>>, vector<256x128xf32>
    tpu.vector_store %arg17[%c0_76, %c896], %87 {strides = array<i32>} : memref<256x1152xf32, #tpu.memory_space<vmem>>, vector<256x128xf32>,
    %c2_77 = arith.constant 2 : index
    %c2_78 = arith.constant 2 : index
    %c0_79 = arith.constant 0 : index
    %89 = vector.load %arg16[%c2_77, %c2_78, %c0_79] : memref<18x18x128xf32, #tpu.memory_space<vmem>>, vector<16x16x128xf32>
    %90 = vector.shape_cast %89 : vector<16x16x128xf32> to vector<256x128xf32>
    %c0_80 = arith.constant 0 : index
    %c1024 = arith.constant 1024 : index
    %91 = vector.load %arg17[%c0_80, %c1024] : memref<256x1152xf32, #tpu.memory_space<vmem>>, vector<256x128xf32>
    tpu.vector_store %arg17[%c0_80, %c1024], %90 {strides = array<i32>} : memref<256x1152xf32, #tpu.memory_space<vmem>>, vector<256x128xf32>,
    %c0_81 = arith.constant 0 : index
    %c0_82 = arith.constant 0 : index
    %92 = vector.load %arg17[%c0_81, %c0_82] : memref<256x1152xf32, #tpu.memory_space<vmem>>, vector<256x1152xf32>
    %c0_83 = arith.constant 0 : index
    %c0_84 = arith.constant 0 : index
    %93 = vector.load %arg6[%c0_83, %c0_84] : memref<1152x128xf32, #tpu.memory_space<vmem>>, vector<1152x128xf32>
    %cst_85 = arith.constant dense<0.000000e+00> : vector<256x128xf32>
    %94 = tpu.matmul %92, %93, %cst_85 {dimension_numbers = #tpu.dot_dimension_numbers<[1], [0], [0], [1], [0, 0, 1, 1], [], []>} : vector<256x1152xf32>, vector<1152x128xf32>, vector<256x128xf32> -> vector<256x128xf32>
    %c0_86 = arith.constant 0 : index
    %c0_87 = arith.constant 0 : index
    %95 = vector.load %arg7[%c0_86, %c0_87] : memref<1x128xf32, #tpu.memory_space<vmem>>, vector<1x128xf32>
    %96 = vector.broadcast %95 : vector<1x128xf32> to vector<256x128xf32>
    %97 = arith.addf %94, %96 : vector<256x128xf32>
    %cst_88 = arith.constant 2.000000e+01 : f32
    %98 = vector.broadcast %cst_88 : f32 to vector<256x128xf32>
    %99 = arith.minimumf %97, %98 : vector<256x128xf32>
    %100 = math.exp %99 : vector<256x128xf32>
    %cst_89 = arith.constant 2.000000e+00 : f32
    %101 = vector.broadcast %cst_89 : f32 to vector<256x128xf32>
    %102 = arith.addf %100, %101 : vector<256x128xf32>
    %103 = arith.mulf %100, %102 : vector<256x128xf32>
    %104 = arith.mulf %97, %103 : vector<256x128xf32>
    %cst_90 = arith.constant 2.000000e+00 : f32
    %105 = vector.broadcast %cst_90 : f32 to vector<256x128xf32>
    %106 = arith.addf %103, %105 : vector<256x128xf32>
    %107 = tpu.reciprocal %106 {approx = true} : vector<256x128xf32> -> vector<256x128xf32>
    %108 = arith.mulf %104, %107 : vector<256x128xf32>
    %c0_91 = arith.constant 0 : index
    %c0_92 = arith.constant 0 : index
    %109 = vector.load %arg8[%c0_91, %c0_92] : memref<1x128xf32, #tpu.memory_space<vmem>>, vector<1x128xf32>
    %110 = vector.broadcast %109 : vector<1x128xf32> to vector<256x128xf32>
    %111 = arith.mulf %108, %110 : vector<256x128xf32>
    %c0_93 = arith.constant 0 : index
    %c0_94 = arith.constant 0 : index
    %112 = vector.load %arg9[%c0_93, %c0_94] : memref<1x128xf32, #tpu.memory_space<vmem>>, vector<1x128xf32>
    %113 = vector.broadcast %112 : vector<1x128xf32> to vector<256x128xf32>
    %114 = arith.addf %111, %113 : vector<256x128xf32>
    %cst_95 = arith.constant 2.000000e+01 : f32
    %115 = vector.broadcast %cst_95 : f32 to vector<256x128xf32>
    %116 = arith.minimumf %114, %115 : vector<256x128xf32>
    %117 = math.exp %116 : vector<256x128xf32>
    %cst_96 = arith.constant 2.000000e+00 : f32
    %118 = vector.broadcast %cst_96 : f32 to vector<256x128xf32>
    %119 = arith.addf %117, %118 : vector<256x128xf32>
    %120 = arith.mulf %117, %119 : vector<256x128xf32>
    %121 = arith.mulf %114, %120 : vector<256x128xf32>
    %cst_97 = arith.constant 2.000000e+00 : f32
    %122 = vector.broadcast %cst_97 : f32 to vector<256x128xf32>
    %123 = arith.addf %120, %122 : vector<256x128xf32>
    %124 = tpu.reciprocal %123 {approx = true} : vector<256x128xf32> -> vector<256x128xf32>
    %125 = arith.mulf %121, %124 : vector<256x128xf32>
    %c0_98 = arith.constant 0 : index
    %c0_99 = arith.constant 0 : index
    %126 = vector.load %arg12[%c0_98, %c0_99] : memref<128x128xf32, #tpu.memory_space<vmem>>, vector<128x128xf32>
    %cst_100 = arith.constant dense<0.000000e+00> : vector<256x128xf32>
    %127 = tpu.matmul %125, %126, %cst_100 {dimension_numbers = #tpu.dot_dimension_numbers<[1], [0], [0], [1], [0, 0, 1, 1], [], []>} : vector<256x128xf32>, vector<128x128xf32>, vector<256x128xf32> -> vector<256x128xf32>
    %128 = arith.addf %127, %54 : vector<256x128xf32>
    %c0_101 = arith.constant 0 : index
    %c0_102 = arith.constant 0 : index
    %129 = vector.load %arg14[%c0_101, %c0_102] : memref<1x128xf32, #tpu.memory_space<vmem>>, vector<1x128xf32>
    %130 = vector.broadcast %129 : vector<1x128xf32> to vector<256x128xf32>
    %131 = arith.addf %128, %130 : vector<256x128xf32>
    %cst_103 = arith.constant 2.000000e+01 : f32
    %132 = vector.broadcast %cst_103 : f32 to vector<256x128xf32>
    %133 = arith.minimumf %131, %132 : vector<256x128xf32>
    %134 = math.exp %133 : vector<256x128xf32>
    %cst_104 = arith.constant 2.000000e+00 : f32
    %135 = vector.broadcast %cst_104 : f32 to vector<256x128xf32>
    %136 = arith.addf %134, %135 : vector<256x128xf32>
    %137 = arith.mulf %134, %136 : vector<256x128xf32>
    %138 = arith.mulf %131, %137 : vector<256x128xf32>
    %cst_105 = arith.constant 2.000000e+00 : f32
    %139 = vector.broadcast %cst_105 : f32 to vector<256x128xf32>
    %140 = arith.addf %137, %139 : vector<256x128xf32>
    %141 = tpu.reciprocal %140 {approx = true} : vector<256x128xf32> -> vector<256x128xf32>
    %142 = arith.mulf %138, %141 : vector<256x128xf32>
    %143 = vector.shape_cast %142 : vector<256x128xf32> to vector<1x16x16x128xf32>
    %c0_106 = arith.constant 0 : index
    %c0_107 = arith.constant 0 : index
    %c0_108 = arith.constant 0 : index
    %c0_109 = arith.constant 0 : index
    %144 = vector.load %arg15[%c0_106, %c0_107, %c0_108, %c0_109] : memref<1x16x16x128xf32, #tpu.memory_space<vmem>>, vector<1x16x16x128xf32>
    tpu.vector_store %arg15[%c0_106, %c0_107, %c0_108, %c0_109], %143 {strides = array<i32>} : memref<1x16x16x128xf32, #tpu.memory_space<vmem>>, vector<1x16x16x128xf32>,
    return
  }
  func.func @transform_0(%arg0: i32) -> (i32, i32, i32, i32) {
    %c0_i32 = arith.constant 0 : i32
    %c0_i32_0 = arith.constant 0 : i32
    %c0_i32_1 = arith.constant 0 : i32
    %c0_i32_2 = arith.constant 0 : i32
    return %arg0, %c0_i32, %c0_i32_0, %c0_i32_1 : i32, i32, i32, i32
  }
  func.func @transform_1(%arg0: i32) -> (i32, i32) {
    %c0_i32 = arith.constant 0 : i32
    %c0_i32_0 = arith.constant 0 : i32
    %c0_i32_1 = arith.constant 0 : i32
    return %c0_i32, %c0_i32_0 : i32, i32
  }
  func.func @transform_2(%arg0: i32) -> (i32, i32) {
    %c0_i32 = arith.constant 0 : i32
    %c0_i32_0 = arith.constant 0 : i32
    %c0_i32_1 = arith.constant 0 : i32
    return %c0_i32, %c0_i32_0 : i32, i32
  }
  func.func @transform_3(%arg0: i32) -> (i32, i32) {
    %c0_i32 = arith.constant 0 : i32
    %c0_i32_0 = arith.constant 0 : i32
    %c0_i32_1 = arith.constant 0 : i32
    return %c0_i32, %c0_i32_0 : i32, i32
  }
  func.func @transform_4(%arg0: i32) -> (i32, i32) {
    %c0_i32 = arith.constant 0 : i32
    %c0_i32_0 = arith.constant 0 : i32
    %c0_i32_1 = arith.constant 0 : i32
    return %c0_i32, %c0_i32_0 : i32, i32
  }
  func.func @transform_5(%arg0: i32) -> (i32, i32) {
    %c0_i32 = arith.constant 0 : i32
    %c0_i32_0 = arith.constant 0 : i32
    %c0_i32_1 = arith.constant 0 : i32
    return %c0_i32, %c0_i32_0 : i32, i32
  }
  func.func @transform_6(%arg0: i32) -> (i32, i32) {
    %c0_i32 = arith.constant 0 : i32
    %c0_i32_0 = arith.constant 0 : i32
    %c0_i32_1 = arith.constant 0 : i32
    return %c0_i32, %c0_i32_0 : i32, i32
  }
  func.func @transform_7(%arg0: i32) -> (i32, i32) {
    %c0_i32 = arith.constant 0 : i32
    %c0_i32_0 = arith.constant 0 : i32
    %c0_i32_1 = arith.constant 0 : i32
    return %c0_i32, %c0_i32_0 : i32, i32
  }
  func.func @transform_8(%arg0: i32) -> (i32, i32) {
    %c0_i32 = arith.constant 0 : i32
    %c0_i32_0 = arith.constant 0 : i32
    %c0_i32_1 = arith.constant 0 : i32
    return %c0_i32, %c0_i32_0 : i32, i32
  }
  func.func @transform_9(%arg0: i32) -> (i32, i32) {
    %c0_i32 = arith.constant 0 : i32
    %c0_i32_0 = arith.constant 0 : i32
    %c0_i32_1 = arith.constant 0 : i32
    return %c0_i32, %c0_i32_0 : i32, i32
  }
  func.func @transform_10(%arg0: i32) -> (i32, i32) {
    %c0_i32 = arith.constant 0 : i32
    %c0_i32_0 = arith.constant 0 : i32
    %c0_i32_1 = arith.constant 0 : i32
    return %c0_i32, %c0_i32_0 : i32, i32
  }
  func.func @transform_11(%arg0: i32) -> (i32, i32) {
    %c0_i32 = arith.constant 0 : i32
    %c0_i32_0 = arith.constant 0 : i32
    %c0_i32_1 = arith.constant 0 : i32
    return %c0_i32, %c0_i32_0 : i32, i32
  }
  func.func @transform_12(%arg0: i32) -> (i32, i32) {
    %c0_i32 = arith.constant 0 : i32
    %c0_i32_0 = arith.constant 0 : i32
    %c0_i32_1 = arith.constant 0 : i32
    return %c0_i32, %c0_i32_0 : i32, i32
  }
  func.func @transform_13(%arg0: i32) -> (i32, i32) {
    %c0_i32 = arith.constant 0 : i32
    %c0_i32_0 = arith.constant 0 : i32
    %c0_i32_1 = arith.constant 0 : i32
    return %c0_i32, %c0_i32_0 : i32, i32
  }
  func.func @transform_14(%arg0: i32) -> (i32, i32, i32, i32) {
    %c0_i32 = arith.constant 0 : i32
    %c0_i32_0 = arith.constant 0 : i32
    %c0_i32_1 = arith.constant 0 : i32
    %c0_i32_2 = arith.constant 0 : i32
    return %arg0, %c0_i32, %c0_i32_0, %c0_i32_1 : i32, i32, i32, i32
  }
}

</mosaic_0001>

<bundles_post_ra>
// kernel: tpu_custom_call.1
= control target key start
LH: loop header
LB: loop body
LE: loop exit
PB: predicated region body
PF: predicated region fallthrough
CT: control target
= control target key end

     0   :  { %s11169_s0 = inlined_call_operand.hbm [shape: f32[2,16,16,128], index: 0, kind: input, shape index: {}]   ;;  %s11170_s1 = inlined_call_operand.hbm [shape: f32[128,128], index: 1, kind: input, shape index: {}]   ;;  %s11171_s2 = inlined_call_operand.vmem [shape: f32[1,128], index: 2, kind: input, shape index: {}]   ;;  %s11172_s3 = inlined_call_operand.hbm [shape: f32[128,256], index: 3, kind: input, shape index: {}]   ;;  %s11173_s4 = inlined_call_operand.vmem [shape: f32[1,128], index: 4, kind: input, shape index: {}]   ;;  %s11174_s5 = inlined_call_operand.hbm [shape: f32[1152,128], index: 5, kind: input, shape index: {}]   ;;  %s11175_s6 = inlined_call_operand.vmem [shape: f32[1,128], index: 6, kind: input, shape index: {}]   ;;  %s11176_s7 = inlined_call_operand.vmem [shape: f32[1,128], index: 7, kind: input, shape index: {}]   ;;  %s11177_s8 = inlined_call_operand.vmem [shape: f32[1,128], index: 8, kind: input, shape index: {}]   ;;  %s11178_s9 = inlined_call_operand.vmem [shape: f32[1,128], index: 9, kind: input, shape index: {}]   ;;  %s11179_s10 = inlined_call_operand.vmem [shape: f32[1,128], index: 10, kind: input, shape index: {}]   ;;  %s11180_s11 = inlined_call_operand.hbm [shape: f32[128,128], index: 11, kind: input, shape index: {}]   ;;  %s11181_s12 = inlined_call_operand.hbm [shape: f32[128,128], index: 12, kind: input, shape index: {}]   ;;  %s11182_s13 = inlined_call_operand.vmem [shape: f32[1,128], index: 13, kind: input, shape index: {}]   ;;  %s11183_s14 = inlined_call_operand.hbm [shape: f32[2,16,16,128], index: 14, kind: output, shape index: {}]  }
   0x1   :  { %11206 = sst [smem:[#allocation32_spill]] %s11170_s1 }
   0x2   :  { %11207 = sst [smem:[#allocation33_spill]] %s11174_s5 }
   0x3   :  { %11208 = sst [smem:[#allocation34_spill]] %s11175_s6 }
   0x4   :  { %11209 = sst [smem:[#allocation35_spill]] %s11176_s7 }
   0x5   :  { %11210 = sst [smem:[#allocation36_spill]] %s11177_s8 }
   0x6   :  { %11211 = sst [smem:[#allocation37_spill]] %s11179_s10 }
   0x7   :  { %11212 = sst [smem:[#allocation38_spill]] %s11182_s13 }
   0x8   :  { %11213 = sst [smem:[#allocation39_spill]] %s11183_s14 }
   0x9   :  { %19 = vsyncpa [#allocation5], 0 }
   0xa   :  { %21 = vsyncpa [#allocation5 + $0x1], 0 }
   0xb   :  { %22 = vsyncpa [#allocation8], 0 }
   0xc   :  { %23 = vsyncpa [#allocation11], 0 }
   0xd   :  { %24 = vsyncpa [#allocation14], 0 }
   0xe   :  { %25 = vsyncpa [#allocation6], 0 }
   0xf   :  { %27 = vsyncpa [#allocation6 + $0x1], 0  ;;  %s8303_s29 = smov 0   ;;  %s8305_s30 = smov 0  }
  0x10   :  { %s8307_s15 = smov 0   ;;  %s8309_s16 = smov 0  }
  0x11 LB: > { %s8213_s17 = smov [#allocation7]   ;;  %s8324_s19 = sadd.s32 4294967295, %s8211_s16   ;;  %s8211_s16 = sphi %s8309_s16, %s11285_s16   ;;  %s8207_s15 = sphi %s8307_s15, %s11284_s15   ;;  %s8203_s30 = sphi %s8305_s30, %s11283_s30   ;;  %s8199_s29 = sphi %s8303_s29, %s11282_s29  }
  0x12   : > { %s375_s18 = sshll.u32 %s8213_s17, 4  ;;  %p5953_p0 = scmp.ge.s32.totalorder %s8211_s16, 1  ;;  %s8329_s18 = int_to_ptr.vmem [resolvable:$true] %s375_s18 }
  0x13   : > { %p11192_p1 = scmp.eq.s32.totalorder %s8324_s19, 0  ;;  %p363_p2 = scmp.lt.s32.totalorder %s8211_s16, 3 }
  0x14   : > { %s8214_s21 = smov [#allocation10]   ;;  %s8215_s24 = smov [#allocation9]  }
  0x15   : > { %p8331_p3 = pnand %p5953_p0, %p363_p2  ;;  %s407_s22 = sshll.u32 %s8214_s21, 4  ;;  %s8344_s22 = int_to_ptr.vmem [resolvable:$true] %s407_s22 }
  0x16   : > { %s391_s25 = sshll.u32 %s8215_s24, 4  ;;  %s11216_s1 = sld [smem:[#allocation32_spill]]  ;;  %s8346_s25 = int_to_ptr.vmem [resolvable:$true] %s391_s25 }
  0x17   : > { %s11214_s20 = scalar_select %p8331_p3, 1, 0 }
  0x18   : > { %p7098_p5 = pneg %p8331_p3 }
  0x1a   : > { %p8340_p6 = pnand %p7098_p5, %p11192_p1 }
  0x1c   : > { %s7963_s28 = scalar_lea.hbm %s11216_s1, 2048  ;;  %p8356_p8 = pneg %p8340_p6 }
  0x1d   : > { %p7964_p7 = scmp.ne.s32.totalorder %s11216_s1, %s7963_s28  ;;  %p7970_p11 = scmp.lt.u32.totalorder %s7963_s28, %s11216_s1 }
  0x1f   : > { %p7966_p9 = pnand %p8356_p8, %p7964_p7 }
  0x21   : > { %p7967_p10 = pneg %p7966_p9 }
  0x23   : > { %p7972_p12 = pnand %p7970_p11, %p7967_p10 }
  0x25   : > { %7975 = shalt.err (!%p7972_p12)
}
  0x26   : > { %s7976_s14 = scalar_lea.vmem %s8329_s18, 2048  ;;  %p7984_p5 = scmp.lt.s32.totalorder %s8329_s18, %s8329_s18 }
  0x27   : > { %p7977_p13 = scmp.ne.s32.totalorder %s8329_s18, %s7976_s14  ;;  %p7985_p4 = scmp.lt.s32.totalorder %s7976_s14, %s7976_s14 }
  0x29   : > { %p7979_p0 = pnand %p7977_p13, %p8356_p8  ;;  %p7986_p7 = por %p7985_p4, %p7984_p5 }
  0x2b   : > { %p7980_p2 = pneg %p7979_p0 }
  0x2d   : > { %p7987_p9 = pnand %p7986_p7, %p7980_p2 }
  0x2f   : > { %7990 = shalt.err (!%p7987_p9)
}
  0x30   : > { %s11188_s26 = smov 128   ;;  %s11190_s13 = smov 8  }
  0x31   : > { %7101 = dma.hbm_to_vmem [thread:$0]  (!%p8340_p6), %s11216_s1, 2048, %s8329_s18, [#allocation8], %s11188_s26, %s11188_s26, %s11190_s13  }
  0x32   : > { %s11218_s5 = sld [smem:[#allocation33_spill]] }
  0x38   : > { %s7991_s14 = scalar_lea.hbm %s11218_s5, 18432 }
  0x39   : > { %p7992_p4 = scmp.ne.s32.totalorder %s11218_s5, %s7991_s14  ;;  %p7998_p12 = scmp.lt.u32.totalorder %s7991_s14, %s11218_s5 }
  0x3b   : > { %p7994_p10 = pnand %p7992_p4, %p8356_p8 }
  0x3d   : > { %p7995_p11 = pneg %p7994_p10 }
  0x3f   : > { %p8000_p13 = pnand %p7998_p12, %p7995_p11 }
  0x41   : > { %8003 = shalt.err (!%p8000_p13)
}
  0x42   : > { %s8004_s18 = scalar_lea.vmem %s8344_s22, 18432  ;;  %p8012_p7 = scmp.lt.s32.totalorder %s8344_s22, %s8344_s22 }
  0x43   : > { %p8005_p0 = scmp.ne.s32.totalorder %s8344_s22, %s8004_s18  ;;  %p8013_p9 = scmp.lt.s32.totalorder %s8004_s18, %s8004_s18 }
  0x45   : > { %p8007_p2 = pnand %p8005_p0, %p8356_p8  ;;  %p8014_p4 = por %p8013_p9, %p8012_p7 }
  0x47   : > { %p8008_p5 = pneg %p8007_p2 }
  0x49   : > { %p8015_p10 = pnand %p8014_p4, %p8008_p5 }
  0x4b   : > { %8018 = shalt.err (!%p8015_p10)
}
  0x4c   : > { %7107 = dma.hbm_to_vmem [thread:$0]  (!%p8340_p6), %s11218_s5, 18432, %s8344_s22, [#allocation11], %s11188_s26, %s11188_s26, %s11190_s13  }
  0x4d   : > { %s8019_s27 = scalar_lea.hbm %s11172_s3, 4096 }
  0x4e   : > { %p8020_p11 = scmp.ne.s32.totalorder %s11172_s3, %s8019_s27  ;;  %p8026_p0 = scmp.lt.u32.totalorder %s8019_s27, %s11172_s3 }
  0x50   : > { %p8022_p12 = pnand %p8020_p11, %p8356_p8 }
  0x52   : > { %p8023_p13 = pneg %p8022_p12 }
  0x54   : > { %p8028_p2 = pnand %p8026_p0, %p8023_p13 }
  0x56   : > { %8031 = shalt.err (!%p8028_p2)
}
  0x57   : > { %s8032_s22 = scalar_lea.vmem %s8346_s25, 4096  ;;  %p8040_p4 = scmp.lt.s32.totalorder %s8346_s25, %s8346_s25 }
  0x58   : > { %p8033_p5 = scmp.ne.s32.totalorder %s8346_s25, %s8032_s22  ;;  %p8041_p10 = scmp.lt.s32.totalorder %s8032_s22, %s8032_s22 }
  0x5a   : > { %p8035_p7 = pnand %p8033_p5, %p8356_p8  ;;  %p8042_p11 = por %p8041_p10, %p8040_p4 }
  0x5c   : > { %p8036_p9 = pneg %p8035_p7 }
  0x5e   : > { %p8043_p12 = pnand %p8042_p11, %p8036_p9 }
  0x60   : > { %8046 = shalt.err (!%p8043_p12)
}
  0x61   : > { %s8218_s18 = smov 256   ;;  %s8219_s6 = smov 16  }
  0x62   : > { %7104 = dma.hbm_to_vmem [thread:$0]  (!%p8340_p6), %s11172_s3, 4096, %s8346_s25, [#allocation8], %s8218_s18, %s8218_s18, %s8219_s6  }
  0x63   : > { %s8220_s10 = smov [#allocation12]   ;;  %s8221_s28 = smov [#allocation13]  }
  0x64   : > { %s435_s27 = sshll.u32 %s8220_s10, 4  ;;  %s448_s17 = sshll.u32 %s8221_s28, 4  ;;  %s436_s27 = int_to_ptr.vmem [resolvable:$true] %s435_s27  ;;  %s449_s17 = int_to_ptr.vmem [resolvable:$true] %s448_s17 }
  0x65   : > { %s8047_s22 = scalar_lea.hbm %s11180_s11, 2048 }
  0x66   : > { %p8048_p13 = scmp.ne.s32.totalorder %s11180_s11, %s8047_s22  ;;  %p8054_p5 = scmp.lt.u32.totalorder %s8047_s22, %s11180_s11 }
  0x68   : > { %p8050_p0 = pnand %p8048_p13, %p8356_p8 }
  0x6a   : > { %p8051_p2 = pneg %p8050_p0 }
  0x6c   : > { %p8056_p7 = pnand %p8054_p5, %p8051_p2 }
  0x6e   : > { %8059 = shalt.err (!%p8056_p7)
}
  0x6f   : > { %s8060_s25 = scalar_lea.vmem %s436_s27, 2048  ;;  %p8068_p11 = scmp.lt.s32.totalorder %s436_s27, %s436_s27 }
  0x70   : > { %p8061_p9 = scmp.ne.s32.totalorder %s436_s27, %s8060_s25  ;;  %p8069_p12 = scmp.lt.s32.totalorder %s8060_s25, %s8060_s25 }
  0x72   : > { %p8063_p4 = pnand %p8061_p9, %p8356_p8  ;;  %p8070_p1 = por %p8069_p12, %p8068_p11 }
  0x74   : > { %p8064_p10 = pneg %p8063_p4 }
  0x76   : > { %p8071_p3 = pnand %p8070_p1, %p8064_p10 }
  0x78   : > { %8074 = shalt.err (!%p8071_p3)
}
  0x79   : > { %s11219_s26 = smov 8   ;;  %s11220_s13 = smov 128  }
  0x7a   : > { %7110 = dma.hbm_to_vmem [thread:$0]  (!%p8340_p6), %s11180_s11, 2048, %s436_s27, [#allocation11], %s11220_s13, %s11220_s13, %s11219_s26  }
  0x7b   : > { %s8075_s7 = scalar_lea.hbm %s11181_s12, 2048 }
  0x7c   : > { %p8076_p1 = scmp.ne.s32.totalorder %s11181_s12, %s8075_s7  ;;  %p8082_p0 = scmp.lt.u32.totalorder %s8075_s7, %s11181_s12 }
  0x7e   : > { %p8078_p3 = pnand %p8076_p1, %p8356_p8 }
  0x80   : > { %p8079_p13 = pneg %p8078_p3 }
  0x82   : > { %p8084_p2 = pnand %p8082_p0, %p8079_p13 }
  0x84   : > { %8087 = shalt.err (!%p8084_p2)
}
  0x85   : > { %s8088_s14 = scalar_lea.vmem %s449_s17, 2048  ;;  %p8096_p4 = scmp.lt.s32.totalorder %s449_s17, %s449_s17 }
  0x86   : > { %p8089_p5 = scmp.ne.s32.totalorder %s449_s17, %s8088_s14  ;;  %p8097_p10 = scmp.lt.s32.totalorder %s8088_s14, %s8088_s14 }
  0x88   : > { %p8091_p7 = pnand %p8089_p5, %p8356_p8  ;;  %p8098_p11 = por %p8097_p10, %p8096_p4 }
  0x8a   : > { %p8092_p9 = pneg %p8091_p7 }
  0x8c   : > { %p8099_p12 = pnand %p8098_p11, %p8092_p9 }
  0x8e   : > { %8102 = shalt.err (!%p8099_p12)
}
  0x8f   : > { %7113 = dma.hbm_to_vmem [thread:$0]  (!%p8340_p6), %s11181_s12, 2048, %s449_s17, [#allocation14], %s11220_s13, %s11220_s13, %s11219_s26  }
  0x90   : > { %s5952_s23 = sadd.s32 4294967294, %s8211_s16   ;;  %s8473_s21 = sadd.s32 1, %s8211_s16  }
  0x91   : > { %s40_s25 = sadd.s32 1, %s8207_s15  ;;  %s37_s1 = ssub.s32 %s8211_s16, %s8473_s21 }
  0x92   : > { %p47_p8 = scmp.ne.s32.totalorder %s8207_s15, %s8203_s30  ;;  %p38_p1 = scmp.eq.s32.totalorder %s37_s1, 0 }
  0x93   : > { %p48_p3 = scmp.eq.s32.totalorder %s8211_s16, 0  ;;  %p53_p13 = scmp.ne.s32.totalorder %s8203_s30, %s8199_s29 }
  0x94   : > { %p350_p0 = scmp.eq.s32.totalorder %s8324_s19, 1  ;;  %p11221_p5 = scmp.eq.s32.totalorder %s8324_s19, 0 }
  0x95   : > { %s8485_s5 = scalar_select %p38_p1, %s8207_s15, %s40_s25  }
  0x96   : > { %p49_p2 = por %p48_p3, %p47_p8  ;;  %p8489_p7 = por %p11221_p5, %p53_p13 }
  0x97   : > { %p8493_p6 = por %p350_p0, %p47_p8  ;;  %p356_p9 = scmp.eq.s32.totalorder %s5952_s23, 1 }
  0x98   : > { %p7127_p4 = scmp.lt.s32.totalorder %s8211_s16, 2  ;;  %s465_s6 = sand.u32 1, %s8207_s15  }
  0x99   : > { %s11223_s17 = scalar_select %p8493_p6, 1, 0 }
  0x9a   : > { %p8499_p10 = por %p356_p9, %p53_p13  ;;  %s5960_s8 = sshll.u32 %s465_s6, 8 }
  0x9b   : > { %s5984_s10 = sshll.u32 %s8211_s16, 12  ;;  %s469_s27 = scalar_lea.vmem [#allocation4], %s5960_s8 }
  0x9c   : > { %s11224_s7 = scalar_select %p8499_p10, 1, 0 }
  0x9d   : > { %s8507_s14 = scalar_lea.hbm %s11169_s0, %s5984_s10  ;;  %s476_s22 = sshll.u32 %s469_s27, 4  ;;  %s8513_s22 = int_to_ptr.vmem [resolvable:$true] %s476_s22 }
  0x9e   : > { %p8509_p11 = pnand %p7127_p4, %p49_p2  ;;  %s8515_s25 = scalar_lea.sflag [#allocation5], %s465_s6 }
  0x9f   : > { %s8103_s1 = scalar_lea.hbm %s8507_s14, 4096  ;;  %s8108_s28 = scalar_lea.hbm %s11169_s0, 8192 }
  0xa0   : > { %p8104_p12 = scmp.ne.s32.totalorder %s8507_s14, %s8103_s1  ;;  %p8105_p8 = pneg %p8509_p11 }
  0xa1   : > { %p8109_p13 = scmp.lt.u32.totalorder %s8507_s14, %s11169_s0  ;;  %p8110_p0 = scmp.lt.u32.totalorder %s8108_s28, %s8103_s1 }
  0xa2   : > { %p8106_p1 = pnand %p8105_p8, %p8104_p12  ;;  %p8112_p5 = scmp.lt.u32.totalorder %s8103_s1, %s8507_s14 }
  0xa3   : > { %p8111_p2 = por %p8110_p0, %p8109_p13 }
  0xa4   : > { %p8107_p3 = pneg %p8106_p1 }
  0xa5   : > { %p8113_p9 = por %p8112_p5, %p8111_p2 }
  0xa7   : > { %p8114_p4 = pnand %p8113_p9, %p8107_p3 }
  0xa9   : > { %8117 = shalt.err (!%p8114_p4)
}
  0xaa   : > { %s8118_s6 = scalar_lea.vmem %s8513_s22, 4096  ;;  %s8222_s8 = smov [#allocation4]  }
  0xab   : > { %p8119_p12 = scmp.ne.s32.totalorder %s8513_s22, %s8118_s6  ;;  %s8123_s10 = sshll.u32 %s8222_s8, 4  ;;  %s8124_s10 = int_to_ptr.vmem [resolvable:$false] %s8123_s10 }
  0xac   : > { %s8125_s24 = scalar_lea.vmem %s8124_s10, 8192  ;;  %p8126_p6 = scmp.lt.s32.totalorder %s8513_s22, %s8124_s10 }
  0xad   : > { %p8121_p1 = pnand %p8119_p12, %p8105_p8  ;;  %p8127_p13 = scmp.lt.s32.totalorder %s8125_s24, %s8118_s6 }
  0xaf   : > { %p8122_p10 = pneg %p8121_p1  ;;  %p8128_p0 = por %p8127_p13, %p8126_p6 }
  0xb1   : > { %p8129_p2 = pnand %p8128_p0, %p8122_p10 }
  0xb3   : > { %8132 = shalt.err (!%p8129_p2)
}
  0xb4   : > { %7117 = dma.hbm_to_vmem [thread:$0]  (!%p8509_p11), %s8507_s14, 4096, %s8513_s22, %s8515_s25, %s11220_s13, %s11220_s13, %s11219_s26  }
  0xb5   : > { %p11226_p8 = scmp.ne.s32.totalorder %s11214_s20, 0 }
  0xb7   : > { %488 = sbr.rel (%p11226_p8) target bundleno = 1733 (0x6c5), region = 76 }
  0xbe   : > { %s8549_s1 = sand.u32 1, %s8203_s30  }
  0xbf   : > { %s5964_s28 = sshll.u32 %s8549_s1, 8  ;;  %s491_s27 = scalar_lea.sflag [#allocation5], %s8549_s1 }
  0xc0   : > { %s8555_s23 = scalar_lea.vmem [#allocation4], %s5964_s28 }
  0xc1   : > { %8178 = dma.done.wait (%p8489_p7), %s491_s27, 4096  }
  0xc2   : > { %8180 = vsyncadd (%p8489_p7), %s491_s27, 4294963200  ;;  %p11227_p6 = scmp.eq.s32.totalorder %s8324_s19, 0 }
  0xc4   : > { %8182 = dma.done.wait (%p11227_p6), [#allocation8], 6144   ;;  %p11228_p10 = pmov %p11227_p6 }
  0xc5   : > { %p11229_p11 = pmov %p11227_p6 }
  0xc6   : > { %8184 = vsyncadd (%p11228_p10), [#allocation8], 4294961152 }
  0xc7   : > { %8186 = dma.done.wait (%p11229_p11), [#allocation11], 20480   ;;  %p11230_p3 = pmov %p11227_p6 }
  0xc9   : > { %8188 = vsyncadd (%p11230_p3), [#allocation11], 4294946816  ;;  %p11231_p5 = pmov %p11230_p3 }
  0xca   : > { %p11232_p9 = pmov %p11230_p3 }
  0xcb   : > { %8190 = dma.done.wait (%p11231_p5), [#allocation14], 2048  }
  0xcc   : > { %8192 = vsyncadd (%p11232_p9), [#allocation14], 4294965248  ;;  %v591_v0 = vld [vmem:[#allocation7] sm:$0xff]  ;;  %v592_v1 = vld [vmem:[#allocation7 + $0x8] sm:$0xff]  ;;  %s11233_s8 = sld [smem:[#allocation37_spill]]  ;;  %s11256_s14 = sld [smem:[#allocation34_spill]] }
  0xcd   : > { %v593_v2 = vld [vmem:[#allocation7 + $0x10] sm:$0xff]  ;;  %v6498_v3 = vpack.c.bf16 %v592_v1, %v591_v0  ;;  %v594_v4 = vld [vmem:[#allocation7 + $0x18] sm:$0xff]  ;;  %v595_v6 = vld [vmem:[#allocation7 + $0x20] sm:$0xff]  ;;  %s11257_s6 = sld [smem:[#allocation35_spill]]  ;;  %s11259_s27 = sld [smem:[#allocation36_spill]] }
  0xce   : > { %v6502_v5 = vpack.c.bf16 %v594_v4, %v593_v2  ;;  %v596_v7 = vld [vmem:[#allocation7 + $0x28] sm:$0xff]  ;;  %v559_v9 = vld [vmem:[%s8555_s23] sm:$0xff]  ;;  %v597_v10 = vld [vmem:[#allocation7 + $0x30] sm:$0xff]  ;;  %s11277_s22 = sld [smem:[#allocation38_spill]]  ;;  %s10953_s25 = scalar_lea.vmem [#allocation15], %s5964_s28 }
  0xcf   : > { %6499 = vmatprep.subr.bf16.mxu0 %v6498_v3  ;;  %v6506_v8 = vpack.c.bf16 %v596_v7, %v595_v6  ;;  %v598_v11 = vld [vmem:[#allocation7 + $0x38] sm:$0xff]  ;;  %6210 = vmatprep.mubr.f32.mxu0 %v559_v9  ;;  %v599_v13 = vld [vmem:[#allocation7 + $0x40] sm:$0xff]  ;;  %v600_v14 = vld [vmem:[#allocation7 + $0x48] sm:$0xff]  ;;  %s5985_s28 = sshll.u32 %s8324_s19, 12  ;;  %s5831_s10 = sshll.u32 %s10953_s25, 4  ;;  %s11124_s10 = int_to_ptr.vmem [resolvable:$true] %s5831_s10 }
  0xd0   : > { %6501 = vmatpush3.bf16.msra.mxu0 %v6498_v3  ;;  %v6510_v12 = vpack.c.bf16 %v598_v11, %v597_v10  ;;  %v6514_v15 = vpack.c.bf16 %v600_v14, %v599_v13  ;;  %v601_v16 = vld [vmem:[#allocation7 + $0x50] sm:$0xff]  ;;  %v602_v17 = vld [vmem:[#allocation7 + $0x58] sm:$0xff]  ;;  %v603_v19 = vld [vmem:[#allocation7 + $0x60] sm:$0xff]  ;;  %s11278_s20 = sld [smem:[#allocation39_spill]]  ;;  %s5818_s13 = scalar_lea.sflag [#allocation6], %s8549_s1 }
  0xd1   : > { %6503 = vmatprep.subr.bf16.mxu0 %v6502_v5  ;;  %v6518_v18 = vpack.c.bf16 %v602_v17, %v601_v16  ;;  %v604_v20 = vld [vmem:[#allocation7 + $0x68] sm:$0xff]  ;;  %v605_v22 = vld [vmem:[#allocation7 + $0x70] sm:$0xff]  ;;  %v606_v23 = vld [vmem:[#allocation7 + $0x78] sm:$0xff]  ;;  %s8133_s18 = scalar_lea.vmem %s11124_s10, 4096  ;;  %p11279_p4 = scmp.ne.s32.totalorder %s11223_s17, 0 }
  0xd2   : > { %v6522_v21 = vpack.c.bf16 %v604_v20, %v603_v19  ;;  %v6526_v24 = vpack.c.bf16 %v606_v23, %v605_v22  ;;  %v560_v25 = vld [vmem:[%s8555_s23 + $0x8] sm:$0xff]  ;;  %v561_v26 = vld [vmem:[%s8555_s23 + $0x10] sm:$0xff]  ;;  %v562_v27 = vld [vmem:[%s8555_s23 + $0x18] sm:$0xff]  ;;  %p8134_p7 = scmp.ne.s32.totalorder %s11124_s10, %s8133_s18  ;;  %s8225_s19 = smov [#allocation15]  }
  0xd3   : > { %v563_v28 = vld [vmem:[%s8555_s23 + $0x20] sm:$0xff]  ;;  %v564_v29 = vld [vmem:[%s8555_s23 + $0x28] sm:$0xff]  ;;  %v565_v30 = vld [vmem:[%s8555_s23 + $0x30] sm:$0xff] }
  0xd4   : > { %6505 = vmatpush3.bf16.msra.mxu0 %v6502_v5  ;;  %v566_v31 = vld [vmem:[%s8555_s23 + $0x38] sm:$0xff]  ;;  %v567_v32 = vld [vmem:[%s8555_s23 + $0x40] sm:$0xff]  ;;  %v568_v33 = vld [vmem:[%s8555_s23 + $0x48] sm:$0xff]  ;;  %p8135_p12 = pnand %p8134_p7, %p11279_p4 }
  0xd5   : > { %6507 = vmatprep.subr.bf16.mxu0 %v6506_v8  ;;  %v569_v34 = vld [vmem:[%s8555_s23 + $0x50] sm:$0xff]  ;;  %v570_v35 = vld [vmem:[%s8555_s23 + $0x58] sm:$0xff]  ;;  %v571_v36 = vld [vmem:[%s8555_s23 + $0x60] sm:$0xff] }
  0xd6   : > { %v572_v37 = vld [vmem:[%s8555_s23 + $0x68] sm:$0xff]  ;;  %v573_v38 = vld [vmem:[%s8555_s23 + $0x70] sm:$0xff]  ;;  %v574_v39 = vld [vmem:[%s8555_s23 + $0x78] sm:$0xff]  ;;  %s11122_s26 = scalar_lea.hbm %s11278_s20, %s5985_s28  ;;  %p8136_p1 = pneg %p8135_p12 }
  0xd7   : > { %v575_v40 = vld [vmem:[%s8555_s23 + $0x80] sm:$0xff]  ;;  %v576_v41 = vld [vmem:[%s8555_s23 + $0x88] sm:$0xff]  ;;  %v577_v42 = vld [vmem:[%s8555_s23 + $0x90] sm:$0xff] }
  0xd8   : > { %6509 = vmatpush3.bf16.msra.mxu0 %v6506_v8  ;;  %v578_v43 = vld [vmem:[%s8555_s23 + $0x98] sm:$0xff]  ;;  %v579_v44 = vld [vmem:[%s8555_s23 + $0xa0] sm:$0xff]  ;;  %v580_v45 = vld [vmem:[%s8555_s23 + $0xa8] sm:$0xff] }
  0xd9   : > { %6511 = vmatprep.subr.bf16.mxu0 %v6510_v12  ;;  %v581_v46 = vld [vmem:[%s8555_s23 + $0xb0] sm:$0xff]  ;;  %v582_v47 = vld [vmem:[%s8555_s23 + $0xb8] sm:$0xff]  ;;  %v583_v48 = vld [vmem:[%s8555_s23 + $0xc0] sm:$0xff] }
  0xda   : > { %v584_v49 = vld [vmem:[%s8555_s23 + $0xc8] sm:$0xff]  ;;  %v585_v50 = vld [vmem:[%s8555_s23 + $0xd0] sm:$0xff]  ;;  %v586_v51 = vld [vmem:[%s8555_s23 + $0xd8] sm:$0xff] }
  0xdb   : > { %v587_v52 = vld [vmem:[%s8555_s23 + $0xe0] sm:$0xff]  ;;  %v588_v53 = vld [vmem:[%s8555_s23 + $0xe8] sm:$0xff]  ;;  %v589_v54 = vld [vmem:[%s8555_s23 + $0xf0] sm:$0xff] }
  0xdc   : > { %6513 = vmatpush3.bf16.msra.mxu0 %v6510_v12  ;;  %v590_v55 = vld [vmem:[%s8555_s23 + $0xf8] sm:$0xff]  ;;  %v1128_v56 = vld [vmem:[#allocation9 + $0x8] sm:$0xff]  ;;  %v1127_v59 = vld [vmem:[#allocation9] sm:$0xff] }
  0xdd   : > { %6515 = vmatprep.subr.bf16.mxu0 %v6514_v15  ;;  %v1130_v57 = vld [vmem:[#allocation9 + $0x18] sm:$0xff]  ;;  %v1129_v60 = vld [vmem:[#allocation9 + $0x10] sm:$0xff]  ;;  %v1132_v62 = vld [vmem:[#allocation9 + $0x28] sm:$0xff] }
  0xde   : > { %v6530_v58 = vpack.c.bf16 %v1130_v57, %v1128_v56  ;;  %v6532_v61 = vpack.c.bf16 %v1129_v60, %v1127_v59  ;;  %v1134_v63 = vld [vmem:[#allocation9 + $0x38] sm:$0xff]  ;;  %v1131_v1 = vld [vmem:[#allocation9 + $0x20] sm:$0xff]  ;;  %v1133_v2 = vld [vmem:[#allocation9 + $0x30] sm:$0xff] }
  0xdf   : > { %v6534_v0 = vpack.c.bf16 %v1134_v63, %v1132_v62  ;;  %v6536_v3 = vpack.c.bf16 %v1133_v2, %v1131_v1  ;;  %v1136_v4 = vld [vmem:[#allocation9 + $0x48] sm:$0xff]  ;;  %v1138_v5 = vld [vmem:[#allocation9 + $0x58] sm:$0xff]  ;;  %v1135_v7 = vld [vmem:[#allocation9 + $0x40] sm:$0xff] }
  0xe0   : > { %6517 = vmatpush3.bf16.msra.mxu0 %v6514_v15  ;;  %6531 = vmatprep.subr.bf16.mxu1 %v6530_v58  ;;  %v6538_v6 = vpack.c.bf16 %v1138_v5, %v1136_v4  ;;  %v1137_v8 = vld [vmem:[#allocation9 + $0x50] sm:$0xff]  ;;  %v1140_v10 = vld [vmem:[#allocation9 + $0x68] sm:$0xff]  ;;  %v1142_v11 = vld [vmem:[#allocation9 + $0x78] sm:$0xff] }
  0xe1   : > { %6519 = vmatprep.subr.bf16.mxu0 %v6518_v18  ;;  %6533 = vmatpush1.bf16.msra.mxu1 %v6532_v61  ;;  %v6540_v9 = vpack.c.bf16 %v1137_v8, %v1135_v7  ;;  %v6542_v12 = vpack.c.bf16 %v1142_v11, %v1140_v10  ;;  %v1139_v13 = vld [vmem:[#allocation9 + $0x60] sm:$0xff]  ;;  %v1141_v14 = vld [vmem:[#allocation9 + $0x70] sm:$0xff]  ;;  %v1144_v16 = vld [vmem:[#allocation9 + $0x88] sm:$0xff] }
  0xe2   : > { %6535 = vmatprep.subr.bf16.mxu1 %v6534_v0  ;;  %v6544_v15 = vpack.c.bf16 %v1141_v14, %v1139_v13  ;;  %v1146_v17 = vld [vmem:[#allocation9 + $0x98] sm:$0xff]  ;;  %v1143_v19 = vld [vmem:[#allocation9 + $0x80] sm:$0xff]  ;;  %v1145_v20 = vld [vmem:[#allocation9 + $0x90] sm:$0xff] }
  0xe3   : > { %v1148_v22 = vld [vmem:[#allocation9 + $0xa8] sm:$0xff]  ;;  %v1150_v23 = vld [vmem:[#allocation9 + $0xb8] sm:$0xff] }
  0xe4   : > { %6521 = vmatpush3.bf16.msra.mxu0 %v6518_v18  ;;  %v6546_v18 = vpack.c.bf16 %v1146_v17, %v1144_v16 }
  0xe5   : > { %6523 = vmatprep.subr.bf16.mxu0 %v6522_v21  ;;  %6537 = vmatpush1.bf16.msra.mxu1 %v6536_v3 }
  0xe6   : > { %6539 = vmatprep.subr.bf16.mxu1 %v6538_v6 }
  0xe8   : > { %6525 = vmatpush3.bf16.msra.mxu0 %v6522_v21  ;;  %v6548_v21 = vpack.c.bf16 %v1145_v20, %v1143_v19 }
  0xe9   : > { %6527 = vmatprep.subr.bf16.mxu0 %v6526_v24  ;;  %6541 = vmatpush1.bf16.msra.mxu1 %v6540_v9 }
  0xea   : > { %6543 = vmatprep.subr.bf16.mxu1 %v6542_v12 }
  0xec   : > { %6529 = vmatpush3.bf16.msra.mxu0 %v6526_v24  ;;  %v6550_v24 = vpack.c.bf16 %v1150_v23, %v1148_v22 }
  0xed   : > { %6545 = vmatpush1.bf16.msra.mxu1 %v6544_v15 }
  0xee   : > { %6547 = vmatprep.subr.bf16.mxu1 %v6546_v18 }
  0xef   : > { %6211 = vmatmul.mubr.f32.vlgmr.msra.gmra.mrb[0].mxu0 %v560_v25  ;;  %v1147_v25 = vld [vmem:[#allocation9 + $0xa0] sm:$0xff] }
  0xf0   : > { %6213 = vmatprep.mubr.f32.mxu0 %v561_v26  ;;  %v1149_v26 = vld [vmem:[#allocation9 + $0xb0] sm:$0xff] }
  0xf1   : > { %6549 = vmatpush1.bf16.msra.mxu1 %v6548_v21 }
  0xf2   : > { %6551 = vmatprep.subr.bf16.mxu1 %v6550_v24 }
  0xf3   : > { %6214 = vmatmul.mubr.f32.gmra.mrb[2].mxu0 %v562_v27  ;;  %v6552_v27 = vpack.c.bf16 %v1149_v26, %v1147_v25 }
  0xf4   : > { %6216 = vmatprep.mubr.f32.mxu0 %v563_v28  ;;  %v1152_v28 = vld [vmem:[#allocation9 + $0xc8] sm:$0xff] }
  0xf5   : > { %6553 = vmatpush1.bf16.msra.mxu1 %v6552_v27 }
  0xf7   : > { %6217 = vmatmul.mubr.f32.gmra.mrb[4].mxu0 %v564_v29  ;;  %v1154_v29 = vld [vmem:[#allocation9 + $0xd8] sm:$0xff] }
  0xf8   : > { %6219 = vmatprep.mubr.f32.mxu0 %v565_v30  ;;  %v6554_v30 = vpack.c.bf16 %v1154_v29, %v1152_v28 }
  0xfa   : > { %6555 = vmatprep.subr.bf16.mxu1 %v6554_v30 }
  0xfb   : > { %6220 = vmatmul.mubr.f32.gmra.mrb[6].mxu0 %v566_v31  ;;  %v1151_v31 = vld [vmem:[#allocation9 + $0xc0] sm:$0xff] }
  0xfc   : > { %6222 = vmatprep.mubr.f32.mxu0 %v567_v32  ;;  %v1153_v32 = vld [vmem:[#allocation9 + $0xd0] sm:$0xff] }
  0xff   : > { %6223 = vmatmul.mubr.f32.gmra.mrb[8].mxu0 %v568_v33  ;;  %v6556_v33 = vpack.c.bf16 %v1153_v32, %v1151_v31 }
 0x100   : > { %6225 = vmatprep.mubr.f32.mxu0 %v569_v34  ;;  %v1156_v34 = vld [vmem:[#allocation9 + $0xe8] sm:$0xff] }
 0x101   : > { %6557 = vmatpush1.bf16.msra.mxu1 %v6556_v33 }
 0x103   : > { %6226 = vmatmul.mubr.f32.gmra.mrb[10].mxu0 %v570_v35  ;;  %v1158_v35 = vld [vmem:[#allocation9 + $0xf8] sm:$0xff] }
 0x104   : > { %6228 = vmatprep.mubr.f32.mxu0 %v571_v36  ;;  %v6558_v36 = vpack.c.bf16 %v1158_v35, %v1156_v34 }
 0x106   : > { %6559 = vmatprep.subr.bf16.mxu1 %v6558_v36 }
 0x107   : > { %6229 = vmatmul.mubr.f32.gmra.mrb[12].mxu0 %v572_v37  ;;  %v1155_v37 = vld [vmem:[#allocation9 + $0xe0] sm:$0xff] }
 0x108   : > { %6231 = vmatprep.mubr.f32.mxu0 %v573_v38  ;;  %v1157_v38 = vld [vmem:[#allocation9 + $0xf0] sm:$0xff] }
 0x10b   : > { %6232 = vmatmul.mubr.f32.gmra.mrb[14].mxu0 %v574_v39  ;;  %v6560_v39 = vpack.c.bf16 %v1157_v38, %v1155_v37 }
 0x10c   : > { %6234 = vmatprep.mubr.f32.mxu0 %v575_v40  ;;  %v8223_v40 = vmov 0.0  }
 0x10d   : > { %6561 = vmatpush1.bf16.msra.mxu1 %v6560_v39  ;;  %1223 = vmatprep.mubr.f32.mxu1 %v8223_v40  ;;  %2350 = vst [vmem:[#allocation2] sm:$0xff] %v8223_v40  ;;  %2351 = vst [vmem:[#allocation2 + $0x8] sm:$0xff] %v8223_v40 }
 0x10e   : > { %2352 = vst [vmem:[#allocation2 + $0x10] sm:$0x3] %v8223_v40  ;;  %2354 = vst [vmem:[#allocation2 + $0x198] sm:$0xff] %v8223_v40 }
 0x10f   : > { %6235 = vmatmul.mubr.f32.gmra.mrb[16].mxu0 %v576_v41  ;;  %2355 = vst [vmem:[#allocation2 + $0x1a0] sm:$0xff] %v8223_v40  ;;  %2356 = vst [vmem:[#allocation2 + $0x1a8] sm:$0x3] %v8223_v40  ;;  %v8647_v41 = vld [vmem:[%s11171_s2] ss:$0 sm:$0xff] }
 0x110   : > { %6237 = vmatprep.mubr.f32.mxu0 %v577_v42  ;;  %2358 = vst [vmem:[#allocation2 + $0x18] sm:$0x1] %v8223_v40  ;;  %2359 = vst [vmem:[#allocation2 + $0x30] sm:$0x1] %v8223_v40 }
 0x111   : > { %2360 = vst [vmem:[#allocation2 + $0x48] sm:$0x1] %v8223_v40  ;;  %2361 = vst [vmem:[#allocation2 + $0x60] sm:$0x1] %v8223_v40 }
 0x112   : > { %2362 = vst [vmem:[#allocation2 + $0x78] sm:$0x1] %v8223_v40  ;;  %2363 = vst [vmem:[#allocation2 + $0x90] sm:$0x1] %v8223_v40 }
 0x113   : > { %6238 = vmatmul.mubr.f32.gmra.mrb[18].mxu0 %v578_v43  ;;  %2364 = vst [vmem:[#allocation2 + $0xa8] sm:$0x1] %v8223_v40  ;;  %2365 = vst [vmem:[#allocation2 + $0xc0] sm:$0x1] %v8223_v40 }
 0x114   : > { %6240 = vmatprep.mubr.f32.mxu0 %v579_v44  ;;  %2366 = vst [vmem:[#allocation2 + $0xd8] sm:$0x1] %v8223_v40  ;;  %2367 = vst [vmem:[#allocation2 + $0xf0] sm:$0x1] %v8223_v40 }
 0x115   : > { %2368 = vst [vmem:[#allocation2 + $0x108] sm:$0x1] %v8223_v40  ;;  %2369 = vst [vmem:[#allocation2 + $0x120] sm:$0x1] %v8223_v40 }
 0x116   : > { %2370 = vst [vmem:[#allocation2 + $0x138] sm:$0x1] %v8223_v40  ;;  %2371 = vst [vmem:[#allocation2 + $0x150] sm:$0x1] %v8223_v40 }
 0x117   : > { %6241 = vmatmul.mubr.f32.gmra.mrb[20].mxu0 %v580_v45  ;;  %2372 = vst [vmem:[#allocation2 + $0x168] sm:$0x1] %v8223_v40  ;;  %2373 = vst [vmem:[#allocation2 + $0x180] sm:$0x1] %v8223_v40 }
 0x118   : > { %6243 = vmatprep.mubr.f32.mxu0 %v581_v46  ;;  %2374 = vst [vmem:[#allocation2 + $0x29] sm:$0x1] %v8223_v40  ;;  %2375 = vst [vmem:[#allocation2 + $0x41] sm:$0x1] %v8223_v40 }
 0x119   : > { %2376 = vst [vmem:[#allocation2 + $0x59] sm:$0x1] %v8223_v40  ;;  %2377 = vst [vmem:[#allocation2 + $0x71] sm:$0x1] %v8223_v40 }
 0x11a   : > { %2378 = vst [vmem:[#allocation2 + $0x89] sm:$0x1] %v8223_v40  ;;  %2379 = vst [vmem:[#allocation2 + $0xa1] sm:$0x1] %v8223_v40 }
 0x11b   : > { %6244 = vmatmul.mubr.f32.gmra.mrb[22].mxu0 %v582_v47  ;;  %2380 = vst [vmem:[#allocation2 + $0xb9] sm:$0x1] %v8223_v40  ;;  %2381 = vst [vmem:[#allocation2 + $0xd1] sm:$0x1] %v8223_v40 }
 0x11c   : > { %6246 = vmatprep.mubr.f32.mxu0 %v583_v48  ;;  %2382 = vst [vmem:[#allocation2 + $0xe9] sm:$0x1] %v8223_v40  ;;  %2383 = vst [vmem:[#allocation2 + $0x101] sm:$0x1] %v8223_v40 }
 0x11d   : > { %2384 = vst [vmem:[#allocation2 + $0x119] sm:$0x1] %v8223_v40  ;;  %2385 = vst [vmem:[#allocation2 + $0x131] sm:$0x1] %v8223_v40 }
 0x11e   : > { %2386 = vst [vmem:[#allocation2 + $0x149] sm:$0x1] %v8223_v40  ;;  %2387 = vst [vmem:[#allocation2 + $0x161] sm:$0x1] %v8223_v40 }
 0x11f   : > { %6247 = vmatmul.mubr.f32.gmra.mrb[24].mxu0 %v584_v49  ;;  %2388 = vst [vmem:[#allocation2 + $0x179] sm:$0x1] %v8223_v40  ;;  %2389 = vst [vmem:[#allocation2 + $0x191] sm:$0x1] %v8223_v40 }
 0x120   : > { %6249 = vmatprep.mubr.f32.mxu0 %v585_v50 }
 0x123   : > { %6250 = vmatmul.mubr.f32.gmra.mrb[26].mxu0 %v586_v51 }
 0x124   : > { %6252 = vmatprep.mubr.f32.mxu0 %v587_v52 }
 0x127   : > { %6253 = vmatmul.mubr.f32.gmra.mrb[28].mxu0 %v588_v53 }
 0x128   : > { %6255 = vmatprep.mubr.f32.mxu0 %v589_v54 }
 0x12b   : > { %6256 = vmatmul.mubr.f32.gmra.mrb[30].mxu0 %v590_v55 }
 0x1c2   : > { %v6212_v42 = vpop.f32.mrb[0].mxu0 }
 0x1c3   : > { %v8650_v43 = vadd.f32 %v6212_v42, %v8647_v41  ;;  %v680_v44 = vpop.f32.mrb[1].mxu0 }
 0x1c4   : > { %v8653_v45 = vadd.f32 %v8647_v41, %v680_v44 }
 0x1c5   : > { %v840_v46 = vmin.f32 %v8650_v43, 20.0 }
 0x1c6   : > { %v839_v47 = vmin.f32 %v8653_v45, 20.0  ;;  %v6215_v48 = vpop.f32.mrb[2].mxu0 }
 0x1c7   : > { %v873_v49 = vmul.f32 1.442695, %v840_v46  ;;  %v8658_v50 = vadd.f32 %v6215_v48, %v8647_v41  ;;  %v690_v51 = vpop.f32.mrb[3].mxu0 }
 0x1c8   : > { %v871_v52 = vmul.f32 1.442695, %v839_v47  ;;  %v8661_v53 = vadd.f32 %v8647_v41, %v690_v51 }
 0x1c9   : > { %7179 = vpow2.f32 %v873_v49  ;;  %v842_v54 = vmin.f32 %v8658_v50, 20.0 }
 0x1ca   : > { %7181 = vpow2.f32 %v871_v52  ;;  %v841_v55 = vmin.f32 %v8661_v53, 20.0  ;;  %v6218_v56 = vpop.f32.mrb[4].mxu0 }
 0x1cb   : > { %v700_v57 = vpop.f32.mrb[5].mxu0  ;;  %v877_v58 = vmul.f32 1.442695, %v842_v54  ;;  %v8666_v60 = vadd.f32 %v6218_v56, %v8647_v41 }
 0x1cc   : > { %v875_v59 = vmul.f32 1.442695, %v841_v55  ;;  %v8669_v61 = vadd.f32 %v8647_v41, %v700_v57 }
 0x1cd   : > { %v844_v1 = vmin.f32 %v8666_v60, 20.0 }
 0x1ce   : > { %7183 = vpow2.f32 %v875_v59  ;;  %v843_v62 = vmin.f32 %v8669_v61, 20.0  ;;  %v6221_v63 = vpop.f32.mrb[6].mxu0 }
 0x1cf   : > { %v710_v0 = vpop.f32.mrb[7].mxu0  ;;  %7185 = vpow2.f32 %v877_v58  ;;  %v881_v8 = vmul.f32 1.442695, %v844_v1  ;;  %v8677_v9 = vadd.f32 %v6221_v63, %v8647_v41 }
 0x1d0   : > { %v879_v2 = vmul.f32 1.442695, %v843_v62  ;;  %v8674_v3 = vadd.f32 %v8647_v41, %v710_v0 }
 0x1d1   : > { %v846_v17 = vmin.f32 %v8677_v9, 20.0 }
 0x1d2   : > { %v6224_v4 = vpop.f32.mrb[8].mxu0  ;;  %7187 = vpow2.f32 %v879_v2  ;;  %v845_v10 = vmin.f32 %v8674_v3, 20.0 }
 0x1d3   : > { %v7180_v5 = vpop.eup %7179  ;;  %v720_v6 = vpop.f32.mrb[9].mxu0  ;;  %7189 = vpow2.f32 %v881_v8  ;;  %v885_v26 = vmul.f32 1.442695, %v846_v17  ;;  %v8685_v27 = vadd.f32 %v6224_v4, %v8647_v41 }
 0x1d4   : > { %v7182_v7 = vpop.eup %7181  ;;  %v936_v11 = vadd.f32 2.0, %v7180_v5  ;;  %v883_v18 = vmul.f32 1.442695, %v845_v10  ;;  %v8682_v19 = vadd.f32 %v8647_v41, %v720_v6 }
 0x1d5   : > { %v935_v12 = vadd.f32 2.0, %v7182_v7  ;;  %v848_v35 = vmin.f32 %v8685_v27, 20.0 }
 0x1d6   : > { %v6227_v13 = vpop.f32.mrb[10].mxu0  ;;  %v968_v20 = vmul.f32 %v7180_v5, %v936_v11  ;;  %7191 = vpow2.f32 %v883_v18  ;;  %v847_v28 = vmin.f32 %v8682_v19, 20.0 }
 0x1d7   : > { %v967_v14 = vmul.f32 %v7182_v7, %v935_v12  ;;  %v730_v15 = vpop.f32.mrb[11].mxu0  ;;  %v889_v48 = vmul.f32 1.442695, %v848_v35  ;;  %v8701_v49 = vadd.f32 %v6227_v13, %v8647_v41 }
 0x1d8   : > { %v7184_v16 = vpop.eup %7183  ;;  %v1032_v29 = vadd.f32 2.0, %v968_v20  ;;  %v887_v36 = vmul.f32 1.442695, %v847_v28  ;;  %v8692_v37 = vadd.f32 %v8647_v41, %v730_v15  ;;  %v1000_v10 = vmul.f32 %v968_v20, %v8650_v43 }
 0x1d9   : > { %v1031_v21 = vadd.f32 2.0, %v967_v14  ;;  %v937_v22 = vadd.f32 2.0, %v7184_v16  ;;  %v7186_v23 = vpop.eup %7185  ;;  %v999_v59 = vmul.f32 %v967_v14, %v8653_v45  ;;  %v850_v63 = vmin.f32 %v8701_v49, 20.0 }
 0x1da   : > { %v6230_v24 = vpop.f32.mrb[12].mxu0  ;;  %v938_v30 = vadd.f32 2.0, %v7186_v23  ;;  %v849_v51 = vmin.f32 %v8692_v37, 20.0 }
 0x1db   : > { %v740_v25 = vpop.f32.mrb[13].mxu0  ;;  %7193 = vrcp.f32 %v1031_v21  ;;  %v969_v31 = vmul.f32 %v7184_v16, %v937_v22  ;;  %v893_v12 = vmul.f32 1.442695, %v850_v63  ;;  %v8725_v13 = vadd.f32 %v6230_v24, %v8647_v41 }
 0x1dc   : > { %v7188_v32 = vpop.eup %7187  ;;  %7195 = vpow2.f32 %v885_v26  ;;  %v8694_v38 = vmul.f32 %v7186_v23, %v938_v30  ;;  %v891_v0 = vmul.f32 1.442695, %v849_v51  ;;  %v8714_v1 = vadd.f32 %v8647_v41, %v740_v25 }
 0x1dd   : > { %7197 = vrcp.f32 %v1032_v29  ;;  %v1033_v39 = vadd.f32 2.0, %v969_v31  ;;  %v939_v42 = vadd.f32 2.0, %v7188_v32  ;;  %v7190_v44 = vpop.eup %7189  ;;  %v1001_v22 = vmul.f32 %v969_v31, %v8661_v53 }
 0x1de   : > { %v8688_v33 = vpop.f32.mrb[14].mxu0  ;;  %7199 = vpow2.f32 %v887_v36  ;;  %v1034_v52 = vadd.f32 2.0, %v8694_v38  ;;  %v940_v54 = vadd.f32 2.0, %v7190_v44  ;;  %v851_v14 = vmin.f32 %v8714_v1, 20.0 }
 0x1df   : > { %v750_v34 = vpop.f32.mrb[15].mxu0  ;;  %7201 = vrcp.f32 %v1033_v39  ;;  %v8705_v55 = vmul.f32 %v7188_v32, %v939_v42  ;;  %v852_v24 = vmin.f32 %v8725_v13, 20.0  ;;  %v8749_v36 = vadd.f32 %v8688_v33, %v8647_v41 }
 0x1e0   : > { %v7192_v56 = vpop.eup %7191  ;;  %7203 = vpow2.f32 %v889_v48  ;;  %v8716_v2 = vmul.f32 %v7190_v44, %v940_v54  ;;  %v895_v25 = vmul.f32 1.442695, %v851_v14  ;;  %v8739_v26 = vadd.f32 %v8647_v41, %v750_v34 }
 0x1e1   : > { %7205 = vrcp.f32 %v1034_v52  ;;  %v1035_v4 = vadd.f32 2.0, %v8705_v55  ;;  %v941_v5 = vadd.f32 2.0, %v7192_v56  ;;  %v1002_v39 = vmul.f32 %v8694_v38, %v8658_v50 }
 0x1e2   : > { %v8696_v46 = vpop.f32.mrb[16].mxu0  ;;  %7207 = vpow2.f32 %v891_v0  ;;  %v1036_v15 = vadd.f32 2.0, %v8716_v2  ;;  %v897_v42 = vmul.f32 1.442695, %v852_v24  ;;  %v853_v44 = vmin.f32 %v8739_v26, 20.0 }
 0x1e3   : > { %v8698_v47 = vpop.f32.mrb[17].mxu0  ;;  %7209 = vrcp.f32 %v1035_v4  ;;  %v8729_v17 = vmul.f32 %v7192_v56, %v941_v5  ;;  %v854_v50 = vmin.f32 %v8749_v36, 20.0  ;;  %v8783_v14 = vadd.f32 %v8696_v46, %v8647_v41 }
 0x1e4   : > { %7211 = vpow2.f32 %v893_v12  ;;  %v899_v63 = vmul.f32 1.442695, %v853_v44  ;;  %v8769_v0 = vadd.f32 %v8647_v41, %v8698_v47  ;;  %v1004_v47 = vmul.f32 %v8716_v2, %v8666_v60 }
 0x1e5   : > { %v7194_v58 = vpop.eup %7193  ;;  %7213 = vrcp.f32 %v1036_v15  ;;  %v1037_v29 = vadd.f32 2.0, %v8729_v17  ;;  %v1005_v46 = vmul.f32 %v8729_v17, %v8674_v3 }
 0x1e6   : > { %v8707_v57 = vpop.f32.mrb[18].mxu0  ;;  %v7196_v6 = vpop.eup %7195  ;;  %v1095_v7 = vmul.f32 %v7194_v58, %v999_v59  ;;  %7215 = vpow2.f32 %v895_v25  ;;  %v1003_v59 = vmul.f32 %v8705_v55, %v8669_v61  ;;  %v901_v55 = vmul.f32 1.442695, %v854_v50 }
 0x1e7   : > { %v8710_v62 = vpop.f32.mrb[19].mxu0  ;;  %v7198_v45 = vpop.eup %7197  ;;  %v942_v16 = vadd.f32 2.0, %v7196_v6  ;;  %7217 = vrcp.f32 %v1037_v29  ;;  %v855_v15 = vmin.f32 %v8769_v0, 20.0  ;;  %v856_v25 = vmin.f32 %v8783_v14, 20.0 }
 0x1e8   : > { %1224 = vmatmul.mubr.f32.vlgmr.msra.gmra.mrb[0].mxu1 %v1095_v7  ;;  %v7200_v18 = vpop.eup %7199  ;;  %v1096_v43 = vmul.f32 %v7198_v45, %v1000_v10  ;;  %7219 = vpow2.f32 %v897_v42  ;;  %v8807_v3 = vadd.f32 %v8707_v57, %v8647_v41 }
 0x1e9   : > { %1229 = vmatprep.mubr.f32.mxu1 %v8223_v40  ;;  %v7202_v21 = vpop.eup %7201  ;;  %v8741_v28 = vmul.f32 %v7196_v6, %v942_v16  ;;  %v943_v30 = vadd.f32 2.0, %v7200_v18  ;;  %v903_v29 = vmul.f32 1.442695, %v855_v15  ;;  %v905_v44 = vmul.f32 1.442695, %v856_v25 }
 0x1ea   : > { %v8719_v8 = vpop.f32.mrb[20].mxu0  ;;  %v7204_v32 = vpop.eup %7203  ;;  %v1097_v53 = vmul.f32 %v7202_v21, %v1001_v22 }
 0x1eb   : > { %v8722_v11 = vpop.f32.mrb[21].mxu0  ;;  %v7206_v35 = vpop.eup %7205  ;;  %v1038_v48 = vadd.f32 2.0, %v8741_v28  ;;  %v944_v51 = vadd.f32 2.0, %v7204_v32  ;;  %v8757_v52 = vmul.f32 %v7200_v18, %v943_v30  ;;  %v8799_v30 = vadd.f32 %v8647_v41, %v8710_v62 }
 0x1ec   : > { %1230 = vmatmul.mubr.f32.gmra.mrb[2].mxu1 %v1096_v43  ;;  %v7208_v33 = vpop.eup %7207  ;;  %v1098_v54 = vmul.f32 %v7206_v35, %v1002_v39  ;;  %v1006_v62 = vmul.f32 %v8741_v28, %v8677_v9 }
 0x1ed   : > { %1235 = vmatprep.mubr.f32.mxu1 %v8223_v40  ;;  %v7210_v58 = vpop.eup %7209  ;;  %7221 = vrcp.f32 %v1038_v48  ;;  %v8771_v4 = vmul.f32 %v7204_v32, %v944_v51  ;;  %v1039_v5 = vadd.f32 2.0, %v8757_v52  ;;  %v945_v6 = vadd.f32 2.0, %v7208_v33 }
 0x1ee   : > { %v8732_v20 = vpop.f32.mrb[22].mxu0  ;;  %v7212_v7 = vpop.eup %7211  ;;  %v1099_v45 = vmul.f32 %v7210_v58, %v1003_v59  ;;  %7223 = vpow2.f32 %v899_v63  ;;  %v857_v48 = vmin.f32 %v8799_v30, 20.0  ;;  %v858_v58 = vmin.f32 %v8807_v3, 20.0 }
 0x1ef   : > { %v8735_v23 = vpop.f32.mrb[23].mxu0  ;;  %v7214_v61 = vpop.eup %7213  ;;  %v1040_v16 = vadd.f32 2.0, %v8771_v4  ;;  %7225 = vrcp.f32 %v1039_v5  ;;  %v946_v18 = vadd.f32 2.0, %v7212_v7  ;;  %v8787_v43 = vmul.f32 %v7208_v33, %v945_v6 }
 0x1f0   : > { %1236 = vmatmul.mubr.f32.gmra.mrb[4].mxu1 %v1097_v53  ;;  %v7216_v21 = vpop.eup %7215  ;;  %v1100_v22 = vmul.f32 %v7214_v61, %v1004_v47  ;;  %7227 = vpow2.f32 %v901_v55  ;;  %v1007_v9 = vmul.f32 %v8757_v52, %v8682_v19  ;;  %v907_v28 = vmul.f32 1.442695, %v857_v48  ;;  %v3290_v48 = vld [vmem:[#allocation10 + $0x18] sm:$0xff] }
 0x1f1   : > { %1241 = vmatprep.mubr.f32.mxu1 %v8223_v40  ;;  %v7218_v60 = vpop.eup %7217  ;;  %7229 = vrcp.f32 %v1040_v16  ;;  %v8801_v32 = vmul.f32 %v7212_v7, %v946_v18  ;;  %v1041_v53 = vadd.f32 2.0, %v8787_v43  ;;  %v947_v35 = vadd.f32 2.0, %v7216_v21 }
 0x1f2   : > { %v8745_v31 = vpop.f32.mrb[24].mxu0  ;;  %v7220_v39 = vpop.eup %7219  ;;  %v1101_v17 = vmul.f32 %v7218_v60, %v1005_v46  ;;  %7231 = vpow2.f32 %v903_v29  ;;  %v8821_v63 = vadd.f32 %v8647_v41, %v8722_v11  ;;  %v909_v61 = vmul.f32 1.442695, %v858_v58  ;;  %v3287_v46 = vld [vmem:[#allocation10] sm:$0xff] }
 0x1f3   : > { %v8751_v34 = vpop.f32.mrb[25].mxu0  ;;  %v1042_v51 = vadd.f32 2.0, %v8801_v32  ;;  %7233 = vrcp.f32 %v1041_v53  ;;  %v948_v33 = vadd.f32 2.0, %v7220_v39  ;;  %v8829_v19 = vadd.f32 %v8719_v8, %v8647_v41 }
 0x1f4   : > { %1242 = vmatmul.mubr.f32.gmra.mrb[6].mxu1 %v1098_v54  ;;  %v8813_v54 = vmul.f32 %v7216_v21, %v947_v35  ;;  %7235 = vpow2.f32 %v905_v44  ;;  %v1008_v11 = vmul.f32 %v8771_v4, %v8685_v27  ;;  %v859_v15 = vmin.f32 %v8821_v63, 20.0  ;;  %v3288_v27 = vld [vmem:[#allocation10 + $0x8] sm:$0xff]  ;;  %v3289_v44 = vld [vmem:[#allocation10 + $0x10] sm:$0xff] }
 0x1f5   : > { %1247 = vmatprep.mubr.f32.mxu1 %v8223_v40  ;;  %7237 = vrcp.f32 %v1042_v51  ;;  %v8823_v6 = vmul.f32 %v7220_v39, %v948_v33  ;;  %v860_v60 = vmin.f32 %v8829_v19, 20.0  ;;  %v1009_v4 = vmul.f32 %v8787_v43, %v8692_v37 }
 0x1f6   : > { %v8760_v56 = vpop.f32.mrb[26].mxu0  ;;  %v1043_v7 = vadd.f32 2.0, %v8813_v54  ;;  %7239 = vpow2.f32 %v907_v28  ;;  %v911_v29 = vmul.f32 1.442695, %v859_v15  ;;  %v8845_v53 = vadd.f32 %v8647_v41, %v8735_v23 }
 0x1f7   : > { %v8763_v38 = vpop.f32.mrb[27].mxu0  ;;  %v7222_v42 = vpop.eup %7221  ;;  %v1044_v16 = vadd.f32 2.0, %v8823_v6  ;;  %v913_v43 = vmul.f32 1.442695, %v860_v60  ;;  %v8851_v51 = vadd.f32 %v8732_v20, %v8647_v41  ;;  %v8224_v23 = vmov 0.0|0.0  }
 0x1f8   : > { %1248 = vmatmul.mubr.f32.gmra.mrb[8].mxu1 %v1099_v45  ;;  %v7224_v57 = vpop.eup %7223  ;;  %v1102_v50 = vmul.f32 %v7222_v42, %v1006_v62  ;;  %7241 = vrcp.f32 %v1043_v7  ;;  %v6595_v62 = vpack.c.bf16 %v3288_v27, %v3287_v46  ;;  %6594 = vmatprep.subr.bf16.mxu1 %v8224_v23  ;;  %v1010_v33 = vmul.f32 %v8801_v32, %v8701_v49  ;;  %v3292_v49 = vld [vmem:[#allocation10 + $0x28] sm:$0xff] }
 0x1f9   : > { %1253 = vmatprep.mubr.f32.mxu1 %v8223_v40  ;;  %v7226_v59 = vpop.eup %7225  ;;  %v949_v45 = vadd.f32 2.0, %v7224_v57  ;;  %7243 = vpow2.f32 %v909_v61  ;;  %v861_v58 = vmin.f32 %v8845_v53, 20.0  ;;  %v6598_v20 = vpack.c.bf16 %v3290_v48, %v3289_v44 }
 0x1fa   : > { %v8775_v10 = vpop.f32.mrb[28].mxu0  ;;  %v7228_v5 = vpop.eup %7227  ;;  %v1103_v55 = vmul.f32 %v7226_v59, %v1007_v9  ;;  %7245 = vrcp.f32 %v1044_v16  ;;  %6596 = vmatpush1.bf16.msra.mxu1 %v6595_v62  ;;  %v862_v7 = vmin.f32 %v8851_v51, 20.0  ;;  %v1011_v61 = vmul.f32 %v8813_v54, %v8714_v1  ;;  %v3293_v1 = vld [vmem:[#allocation10 + $0x30] sm:$0xff]  ;;  %v3294_v54 = vld [vmem:[#allocation10 + $0x38] sm:$0xff] }
 0x1fb   : > { %v8777_v12 = vpop.f32.mrb[29].mxu0  ;;  %v7230_v47 = vpop.eup %7229  ;;  %v950_v52 = vadd.f32 2.0, %v7228_v5  ;;  %v8835_v18 = vmul.f32 %v7224_v57, %v949_v45  ;;  %7247 = vpow2.f32 %v911_v29  ;;  %6597 = vmatprep.subr.bf16.mxu1 %v8224_v23  ;;  %v8878_v46 = vadd.f32 %v8745_v31, %v8647_v41 }
 0x1fc   : > { %1254 = vmatmul.mubr.f32.gmra.mrb[10].mxu1 %v1100_v22  ;;  %v7232_v21 = vpop.eup %7231  ;;  %v1104_v22 = vmul.f32 %v7230_v47, %v1008_v11  ;;  %v8867_v47 = vadd.f32 %v8647_v41, %v8751_v34  ;;  %v1012_v34 = vmul.f32 %v8823_v6, %v8725_v13  ;;  %v917_v60 = vmul.f32 1.442695, %v862_v7 }
 0x1fd   : > { %1259 = vmatprep.mubr.f32.mxu1 %v8223_v40  ;;  %v7234_v8 = vpop.eup %7233  ;;  %v8841_v25 = vmul.f32 %v7228_v5, %v950_v52  ;;  %v1045_v35 = vadd.f32 2.0, %v8835_v18  ;;  %v951_v39 = vadd.f32 2.0, %v7232_v21  ;;  %v3291_v5 = vld [vmem:[#allocation10 + $0x20] sm:$0xff]  ;;  %v864_v44 = vmin.f32 %v8878_v46, 20.0 }
 0x1fe   : > { %v8790_v24 = vpop.f32.mrb[30].mxu0  ;;  %v1105_v42 = vmul.f32 %v7234_v8, %v1009_v4  ;;  %6599 = vmatpush1.bf16.msra.mxu1 %v6598_v20  ;;  %v6601_v16 = vpack.c.bf16 %v3292_v49, %v3291_v5  ;;  %v863_v27 = vmin.f32 %v8867_v47, 20.0  ;;  %v3298_v20 = vld [vmem:[#allocation10 + $0x58] sm:$0xff]  ;;  %v8903_v5 = vadd.f32 %v8760_v56, %v8647_v41  ;;  %v3299_v56 = vld [vmem:[#allocation10 + $0x60] sm:$0xff] }
 0x1ff   : > { %v8792_v2 = vpop.f32.mrb[31].mxu0  ;;  %v1046_v57 = vadd.f32 2.0, %v8841_v25  ;;  %7249 = vrcp.f32 %v1045_v35  ;;  %v8858_v59 = vmul.f32 %v7232_v21, %v951_v39  ;;  %6600 = vmatprep.subr.bf16.mxu1 %v8224_v23  ;;  %v6604_v35 = vpack.c.bf16 %v3294_v54, %v3293_v1  ;;  %v3295_v39 = vld [vmem:[#allocation10 + $0x40] sm:$0xff] }
 0x200   : > { %1260 = vmatmul.mubr.f32.gmra.mrb[12].mxu1 %v1101_v17  ;;  %v7236_v17 = vpop.eup %7235  ;;  %7251 = vpow2.f32 %v913_v43  ;;  %v919_v48 = vmul.f32 1.442695, %v863_v27  ;;  %v8926_v27 = vadd.f32 %v8775_v10, %v8647_v41 }
 0x201   : > { %1265 = vmatprep.mubr.f32.mxu1 %v8223_v40  ;;  %v7238_v37 = vpop.eup %7237  ;;  %7253 = vrcp.f32 %v1046_v57  ;;  %v1047_v52 = vadd.f32 2.0, %v8858_v59 }
 0x202   : > { %v7240_v9 = vpop.eup %7239  ;;  %v1106_v28 = vmul.f32 %v7238_v37, %v1010_v33  ;;  %6602 = vmatpush1.bf16.msra.mxu1 %v6601_v16  ;;  %v8893_v37 = vadd.f32 %v8647_v41, %v8763_v38  ;;  %v1014_v38 = vmul.f32 %v8841_v25, %v8749_v36  ;;  %v1015_v25 = vmul.f32 %v8858_v59, %v8769_v0 }
 0x203   : > { %v7242_v32 = vpop.eup %7241  ;;  %v953_v15 = vadd.f32 2.0, %v7240_v9  ;;  %6603 = vmatprep.subr.bf16.mxu1 %v8224_v23 }
 0x204   : > { %1266 = vmatmul.mubr.f32.gmra.mrb[14].mxu1 %v1102_v50  ;;  %v952_v50 = vadd.f32 2.0, %v7236_v17  ;;  %v7244_v45 = vpop.eup %7243  ;;  %v1107_v21 = vmul.f32 %v7242_v32, %v1011_v61  ;;  %v865_v49 = vmin.f32 %v8893_v37, 20.0 }
 0x205   : > { %1271 = vmatprep.mubr.f32.mxu1 %v8223_v40  ;;  %v954_v8 = vadd.f32 2.0, %v7244_v45  ;;  %v8882_v29 = vmul.f32 %v7240_v9, %v953_v15  ;;  %v866_v15 = vmin.f32 %v8903_v5, 20.0 }
 0x206   : > { %v8869_v11 = vmul.f32 %v7236_v17, %v952_v50  ;;  %v3296_v17 = vld [vmem:[#allocation10 + $0x48] sm:$0xff]  ;;  %6605 = vmatpush1.bf16.msra.mxu1 %v6604_v35  ;;  %v3297_v50 = vld [vmem:[#allocation10 + $0x50] sm:$0xff]  ;;  %v923_v16 = vmul.f32 1.442695, %v865_v49 }
 0x207   : > { %v8888_v62 = vmul.f32 %v7244_v45, %v954_v8  ;;  %v1049_v33 = vadd.f32 2.0, %v8882_v29  ;;  %6606 = vmatprep.subr.bf16.mxu1 %v8224_v23  ;;  %v6610_v45 = vpack.c.bf16 %v3298_v20, %v3297_v50 }
 0x208   : > { %1272 = vmatmul.mubr.f32.gmra.mrb[16].mxu1 %v1103_v55  ;;  %v915_v55 = vmul.f32 1.442695, %v861_v58  ;;  %v1048_v4 = vadd.f32 2.0, %v8869_v11 }
 0x209   : > { %1277 = vmatprep.mubr.f32.mxu1 %v8223_v40  ;;  %v1050_v9 = vadd.f32 2.0, %v8888_v62 }
 0x20a   : > { %7255 = vpow2.f32 %v915_v55  ;;  %v3300_v55 = vld [vmem:[#allocation10 + $0x68] sm:$0xff] }
 0x20b   : > { %7257 = vrcp.f32 %v1047_v52  ;;  %v6613_v54 = vpack.c.bf16 %v3300_v55, %v3299_v56 }
 0x20c   : > { %1278 = vmatmul.mubr.f32.gmra.mrb[18].mxu1 %v1104_v22  ;;  %v7246_v22 = vpop.eup %7245  ;;  %7259 = vpow2.f32 %v917_v60 }
 0x20d   : > { %1283 = vmatprep.mubr.f32.mxu1 %v8223_v40  ;;  %v7248_v13 = vpop.eup %7247  ;;  %v1108_v6 = vmul.f32 %v7246_v22, %v1012_v34  ;;  %7261 = vrcp.f32 %v1048_v4  ;;  %v1016_v34 = vmul.f32 %v8869_v11, %v8783_v14  ;;  %v1017_v11 = vmul.f32 %v8882_v29, %v8799_v30 }
 0x20e   : > { %v7250_v31 = vpop.eup %7249  ;;  %v955_v57 = vadd.f32 2.0, %v7248_v13  ;;  %7263 = vpow2.f32 %v919_v48  ;;  %v1018_v29 = vmul.f32 %v8888_v62, %v8807_v3 }
 0x20f   : > { %v7252_v43 = vpop.eup %7251  ;;  %7265 = vrcp.f32 %v1049_v33 }
 0x210   : > { %1284 = vmatmul.mubr.f32.gmra.mrb[20].mxu1 %v1105_v42  ;;  %v1013_v42 = vmul.f32 %v8835_v18, %v8739_v26  ;;  %v6607_v26 = vpack.c.bf16 %v3296_v17, %v3295_v39  ;;  %v7254_v18 = vpop.eup %7253  ;;  %v956_v32 = vadd.f32 2.0, %v7252_v43  ;;  %v8906_v7 = vmul.f32 %v7248_v13, %v955_v57 }
 0x211   : > { %1289 = vmatprep.mubr.f32.mxu1 %v8223_v40  ;;  %v1110_v61 = vmul.f32 %v7254_v18, %v1014_v38  ;;  %7267 = vrcp.f32 %v1050_v9  ;;  %v868_v17 = vmin.f32 %v8926_v27, 20.0  ;;  %v8944_v18 = vadd.f32 %v8790_v24, %v8647_v41 }
 0x212   : > { %v1109_v58 = vmul.f32 %v7250_v31, %v1013_v42  ;;  %6608 = vmatpush1.bf16.msra.mxu1 %v6607_v26  ;;  %v8917_v1 = vmul.f32 %v7252_v43, %v956_v32  ;;  %v1051_v0 = vadd.f32 2.0, %v8906_v7  ;;  %v8937_v42 = vadd.f32 %v8647_v41, %v8792_v2 }
 0x213   : > { %6609 = vmatprep.subr.bf16.mxu1 %v8224_v23  ;;  %v929_v26 = vmul.f32 1.442695, %v868_v17  ;;  %v1019_v3 = vmul.f32 %v8906_v7, %v8821_v63 }
 0x214   : > { %1290 = vmatmul.mubr.f32.gmra.mrb[22].mxu1 %v1106_v28  ;;  %v921_v28 = vmul.f32 1.442695, %v864_v44  ;;  %v7256_v36 = vpop.eup %7255  ;;  %v1052_v35 = vadd.f32 2.0, %v8917_v1  ;;  %v869_v2 = vmin.f32 %v8937_v42, 20.0 }
 0x215   : > { %1295 = vmatprep.mubr.f32.mxu1 %v8223_v40  ;;  %v7258_v52 = vpop.eup %7257  ;;  %v957_v59 = vadd.f32 2.0, %v7256_v36 }
 0x216   : > { %7269 = vpow2.f32 %v921_v28  ;;  %6611 = vmatpush1.bf16.msra.mxu1 %v6610_v45  ;;  %v7260_v22 = vpop.eup %7259  ;;  %v1111_v8 = vmul.f32 %v7258_v52, %v1015_v25  ;;  %v870_v28 = vmin.f32 %v8944_v18, 20.0 }
 0x217   : > { %6612 = vmatprep.subr.bf16.mxu1 %v8224_v23  ;;  %v7262_v60 = vpop.eup %7261  ;;  %7271 = vpow2.f32 %v923_v16  ;;  %v958_v13 = vadd.f32 2.0, %v7260_v22 }
 0x218   : > { %1296 = vmatmul.mubr.f32.gmra.mrb[24].mxu1 %v1107_v21  ;;  %v8915_v21 = vadd.f32 %v8647_v41, %v8777_v12  ;;  %v925_v12 = vmul.f32 1.442695, %v866_v15  ;;  %7273 = vrcp.f32 %v1051_v0  ;;  %v7264_v14 = vpop.eup %7263  ;;  %v1112_v39 = vmul.f32 %v7262_v60, %v1016_v34 }
 0x219   : > { %1301 = vmatprep.mubr.f32.mxu1 %v8223_v40  ;;  %v7266_v10 = vpop.eup %7265  ;;  %v990_v48 = vmul.f32 %v7260_v22, %v958_v13  ;;  %v959_v33 = vadd.f32 2.0, %v7264_v14  ;;  %v931_v41 = vmul.f32 1.442695, %v869_v2  ;;  %v933_v63 = vmul.f32 1.442695, %v870_v28  ;;  %v8968_v2 = vld [vmem:[#allocation2] sm:$0xff] }
 0x21a   : > { %v867_v4 = vmin.f32 %v8915_v21, 20.0  ;;  %6614 = vmatpush1.bf16.msra.mxu1 %v6613_v54  ;;  %7275 = vpow2.f32 %v925_v12  ;;  %v1113_v57 = vmul.f32 %v7266_v10, %v1017_v11  ;;  %v3308_v28 = vld [vmem:[#allocation10 + $0xa8] sm:$0xff] }
 0x21b   : > { %6615 = vmatprep.subr.bf16.mxu1 %v8224_v23  ;;  %v7268_v44 = vpop.eup %7267  ;;  %7277 = vrcp.f32 %v1052_v35  ;;  %v991_v20 = vmul.f32 %v7264_v14, %v959_v33  ;;  %v1022_v22 = vmul.f32 %v990_v48, %v8851_v51  ;;  %v3302_v35 = vld [vmem:[#allocation10 + $0x78] sm:$0xff] }
 0x21c   : > { %1302 = vmatmul.mubr.f32.gmra.mrb[26].mxu1 %v1108_v6  ;;  %v989_v6 = vmul.f32 %v7256_v36, %v957_v59  ;;  %v927_v31 = vmul.f32 1.442695, %v867_v4  ;;  %v1114_v62 = vmul.f32 %v7268_v44, %v1018_v29  ;;  %v1020_v36 = vmul.f32 %v8917_v1, %v8829_v19  ;;  %v3301_v4 = vld [vmem:[#allocation10 + $0x70] sm:$0xff]  ;;  %v3304_v44 = vld [vmem:[#allocation10 + $0x88] sm:$0xff] }
 0x21d   : > { %1307 = vmatprep.mubr.f32.mxu1 %v8223_v40  ;;  %v1055_v49 = vadd.f32 2.0, %v991_v20  ;;  %v6616_v11 = vpack.c.bf16 %v3302_v35, %v3301_v4 }
 0x21e   : > { %v1053_v43 = vadd.f32 2.0, %v989_v6  ;;  %7279 = vpow2.f32 %v927_v31  ;;  %v1021_v15 = vmul.f32 %v989_v6, %v8845_v53  ;;  %v1023_v6 = vmul.f32 %v991_v20, %v8867_v47  ;;  %v3303_v31 = vld [vmem:[#allocation10 + $0x80] sm:$0xff] }
 0x21f   : > { %6617 = vmatpush1.bf16.msra.mxu1 %v6616_v11  ;;  %v6619_v47 = vpack.c.bf16 %v3304_v44, %v3303_v31  ;;  %v3315_v11 = vld [vmem:[#allocation10 + $0xe0] sm:$0xff]  ;;  %v2118_v44 = vld [vmem:[#allocation13 + $0x48] sm:$0xff] }
 0x220   : > { %1308 = vmatmul.mubr.f32.gmra.mrb[28].mxu1 %v1109_v58  ;;  %v7270_v30 = vpop.eup %7269  ;;  %v1054_v58 = vadd.f32 2.0, %v990_v48  ;;  %7281 = vrcp.f32 %v1053_v43  ;;  %6618 = vmatprep.subr.bf16.mxu1 %v8224_v23  ;;  %v2117_v31 = vld [vmem:[#allocation13 + $0x40] sm:$0xff] }
 0x221   : > { %1313 = vmatprep.mubr.f32.mxu1 %v8223_v40  ;;  %v960_v50 = vadd.f32 2.0, %v7270_v30  ;;  %v7272_v38 = vpop.eup %7271  ;;  %7283 = vpow2.f32 %v929_v26 }
 0x222   : > { %v7274_v9 = vpop.eup %7273  ;;  %7285 = vrcp.f32 %v1054_v58  ;;  %v961_v32 = vadd.f32 2.0, %v7272_v38  ;;  %v3306_v58 = vld [vmem:[#allocation10 + $0x98] sm:$0xff] }
 0x223   : > { %v992_v24 = vmul.f32 %v7270_v30, %v960_v50  ;;  %v1115_v25 = vmul.f32 %v7274_v9, %v1019_v3  ;;  %7287 = vpow2.f32 %v931_v41  ;;  %6620 = vmatpush1.bf16.msra.mxu1 %v6619_v47  ;;  %v3307_v9 = vld [vmem:[#allocation10 + $0xa0] sm:$0xff] }
 0x224   : > { %1314 = vmatmul.mubr.f32.gmra.mrb[30].mxu1 %v1110_v61  ;;  %v7276_v45 = vpop.eup %7275  ;;  %7289 = vrcp.f32 %v1055_v49  ;;  %v993_v55 = vmul.f32 %v7272_v38, %v961_v32  ;;  %6621 = vmatprep.subr.bf16.mxu1 %v8224_v23  ;;  %v2109_v32 = vld [vmem:[#allocation13] sm:$0xff] }
 0x225   : > { %1319 = vmatprep.mubr.f32.mxu1 %v8223_v40  ;;  %v7278_v61 = vpop.eup %7277  ;;  %v1056_v7 = vadd.f32 2.0, %v992_v24  ;;  %v962_v56 = vadd.f32 2.0, %v7276_v45  ;;  %7291 = vpow2.f32 %v933_v63  ;;  %v1024_v43 = vmul.f32 %v992_v24, %v8878_v46  ;;  %v3310_v63 = vld [vmem:[#allocation10 + $0xb8] sm:$0xff] }
 0x226   : > { %v1116_v16 = vmul.f32 %v7278_v61, %v1020_v36  ;;  %v1057_v1 = vadd.f32 2.0, %v993_v55  ;;  %v1025_v46 = vmul.f32 %v993_v55, %v8893_v37  ;;  %v6625_v37 = vpack.c.bf16 %v3308_v28, %v3307_v9  ;;  %v3309_v61 = vld [vmem:[#allocation10 + $0xb0] sm:$0xff] }
 0x227   : > { %7293 = vrcp.f32 %v1056_v7  ;;  %v994_v19 = vmul.f32 %v7276_v45, %v962_v56  ;;  %v2110_v45 = vld [vmem:[#allocation13 + $0x8] sm:$0xff]  ;;  %v6628_v56 = vpack.c.bf16 %v3310_v63, %v3309_v61  ;;  %v9009_v9 = vld [vmem:[%s11178_s9] ss:$0 sm:$0xff] }
 0x228   : > { %1320 = vmatmul.mubr.f32.gmra.mrb[32].mxu1 %v1111_v8  ;;  %v7280_v52 = vpop.eup %7279  ;;  %7295 = vrcp.f32 %v1057_v1 }
 0x229   : > { %1325 = vmatprep.mubr.f32.mxu1 %v8223_v40  ;;  %v963_v59 = vadd.f32 2.0, %v7280_v52  ;;  %v1058_v60 = vadd.f32 2.0, %v994_v19  ;;  %v1026_v41 = vmul.f32 %v994_v19, %v8903_v5  ;;  %v3312_v19 = vld [vmem:[#allocation10 + $0xc8] sm:$0xff] }
 0x22a   : > { %v7282_v0 = vpop.eup %7281 }
 0x22b   : > { %v7284_v54 = vpop.eup %7283  ;;  %v1117_v34 = vmul.f32 %v7282_v0, %v1021_v15  ;;  %v995_v53 = vmul.f32 %v7280_v52, %v963_v59  ;;  %7297 = vrcp.f32 %v1058_v60  ;;  %v2111_v52 = vld [vmem:[#allocation13 + $0x10] sm:$0xff]  ;;  %v2112_v15 = vld [vmem:[#allocation13 + $0x18] sm:$0xff]  ;;  %v3311_v0 = vld [vmem:[#allocation10 + $0xc0] sm:$0xff] }
 0x22c   : > { %1326 = vmatmul.mubr.f32.gmra.mrb[34].mxu1 %v1112_v39  ;;  %v7286_v8 = vpop.eup %7285  ;;  %v964_v12 = vadd.f32 2.0, %v7284_v54  ;;  %v6631_v59 = vpack.c.bf16 %v3312_v19, %v3311_v0  ;;  %v3313_v60 = vld [vmem:[#allocation10 + $0xd0] sm:$0xff] }
 0x22d   : > { %1331 = vmatprep.mubr.f32.mxu1 %v8223_v40  ;;  %v7288_v13 = vpop.eup %7287  ;;  %v1118_v14 = vmul.f32 %v7286_v8, %v1022_v22  ;;  %v1059_v10 = vadd.f32 2.0, %v995_v53  ;;  %v1027_v7 = vmul.f32 %v995_v53, %v8915_v21  ;;  %v2113_v22 = vld [vmem:[#allocation13 + $0x20] sm:$0xff]  ;;  %v3321_v19 = vld [vmem:[#allocation10 + $0x110] sm:$0xff] }
 0x22e   : > { %v7290_v39 = vpop.eup %7289  ;;  %v8960_v51 = vmul.f32 %v7284_v54, %v964_v12  ;;  %v965_v17 = vadd.f32 2.0, %v7288_v13  ;;  %v3314_v12 = vld [vmem:[#allocation10 + $0xd8] sm:$0xff] }
 0x22f   : > { %v7292_v48 = vpop.eup %7291  ;;  %v1119_v33 = vmul.f32 %v7290_v39, %v1023_v6  ;;  %7299 = vrcp.f32 %v1059_v10  ;;  %v6634_v4 = vpack.c.bf16 %v3314_v12, %v3313_v60  ;;  %v2116_v6 = vld [vmem:[#allocation13 + $0x38] sm:$0xff]  ;;  %v3316_v39 = vld [vmem:[#allocation10 + $0xe8] sm:$0xff] }
 0x230   : > { %1332 = vmatmul.mubr.f32.gmra.mrb[36].mxu1 %v1113_v57  ;;  %v1060_v29 = vadd.f32 2.0, %v8960_v51  ;;  %v966_v57 = vadd.f32 2.0, %v7292_v48  ;;  %v8966_v26 = vmul.f32 %v7288_v13, %v965_v17  ;;  %v1028_v21 = vmul.f32 %v8960_v51, %v8926_v27  ;;  %v2115_v13 = vld [vmem:[#allocation13 + $0x30] sm:$0xff] }
 0x231   : > { %1337 = vmatprep.mubr.f32.mxu1 %v8223_v40  ;;  %v7294_v30 = vpop.eup %7293  ;;  %v6637_v10 = vpack.c.bf16 %v3316_v39, %v3315_v11 }
 0x232   : > { %v1120_v50 = vmul.f32 %v7294_v30, %v1024_v43  ;;  %v7296_v38 = vpop.eup %7295  ;;  %7301 = vrcp.f32 %v1060_v29  ;;  %v8973_v3 = vmul.f32 %v7292_v48, %v966_v57  ;;  %v1029_v53 = vmul.f32 %v8966_v26, %v8937_v42  ;;  %v3317_v43 = vld [vmem:[#allocation10 + $0xf0] sm:$0xff]  ;;  %v2120_v29 = vld [vmem:[#allocation13 + $0x58] sm:$0xff] }
 0x233   : > { %v1121_v24 = vmul.f32 %v7296_v38, %v1025_v46  ;;  %v6578_v48 = vpack.c.bf16 %v2118_v44, %v2117_v31  ;;  %v2119_v30 = vld [vmem:[#allocation13 + $0x50] sm:$0xff]  ;;  %v2124_v38 = vld [vmem:[#allocation13 + $0x78] sm:$0xff] }
 0x234   : > { %1338 = vmatmul.mubr.f32.gmra.mrb[38].mxu1 %v1114_v62  ;;  %v1061_v62 = vadd.f32 2.0, %v8966_v26  ;;  %v1062_v36 = vadd.f32 2.0, %v8973_v3  ;;  %v1030_v51 = vmul.f32 %v8973_v3, %v8944_v18  ;;  %v6582_v57 = vpack.c.bf16 %v2120_v29, %v2119_v30  ;;  %v2486_v26 = vld [vmem:[#allocation2 + $0x1] sm:$0xff] }
 0x235   : > { %1343 = vmatprep.mubr.f32.mxu1 %v8223_v40  ;;  %v7298_v49 = vpop.eup %7297  ;;  %v3325_v29 = vld [vmem:[#allocation10 + $0x130] sm:$0xff] }
 0x236   : > { %7303 = vrcp.f32 %v1061_v62  ;;  %v1122_v5 = vmul.f32 %v7298_v49, %v1026_v41  ;;  %v9004_v62 = vld [vmem:[%s11173_s4] ss:$0 sm:$0xff]  ;;  %v3320_v49 = vld [vmem:[#allocation10 + $0x108] sm:$0xff] }
 0x237   : > { %7305 = vrcp.f32 %v1062_v36 }
 0x238   : > { %1344 = vmatmul.mubr.f32.gmra.mrb[40].mxu1 %v1115_v25  ;;  %v6562_v25 = vpack.c.bf16 %v2110_v45, %v2109_v32 }
 0x239   : > { %1349 = vmatprep.mubr.f32.mxu1 %v8223_v40  ;;  %v7300_v55 = vpop.eup %7299 }
 0x23a   : > { %6563 = vmatprep.subr.bf16.mxu0 %v6562_v25  ;;  %v1123_v1 = vmul.f32 %v7300_v55, %v1027_v7 }
 0x23b   : > { %6565 = vmatpush3.bf16.msra.mxu0 %v6562_v25 }
 0x23c   : > { %1350 = vmatmul.mubr.f32.gmra.mrb[42].mxu1 %v1116_v16  ;;  %v6566_v16 = vpack.c.bf16 %v2112_v15, %v2111_v52  ;;  %v7302_v54 = vpop.eup %7301 }
 0x23d   : > { %1355 = vmatprep.mubr.f32.mxu1 %v8223_v40  ;;  %v1124_v27 = vmul.f32 %v7302_v54, %v1028_v21  ;;  %v3322_v21 = vld [vmem:[#allocation10 + $0x118] sm:$0xff] }
 0x23e   : > { %6567 = vmatprep.subr.bf16.mxu0 %v6566_v16 }
 0x23f   : > { %6569 = vmatpush3.bf16.msra.mxu0 %v6566_v16 }
 0x240   : > { %1356 = vmatmul.mubr.f32.gmra.mrb[44].mxu1 %v1117_v34  ;;  %v2114_v34 = vld [vmem:[#allocation13 + $0x28] sm:$0xff]  ;;  %v7304_v35 = vpop.eup %7303 }
 0x241   : > { %1361 = vmatprep.mubr.f32.mxu1 %v8223_v40  ;;  %v6570_v8 = vpack.c.bf16 %v2114_v34, %v2113_v22  ;;  %v1125_v42 = vmul.f32 %v7304_v35, %v1029_v53  ;;  %v7306_v17 = vpop.eup %7305  ;;  %v6646_v22 = vpack.c.bf16 %v3322_v21, %v3321_v19  ;;  %v9080_v21 = vld [vmem:[#allocation10 + $0x220] sm:$0xff] }
 0x242   : > { %v1126_v47 = vmul.f32 %v7306_v17, %v1030_v51 }
 0x243   : > { %6571 = vmatprep.subr.bf16.mxu0 %v6570_v8 }
 0x244   : > { %1362 = vmatmul.mubr.f32.gmra.mrb[46].mxu1 %v1118_v14  ;;  %6573 = vmatpush3.bf16.msra.mxu0 %v6570_v8  ;;  %v6574_v14 = vpack.c.bf16 %v2116_v6, %v2115_v13  ;;  %v3323_v6 = vld [vmem:[#allocation10 + $0x120] sm:$0xff] }
 0x245   : > { %1367 = vmatprep.mubr.f32.mxu1 %v8223_v40  ;;  %v3305_v40 = vld [vmem:[#allocation10 + $0x90] sm:$0xff] }
 0x246   : > { %v6622_v20 = vpack.c.bf16 %v3306_v58, %v3305_v40  ;;  %6575 = vmatprep.subr.bf16.mxu0 %v6574_v14  ;;  %v2121_v40 = vld [vmem:[#allocation13 + $0x60] sm:$0xff]  ;;  %v2122_v58 = vld [vmem:[#allocation13 + $0x68] sm:$0xff] }
 0x247   : > { %v6586_v46 = vpack.c.bf16 %v2122_v58, %v2121_v40 }
 0x248   : > { %1368 = vmatmul.mubr.f32.gmra.mrb[48].mxu1 %v1119_v33  ;;  %6577 = vmatpush3.bf16.msra.mxu0 %v6574_v14  ;;  %v3318_v33 = vld [vmem:[#allocation10 + $0xf8] sm:$0xff]  ;;  %v3324_v14 = vld [vmem:[#allocation10 + $0x128] sm:$0xff] }
 0x249   : > { %1373 = vmatprep.mubr.f32.mxu1 %v8968_v2  ;;  %6623 = vmatpush1.bf16.msra.mxu1 %v6622_v20  ;;  %v6640_v18 = vpack.c.bf16 %v3318_v33, %v3317_v43  ;;  %v2123_v20 = vld [vmem:[#allocation13 + $0x70] sm:$0xff]  ;;  %v6649_v51 = vpack.c.bf16 %v3324_v14, %v3323_v6 }
 0x24a   : > { %6624 = vmatprep.subr.bf16.mxu1 %v8224_v23  ;;  %6579 = vmatprep.subr.bf16.mxu0 %v6578_v48  ;;  %v6590_v3 = vpack.c.bf16 %v2124_v38, %v2123_v20 }
 0x24c   : > { %1374 = vmatmul.mubr.f32.gmra.mrb[50].mxu1 %v1120_v50  ;;  %6581 = vmatpush3.bf16.msra.mxu0 %v6578_v48  ;;  %v2487_v50 = vld [vmem:[#allocation2 + $0x9] sm:$0xff] }
 0x24d   : > { %1379 = vmatprep.mubr.f32.mxu1 %v8968_v2  ;;  %6626 = vmatpush1.bf16.msra.mxu1 %v6625_v37  ;;  %v3319_v37 = vld [vmem:[#allocation10 + $0x100] sm:$0xff] }
 0x24e   : > { %6627 = vmatprep.subr.bf16.mxu1 %v8224_v23  ;;  %6583 = vmatprep.subr.bf16.mxu0 %v6582_v57  ;;  %v6643_v45 = vpack.c.bf16 %v3320_v49, %v3319_v37  ;;  %v9066_v49 = vld [vmem:[#allocation10 + $0x200] sm:$0xff] }
 0x250   : > { %1380 = vmatmul.mubr.f32.gmra.mrb[52].mxu1 %v1121_v24  ;;  %6585 = vmatpush3.bf16.msra.mxu0 %v6582_v57  ;;  %v9017_v24 = vld [vmem:[%s11233_s8] ss:$0 sm:$0xff]  ;;  %v3326_v57 = vld [vmem:[#allocation10 + $0x138] sm:$0xff] }
 0x251   : > { %1385 = vmatprep.mubr.f32.mxu1 %v8968_v2  ;;  %6629 = vmatpush1.bf16.msra.mxu1 %v6628_v56  ;;  %v6652_v40 = vpack.c.bf16 %v3326_v57, %v3325_v29 }
 0x252   : > { %6630 = vmatprep.subr.bf16.mxu1 %v8224_v23  ;;  %6587 = vmatprep.subr.bf16.mxu0 %v6586_v46 }
 0x254   : > { %1386 = vmatmul.mubr.f32.gmra.mrb[54].mxu1 %v1122_v5  ;;  %6589 = vmatpush3.bf16.msra.mxu0 %v6586_v46 }
 0x255   : > { %1391 = vmatprep.mubr.f32.mxu1 %v8968_v2  ;;  %6632 = vmatpush1.bf16.msra.mxu1 %v6631_v59 }
 0x256   : > { %6633 = vmatprep.subr.bf16.mxu1 %v8224_v23  ;;  %6591 = vmatprep.subr.bf16.mxu0 %v6590_v3 }
 0x258   : > { %1392 = vmatmul.mubr.f32.gmra.mrb[56].mxu1 %v1123_v1  ;;  %6593 = vmatpush3.bf16.msra.mxu0 %v6590_v3 }
 0x259   : > { %1397 = vmatprep.mubr.f32.mxu1 %v8968_v2  ;;  %6635 = vmatpush1.bf16.msra.mxu1 %v6634_v4 }
 0x25a   : > { %6636 = vmatprep.subr.bf16.mxu1 %v8224_v23  ;;  %6690 = vmatprep.subr.bf16.mxu0 %v8224_v23 }
 0x25c   : > { %1398 = vmatmul.mubr.f32.gmra.mrb[58].mxu1 %v1124_v27 }
 0x25d   : > { %1403 = vmatprep.mubr.f32.mxu1 %v8968_v2  ;;  %6638 = vmatpush1.bf16.msra.mxu1 %v6637_v10 }
 0x25e   : > { %6639 = vmatprep.subr.bf16.mxu1 %v8224_v23 }
 0x260   : > { %1404 = vmatmul.mubr.f32.gmra.mrb[60].mxu1 %v1125_v42 }
 0x261   : > { %1409 = vmatprep.mubr.f32.mxu1 %v8968_v2  ;;  %6641 = vmatpush1.bf16.msra.mxu1 %v6640_v18 }
 0x262   : > { %6642 = vmatprep.subr.bf16.mxu1 %v8224_v23 }
 0x264   : > { %1410 = vmatmul.mubr.f32.gmra.mrb[62].mxu1 %v1126_v47 }
 0x265   : > { %3502 = vmatprep.mubr.f32.mxu1 %v2486_v26 }
 0x268   : > { %3503 = vmatmul.mubr.f32.vlgmr.msra.gmra.mrb[64].mxu1 %v8968_v2 }
 0x269   : > { %3507 = vmatprep.mubr.f32.mxu1 %v2487_v50  ;;  %6644 = vmatpush1.bf16.msra.mxu1 %v6643_v45 }
 0x26a   : > { %6645 = vmatprep.subr.bf16.mxu1 %v8224_v23 }
 0x26c   : > { %3508 = vmatmul.mubr.f32.gmra.mrb[66].mxu1 %v8968_v2 }
 0x26d   : > { %6647 = vmatpush1.bf16.msra.mxu1 %v6646_v22 }
 0x26e   : > { %6648 = vmatprep.subr.bf16.mxu1 %v8224_v23 }
 0x271   : > { %6650 = vmatpush1.bf16.msra.mxu1 %v6649_v51 }
 0x272   : > { %6651 = vmatprep.subr.bf16.mxu1 %v8224_v23 }
 0x275   : > { %6653 = vmatpush1.bf16.msra.mxu1 %v6652_v40 }
 0x276   : > { %6654 = vmatprep.subr.bf16.mxu1 %v8224_v23 }
 0x2bb   : > { %v1225_v28 = vpop.f32.mrb[0].mxu1 }
 0x2bc   : > { %v9012_v41 = vadd.f32 %v9004_v62, %v1225_v28  ;;  %v1227_v2 = vpop.f32.mrb[1].mxu1 }
 0x2bd   : > { %v1750_v32 = vmul.f32 %v9009_v9, %v1227_v2 }
 0x2be   : > { %v1455_v36 = vmin.f32 %v9012_v41, 20.0 }
 0x2bf   : > { %v9022_v25 = vadd.f32 %v9017_v24, %v1750_v32  ;;  %v1231_v61 = vpop.f32.mrb[2].mxu1 }
 0x2c0   : > { %v1487_v63 = vmul.f32 1.442695, %v1455_v36  ;;  %v9025_v7 = vadd.f32 %v9004_v62, %v1231_v61  ;;  %v1233_v5 = vpop.f32.mrb[3].mxu1  ;;  %v9068_v61 = vld [vmem:[#allocation10 + $0x208] sm:$0xff] }
 0x2c1   : > { %v1821_v56 = vmin.f32 %v9022_v25, 20.0  ;;  %v1751_v55 = vmul.f32 %v9009_v9, %v1233_v5  ;;  %v9072_v5 = vld [vmem:[#allocation10 + $0x218] sm:$0xff] }
 0x2c2   : > { %7307 = vpow2.f32 %v1487_v63  ;;  %v1456_v52 = vmin.f32 %v9025_v7, 20.0  ;;  %v9070_v63 = vld [vmem:[#allocation10 + $0x210] sm:$0xff] }
 0x2c3   : > { %v1853_v15 = vmul.f32 1.442695, %v1821_v56  ;;  %v9032_v16 = vadd.f32 %v9017_v24, %v1751_v55  ;;  %v1237_v0 = vpop.f32.mrb[4].mxu1 }
 0x2c4   : > { %v1489_v1 = vmul.f32 1.442695, %v1456_v52  ;;  %v9035_v59 = vadd.f32 %v9004_v62, %v1237_v0  ;;  %v1239_v54 = vpop.f32.mrb[5].mxu1 }
 0x2c5   : > { %7309 = vpow2.f32 %v1853_v15  ;;  %v1822_v34 = vmin.f32 %v9032_v16, 20.0  ;;  %v1752_v8 = vmul.f32 %v9009_v9, %v1239_v54 }
 0x2c6   : > { %7311 = vpow2.f32 %v1489_v1  ;;  %v1457_v60 = vmin.f32 %v9035_v59, 20.0  ;;  %v9082_v1 = vld [vmem:[#allocation10 + $0x228] sm:$0xff] }
 0x2c7   : > { %v1855_v12 = vmul.f32 1.442695, %v1822_v34  ;;  %v9041_v53 = vadd.f32 %v9017_v24, %v1752_v8  ;;  %v1243_v27 = vpop.f32.mrb[6].mxu1 }
 0x2c8   : > { %v1491_v4 = vmul.f32 1.442695, %v1457_v60  ;;  %v9045_v35 = vadd.f32 %v9004_v62, %v1243_v27  ;;  %v1245_v13 = vpop.f32.mrb[7].mxu1  ;;  %v6691_v60 = vpack.c.bf16 %v9068_v61, %v9066_v49  ;;  %v3327_v27 = vld [vmem:[#allocation10 + $0x140] sm:$0xff] }
 0x2c9   : > { %7313 = vpow2.f32 %v1855_v12  ;;  %v1823_v11 = vmin.f32 %v9041_v53, 20.0  ;;  %v1753_v39 = vmul.f32 %v9009_v9, %v1245_v13  ;;  %v6694_v12 = vpack.c.bf16 %v9072_v5, %v9070_v63 }
 0x2ca   : > { %7315 = vpow2.f32 %v1491_v4  ;;  %v1458_v42 = vmin.f32 %v9045_v35, 20.0  ;;  %v3328_v4 = vld [vmem:[#allocation10 + $0x148] sm:$0xff] }
 0x2cb   : > { %v1857_v10 = vmul.f32 1.442695, %v1823_v11  ;;  %v9051_v17 = vadd.f32 %v9017_v24, %v1753_v39  ;;  %v1249_v31 = vpop.f32.mrb[8].mxu1 }
 0x2cc   : > { %v7308_v44 = vpop.eup %7307  ;;  %v1493_v48 = vmul.f32 1.442695, %v1458_v42  ;;  %v9054_v43 = vadd.f32 %v9004_v62, %v1249_v31  ;;  %v1251_v33 = vpop.f32.mrb[9].mxu1 }
 0x2cd   : > { %v1551_v47 = vadd.f32 2.0, %v7308_v44  ;;  %7317 = vpow2.f32 %v1857_v10  ;;  %v1824_v18 = vmin.f32 %v9051_v17, 20.0  ;;  %v1754_v30 = vmul.f32 %v9009_v9, %v1251_v33 }
 0x2ce   : > { %7319 = vpow2.f32 %v1493_v48  ;;  %v1459_v26 = vmin.f32 %v9054_v43, 20.0  ;;  %v6697_v10 = vpack.c.bf16 %v9082_v1, %v9080_v21 }
 0x2cf   : > { %v7310_v58 = vpop.eup %7309  ;;  %v1583_v46 = vmul.f32 %v7308_v44, %v1551_v47  ;;  %v1859_v50 = vmul.f32 1.442695, %v1824_v18  ;;  %v9061_v20 = vadd.f32 %v9017_v24, %v1754_v30  ;;  %v1255_v38 = vpop.f32.mrb[10].mxu1  ;;  %v6655_v47 = vpack.c.bf16 %v3328_v4, %v3327_v27 }
 0x2d0   : > { %v7312_v3 = vpop.eup %7311  ;;  %v1495_v28 = vmul.f32 1.442695, %v1459_v26  ;;  %v9064_v2 = vadd.f32 %v9004_v62, %v1255_v38  ;;  %v1257_v37 = vpop.f32.mrb[11].mxu1  ;;  %v1917_v45 = vadd.f32 2.0, %v7310_v58  ;;  %v9099_v38 = vld [vmem:[#allocation10 + $0x230] sm:$0xff] }
 0x2d1   : > { %v1647_v32 = vadd.f32 2.0, %v1583_v46  ;;  %v1552_v36 = vadd.f32 2.0, %v7312_v3  ;;  %7321 = vpow2.f32 %v1859_v50  ;;  %v1825_v56 = vmin.f32 %v9061_v20, 20.0  ;;  %6656 = vmatpush1.bf16.msra.mxu1 %v6655_v47 }
 0x2d2   : > { %7323 = vpow2.f32 %v1495_v28  ;;  %v1460_v55 = vmin.f32 %v9064_v2, 20.0  ;;  %v1755_v0 = vmul.f32 %v9009_v9, %v1257_v37  ;;  %v1949_v13 = vmul.f32 %v7310_v58, %v1917_v45  ;;  %6657 = vmatprep.subr.bf16.mxu1 %v8224_v23 }
 0x2d3   : > { %v7314_v52 = vpop.eup %7313  ;;  %7325 = vrcp.f32 %v1647_v32  ;;  %v9077_v15 = vmul.f32 %v7312_v3, %v1552_v36  ;;  %v1261_v19 = vpop.f32.mrb[12].mxu1  ;;  %v1861_v34 = vmul.f32 1.442695, %v1825_v56  ;;  %v1615_v30 = vmul.f32 %v1583_v46, %v9012_v41  ;;  %v9101_v3 = vld [vmem:[#allocation10 + $0x238] sm:$0xff] }
 0x2d4   : > { %v7316_v54 = vpop.eup %7315  ;;  %v1918_v22 = vadd.f32 2.0, %v7314_v52  ;;  %v1263_v8 = vpop.f32.mrb[13].mxu1  ;;  %v1497_v11 = vmul.f32 1.442695, %v1460_v55  ;;  %v9090_v51 = vadd.f32 %v9017_v24, %v1755_v0  ;;  %v9093_v42 = vadd.f32 %v9004_v62, %v1261_v19 }
 0x2d5   : > { %v1648_v6 = vadd.f32 2.0, %v9077_v15  ;;  %v1553_v14 = vadd.f32 2.0, %v7316_v54  ;;  %v1756_v48 = vmul.f32 %v9009_v9, %v1263_v8  ;;  %v2013_v40 = vadd.f32 2.0, %v1949_v13 }
 0x2d6   : > { %v1950_v39 = vmul.f32 %v7314_v52, %v1918_v22  ;;  %v1826_v37 = vmin.f32 %v9090_v51, 20.0  ;;  %v1461_v41 = vmin.f32 %v9093_v42, 20.0  ;;  %v9115_v52 = vmul.f32 %v1949_v13, %v9022_v25 }
 0x2d7   : > { %v7318_v31 = vpop.eup %7317  ;;  %7327 = vrcp.f32 %v1648_v6  ;;  %v1585_v44 = vmul.f32 %v7316_v54, %v1553_v14  ;;  %v1267_v33 = vpop.f32.mrb[14].mxu1  ;;  %v9109_v45 = vadd.f32 %v9017_v24, %v1756_v48  ;;  %v6700_v22 = vpack.c.bf16 %v9101_v3, %v9099_v38 }
 0x2d8   : > { %v7320_v18 = vpop.eup %7319  ;;  %v2014_v29 = vadd.f32 2.0, %v1950_v39  ;;  %v1919_v57 = vadd.f32 2.0, %v7318_v31  ;;  %7329 = vpow2.f32 %v1861_v34  ;;  %v1269_v26 = vpop.f32.mrb[15].mxu1  ;;  %v9112_v36 = vadd.f32 %v9004_v62, %v1267_v33 }
 0x2d9   : > { %v1649_v58 = vadd.f32 2.0, %v1585_v44  ;;  %v1554_v50 = vadd.f32 2.0, %v7320_v18  ;;  %7331 = vpow2.f32 %v1497_v11  ;;  %v1863_v19 = vmul.f32 1.442695, %v1826_v37 }
 0x2da   : > { %7333 = vrcp.f32 %v2014_v29  ;;  %v9103_v28 = vmul.f32 %v7318_v31, %v1919_v57  ;;  %v1499_v4 = vmul.f32 1.442695, %v1461_v41  ;;  %v1827_v31 = vmin.f32 %v9109_v45, 20.0 }
 0x2db   : > { %v7322_v46 = vpop.eup %7321  ;;  %7335 = vrcp.f32 %v1649_v58  ;;  %v1586_v32 = vmul.f32 %v7320_v18, %v1554_v50  ;;  %v1273_v56 = vpop.f32.mrb[16].mxu1  ;;  %v1462_v13 = vmin.f32 %v9112_v36, 20.0  ;;  %v1757_v48 = vmul.f32 %v9009_v9, %v1269_v26 }
 0x2dc   : > { %v7324_v55 = vpop.eup %7323  ;;  %v1920_v0 = vadd.f32 2.0, %v7322_v46  ;;  %v1275_v54 = vpop.f32.mrb[17].mxu1  ;;  %7337 = vrcp.f32 %v2013_v40  ;;  %v2015_v14 = vadd.f32 2.0, %v9103_v28  ;;  %v1616_v47 = vmul.f32 %v9077_v15, %v9025_v7 }
 0x2dd   : > { %v7326_v34 = vpop.eup %7325  ;;  %v1650_v8 = vadd.f32 2.0, %v1586_v32  ;;  %v1555_v27 = vadd.f32 2.0, %v7324_v55  ;;  %v1982_v18 = vmul.f32 %v1950_v39, %v9032_v16  ;;  %v1617_v40 = vmul.f32 %v1585_v44, %v9035_v59 }
 0x2de   : > { %v1711_v6 = vmul.f32 %v7326_v34, %v1615_v30  ;;  %v9120_v11 = vmul.f32 %v7322_v46, %v1920_v0  ;;  %v1865_v30 = vmul.f32 1.442695, %v1827_v31  ;;  %v1501_v50 = vmul.f32 1.442695, %v1462_v13 }
 0x2df   : > { %7339 = vrcp.f32 %v1650_v8  ;;  %v1587_v25 = vmul.f32 %v7324_v55, %v1555_v27  ;;  %v1279_v33 = vpop.f32.mrb[18].mxu1  ;;  %v9130_v26 = vadd.f32 %v9017_v24, %v1757_v48  ;;  %v9133_v7 = vadd.f32 %v9004_v62, %v1273_v56 }
 0x2e0   : > { %2390 = vst [vmem:[#allocation2 + $0x19] sm:$0xff] %v1711_v6  ;;  %7341 = vpow2.f32 %v1863_v19  ;;  %v1281_v29 = vpop.f32.mrb[19].mxu1  ;;  %3512 = vmatprep.mubr.f32.mxu1 %v1711_v6  ;;  %v2016_v15 = vadd.f32 2.0, %v9120_v11  ;;  %v1758_v39 = vmul.f32 %v9009_v9, %v1275_v54  ;;  %v9138_v59 = vadd.f32 %v9004_v62, %v1279_v33 }
 0x2e1   : > { %v7328_v57 = vpop.eup %7327  ;;  %v1651_v58 = vadd.f32 2.0, %v1587_v25  ;;  %7343 = vpow2.f32 %v1499_v4  ;;  %v1828_v0 = vmin.f32 %v9130_v26, 20.0  ;;  %v1463_v19 = vmin.f32 %v9133_v7, 20.0 }
 0x2e2   : > { %v7330_v37 = vpop.eup %7329  ;;  %v1712_v41 = vmul.f32 %v7328_v57, %v1616_v47  ;;  %7345 = vrcp.f32 %v2015_v14  ;;  %v1618_v8 = vmul.f32 %v1586_v32, %v9045_v35  ;;  %v9144_v54 = vadd.f32 %v9017_v24, %v1758_v39 }
 0x2e3   : > { %v7332_v16 = vpop.eup %7331  ;;  %7347 = vrcp.f32 %v1651_v58  ;;  %v1285_v44 = vpop.f32.mrb[20].mxu1  ;;  %v1921_v27 = vadd.f32 2.0, %v7330_v37  ;;  %v1619_v6 = vmul.f32 %v1587_v25, %v9054_v43  ;;  %v1867_v31 = vmul.f32 1.442695, %v1828_v0 }
 0x2e4   : > { %v7334_v46 = vpop.eup %7333  ;;  %2391 = vst [vmem:[#allocation2 + $0x21] sm:$0xff] %v1712_v41  ;;  %v1556_v55 = vadd.f32 2.0, %v7332_v16  ;;  %7349 = vpow2.f32 %v1865_v30  ;;  %v1287_v56 = vpop.f32.mrb[21].mxu1  ;;  %v1503_v48 = vmul.f32 1.442695, %v1463_v19  ;;  %v1829_v33 = vmin.f32 %v9144_v54, 20.0 }
 0x2e5   : > { %v7336_v34 = vpop.eup %7335  ;;  %7351 = vpow2.f32 %v1501_v50  ;;  %v1464_v47 = vmin.f32 %v9138_v59, 20.0  ;;  %v2078_v32 = vmul.f32 %v7334_v46, %v1982_v18  ;;  %v1953_v58 = vmul.f32 %v7330_v37, %v1921_v27 }
 0x2e6   : > { %v1713_v4 = vmul.f32 %v7336_v34, %v1617_v40  ;;  %v9147_v14 = vmul.f32 %v7332_v16, %v1556_v55  ;;  %v7338_v13 = vpop.eup %7337  ;;  %7353 = vrcp.f32 %v2016_v15  ;;  %v1759_v40 = vmul.f32 %v9009_v9, %v1281_v29 }
 0x2e7   : > { %v1291_v30 = vpop.f32.mrb[22].mxu1  ;;  %v2424_v35 = vld [vmem:[#allocation2 + $0x18] sm:$0xff]  ;;  %7355 = vpow2.f32 %v1867_v31  ;;  %v1869_v50 = vmul.f32 1.442695, %v1829_v33  ;;  %v1505_v16 = vmul.f32 1.442695, %v1464_v47  ;;  %v9156_v15 = vadd.f32 %v9004_v62, %v1285_v44 }
 0x2e8   : > { %2392 = vst [vmem:[#allocation2 + $0x31] sm:$0xff] %v1713_v4  ;;  %v1652_v57 = vadd.f32 2.0, %v9147_v14  ;;  %v9153_v43 = vpop.f32.mrb[23].mxu1  ;;  %3513 = vmatmul.mubr.f32.gmra.mrb[68].mxu1 %v2424_v35  ;;  %v9159_v18 = vadd.f32 %v9017_v24, %v1759_v40  ;;  %v2077_v46 = vmul.f32 %v7338_v13, %v9115_v52  ;;  %v1760_v37 = vmul.f32 %v9009_v9, %v1287_v56 }
 0x2e9   : > { %v7340_v25 = vpop.eup %7339  ;;  %3517 = vmatprep.mubr.f32.mxu1 %v1712_v41  ;;  %v1465_v19 = vmin.f32 %v9156_v15, 20.0  ;;  %v9168_v31 = vadd.f32 %v9004_v62, %v1291_v30  ;;  %v9174_v56 = vmul.f32 %v9103_v28, %v9041_v53  ;;  %v9187_v28 = vmul.f32 %v9120_v11, %v9051_v17 }
 0x2ea   : > { %v7342_v39 = vpop.eup %7341  ;;  %v1714_v55 = vmul.f32 %v7340_v25, %v1618_v8  ;;  %7357 = vrcp.f32 %v1652_v57  ;;  %v1830_v8 = vmin.f32 %v9159_v18, 20.0  ;;  %6290 = vmatprep.mubr.f32.mxu0 %v2077_v46  ;;  %v9177_v33 = vadd.f32 %v9017_v24, %v1760_v37 }
 0x2eb   : > { %v7344_v29 = vpop.eup %7343  ;;  %v1922_v0 = vadd.f32 2.0, %v7342_v39  ;;  %7359 = vpow2.f32 %v1503_v48  ;;  %v1297_v34 = vpop.f32.mrb[24].mxu1  ;;  %v2425_v27 = vld [vmem:[#allocation2 + $0x20] sm:$0xff]  ;;  %v1507_v48 = vmul.f32 1.442695, %v1465_v19  ;;  %6291 = vmatmul.mubr.f32.vlgmr.msra.gmra.mrb[32].mxu0 %v2078_v32  ;;  %v1466_v40 = vmin.f32 %v9168_v31, 20.0 }
 0x2ec   : > { %v9164_v44 = vpop.eup %7345  ;;  %2393 = vst [vmem:[#allocation2 + $0x39] sm:$0xff] %v1714_v55  ;;  %v1557_v41 = vadd.f32 2.0, %v7344_v29  ;;  %7361 = vpow2.f32 %v1869_v50  ;;  %v9170_v52 = vpop.f32.mrb[25].mxu1  ;;  %3518 = vmatmul.mubr.f32.gmra.mrb[70].mxu1 %v2425_v27  ;;  %v1871_v30 = vmul.f32 1.442695, %v1830_v8  ;;  %6692 = vmatpush1.bf16.msra.mxu0 %v6691_v60  ;;  %v2017_v25 = vadd.f32 2.0, %v1953_v58 }
 0x2ed   : > { %v7348_v13 = vpop.eup %7347  ;;  %7363 = vpow2.f32 %v1505_v16  ;;  %3522 = vmatprep.mubr.f32.mxu1 %v1713_v4  ;;  %6693 = vmatprep.subr.bf16.mxu0 %v8224_v23  ;;  %v1954_v32 = vmul.f32 %v7342_v39, %v1922_v0  ;;  %v9198_v17 = vmul.f32 %v1953_v58, %v9061_v20  ;;  %v1831_v11 = vmin.f32 %v9177_v33, 20.0 }
 0x2ee   : > { %v7350_v47 = vpop.eup %7349  ;;  %v1715_v35 = vmul.f32 %v7348_v13, %v1619_v6  ;;  %v9179_v57 = vmul.f32 %v7344_v29, %v1557_v41  ;;  %7365 = vpow2.f32 %v1507_v48  ;;  %v1509_v29 = vmul.f32 1.442695, %v1466_v40 }
 0x2ef   : > { %v7352_v53 = vpop.eup %7351  ;;  %v1923_v50 = vadd.f32 2.0, %v7350_v47  ;;  %v9189_v4 = vpop.f32.mrb[26].mxu1  ;;  %v2426_v6 = vld [vmem:[#allocation2 + $0x30] sm:$0xff]  ;;  %7367 = vpow2.f32 %v1871_v30  ;;  %v1620_v39 = vmul.f32 %v9147_v14, %v9064_v2  ;;  %v1761_v37 = vmul.f32 %v9009_v9, %v9153_v43 }
 0x2f0   : > { %2394 = vst [vmem:[#allocation2 + $0x49] sm:$0xff] %v1715_v35  ;;  %v1653_v16 = vadd.f32 2.0, %v9179_v57  ;;  %v1558_v46 = vadd.f32 2.0, %v7352_v53  ;;  %v9193_v49 = vpop.f32.mrb[27].mxu1  ;;  %3523 = vmatmul.mubr.f32.gmra.mrb[72].mxu1 %v2426_v6  ;;  %v9195_v61 = vpop.eup %7353  ;;  %6695 = vmatpush1.bf16.msra.mxu0 %v6694_v12  ;;  %v1873_v58 = vmul.f32 1.442695, %v1831_v11  ;;  %v9211_v27 = vadd.f32 %v9004_v62, %v1297_v34 }
 0x2f1   : > { %v1955_v60 = vmul.f32 %v7350_v47, %v1923_v50  ;;  %3527 = vmatprep.mubr.f32.mxu1 %v1714_v55  ;;  %v7356_v19 = vpop.eup %7355  ;;  %6696 = vmatprep.subr.bf16.mxu0 %v8224_v23  ;;  %v2018_v14 = vadd.f32 2.0, %v1954_v32  ;;  %v9218_v43 = vadd.f32 %v9017_v24, %v1761_v37  ;;  %v9223_v34 = vmul.f32 %v1954_v32, %v9090_v51 }
 0x2f2   : > { %7369 = vrcp.f32 %v1653_v16  ;;  %v9203_v0 = vmul.f32 %v7352_v53, %v1558_v46  ;;  %v1924_v20 = vadd.f32 2.0, %v7356_v19  ;;  %v2079_v53 = vmul.f32 %v9164_v44, %v9174_v56 }
 0x2f3   : > { %7371 = vrcp.f32 %v2017_v25  ;;  %v9213_v55 = vpop.f32.mrb[28].mxu1  ;;  %v2427_v41 = vld [vmem:[#allocation2 + $0x38] sm:$0xff]  ;;  %v2019_v13 = vadd.f32 2.0, %v1955_v60  ;;  %v1832_v40 = vmin.f32 %v9218_v43, 20.0  ;;  %v1467_v6 = vmin.f32 %v9211_v27, 20.0 }
 0x2f4   : > { %v7358_v2 = vpop.eup %7357  ;;  %v1654_v8 = vadd.f32 2.0, %v9203_v0  ;;  %7373 = vpow2.f32 %v1509_v29  ;;  %v9220_v63 = vpop.f32.mrb[29].mxu1  ;;  %3528 = vmatmul.mubr.f32.gmra.mrb[74].mxu1 %v2427_v41  ;;  %v1956_v48 = vmul.f32 %v7356_v19, %v1924_v20  ;;  %6698 = vmatpush1.bf16.msra.mxu0 %v6697_v10  ;;  %v1621_v44 = vmul.f32 %v9179_v57, %v9093_v42 }
 0x2f5   : > { %v7360_v5 = vpop.eup %7359  ;;  %v1716_v12 = vmul.f32 %v7358_v2, %v1620_v39  ;;  %3532 = vmatprep.mubr.f32.mxu1 %v1715_v35  ;;  %6699 = vmatprep.subr.bf16.mxu0 %v8224_v23  ;;  %v9240_v10 = vmul.f32 %v1955_v60, %v9109_v45  ;;  %v1875_v46 = vmul.f32 1.442695, %v1832_v40  ;;  %v1762_v11 = vmul.f32 %v9009_v9, %v9170_v52 }
 0x2f6   : > { %v7362_v47 = vpop.eup %7361  ;;  %7375 = vrcp.f32 %v1654_v8  ;;  %v1559_v30 = vadd.f32 2.0, %v7360_v5  ;;  %v2020_v50 = vadd.f32 2.0, %v1956_v48  ;;  %6293 = vmatprep.mubr.f32.mxu0 %v2079_v53  ;;  %v9248_v57 = vadd.f32 %v9004_v62, %v9189_v4 }
 0x2f7   : > { %v7364_v25 = vpop.eup %7363  ;;  %2395 = vst [vmem:[#allocation2 + $0x51] sm:$0xff] %v1716_v12  ;;  %v1925_v51 = vadd.f32 2.0, %v7362_v47  ;;  %7377 = vpow2.f32 %v1873_v58  ;;  %v9232_v35 = vpop.f32.mrb[30].mxu1  ;;  %v2428_v32 = vld [vmem:[#allocation2 + $0x48] sm:$0xff]  ;;  %v1511_v37 = vmul.f32 1.442695, %v1467_v6  ;;  %v1622_v58 = vmul.f32 %v9203_v0, %v9112_v36 }
 0x2f8   : > { %7379 = vrcp.f32 %v2018_v14  ;;  %v1591_v56 = vmul.f32 %v7360_v5, %v1559_v30  ;;  %v1560_v16 = vadd.f32 2.0, %v7364_v25  ;;  %v9237_v21 = vpop.f32.mrb[31].mxu1  ;;  %3533 = vmatmul.mubr.f32.gmra.mrb[76].mxu1 %v2428_v32  ;;  %v7366_v1 = vpop.eup %7365  ;;  %6701 = vmatpush1.bf16.msra.mxu0 %v6700_v22  ;;  %v9262_v22 = vmul.f32 %v1956_v48, %v9130_v26 }
 0x2f9   : > { %7381 = vrcp.f32 %v2019_v13  ;;  %3537 = vmatprep.mubr.f32.mxu1 %v1716_v12  ;;  %v7368_v29 = vpop.eup %7367  ;;  %v1561_v42 = vadd.f32 2.0, %v7366_v1  ;;  %v1957_v45 = vmul.f32 %v7362_v47, %v1925_v51  ;;  %6702 = vmatprep.subr.bf16.mxu0 %v8224_v23  ;;  %v9265_v14 = vadd.f32 %v9017_v24, %v1762_v11 }
 0x2fa   : > { %v1655_v19 = vadd.f32 2.0, %v1591_v56  ;;  %v9244_v39 = vmul.f32 %v7364_v25, %v1560_v16  ;;  %7383 = vrcp.f32 %v2020_v50  ;;  %v1926_v60 = vadd.f32 2.0, %v7368_v29 }
 0x2fb   : > { %v9253_v20 = vpop.f32.mrb[32].mxu1  ;;  %v1593_v41 = vmul.f32 %v7366_v1, %v1561_v42  ;;  %v1623_v5 = vmul.f32 %v1591_v56, %v9133_v7  ;;  %v1468_v0 = vmin.f32 %v9248_v57, 20.0  ;;  %v9270_v13 = vmul.f32 %v1957_v45, %v9144_v54 }
 0x2fc   : > { %v7370_v52 = vpop.eup %7369  ;;  %7385 = vrcp.f32 %v1655_v19  ;;  %v1656_v4 = vadd.f32 2.0, %v9244_v39  ;;  %v9259_v2 = vpop.f32.mrb[33].mxu1  ;;  %v9272_v47 = vmul.f32 %v7368_v29, %v1926_v60  ;;  %v1833_v7 = vmin.f32 %v9265_v14, 20.0 }
 0x2fd   : > { %v7372_v38 = vpop.eup %7371  ;;  %v1717_v3 = vmul.f32 %v7370_v52, %v1621_v44  ;;  %7387 = vpow2.f32 %v1875_v46  ;;  %v1657_v36 = vadd.f32 2.0, %v1593_v41  ;;  %v1513_v40 = vmul.f32 1.442695, %v1468_v0 }
 0x2fe   : > { %v7374_v8 = vpop.eup %7373  ;;  %7389 = vrcp.f32 %v1656_v4  ;;  %v2429_v12 = vld [vmem:[#allocation2 + $0x50] sm:$0xff]  ;;  %v2080_v53 = vmul.f32 %v9195_v61, %v9187_v28  ;;  %v2021_v51 = vadd.f32 2.0, %v1957_v45  ;;  %v1763_v32 = vmul.f32 %v9009_v9, %v9193_v49 }
 0x2ff   : > { %2396 = vst [vmem:[#allocation2 + $0x61] sm:$0xff] %v1717_v3  ;;  %v1562_v26 = vadd.f32 2.0, %v7374_v8  ;;  %7391 = vpow2.f32 %v1511_v37  ;;  %3538 = vmatmul.mubr.f32.gmra.mrb[78].mxu1 %v2429_v12  ;;  %v9274_v48 = vpop.f32.mrb[34].mxu1  ;;  %v1877_v16 = vmul.f32 1.442695, %v1833_v7  ;;  %v9285_v1 = vadd.f32 %v9004_v62, %v9213_v55 }
 0x300   : > { %v7376_v30 = vpop.eup %7375  ;;  %7393 = vrcp.f32 %v1657_v36  ;;  %v9279_v25 = vpop.f32.mrb[35].mxu1  ;;  %3542 = vmatprep.mubr.f32.mxu1 %v1717_v3  ;;  %6294 = vmatmul.mubr.f32.gmra.mrb[34].mxu0 %v2080_v53  ;;  %v2022_v61 = vadd.f32 2.0, %v9272_v47  ;;  %v9289_v11 = vadd.f32 %v9017_v24, %v1763_v32  ;;  %v2081_v29 = vmul.f32 %v7372_v38, %v9198_v17 }
 0x301   : > { %v7378_v54 = vpop.eup %7377  ;;  %v1718_v50 = vmul.f32 %v7376_v30, %v1622_v58  ;;  %v1594_v6 = vmul.f32 %v7374_v8, %v1562_v26  ;;  %7395 = vpow2.f32 %v1513_v40  ;;  %v1469_v42 = vmin.f32 %v9285_v1, 20.0 }
 0x302   : > { %v7380_v44 = vpop.eup %7379  ;;  %v1927_v56 = vadd.f32 2.0, %v7378_v54  ;;  %7397 = vpow2.f32 %v1877_v16  ;;  %v1764_v55 = vmul.f32 %v9009_v9, %v9220_v63  ;;  %v1834_v37 = vmin.f32 %v9289_v11, 20.0  ;;  %6296 = vmatprep.mubr.f32.mxu0 %v2081_v29 }
 0x303   : > { %v7382_v28 = vpop.eup %7381  ;;  %2397 = vst [vmem:[#allocation2 + $0x69] sm:$0xff] %v1718_v50  ;;  %v1658_v46 = vadd.f32 2.0, %v1594_v6  ;;  %v9292_v49 = vpop.f32.mrb[36].mxu1  ;;  %v9306_v17 = vadd.f32 %v9004_v62, %v9232_v35  ;;  %v2082_v52 = vmul.f32 %v7380_v44, %v9223_v34  ;;  %v1624_v4 = vmul.f32 %v9244_v39, %v9138_v59 }
 0x304   : > { %v9294_v19 = vmul.f32 %v7378_v54, %v1927_v56  ;;  %v9299_v45 = vpop.f32.mrb[37].mxu1  ;;  %v9301_v60 = vpop.eup %7383  ;;  %v1625_v63 = vmul.f32 %v1593_v41, %v9156_v15  ;;  %v1515_v38 = vmul.f32 1.442695, %v1469_v42  ;;  %v1879_v0 = vmul.f32 1.442695, %v1834_v37 }
 0x305   : > { %7399 = vrcp.f32 %v1658_v46  ;;  %v9313_v12 = vadd.f32 %v9017_v24, %v1764_v55  ;;  %v1470_v35 = vmin.f32 %v9306_v17, 20.0  ;;  %6297 = vmatmul.mubr.f32.gmra.mrb[36].mxu0 %v2082_v52  ;;  %v1765_v15 = vmul.f32 %v9009_v9, %v9237_v21 }
 0x306   : > { %v7386_v58 = vpop.eup %7385  ;;  %7401 = vrcp.f32 %v2021_v51  ;;  %v2430_v3 = vld [vmem:[#allocation2 + $0x60] sm:$0xff]  ;;  %v2023_v59 = vadd.f32 2.0, %v9294_v19  ;;  %v9323_v39 = vadd.f32 %v9004_v62, %v9253_v20  ;;  %v1626_v54 = vmul.f32 %v1594_v6, %v9168_v31 }
 0x307   : > { %v7388_v8 = vpop.eup %7387  ;;  %v1719_v36 = vmul.f32 %v7386_v58, %v1623_v5  ;;  %3543 = vmatmul.mubr.f32.gmra.mrb[80].mxu1 %v2430_v3  ;;  %v9316_v34 = vpop.f32.mrb[38].mxu1  ;;  %7403 = vrcp.f32 %v2022_v61  ;;  %v1835_v7 = vmin.f32 %v9313_v12, 20.0  ;;  %v1517_v40 = vmul.f32 1.442695, %v1470_v35 }
 0x308   : > { %v7390_v26 = vpop.eup %7389  ;;  %3547 = vmatprep.mubr.f32.mxu1 %v1718_v50  ;;  %v9325_v41 = vpop.f32.mrb[39].mxu1  ;;  %7405 = vpow2.f32 %v1879_v0  ;;  %v1928_v51 = vadd.f32 2.0, %v7388_v8  ;;  %v9332_v44 = vadd.f32 %v9017_v24, %v1765_v15  ;;  %v1471_v31 = vmin.f32 %v9323_v39, 20.0 }
 0x309   : > { %v7392_v5 = vpop.eup %7391  ;;  %2398 = vst [vmem:[#allocation2 + $0x79] sm:$0xff] %v1719_v36  ;;  %v1720_v30 = vmul.f32 %v7390_v26, %v1624_v4  ;;  %7407 = vpow2.f32 %v1515_v38  ;;  %v1881_v50 = vmul.f32 1.442695, %v1835_v7  ;;  %v2083_v6 = vmul.f32 %v7382_v28, %v9240_v10 }
 0x30a   : > { %v7394_v53 = vpop.eup %7393  ;;  %v1563_v32 = vadd.f32 2.0, %v7392_v5  ;;  %v2431_v21 = vld [vmem:[#allocation2 + $0x68] sm:$0xff]  ;;  %7409 = vpow2.f32 %v1517_v40  ;;  %v1836_v42 = vmin.f32 %v9332_v44, 20.0  ;;  %v1766_v55 = vmul.f32 %v9009_v9, %v9259_v2 }
 0x30b   : > { %2399 = vst [vmem:[#allocation2 + $0x81] sm:$0xff] %v1720_v30  ;;  %v9329_v20 = vmul.f32 %v7394_v53, %v1625_v63  ;;  %3548 = vmatmul.mubr.f32.gmra.mrb[82].mxu1 %v2431_v21  ;;  %v9334_v56 = vpop.f32.mrb[40].mxu1  ;;  %v7396_v16 = vpop.eup %7395  ;;  %7411 = vrcp.f32 %v2023_v59  ;;  %v1960_v52 = vmul.f32 %v7388_v8, %v1928_v51  ;;  %v1519_v4 = vmul.f32 1.442695, %v1471_v31  ;;  %6299 = vmatprep.mubr.f32.mxu0 %v2083_v6 }
 0x30c   : > { %v9336_v61 = vmul.f32 %v7392_v5, %v1563_v32  ;;  %3552 = vmatprep.mubr.f32.mxu1 %v1719_v36  ;;  %v9340_v46 = vpop.f32.mrb[41].mxu1  ;;  %v1564_v29 = vadd.f32 2.0, %v7396_v16  ;;  %7413 = vpow2.f32 %v1881_v50  ;;  %v7398_v37 = vpop.eup %7397  ;;  %v9349_v10 = vadd.f32 %v9004_v62, %v9274_v48 }
 0x30d   : > { %2400 = vst [vmem:[#allocation2 + $0x91] sm:$0xff] %v9329_v20  ;;  %v1929_v63 = vadd.f32 2.0, %v7398_v37  ;;  %v1883_v3 = vmul.f32 1.442695, %v1836_v42  ;;  %v9354_v36 = vadd.f32 %v9017_v24, %v1766_v55  ;;  %v2084_v48 = vmul.f32 %v9301_v60, %v9262_v22 }
 0x30e   : > { %v1659_v58 = vadd.f32 2.0, %v9336_v61  ;;  %v9351_v38 = vmul.f32 %v7396_v16, %v1564_v29  ;;  %v1472_v35 = vmin.f32 %v9349_v10, 20.0  ;;  %v9367_v15 = vmul.f32 %v9272_v47, %v9159_v18 }
 0x30f   : > { %v7400_v28 = vpop.eup %7399  ;;  %v9356_v0 = vpop.f32.mrb[42].mxu1  ;;  %v9369_v5 = vmul.f32 %v7398_v37, %v1929_v63  ;;  %v1837_v22 = vmin.f32 %v9354_v36, 20.0  ;;  %6300 = vmatmul.mubr.f32.gmra.mrb[38].mxu0 %v2084_v48  ;;  %v1767_v53 = vmul.f32 %v9009_v9, %v9279_v25  ;;  %v2024_v51 = vadd.f32 2.0, %v1960_v52 }
 0x310   : > { %v7402_v2 = vpop.eup %7401  ;;  %v9358_v8 = vmul.f32 %v7400_v28, %v1626_v54  ;;  %7415 = vrcp.f32 %v1659_v58  ;;  %v2432_v26 = vld [vmem:[#allocation2 + $0x78] sm:$0xff]  ;;  %v9363_v59 = vpop.f32.mrb[43].mxu1  ;;  %v1660_v7 = vadd.f32 2.0, %v9351_v38  ;;  %v1521_v60 = vmul.f32 1.442695, %v1472_v35 }
 0x311   : > { %7417 = vpow2.f32 %v1883_v3  ;;  %3553 = vmatmul.mubr.f32.gmra.mrb[84].mxu1 %v2432_v26  ;;  %v9372_v40 = vpop.eup %7403  ;;  %v9380_v54 = vmul.f32 %v9294_v19, %v9177_v33  ;;  %v9384_v32 = vadd.f32 %v9004_v62, %v9292_v49  ;;  %v1885_v31 = vmul.f32 1.442695, %v1837_v22 }
 0x312   : > { %2401 = vst [vmem:[#allocation2 + $0x99] sm:$0xff] %v9358_v8  ;;  %7419 = vpow2.f32 %v1519_v4  ;;  %3557 = vmatprep.mubr.f32.mxu1 %v1720_v30  ;;  %v2433_v18 = vld [vmem:[#allocation2 + $0x80] sm:$0xff]  ;;  %v7406_v47 = vpop.eup %7405  ;;  %v9389_v9 = vadd.f32 %v9017_v24, %v1767_v53  ;;  %v9394_v33 = vmul.f32 %v1960_v52, %v9218_v43  ;;  %v2085_v62 = vmul.f32 %v7402_v2, %v9270_v13 }
 0x313   : > { %7421 = vrcp.f32 %v1660_v7  ;;  %v9386_v21 = vpop.f32.mrb[44].mxu1  ;;  %v7408_v50 = vpop.eup %7407  ;;  %v1930_v16 = vadd.f32 2.0, %v7406_v47  ;;  %v1473_v6 = vmin.f32 %v9384_v32, 20.0  ;;  %v2025_v29 = vadd.f32 2.0, %v9369_v5  ;;  %v9406_v13 = vld [vmem:[%s11178_s9] ss:$0 sm:$0xff] }
 0x314   : > { %7423 = vpow2.f32 %v1521_v60  ;;  %v9391_v25 = vpop.f32.mrb[45].mxu1  ;;  %v7410_v30 = vpop.eup %7409  ;;  %v1565_v19 = vadd.f32 2.0, %v7408_v50  ;;  %v1838_v24 = vmin.f32 %v9389_v9, 20.0  ;;  %v2434_v55 = vld [vmem:[#allocation2 + $0x90] sm:$0xff]  ;;  %6302 = vmatprep.mubr.f32.mxu0 %v2085_v62  ;;  %v1768_v58 = vmul.f32 %v9406_v13, %v9299_v45  ;;  %v9413_v4 = vld [vmem:[%s11173_s4] ss:$0 sm:$0xff] }
 0x315   : > { %3558 = vmatmul.mubr.f32.gmra.mrb[86].mxu1 %v2433_v18  ;;  %v9398_v49 = vpop.eup %7411  ;;  %v1566_v42 = vadd.f32 2.0, %v7410_v30  ;;  %7425 = vpow2.f32 %v1885_v31  ;;  %v1523_v52 = vmul.f32 1.442695, %v1473_v6  ;;  %v1962_v63 = vmul.f32 %v7406_v47, %v1930_v16 }
 0x316   : > { %3562 = vmatprep.mubr.f32.mxu1 %v9329_v20  ;;  %v7414_v37 = vpop.eup %7413  ;;  %v1597_v43 = vmul.f32 %v7408_v50, %v1565_v19  ;;  %v9417_v20 = vadd.f32 %v9413_v4, %v9316_v34  ;;  %7427 = vrcp.f32 %v2024_v51  ;;  %v1627_v45 = vmul.f32 %v9336_v61, %v9211_v27  ;;  %v9434_v27 = vld [vmem:[%s11233_s8] ss:$0 sm:$0xff] }
 0x317   : > { %v9419_v28 = vpop.f32.mrb[46].mxu1  ;;  %v1931_v3 = vadd.f32 2.0, %v7414_v37  ;;  %v9421_v2 = vmul.f32 %v7410_v30, %v1566_v42  ;;  %v1887_v26 = vmul.f32 1.442695, %v1838_v24  ;;  %7429 = vpow2.f32 %v1523_v52 }
 0x318   : > { %v9423_v35 = vpop.f32.mrb[47].mxu1  ;;  %v1661_v48 = vadd.f32 2.0, %v1597_v43  ;;  %7431 = vrcp.f32 %v2025_v29  ;;  %v1628_v34 = vmul.f32 %v9351_v38, %v9248_v57  ;;  %v9437_v61 = vadd.f32 %v9434_v27, %v1768_v58 }
 0x319   : > { %3563 = vmatmul.mubr.f32.gmra.mrb[88].mxu1 %v2434_v55  ;;  %v1963_v22 = vmul.f32 %v7414_v37, %v1931_v3  ;;  %v1662_v60 = vadd.f32 2.0, %v9421_v2  ;;  %v2435_v53 = vld [vmem:[#allocation2 + $0x98] sm:$0xff]  ;;  %v1474_v51 = vmin.f32 %v9417_v20, 20.0  ;;  %v2026_v50 = vadd.f32 2.0, %v1962_v63 }
 0x31a   : > { %v7416_v7 = vpop.eup %7415  ;;  %3567 = vmatprep.mubr.f32.mxu1 %v9358_v8  ;;  %7433 = vrcp.f32 %v1661_v48  ;;  %v9444_v8 = vmul.f32 %v9369_v5, %v9265_v14  ;;  %v1839_v6 = vmin.f32 %v9437_v61, 20.0  ;;  %v9450_v24 = vmul.f32 %v1962_v63, %v9289_v11 }
 0x31b   : > { %v7418_v18 = vpop.eup %7417  ;;  %v1723_v47 = vmul.f32 %v7416_v7, %v1627_v45  ;;  %v9440_v57 = vpop.f32.mrb[48].mxu1  ;;  %7435 = vrcp.f32 %v1662_v60  ;;  %v1525_v62 = vmul.f32 1.442695, %v1474_v51  ;;  %v2027_v14 = vadd.f32 2.0, %v1963_v22 }
 0x31c   : > { %v7420_v38 = vpop.eup %7419  ;;  %v1932_v16 = vadd.f32 2.0, %v7418_v18  ;;  %v9446_v31 = vpop.f32.mrb[49].mxu1  ;;  %7437 = vpow2.f32 %v1887_v26  ;;  %v2086_v5 = vmul.f32 %v9372_v40, %v9367_v15  ;;  %v1629_v55 = vmul.f32 %v1597_v43, %v9285_v1 }
 0x31d   : > { %v7422_v30 = vpop.eup %7421  ;;  %2402 = vst [vmem:[#allocation2 + $0xa9] sm:$0xff] %v1723_v47  ;;  %v1567_v19 = vadd.f32 2.0, %v7420_v38  ;;  %3568 = vmatmul.mubr.f32.gmra.mrb[90].mxu1 %v2435_v53  ;;  %7439 = vpow2.f32 %v1525_v62  ;;  %v1889_v45 = vmul.f32 1.442695, %v1839_v6  ;;  %v1769_v11 = vmul.f32 %v9406_v13, %v9325_v41 }
 0x31e   : > { %v7424_v29 = vpop.eup %7423  ;;  %v1724_v42 = vmul.f32 %v7422_v30, %v1628_v34  ;;  %3572 = vmatprep.mubr.f32.mxu1 %v1723_v47  ;;  %7441 = vrcp.f32 %v2026_v50  ;;  %6303 = vmatmul.mubr.f32.gmra.mrb[40].mxu0 %v2086_v5  ;;  %v9461_v63 = vadd.f32 %v9413_v4, %v9334_v56  ;;  %v1964_v1 = vmul.f32 %v7418_v18, %v1932_v16 }
 0x31f   : > { %v1599_v37 = vmul.f32 %v7420_v38, %v1567_v19  ;;  %v1568_v52 = vadd.f32 2.0, %v7424_v29  ;;  %v9455_v58 = vpop.f32.mrb[50].mxu1  ;;  %v7426_v3 = vpop.eup %7425  ;;  %7443 = vrcp.f32 %v2027_v14  ;;  %v9468_v7 = vadd.f32 %v9434_v27, %v1769_v11 }
 0x320   : > { %2403 = vst [vmem:[#allocation2 + $0xb1] sm:$0xff] %v1724_v42  ;;  %v9463_v15 = vpop.f32.mrb[51].mxu1  ;;  %v1933_v43 = vadd.f32 2.0, %v7426_v3  ;;  %v7428_v26 = vpop.eup %7427  ;;  %v1475_v34 = vmin.f32 %v9461_v63, 20.0  ;;  %v2087_v41 = vmul.f32 %v9398_v49, %v9380_v54  ;;  %v9474_v56 = vmul.f32 %v1963_v22, %v9313_v12 }
 0x321   : > { %v1663_v40 = vadd.f32 2.0, %v1599_v37  ;;  %v9465_v48 = vmul.f32 %v7424_v29, %v1568_v52  ;;  %v7430_v60 = vpop.eup %7429  ;;  %v1630_v53 = vmul.f32 %v9421_v2, %v9306_v17  ;;  %v1840_v50 = vmin.f32 %v9468_v7, 20.0 }
 0x322   : > { %v7432_v51 = vpop.eup %7431  ;;  %v1569_v38 = vadd.f32 2.0, %v7430_v60  ;;  %v1527_v16 = vmul.f32 1.442695, %v1475_v34  ;;  %6305 = vmatprep.mubr.f32.mxu0 %v2087_v41  ;;  %v9485_v22 = vmul.f32 %v1964_v1, %v9332_v44  ;;  %v9487_v17 = vmul.f32 %v7426_v3, %v1933_v43 }
 0x323   : > { %7445 = vrcp.f32 %v1663_v40  ;;  %v1664_v18 = vadd.f32 2.0, %v9465_v48  ;;  %v9479_v47 = vpop.f32.mrb[52].mxu1  ;;  %v1770_v2 = vmul.f32 %v9406_v13, %v9340_v46  ;;  %v1891_v62 = vmul.f32 1.442695, %v1840_v50 }
 0x324   : > { %7447 = vpow2.f32 %v1889_v45  ;;  %v2436_v54 = vld [vmem:[#allocation2 + $0xa8] sm:$0xff]  ;;  %v9482_v49 = vpop.f32.mrb[53].mxu1  ;;  %v7434_v12 = vpop.eup %7433  ;;  %v9491_v6 = vmul.f32 %v7430_v60, %v1569_v38  ;;  %v2028_v5 = vadd.f32 2.0, %v1964_v1  ;;  %v9500_v52 = vadd.f32 %v9413_v4, %v9356_v0 }
 0x325   : > { %7449 = vrcp.f32 %v1664_v18  ;;  %3573 = vmatmul.mubr.f32.gmra.mrb[92].mxu1 %v2436_v54  ;;  %v7436_v30 = vpop.eup %7435  ;;  %v1725_v19 = vmul.f32 %v7434_v12, %v1629_v55  ;;  %v9496_v44 = vadd.f32 %v9434_v27, %v1770_v2  ;;  %v1631_v55 = vmul.f32 %v1599_v37, %v9323_v39 }
 0x326   : > { %7451 = vpow2.f32 %v1527_v16  ;;  %3577 = vmatprep.mubr.f32.mxu1 %v1724_v42  ;;  %v7438_v29 = vpop.eup %7437  ;;  %v9493_v14 = vmul.f32 %v7436_v30, %v1630_v53  ;;  %v1665_v42 = vadd.f32 2.0, %v9491_v6  ;;  %v1476_v0 = vmin.f32 %v9500_v52, 20.0 }
 0x327   : > { %v2437_v46 = vld [vmem:[#allocation2 + $0xb0] sm:$0xff]  ;;  %v9502_v3 = vpop.f32.mrb[54].mxu1  ;;  %2404 = vst [vmem:[#allocation2 + $0xc1] sm:$0xff] %v1725_v19  ;;  %v1934_v45 = vadd.f32 2.0, %v7438_v29  ;;  %7453 = vpow2.f32 %v1891_v62  ;;  %v7440_v1 = vpop.eup %7439  ;;  %v1841_v40 = vmin.f32 %v9496_v44, 20.0  ;;  %v2088_v43 = vmul.f32 %v7428_v26, %v9394_v33 }
 0x328   : > { %v9506_v11 = vpop.f32.mrb[55].mxu1  ;;  %2405 = vst [vmem:[#allocation2 + $0xc9] sm:$0xff] %v9493_v14  ;;  %v1771_v34 = vmul.f32 %v9406_v13, %v9363_v59  ;;  %v7442_v39 = vpop.eup %7441  ;;  %v2029_v37 = vadd.f32 2.0, %v9487_v17  ;;  %7455 = vrcp.f32 %v1665_v42  ;;  %v1570_v41 = vadd.f32 2.0, %v7440_v1 }
 0x329   : > { %3578 = vmatmul.mubr.f32.gmra.mrb[94].mxu1 %v2437_v46  ;;  %v9517_v60 = vadd.f32 %v9413_v4, %v9386_v21  ;;  %v1893_v53 = vmul.f32 1.442695, %v1841_v40  ;;  %v1529_v18 = vmul.f32 1.442695, %v1476_v0  ;;  %6306 = vmatmul.mubr.f32.gmra.mrb[42].mxu0 %v2088_v43  ;;  %v2089_v33 = vmul.f32 %v7432_v51, %v9444_v8  ;;  %v9525_v26 = vpop.eup %7443 }
 0x32a   : > { %3582 = vmatprep.mubr.f32.mxu1 %v1725_v19  ;;  %v9520_v38 = vadd.f32 %v9434_v27, %v1771_v34  ;;  %7457 = vrcp.f32 %v2028_v5  ;;  %v9527_v50 = vmul.f32 %v7438_v29, %v1934_v45  ;;  %v9529_v16 = vmul.f32 %v7440_v1, %v1570_v41 }
 0x32b   : > { %v9523_v59 = vpop.f32.mrb[56].mxu1  ;;  %v1477_v21 = vmin.f32 %v9517_v60, 20.0  ;;  %7459 = vpow2.f32 %v1893_v53  ;;  %6308 = vmatprep.mubr.f32.mxu0 %v2089_v33  ;;  %v1772_v8 = vmul.f32 %v9406_v13, %v9391_v25  ;;  %v9539_v51 = vadd.f32 %v9413_v4, %v9419_v28 }
 0x32c   : > { %v9532_v54 = vpop.f32.mrb[57].mxu1  ;;  %v1842_v2 = vmin.f32 %v9520_v38, 20.0  ;;  %7461 = vrcp.f32 %v2029_v37  ;;  %v1632_v62 = vmul.f32 %v9465_v48, %v9349_v10  ;;  %v1666_v29 = vadd.f32 2.0, %v9529_v16 }
 0x32d   : > { %v7446_v12 = vpop.eup %7445  ;;  %7463 = vpow2.f32 %v1529_v18  ;;  %v1531_v42 = vmul.f32 1.442695, %v1477_v21  ;;  %v9547_v28 = vadd.f32 %v9434_v27, %v1772_v8  ;;  %v2030_v48 = vadd.f32 2.0, %v9527_v50 }
 0x32e   : > { %v7448_v30 = vpop.eup %7447  ;;  %v1727_v19 = vmul.f32 %v7446_v12, %v1631_v55  ;;  %v1895_v45 = vmul.f32 1.442695, %v1842_v2  ;;  %v2438_v1 = vld [vmem:[#allocation2 + $0xc0] sm:$0xff]  ;;  %7465 = vrcp.f32 %v1666_v29  ;;  %v1478_v55 = vmin.f32 %v9539_v51, 20.0 }
 0x32f   : > { %v7450_v5 = vpop.eup %7449  ;;  %v1935_v46 = vadd.f32 2.0, %v7448_v30  ;;  %3583 = vmatmul.mubr.f32.gmra.mrb[96].mxu1 %v2438_v1  ;;  %v9550_v10 = vpop.f32.mrb[58].mxu1  ;;  %v2090_v43 = vmul.f32 %v7442_v39, %v9450_v24  ;;  %v2439_v34 = vld [vmem:[#allocation2 + $0xc8] sm:$0xff]  ;;  %v1843_v53 = vmin.f32 %v9547_v28, 20.0  ;;  %v1773_v33 = vmul.f32 %v9406_v13, %v9423_v35 }
 0x330   : > { %v7452_v40 = vpop.eup %7451  ;;  %2406 = vst [vmem:[#allocation2 + $0xd9] sm:$0xff] %v1727_v19  ;;  %v9544_v25 = vmul.f32 %v7450_v5, %v1632_v62  ;;  %7467 = vpow2.f32 %v1895_v45  ;;  %3587 = vmatprep.mubr.f32.mxu1 %v9493_v14  ;;  %v9555_v37 = vpop.f32.mrb[59].mxu1  ;;  %v1533_v18 = vmul.f32 1.442695, %v1478_v55  ;;  %v1633_v21 = vmul.f32 %v9491_v6, %v9384_v32 }
 0x331   : > { %v1571_v0 = vadd.f32 2.0, %v7452_v40  ;;  %v7454_v41 = vpop.eup %7453  ;;  %7469 = vpow2.f32 %v1531_v42  ;;  %v1967_v12 = vmul.f32 %v7448_v30, %v1935_v46  ;;  %6309 = vmatmul.mubr.f32.gmra.mrb[44].mxu0 %v2090_v43  ;;  %v1897_v8 = vmul.f32 1.442695, %v1843_v53 }
 0x332   : > { %2407 = vst [vmem:[#allocation2 + $0xe1] sm:$0xff] %v9544_v25  ;;  %v1936_v24 = vadd.f32 2.0, %v7454_v41  ;;  %v7456_v2 = vpop.eup %7455  ;;  %7471 = vpow2.f32 %v1533_v18  ;;  %v9568_v62 = vadd.f32 %v9434_v27, %v1773_v33  ;;  %v9572_v29 = vadd.f32 %v9413_v4, %v9440_v57 }
 0x333   : > { %v9563_v39 = vmul.f32 %v7452_v40, %v1571_v0  ;;  %v9565_v14 = vpop.f32.mrb[60].mxu1  ;;  %3588 = vmatmul.mubr.f32.gmra.mrb[98].mxu1 %v2439_v34  ;;  %v9578_v32 = vmul.f32 %v9487_v17, %v9354_v36  ;;  %7473 = vrcp.f32 %v2030_v48  ;;  %v1729_v6 = vmul.f32 %v7456_v2, %v1633_v21 }
 0x334   : > { %v9574_v35 = vpop.f32.mrb[61].mxu1  ;;  %v9580_v30 = vmul.f32 %v7454_v41, %v1936_v24  ;;  %3592 = vmatprep.mubr.f32.mxu1 %v1727_v19  ;;  %v7458_v5 = vpop.eup %7457  ;;  %7475 = vpow2.f32 %v1897_v8  ;;  %v1844_v45 = vmin.f32 %v9568_v62, 20.0  ;;  %v1479_v57 = vmin.f32 %v9572_v29, 20.0 }
 0x335   : > { %v1667_v46 = vadd.f32 2.0, %v9563_v39  ;;  %v7460_v42 = vpop.eup %7459  ;;  %2408 = vst [vmem:[#allocation2 + $0xf1] sm:$0xff] %v1729_v6  ;;  %v2031_v1 = vadd.f32 2.0, %v1967_v12  ;;  %v1634_v36 = vmul.f32 %v9529_v16, %v9417_v20  ;;  %v2091_v17 = vmul.f32 %v9525_v26, %v9474_v56 }
 0x336   : > { %v1774_v19 = vmul.f32 %v9406_v13, %v9446_v31  ;;  %v9593_v48 = vpop.eup %7461  ;;  %v1937_v0 = vadd.f32 2.0, %v7460_v42  ;;  %v1899_v43 = vmul.f32 1.442695, %v1844_v45  ;;  %v1535_v34 = vmul.f32 1.442695, %v1479_v57 }
 0x337   : > { %v2440_v40 = vld [vmem:[#allocation2 + $0xd8] sm:$0xff]  ;;  %v9591_v55 = vpop.f32.mrb[62].mxu1  ;;  %7477 = vrcp.f32 %v1667_v46  ;;  %v7464_v53 = vpop.eup %7463  ;;  %v2032_v20 = vadd.f32 2.0, %v9580_v30  ;;  %6311 = vmatprep.mubr.f32.mxu0 %v2091_v17  ;;  %v9603_v31 = vadd.f32 %v9413_v4, %v9455_v58  ;;  %v2092_v26 = vmul.f32 %v7458_v5, %v9485_v22 }
 0x338   : > { %3593 = vmatmul.mubr.f32.gmra.mrb[100].mxu1 %v2440_v40  ;;  %v9595_v41 = vpop.f32.mrb[63].mxu1  ;;  %v9599_v56 = vadd.f32 %v9434_v27, %v1774_v19  ;;  %v7466_v18 = vpop.eup %7465  ;;  %v1969_v33 = vmul.f32 %v7460_v42, %v1937_v0  ;;  %v1572_v21 = vadd.f32 2.0, %v7464_v53  ;;  %7479 = vpow2.f32 %v1899_v43 }
 0x339   : > { %3597 = vmatprep.mubr.f32.mxu1 %v9544_v25  ;;  %v2441_v16 = vld [vmem:[#allocation2 + $0xe0] sm:$0xff]  ;;  %v1775_v24 = vmul.f32 %v9406_v13, %v9463_v15  ;;  %v9611_v8 = vmul.f32 %v9527_v50, %v9389_v9  ;;  %v1730_v46 = vmul.f32 %v7466_v18, %v1634_v36  ;;  %7481 = vpow2.f32 %v1535_v34  ;;  %6312 = vmatmul.mubr.f32.gmra.mrb[46].mxu0 %v2092_v26 }
 0x33a   : > { %v7468_v2 = vpop.eup %7467  ;;  %v1845_v58 = vmin.f32 %v9599_v56, 20.0  ;;  %v9615_v25 = vmul.f32 %v1967_v12, %v9437_v61  ;;  %7483 = vrcp.f32 %v2031_v1  ;;  %v1604_v5 = vmul.f32 %v7464_v53, %v1572_v21 }
 0x33b   : > { %v7470_v22 = vpop.eup %7469  ;;  %v1480_v45 = vmin.f32 %v9603_v31, 20.0  ;;  %2409 = vst [vmem:[#allocation2 + $0xf9] sm:$0xff] %v1730_v46  ;;  %v1938_v15 = vadd.f32 2.0, %v7468_v2  ;;  %v9619_v9 = vadd.f32 %v9434_v27, %v1775_v24  ;;  %7485 = vrcp.f32 %v2032_v20 }
 0x33c   : > { %3598 = vmatmul.mubr.f32.gmra.mrb[102].mxu1 %v2441_v16  ;;  %v1573_v57 = vadd.f32 2.0, %v7470_v22  ;;  %v1901_v42 = vmul.f32 1.442695, %v1845_v58  ;;  %v7472_v50 = vpop.eup %7471  ;;  %v1635_v36 = vmul.f32 %v9563_v39, %v9461_v63  ;;  %v2033_v61 = vadd.f32 2.0, %v1969_v33  ;;  %v2442_v1 = vld [vmem:[#allocation2 + $0xf0] sm:$0xff] }
 0x33d   : > { %3602 = vmatprep.mubr.f32.mxu1 %v1729_v6  ;;  %v1668_v12 = vadd.f32 2.0, %v1604_v5  ;;  %v7474_v17 = vpop.eup %7473  ;;  %v1574_v40 = vadd.f32 2.0, %v7472_v50  ;;  %v1846_v0 = vmin.f32 %v9619_v9, 20.0  ;;  %v9626_v34 = vmul.f32 %v9580_v30, %v9468_v7 }
 0x33e   : > { %v1605_v19 = vmul.f32 %v7470_v22, %v1573_v57  ;;  %7487 = vpow2.f32 %v1901_v42  ;;  %v7476_v43 = vpop.eup %7475  ;;  %v1537_v6 = vmul.f32 1.442695, %v1480_v45  ;;  %v9630_v53 = vadd.f32 %v9413_v4, %v9479_v47 }
 0x33f   : > { %7489 = vrcp.f32 %v1668_v12  ;;  %v1970_v63 = vmul.f32 %v7468_v2, %v1938_v15  ;;  %v1939_v20 = vadd.f32 2.0, %v7476_v43  ;;  %v9632_v26 = vmul.f32 %v7472_v50, %v1574_v40 }
 0x340   : > { %3603 = vmatmul.mubr.f32.gmra.mrb[104].mxu1 %v2442_v1  ;;  %v1669_v39 = vadd.f32 2.0, %v1605_v19  ;;  %7491 = vrcp.f32 %v2033_v61  ;;  %v1903_v18 = vmul.f32 1.442695, %v1846_v0  ;;  %v1481_v21 = vmin.f32 %v9630_v53, 20.0 }
 0x341   : > { %3607 = vmatprep.mubr.f32.mxu1 %v1730_v46  ;;  %v7478_v16 = vpop.eup %7477  ;;  %v2093_v7 = vmul.f32 %v9593_v48, %v9578_v32  ;;  %v9638_v24 = vmul.f32 %v1969_v33, %v9496_v44  ;;  %v9640_v47 = vmul.f32 %v7476_v43, %v1939_v20  ;;  %v1670_v58 = vadd.f32 2.0, %v9632_v26 }
 0x342   : > { %v1731_v30 = vmul.f32 %v7478_v16, %v1635_v36  ;;  %7493 = vrcp.f32 %v1669_v39  ;;  %v7480_v2 = vpop.eup %7479  ;;  %v1539_v46 = vmul.f32 1.442695, %v1481_v21  ;;  %v1776_v22 = vmul.f32 %v9406_v13, %v9482_v49  ;;  %v2443_v45 = vld [vmem:[#allocation2 + $0xf8] sm:$0xff] }
 0x343   : > { %7495 = vpow2.f32 %v1537_v6  ;;  %6314 = vmatprep.mubr.f32.mxu0 %v2093_v7  ;;  %v7482_v15 = vpop.eup %7481  ;;  %v1636_v32 = vmul.f32 %v1604_v5, %v9500_v52  ;;  %v2034_v48 = vadd.f32 2.0, %v1970_v63  ;;  %v1940_v44 = vadd.f32 2.0, %v7480_v2 }
 0x344   : > { %2410 = vst [vmem:[#allocation2 + $0x109] sm:$0xff] %v1731_v30  ;;  %7497 = vpow2.f32 %v1903_v18  ;;  %3608 = vmatmul.mubr.f32.gmra.mrb[106].mxu1 %v2443_v45  ;;  %v7484_v33 = vpop.eup %7483  ;;  %v1575_v57 = vadd.f32 2.0, %v7482_v15  ;;  %v9647_v42 = vadd.f32 %v9434_v27, %v1776_v22  ;;  %v9651_v50 = vadd.f32 %v9413_v4, %v9502_v3 }
 0x345   : > { %7499 = vrcp.f32 %v1670_v58  ;;  %3612 = vmatprep.mubr.f32.mxu1 %v1731_v30  ;;  %v2035_v49 = vadd.f32 2.0, %v9640_v47  ;;  %v9654_v36 = vmul.f32 %v7480_v2, %v1940_v44  ;;  %v2094_v52 = vmul.f32 %v7474_v17, %v9611_v8  ;;  %v7486_v61 = vpop.eup %7485 }
 0x346   : > { %v1777_v5 = vmul.f32 %v9406_v13, %v9506_v11  ;;  %v9659_v12 = vmul.f32 %v7482_v15, %v1575_v57  ;;  %7501 = vpow2.f32 %v1539_v46  ;;  %v1847_v1 = vmin.f32 %v9647_v42, 20.0 }
 0x347   : > { %v1482_v40 = vmin.f32 %v9651_v50, 20.0  ;;  %v9664_v0 = vmul.f32 %v1970_v63, %v9520_v38  ;;  %v1637_v43 = vmul.f32 %v1605_v19, %v9517_v60  ;;  %6315 = vmatmul.mubr.f32.gmra.mrb[48].mxu0 %v2094_v52  ;;  %v9672_v11 = vadd.f32 %v9413_v4, %v9523_v59 }
 0x348   : > { %v7488_v3 = vpop.eup %7487  ;;  %v9668_v8 = vadd.f32 %v9434_v27, %v1777_v5  ;;  %7503 = vrcp.f32 %v2034_v48  ;;  %v1671_v6 = vadd.f32 2.0, %v9659_v12  ;;  %v1905_v20 = vmul.f32 1.442695, %v1847_v1 }
 0x349   : > { %v7490_v17 = vpop.eup %7489  ;;  %v1941_v39 = vadd.f32 2.0, %v7488_v3  ;;  %7505 = vrcp.f32 %v2035_v49  ;;  %v1541_v38 = vmul.f32 1.442695, %v1482_v40  ;;  %v2036_v19 = vadd.f32 2.0, %v9654_v36 }
 0x34a   : > { %v1732_v16 = vmul.f32 %v7490_v17, %v1636_v32  ;;  %v1848_v63 = vmin.f32 %v9668_v8, 20.0  ;;  %v7492_v60 = vpop.eup %7491  ;;  %7507 = vrcp.f32 %v1671_v6  ;;  %v1483_v18 = vmin.f32 %v9672_v11, 20.0  ;;  %v3359_v6 = vld [vmem:[#allocation10 + $0x240] sm:$0xff] }
 0x34b   : > { %v2095_v59 = vmul.f32 %v7484_v33, %v9615_v25  ;;  %v2444_v21 = vld [vmem:[#allocation2 + $0x108] sm:$0xff]  ;;  %7509 = vpow2.f32 %v1905_v20  ;;  %v1778_v2 = vmul.f32 %v9406_v13, %v9532_v54  ;;  %v9683_v58 = vadd.f32 %v9413_v4, %v9550_v10 }
 0x34c   : > { %v7494_v7 = vpop.eup %7493  ;;  %2411 = vst [vmem:[#allocation2 + $0x111] sm:$0xff] %v1732_v16  ;;  %v1907_v30 = vmul.f32 1.442695, %v1848_v63  ;;  %3613 = vmatmul.mubr.f32.gmra.mrb[108].mxu1 %v2444_v21  ;;  %v1638_v45 = vmul.f32 %v9632_v26, %v9539_v51  ;;  %v9687_v15 = vmul.f32 %v7488_v3, %v1941_v39  ;;  %7511 = vpow2.f32 %v1541_v38  ;;  %v3360_v39 = vld [vmem:[#allocation10 + $0x248] sm:$0xff]  ;;  %v3329_v21 = vld [vmem:[#allocation10 + $0x150] sm:$0xff] }
 0x34d   : > { %v7496_v46 = vpop.eup %7495  ;;  %v1733_v22 = vmul.f32 %v7494_v7, %v1637_v43  ;;  %6317 = vmatprep.mubr.f32.mxu0 %v2095_v59  ;;  %3617 = vmatprep.mubr.f32.mxu1 %v1732_v16  ;;  %v1543_v48 = vmul.f32 1.442695, %v1483_v18  ;;  %v9690_v54 = vadd.f32 %v9434_v27, %v1778_v2  ;;  %v1484_v33 = vmin.f32 %v9683_v58, 20.0  ;;  %v3330_v7 = vld [vmem:[#allocation10 + $0x158] sm:$0xff] }
 0x34e   : > { %v7498_v25 = vpop.eup %7497  ;;  %v1576_v32 = vadd.f32 2.0, %v7496_v46  ;;  %7513 = vpow2.f32 %v1907_v30  ;;  %v2096_v51 = vmul.f32 %v7486_v61, %v9626_v34  ;;  %v2037_v5 = vadd.f32 2.0, %v9687_v15 }
 0x34f   : > { %v7500_v10 = vpop.eup %7499  ;;  %2412 = vst [vmem:[#allocation2 + $0x121] sm:$0xff] %v1733_v22  ;;  %7515 = vrcp.f32 %v2036_v19  ;;  %v1942_v44 = vadd.f32 2.0, %v7498_v25  ;;  %v1849_v49 = vmin.f32 %v9690_v54, 20.0  ;;  %v1545_v1 = vmul.f32 1.442695, %v1484_v33 }
 0x350   : > { %v1734_v26 = vmul.f32 %v7500_v10, %v1638_v45  ;;  %v9694_v57 = vmul.f32 %v7496_v46, %v1576_v32  ;;  %7517 = vpow2.f32 %v1543_v48  ;;  %v7502_v52 = vpop.eup %7501  ;;  %6318 = vmatmul.mubr.f32.gmra.mrb[50].mxu0 %v2096_v51  ;;  %v1779_v40 = vmul.f32 %v9406_v13, %v9555_v37 }
 0x351   : > { %v9702_v3 = vadd.f32 %v9413_v4, %v9565_v14  ;;  %v9705_v61 = vmul.f32 %v7498_v25, %v1942_v44  ;;  %v1577_v43 = vadd.f32 2.0, %v7502_v52  ;;  %v1909_v17 = vmul.f32 1.442695, %v1849_v49 }
 0x352   : > { %2413 = vst [vmem:[#allocation2 + $0x129] sm:$0xff] %v1734_v26  ;;  %v1672_v34 = vadd.f32 2.0, %v9694_v57  ;;  %v7504_v20 = vpop.eup %7503  ;;  %v9709_v16 = vmul.f32 %v9640_v47, %v9547_v28  ;;  %v1639_v37 = vmul.f32 %v9659_v12, %v9572_v29  ;;  %7519 = vpow2.f32 %v1545_v1 }
 0x353   : > { %v9714_v14 = vadd.f32 %v9434_v27, %v1779_v40  ;;  %v2445_v38 = vld [vmem:[#allocation2 + $0x110] sm:$0xff]  ;;  %v9716_v63 = vpop.eup %7505  ;;  %v9718_v19 = vmul.f32 %v7502_v52, %v1577_v43  ;;  %v1485_v18 = vmin.f32 %v9702_v3, 20.0  ;;  %v2097_v59 = vmul.f32 %v7492_v60, %v9638_v24 }
 0x354   : > { %7521 = vrcp.f32 %v1672_v34  ;;  %3618 = vmatmul.mubr.f32.gmra.mrb[110].mxu1 %v2445_v38  ;;  %v7508_v28 = vpop.eup %7507  ;;  %v6703_v29 = vpack.c.bf16 %v3360_v39, %v3359_v6  ;;  %v1780_v12 = vmul.f32 %v9406_v13, %v9574_v35  ;;  %v2038_v46 = vadd.f32 2.0, %v9705_v61  ;;  %v3361_v39 = vld [vmem:[#allocation10 + $0x250] sm:$0xff] }
 0x355   : > { %7523 = vrcp.f32 %v2037_v5  ;;  %v1850_v47 = vmin.f32 %v9714_v14, 20.0  ;;  %3622 = vmatprep.mubr.f32.mxu1 %v1733_v22  ;;  %v7510_v30 = vpop.eup %7509  ;;  %v1735_v2 = vmul.f32 %v7508_v28, %v1639_v37  ;;  %v1673_v45 = vadd.f32 2.0, %v9718_v19  ;;  %6320 = vmatprep.mubr.f32.mxu0 %v2097_v59  ;;  %v3362_v37 = vld [vmem:[#allocation10 + $0x258] sm:$0xff] }
 0x356   : > { %7525 = vpow2.f32 %v1909_v17  ;;  %v2446_v24 = vld [vmem:[#allocation2 + $0x120] sm:$0xff]  ;;  %v7512_v60 = vpop.eup %7511  ;;  %v1943_v25 = vadd.f32 2.0, %v7510_v30  ;;  %v1547_v48 = vmul.f32 1.442695, %v1485_v18  ;;  %6704 = vmatpush1.bf16.msra.mxu0 %v6703_v29  ;;  %v9728_v10 = vadd.f32 %v9434_v27, %v1780_v12  ;;  %v3331_v29 = vld [vmem:[#allocation10 + $0x160] sm:$0xff]  ;;  %v3332_v12 = vld [vmem:[#allocation10 + $0x168] sm:$0xff] }
 0x357   : > { %v1911_v32 = vmul.f32 1.442695, %v1850_v47  ;;  %2414 = vst [vmem:[#allocation2 + $0x139] sm:$0xff] %v1735_v2  ;;  %7527 = vrcp.f32 %v1673_v45  ;;  %v1578_v22 = vadd.f32 2.0, %v7512_v60  ;;  %v6658_v44 = vpack.c.bf16 %v3330_v7, %v3329_v21  ;;  %6705 = vmatprep.subr.bf16.mxu0 %v8224_v23  ;;  %v3364_v7 = vld [vmem:[#allocation10 + $0x268] sm:$0xff] }
 0x358   : > { %v7514_v35 = vpop.eup %7513  ;;  %v9733_v33 = vadd.f32 %v9413_v4, %v9591_v55  ;;  %3623 = vmatmul.mubr.f32.gmra.mrb[112].mxu1 %v2446_v24  ;;  %v9737_v49 = vmul.f32 %v7510_v30, %v1943_v25  ;;  %v1851_v5 = vmin.f32 %v9728_v10, 20.0  ;;  %v2098_v4 = vmul.f32 %v7504_v20, %v9664_v0 }
 0x359   : > { %v9735_v51 = vpop.eup %7515  ;;  %v1944_v52 = vadd.f32 2.0, %v7514_v35  ;;  %7529 = vpow2.f32 %v1911_v32  ;;  %3627 = vmatprep.mubr.f32.mxu1 %v1734_v26  ;;  %v2447_v1 = vld [vmem:[#allocation2 + $0x128] sm:$0xff]  ;;  %v9740_v34 = vmul.f32 %v7512_v60, %v1578_v22  ;;  %6659 = vmatpush1.bf16.msra.mxu1 %v6658_v44  ;;  %v9750_v26 = vmul.f32 %v9654_v36, %v9568_v62 }
 0x35a   : > { %v7518_v40 = vpop.eup %7517  ;;  %7531 = vpow2.f32 %v1547_v48  ;;  %v1486_v43 = vmin.f32 %v9733_v33, 20.0  ;;  %v2039_v55 = vadd.f32 2.0, %v9737_v49  ;;  %6660 = vmatprep.subr.bf16.mxu1 %v8224_v23  ;;  %v1640_v38 = vmul.f32 %v9694_v57, %v9603_v31  ;;  %6321 = vmatmul.mubr.f32.gmra.mrb[52].mxu0 %v2098_v4  ;;  %v3363_v57 = vld [vmem:[#allocation10 + $0x260] sm:$0xff]  ;;  %v3334_v48 = vld [vmem:[#allocation10 + $0x178] sm:$0xff] }
 0x35b   : > { %7533 = vrcp.f32 %v2038_v46  ;;  %v9745_v17 = vmul.f32 %v7514_v35, %v1944_v52  ;;  %v1579_v6 = vadd.f32 2.0, %v7518_v40  ;;  %v1674_v18 = vadd.f32 2.0, %v9740_v34 }
 0x35c   : > { %v1913_v0 = vmul.f32 1.442695, %v1851_v5  ;;  %3628 = vmatmul.mubr.f32.gmra.mrb[114].mxu1 %v2447_v1  ;;  %v7520_v20 = vpop.eup %7519  ;;  %7535 = vrcp.f32 %v2039_v55  ;;  %v1549_v47 = vmul.f32 1.442695, %v1486_v43  ;;  %v6706_v21 = vpack.c.bf16 %v3362_v37, %v3361_v39  ;;  %v3365_v5 = vld [vmem:[#allocation10 + $0x270] sm:$0xff]  ;;  %v3366_v1 = vld [vmem:[#allocation10 + $0x278] sm:$0xff] }
 0x35d   : > { %v2040_v59 = vadd.f32 2.0, %v9745_v17  ;;  %v9756_v28 = vmul.f32 %v7518_v40, %v1579_v6  ;;  %3632 = vmatprep.mubr.f32.mxu1 %v1735_v2  ;;  %7537 = vrcp.f32 %v1674_v18  ;;  %v1580_v36 = vadd.f32 2.0, %v7520_v20  ;;  %v3336_v55 = vld [vmem:[#allocation10 + $0x188] sm:$0xff] }
 0x35e   : > { %v7522_v62 = vpop.eup %7521  ;;  %v1781_v31 = vmul.f32 %v9406_v13, %v9595_v41  ;;  %v1641_v45 = vmul.f32 %v9718_v19, %v9630_v53  ;;  %v9763_v60 = vld [vmem:[#allocation2 + $0x138] sm:$0xff]  ;;  %6707 = vmatpush1.bf16.msra.mxu0 %v6706_v21  ;;  %v6661_v13 = vpack.c.bf16 %v3332_v12, %v3331_v29  ;;  %v3333_v41 = vld [vmem:[#allocation10 + $0x170] sm:$0xff]  ;;  %v2099_v19 = vmul.f32 %v9716_v63, %v9709_v16  ;;  %v3335_v63 = vld [vmem:[#allocation10 + $0x180] sm:$0xff] }
 0x35f   : > { %v7524_v30 = vpop.eup %7523  ;;  %v1736_v46 = vmul.f32 %v7522_v62, %v1640_v38  ;;  %7539 = vrcp.f32 %v2040_v59  ;;  %v1675_v24 = vadd.f32 2.0, %v9756_v28  ;;  %v9765_v25 = vmul.f32 %v7520_v20, %v1580_v36  ;;  %6708 = vmatprep.subr.bf16.mxu0 %v8224_v23  ;;  %v3367_v59 = vld [vmem:[#allocation10 + $0x280] sm:$0xff]  ;;  %v3337_v62 = vld [vmem:[#allocation10 + $0x190] sm:$0xff]  ;;  %v3338_v36 = vld [vmem:[#allocation10 + $0x198] sm:$0xff] }
 0x360   : > { %v7526_v2 = vpop.eup %7525  ;;  %7541 = vpow2.f32 %v1913_v0  ;;  %v9768_v32 = vadd.f32 %v9434_v27, %v1781_v31  ;;  %3633 = vmatmul.mubr.f32.gmra.mrb[116].mxu1 %v9763_v60  ;;  %v6709_v35 = vpack.c.bf16 %v3364_v7, %v3363_v57  ;;  %v2005_v27 = vmul.f32 %v9687_v15, %v9599_v56  ;;  %6323 = vmatprep.mubr.f32.mxu0 %v2099_v19  ;;  %v3340_v19 = vld [vmem:[#allocation10 + $0x1a8] sm:$0xff] }
 0x361   : > { %2415 = vst [vmem:[#allocation2 + $0x141] sm:$0xff] %v1736_v46  ;;  %7543 = vrcp.f32 %v1675_v24  ;;  %v1945_v53 = vadd.f32 2.0, %v7526_v2  ;;  %3637 = vmatprep.mubr.f32.mxu1 %v1736_v46  ;;  %v7528_v22 = vpop.eup %7527  ;;  %v1676_v44 = vadd.f32 2.0, %v9765_v25  ;;  %6662 = vmatpush1.bf16.msra.mxu1 %v6661_v13  ;;  %v6664_v16 = vpack.c.bf16 %v3334_v48, %v3333_v41  ;;  %v3370_v13 = vld [vmem:[#allocation10 + $0x298] sm:$0xff] }
 0x362   : > { %7545 = vpow2.f32 %v1549_v47  ;;  %v1852_v52 = vmin.f32 %v9768_v32, 20.0  ;;  %v9778_v43 = vmul.f32 %v7528_v22, %v1641_v45  ;;  %6663 = vmatprep.subr.bf16.mxu1 %v8224_v23  ;;  %6710 = vmatpush1.bf16.msra.mxu0 %v6709_v35  ;;  %v2100_v39 = vmul.f32 %v9735_v51, %v9750_v26  ;;  %v3368_v47 = vld [vmem:[#allocation10 + $0x288] sm:$0xff] }
 0x363   : > { %v7530_v40 = vpop.eup %7529  ;;  %v9780_v4 = vmul.f32 %v7526_v2, %v1945_v53  ;;  %7547 = vrcp.f32 %v1676_v44  ;;  %v2006_v38 = vmul.f32 %v9705_v61, %v9619_v9  ;;  %6711 = vmatprep.subr.bf16.mxu0 %v8224_v23  ;;  %v6712_v20 = vpack.c.bf16 %v3366_v1, %v3365_v5  ;;  %v3369_v2 = vld [vmem:[#allocation10 + $0x290] sm:$0xff]  ;;  %v3371_v1 = vld [vmem:[#allocation10 + $0x2a0] sm:$0xff] }
 0x364   : > { %v7532_v56 = vpop.eup %7531  ;;  %v1946_v15 = vadd.f32 2.0, %v7530_v40  ;;  %v1915_v6 = vmul.f32 1.442695, %v1852_v52  ;;  %2416 = vst [vmem:[#allocation2 + $0x151] sm:$0xff] %v9778_v43  ;;  %6324 = vmatmul.mubr.f32.gmra.mrb[54].mxu0 %v2100_v39  ;;  %v6667_v51 = vpack.c.bf16 %v3336_v55, %v3335_v63  ;;  %v2101_v26 = vmul.f32 %v7524_v30, %v2005_v27 }
 0x365   : > { %v7534_v37 = vpop.eup %7533  ;;  %v2041_v18 = vadd.f32 2.0, %v9780_v4  ;;  %v1581_v0 = vadd.f32 2.0, %v7532_v56  ;;  %6665 = vmatpush1.bf16.msra.mxu1 %v6664_v16  ;;  %v1642_v9 = vmul.f32 %v9740_v34, %v9651_v50  ;;  %v2007_v31 = vmul.f32 %v9737_v49, %v9647_v42 }
 0x366   : > { %v9790_v29 = vmul.f32 %v7530_v40, %v1946_v15  ;;  %7549 = vpow2.f32 %v1915_v6  ;;  %v7536_v12 = vpop.eup %7535  ;;  %6666 = vmatprep.subr.bf16.mxu1 %v8224_v23  ;;  %6713 = vmatpush1.bf16.msra.mxu0 %v6712_v20  ;;  %v6715_v7 = vpack.c.bf16 %v3368_v47, %v3367_v59  ;;  %v2102_v30 = vmul.f32 %v7534_v37, %v2006_v38  ;;  %v3372_v40 = vld [vmem:[#allocation10 + $0x2a8] sm:$0xff]  ;;  %v3374_v20 = vld [vmem:[#allocation10 + $0x2b8] sm:$0xff] }
 0x367   : > { %7551 = vrcp.f32 %v2041_v18  ;;  %v9794_v61 = vmul.f32 %v7532_v56, %v1581_v0  ;;  %v7538_v21 = vpop.eup %7537  ;;  %6326 = vmatprep.mubr.f32.mxu0 %v2101_v26  ;;  %v2008_v45 = vmul.f32 %v9745_v17, %v9668_v8  ;;  %6714 = vmatprep.subr.bf16.mxu0 %v8224_v23  ;;  %v1643_v49 = vmul.f32 %v9756_v28, %v9672_v11  ;;  %v3339_v17 = vld [vmem:[#allocation10 + $0x1a0] sm:$0xff]  ;;  %v3373_v0 = vld [vmem:[#allocation10 + $0x2b0] sm:$0xff] }
 0x368   : > { %v2042_v57 = vadd.f32 2.0, %v9790_v29  ;;  %v9800_v46 = vld [vmem:[#allocation2 + $0x140] sm:$0xff]  ;;  %v1738_v34 = vmul.f32 %v7538_v21, %v1642_v9  ;;  %v6670_v41 = vpack.c.bf16 %v3338_v36, %v3337_v62  ;;  %6327 = vmatmul.mubr.f32.gmra.mrb[56].mxu0 %v2102_v30  ;;  %v2103_v48 = vmul.f32 %v7536_v12, %v2007_v31  ;;  %v3343_v26 = vld [vmem:[#allocation10 + $0x1c0] sm:$0xff]  ;;  %v3344_v12 = vld [vmem:[#allocation10 + $0x1c8] sm:$0xff] }
 0x369   : > { %v7540_v50 = vpop.eup %7539  ;;  %v1677_v24 = vadd.f32 2.0, %v9794_v61  ;;  %3638 = vmatmul.mubr.f32.gmra.mrb[118].mxu1 %v9800_v46  ;;  %v6718_v11 = vpack.c.bf16 %v3370_v13, %v3369_v2  ;;  %v1644_v44 = vmul.f32 %v9765_v25, %v9683_v58  ;;  %v6673_v16 = vpack.c.bf16 %v3340_v19, %v3339_v17  ;;  %v3341_v58 = vld [vmem:[#allocation10 + $0x1b0] sm:$0xff]  ;;  %v3342_v25 = vld [vmem:[#allocation10 + $0x1b8] sm:$0xff]  ;;  %v2614_v19 = vld [vmem:[#allocation2 + $0x18] sm:$0xff] }
 0x36a   : > { %v7542_v42 = vpop.eup %7541  ;;  %7553 = vrcp.f32 %v2042_v57  ;;  %6668 = vmatpush1.bf16.msra.mxu1 %v6667_v51  ;;  %2417 = vst [vmem:[#allocation2 + $0x159] sm:$0xff] %v1738_v34  ;;  %v2104_v35 = vmul.f32 %v7540_v50, %v2008_v45  ;;  %3642 = vmatprep.mubr.f32.mxu1 %v9778_v43  ;;  %v2009_v6 = vmul.f32 %v9780_v4, %v9690_v54  ;;  %v3377_v45 = vld [vmem:[#allocation10 + $0x2d0] sm:$0xff] }
 0x36b   : > { %v7544_v53 = vpop.eup %7543  ;;  %7555 = vrcp.f32 %v1677_v24  ;;  %v1947_v8 = vadd.f32 2.0, %v7542_v42  ;;  %6669 = vmatprep.subr.bf16.mxu1 %v8224_v23  ;;  %6716 = vmatpush1.bf16.msra.mxu0 %v6715_v7  ;;  %v9811_v28 = vld [vmem:[#allocation2 + $0x150] sm:$0xff]  ;;  %v6721_v39 = vpack.c.bf16 %v3372_v40, %v3371_v1  ;;  %v6676_v59 = vpack.c.bf16 %v3342_v25, %v3341_v58  ;;  %v3378_v24 = vld [vmem:[#allocation10 + $0x2d8] sm:$0xff]  ;;  %v3416_v40 = vld [vmem:[#allocation10 + $0x408] sm:$0xff] }
 0x36c   : > { %v7546_v22 = vpop.eup %7545  ;;  %v1739_v27 = vmul.f32 %v7544_v53, %v1643_v49  ;;  %6329 = vmatprep.mubr.f32.mxu0 %v2103_v48  ;;  %6717 = vmatprep.subr.bf16.mxu0 %v8224_v23  ;;  %v2010_v54 = vmul.f32 %v9790_v29, %v9714_v14  ;;  %v1645_v62 = vmul.f32 %v9794_v61, %v9702_v3  ;;  %v3375_v14 = vld [vmem:[#allocation10 + $0x2c0] sm:$0xff]  ;;  %v3376_v29 = vld [vmem:[#allocation10 + $0x2c8] sm:$0xff]  ;;  %v3345_v3 = vld [vmem:[#allocation10 + $0x1d0] sm:$0xff] }
 0x36d   : > { %v9815_v52 = vmul.f32 %v7542_v42, %v1947_v8  ;;  %v1582_v5 = vadd.f32 2.0, %v7546_v22  ;;  %3643 = vmatmul.mubr.f32.gmra.mrb[120].mxu1 %v9811_v28  ;;  %v7548_v43 = vpop.eup %7547  ;;  %6330 = vmatmul.mubr.f32.gmra.mrb[58].mxu0 %v2104_v35  ;;  %v6724_v36 = vpack.c.bf16 %v3374_v20, %v3373_v0  ;;  %v6679_v50 = vpack.c.bf16 %v3344_v12, %v3343_v26  ;;  %v3346_v61 = vld [vmem:[#allocation10 + $0x1d8] sm:$0xff]  ;;  %v3348_v48 = vld [vmem:[#allocation10 + $0x1e8] sm:$0xff]  ;;  %v3415_v1 = vld [vmem:[#allocation10 + $0x400] sm:$0xff] }
 0x36e   : > { %2418 = vst [vmem:[#allocation2 + $0x169] sm:$0xff] %v1739_v27  ;;  %6671 = vmatpush1.bf16.msra.mxu1 %v6670_v41  ;;  %v1740_v63 = vmul.f32 %v7548_v43, %v1644_v44  ;;  %3647 = vmatprep.mubr.f32.mxu1 %v1738_v34  ;;  %v6727_v34 = vpack.c.bf16 %v3376_v29, %v3375_v14  ;;  %v3347_v41 = vld [vmem:[#allocation10 + $0x1e0] sm:$0xff]  ;;  %v3349_v44 = vld [vmem:[#allocation10 + $0x1f0] sm:$0xff] }
 0x36f   : > { %v2043_v55 = vadd.f32 2.0, %v9815_v52  ;;  %v9820_v56 = vmul.f32 %v7546_v22, %v1582_v5  ;;  %6672 = vmatprep.subr.bf16.mxu1 %v8224_v23  ;;  %6719 = vmatpush1.bf16.msra.mxu0 %v6718_v11  ;;  %v2011_v13 = vmul.f32 %v9815_v52, %v9728_v10  ;;  %v6682_v42 = vpack.c.bf16 %v3346_v61, %v3345_v3  ;;  %v3379_v10 = vld [vmem:[#allocation10 + $0x2e0] sm:$0xff]  ;;  %v3380_v22 = vld [vmem:[#allocation10 + $0x2e8] sm:$0xff] }
 0x370   : > { %v7550_v15 = vpop.eup %7549  ;;  %2419 = vst [vmem:[#allocation2 + $0x171] sm:$0xff] %v1740_v63  ;;  %6720 = vmatprep.subr.bf16.mxu0 %v8224_v23  ;;  %v6730_v8 = vpack.c.bf16 %v3378_v24, %v3377_v45  ;;  %v6685_v11 = vpack.c.bf16 %v3348_v48, %v3347_v41  ;;  %v6733_v5 = vpack.c.bf16 %v3380_v22, %v3379_v10  ;;  %v3419_v20 = vld [vmem:[#allocation10 + $0x420] sm:$0xff]  ;;  %v2678_v26 = vld [vmem:[#allocation2 + $0x19] sm:$0xff] }
 0x371   : > { %v7552_v37 = vpop.eup %7551  ;;  %7557 = vrcp.f32 %v2043_v55  ;;  %v1678_v38 = vadd.f32 2.0, %v9820_v56  ;;  %v1948_v18 = vadd.f32 2.0, %v7550_v15  ;;  %v9827_v51 = vld [vmem:[#allocation2 + $0x158] sm:$0xff]  ;;  %v1646_v53 = vmul.f32 %v9820_v56, %v9733_v33  ;;  %v3350_v33 = vld [vmem:[#allocation10 + $0x1f8] sm:$0xff]  ;;  %v9856_v14 = vld [vmem:[#allocation2 + $0x30] sm:$0xff] }
 0x372   : > { %6674 = vmatpush1.bf16.msra.mxu1 %v6673_v16  ;;  %v2105_v47 = vmul.f32 %v7552_v37, %v2009_v6  ;;  %v3381_v16 = vld [vmem:[#allocation10 + $0x2f0] sm:$0xff]  ;;  %v6688_v55 = vpack.c.bf16 %v3350_v33, %v3349_v44  ;;  %v6786_v58 = vpack.c.bf16 %v3416_v40, %v3415_v1  ;;  %v3418_v6 = vld [vmem:[#allocation10 + $0x418] sm:$0xff]  ;;  %v3384_v37 = vld [vmem:[#allocation10 + $0x308] sm:$0xff] }
 0x373   : > { %7559 = vrcp.f32 %v1678_v38  ;;  %v1980_v4 = vmul.f32 %v7550_v15, %v1948_v18  ;;  %6675 = vmatprep.subr.bf16.mxu1 %v8224_v23  ;;  %3648 = vmatmul.mubr.f32.gmra.mrb[122].mxu1 %v9827_v51  ;;  %v3417_v15 = vld [vmem:[#allocation10 + $0x410] sm:$0xff]  ;;  %v2551_v12 = vld [vmem:[#allocation2 + $0xa] sm:$0xff]  ;;  %v3424_v45 = vld [vmem:[#allocation10 + $0x448] sm:$0xff] }
 0x374   : > { %v7554_v9 = vpop.eup %7553  ;;  %6722 = vmatpush1.bf16.msra.mxu0 %v6721_v39  ;;  %6332 = vmatprep.mubr.f32.mxu0 %v2105_v47  ;;  %v3383_v39 = vld [vmem:[#allocation10 + $0x300] sm:$0xff]  ;;  %v2550_v38 = vld [vmem:[#allocation2 + $0x2] sm:$0xff]  ;;  %v6790_v18 = vpack.c.bf16 %v3418_v6, %v3417_v15  ;;  %v9863_v24 = vld [vmem:[#allocation2 + $0x38] sm:$0xff] }
 0x375   : > { %v7556_v21 = vpop.eup %7555  ;;  %v2044_v31 = vadd.f32 2.0, %v1980_v4  ;;  %6723 = vmatprep.subr.bf16.mxu0 %v8224_v23  ;;  %v2106_v57 = vmul.f32 %v7554_v9, %v2010_v54  ;;  %3652 = vmatprep.mubr.f32.mxu1 %v1739_v27  ;;  %v9836_v7 = vld [vmem:[#allocation2 + $0x168] sm:$0xff]  ;;  %v2012_v52 = vmul.f32 %v1980_v4, %v9768_v32  ;;  %v2742_v32 = vld [vmem:[#allocation2 + $0x1a] sm:$0xff]  ;;  %v6739_v0 = vpack.c.bf16 %v3384_v37, %v3383_v39  ;;  %v3387_v29 = vld [vmem:[#allocation10 + $0x320] sm:$0xff] }
 0x376   : > { %v1741_v30 = vmul.f32 %v7556_v21, %v1645_v62  ;;  %6677 = vmatpush1.bf16.msra.mxu1 %v6676_v59  ;;  %v3420_v59 = vld [vmem:[#allocation10 + $0x428] sm:$0xff]  ;;  %v2615_v47 = vld [vmem:[#allocation2 + $0x20] sm:$0xff]  ;;  %v3386_v4 = vld [vmem:[#allocation10 + $0x318] sm:$0xff] }
 0x377   : > { %7561 = vrcp.f32 %v2044_v31  ;;  %6678 = vmatprep.subr.bf16.mxu1 %v8224_v23  ;;  %6333 = vmatmul.mubr.f32.gmra.mrb[60].mxu0 %v2106_v57  ;;  %v9841_v2 = vld [vmem:[#allocation2 + $0x170] sm:$0xff]  ;;  %v3385_v54 = vld [vmem:[#allocation10 + $0x310] sm:$0xff]  ;;  %v6794_v62 = vpack.c.bf16 %v3420_v59, %v3419_v20  ;;  %v3422_v31 = vld [vmem:[#allocation10 + $0x438] sm:$0xff] }
 0x378   : > { %2420 = vst [vmem:[#allocation2 + $0x181] sm:$0xff] %v1741_v30  ;;  %6725 = vmatpush1.bf16.msra.mxu0 %v6724_v36  ;;  %3653 = vmatmul.mubr.f32.gmra.mrb[124].mxu1 %v9836_v7  ;;  %v2743_v9 = vld [vmem:[#allocation2 + $0x22] sm:$0xff]  ;;  %v6742_v36 = vpack.c.bf16 %v3386_v4, %v3385_v54  ;;  %v3388_v57 = vld [vmem:[#allocation10 + $0x328] sm:$0xff]  ;;  %v3427_v33 = vld [vmem:[#allocation10 + $0x460] sm:$0xff] }
 0x379   : > { %6726 = vmatprep.subr.bf16.mxu0 %v8224_v23  ;;  %3657 = vmatprep.mubr.f32.mxu1 %v1740_v63  ;;  %v3382_v63 = vld [vmem:[#allocation10 + $0x2f8] sm:$0xff]  ;;  %v3421_v21 = vld [vmem:[#allocation10 + $0x430] sm:$0xff]  ;;  %v6745_v61 = vpack.c.bf16 %v3388_v57, %v3387_v29  ;;  %v3392_v10 = vld [vmem:[#allocation10 + $0x348] sm:$0xff] }
 0x37a   : > { %6680 = vmatpush1.bf16.msra.mxu1 %v6679_v50  ;;  %v6736_v25 = vpack.c.bf16 %v3382_v63, %v3381_v16  ;;  %v2679_v30 = vld [vmem:[#allocation2 + $0x21] sm:$0xff]  ;;  %v9860_v50 = vld [vmem:[#allocation2 + $0x32] sm:$0xff]  ;;  %v6798_v3 = vpack.c.bf16 %v3422_v31, %v3421_v21 }
 0x37b   : > { %v7558_v49 = vpop.eup %7557  ;;  %6681 = vmatprep.subr.bf16.mxu1 %v8224_v23  ;;  %v9870_v41 = vld [vmem:[#allocation2 + $0x3a] sm:$0xff]  ;;  %v3394_v40 = vld [vmem:[#allocation10 + $0x358] sm:$0xff]  ;;  %v9891_v16 = vld [vmem:[#allocation2 + $0x52] sm:$0xff] }
 0x37c   : > { %6728 = vmatpush1.bf16.msra.mxu0 %v6727_v34  ;;  %v2107_v17 = vmul.f32 %v7558_v49, %v2011_v13  ;;  %3658 = vmatmul.mubr.f32.gmra.mrb[126].mxu1 %v9841_v2  ;;  %v3423_v34 = vld [vmem:[#allocation10 + $0x440] sm:$0xff]  ;;  %v3389_v13 = vld [vmem:[#allocation10 + $0x330] sm:$0xff]  ;;  %v3396_v6 = vld [vmem:[#allocation10 + $0x368] sm:$0xff] }
 0x37d   : > { %v7560_v35 = vpop.eup %7559  ;;  %6729 = vmatprep.subr.bf16.mxu0 %v8224_v23  ;;  %3727 = vmatprep.mubr.f32.mxu1 %v2614_v19  ;;  %v9867_v49 = vld [vmem:[#allocation2 + $0x31] sm:$0xff]  ;;  %v6802_v48 = vpack.c.bf16 %v3424_v45, %v3423_v34  ;;  %v9873_v19 = vld [vmem:[#allocation2 + $0x48] sm:$0xff]  ;;  %v9877_v22 = vld [vmem:[#allocation2 + $0x39] sm:$0xff] }
 0x37e   : > { %v1742_v27 = vmul.f32 %v7560_v35, %v1646_v53  ;;  %6683 = vmatpush1.bf16.msra.mxu1 %v6682_v42  ;;  %6335 = vmatprep.mubr.f32.mxu0 %v2107_v17  ;;  %v3390_v42 = vld [vmem:[#allocation10 + $0x338] sm:$0xff]  ;;  %v3391_v35 = vld [vmem:[#allocation10 + $0x340] sm:$0xff]  ;;  %v3393_v1 = vld [vmem:[#allocation10 + $0x350] sm:$0xff] }
 0x37f   : > { %6684 = vmatprep.subr.bf16.mxu1 %v8224_v23  ;;  %v6748_v53 = vpack.c.bf16 %v3390_v42, %v3389_v13  ;;  %v3426_v17 = vld [vmem:[#allocation10 + $0x458] sm:$0xff]  ;;  %v6751_v44 = vpack.c.bf16 %v3392_v10, %v3391_v35  ;;  %v3395_v15 = vld [vmem:[#allocation10 + $0x360] sm:$0xff]  ;;  %v9917_v4 = vld [vmem:[#allocation2 + $0x78] sm:$0xff] }
 0x380   : > { %2421 = vst [vmem:[#allocation2 + $0x189] sm:$0xff] %v1742_v27  ;;  %6731 = vmatpush1.bf16.msra.mxu0 %v6730_v8  ;;  %v3425_v8 = vld [vmem:[#allocation10 + $0x450] sm:$0xff]  ;;  %v9880_v27 = vld [vmem:[#allocation2 + $0x4a] sm:$0xff]  ;;  %v3404_v45 = vld [vmem:[#allocation10 + $0x3a8] sm:$0xff] }
 0x381   : > { %v7562_v43 = vpop.eup %7561  ;;  %6732 = vmatprep.subr.bf16.mxu0 %v8224_v23  ;;  %v9902_v39 = vld [vmem:[#allocation2 + $0x62] sm:$0xff]  ;;  %v9932_v57 = vld [vmem:[#allocation2 + $0x79] sm:$0xff]  ;;  %v3403_v34 = vld [vmem:[#allocation10 + $0x3a0] sm:$0xff] }
 0x382   : > { %6686 = vmatpush1.bf16.msra.mxu1 %v6685_v11  ;;  %v2108_v56 = vmul.f32 %v7562_v43, %v2012_v52  ;;  %v6806_v11 = vpack.c.bf16 %v3426_v17, %v3425_v8  ;;  %v3428_v52 = vld [vmem:[#allocation10 + $0x468] sm:$0xff]  ;;  %v9888_v43 = vld [vmem:[#allocation2 + $0x49] sm:$0xff]  ;;  %v9910_v59 = vld [vmem:[#allocation2 + $0x61] sm:$0xff] }
 0x383   : > { %6687 = vmatprep.subr.bf16.mxu1 %v8224_v23  ;;  %v6810_v63 = vpack.c.bf16 %v3428_v52, %v3427_v33  ;;  %v3398_v20 = vld [vmem:[#allocation10 + $0x378] sm:$0xff]  ;;  %v9928_v21 = vld [vmem:[#allocation2 + $0x80] sm:$0xff]  ;;  %v9946_v42 = vld [vmem:[#allocation2 + $0x92] sm:$0xff] }
 0x384   : > { %6734 = vmatpush1.bf16.msra.mxu0 %v6733_v5  ;;  %v9884_v5 = vld [vmem:[#allocation2 + $0x50] sm:$0xff]  ;;  %v3401_v31 = vld [vmem:[#allocation10 + $0x390] sm:$0xff]  ;;  %v3402_v29 = vld [vmem:[#allocation10 + $0x398] sm:$0xff] }
 0x385   : > { %6735 = vmatprep.subr.bf16.mxu0 %v8224_v23  ;;  %6336 = vmatmul.mubr.f32.gmra.mrb[62].mxu0 %v2108_v56  ;;  %v3429_v56 = vld [vmem:[#allocation10 + $0x470] sm:$0xff]  ;;  %v3406_v17 = vld [vmem:[#allocation10 + $0x3b8] sm:$0xff]  ;;  %v9954_v35 = vld [vmem:[#allocation2 + $0x91] sm:$0xff] }
 0x386   : > { %6689 = vmatpush1.bf16.msra.mxu1 %v6688_v55  ;;  %3952 = vmatprep.mubr.f32.mxu0 %v2742_v32  ;;  %v6754_v55 = vpack.c.bf16 %v3394_v40, %v3393_v1  ;;  %v9943_v13 = vld [vmem:[#allocation2 + $0x81] sm:$0xff]  ;;  %v3407_v33 = vld [vmem:[#allocation10 + $0x3c0] sm:$0xff]  ;;  %v3408_v52 = vld [vmem:[#allocation10 + $0x3c8] sm:$0xff] }
 0x387   : > { %6787 = vmatprep.subr.bf16.mxu1 %v6786_v58  ;;  %v3405_v8 = vld [vmem:[#allocation10 + $0x3b0] sm:$0xff]  ;;  %v9968_v40 = vld [vmem:[#allocation2 + $0xaa] sm:$0xff] }
 0x388   : > { %6737 = vmatpush1.bf16.msra.mxu0 %v6736_v25  ;;  %v9895_v25 = vld [vmem:[#allocation2 + $0x60] sm:$0xff] }
 0x389   : > { %3728 = vmatmul.mubr.f32.vlgmr.msra.gmra.mrb[64].mxu1 %v2550_v38  ;;  %6738 = vmatprep.subr.bf16.mxu0 %v8224_v23  ;;  %v6757_v38 = vpack.c.bf16 %v3396_v6, %v3395_v15  ;;  %v9957_v10 = vld [vmem:[#allocation2 + $0x9a] sm:$0xff]  ;;  %v9976_v15 = vld [vmem:[#allocation2 + $0xa9] sm:$0xff]  ;;  %v9979_v6 = vld [vmem:[#allocation2 + $0xb2] sm:$0xff] }
 0x38a   : > { %3732 = vmatprep.mubr.f32.mxu1 %v2615_v47  ;;  %6789 = vmatpush3.bf16.msra.mxu1 %v6786_v58  ;;  %v3430_v58 = vld [vmem:[#allocation10 + $0x478] sm:$0xff]  ;;  %v9965_v1 = vld [vmem:[#allocation2 + $0x99] sm:$0xff] }
 0x38b   : > { %3953 = vmatmul.mubr.f32.vlgmr.msra.gmra.mrb[64].mxu0 %v2678_v26  ;;  %6791 = vmatprep.subr.bf16.mxu1 %v6790_v18  ;;  %v6814_v37 = vpack.c.bf16 %v3430_v58, %v3429_v56  ;;  %v9913_v47 = vld [vmem:[#allocation2 + $0x6a] sm:$0xff]  ;;  %v3409_v56 = vld [vmem:[#allocation10 + $0x3d0] sm:$0xff] }
 0x38c   : > { %6740 = vmatpush1.bf16.msra.mxu0 %v6739_v0  ;;  %3957 = vmatprep.mubr.f32.mxu0 %v2743_v9  ;;  %v3397_v0 = vld [vmem:[#allocation10 + $0x370] sm:$0xff]  ;;  %v3399_v26 = vld [vmem:[#allocation10 + $0x380] sm:$0xff]  ;;  %v3410_v58 = vld [vmem:[#allocation10 + $0x3d8] sm:$0xff] }
 0x38d   : > { %3733 = vmatmul.mubr.f32.gmra.mrb[66].mxu1 %v2551_v12  ;;  %6741 = vmatprep.subr.bf16.mxu0 %v8224_v23  ;;  %v6760_v54 = vpack.c.bf16 %v3398_v20, %v3397_v0  ;;  %v3400_v12 = vld [vmem:[#allocation10 + $0x388] sm:$0xff]  ;;  %v3411_v0 = vld [vmem:[#allocation10 + $0x3e0] sm:$0xff] }
 0x38e   : > { %3737 = vmatprep.mubr.f32.mxu1 %v9856_v14  ;;  %6793 = vmatpush3.bf16.msra.mxu1 %v6790_v18  ;;  %v9906_v18 = vld [vmem:[#allocation2 + $0x68] sm:$0xff]  ;;  %v3412_v20 = vld [vmem:[#allocation10 + $0x3e8] sm:$0xff] }
 0x38f   : > { %3958 = vmatmul.mubr.f32.gmra.mrb[66].mxu0 %v2679_v30  ;;  %6795 = vmatprep.subr.bf16.mxu1 %v6794_v62  ;;  %v9935_v30 = vld [vmem:[#allocation2 + $0x82] sm:$0xff] }
 0x390   : > { %3962 = vmatprep.mubr.f32.mxu0 %v9860_v50  ;;  %6743 = vmatpush1.bf16.msra.mxu0 %v6742_v36  ;;  %v6763_v36 = vpack.c.bf16 %v3400_v12, %v3399_v26  ;;  %v9990_v26 = vld [vmem:[#allocation2 + $0xc2] sm:$0xff]  ;;  %v6781_v12 = vpack.c.bf16 %v3412_v20, %v3411_v0  ;;  %v10027_v0 = vld [vmem:[#allocation2 + $0xfa] sm:$0xff] }
 0x391   : > { %3738 = vmatmul.mubr.f32.gmra.mrb[68].mxu1 %v2742_v32  ;;  %6744 = vmatprep.subr.bf16.mxu0 %v8224_v23  ;;  %v9899_v32 = vld [vmem:[#allocation2 + $0x51] sm:$0xff]  ;;  %v7956_v20 = vld [vmem:[#allocation2 + $0x108] sm:$0xff] }
 0x392   : > { %3742 = vmatprep.mubr.f32.mxu1 %v9863_v24  ;;  %6797 = vmatpush3.bf16.msra.mxu1 %v6794_v62  ;;  %v9924_v62 = vld [vmem:[#allocation2 + $0x7a] sm:$0xff] }
 0x393   : > { %3963 = vmatmul.mubr.f32.gmra.mrb[68].mxu0 %v9867_v49  ;;  %6799 = vmatprep.subr.bf16.mxu1 %v6798_v3 }
 0x394   : > { %3967 = vmatprep.mubr.f32.mxu0 %v9870_v41  ;;  %6746 = vmatpush1.bf16.msra.mxu0 %v6745_v61  ;;  %v9939_v61 = vld [vmem:[#allocation2 + $0x90] sm:$0xff] }
 0x395   : > { %3743 = vmatmul.mubr.f32.gmra.mrb[70].mxu1 %v2743_v9  ;;  %6747 = vmatprep.subr.bf16.mxu0 %v8224_v23  ;;  %v9921_v9 = vld [vmem:[#allocation2 + $0x69] sm:$0xff] }
 0x396   : > { %3747 = vmatprep.mubr.f32.mxu1 %v9873_v19  ;;  %6801 = vmatpush3.bf16.msra.mxu1 %v6798_v3  ;;  %v6766_v3 = vpack.c.bf16 %v3402_v29, %v3401_v31  ;;  %v3414_v31 = vld [vmem:[#allocation10 + $0x3f8] sm:$0xff] }
 0x397   : > { %3968 = vmatmul.mubr.f32.gmra.mrb[70].mxu0 %v9877_v22  ;;  %6803 = vmatprep.subr.bf16.mxu1 %v6802_v48  ;;  %v7951_v29 = vld [vmem:[#allocation2 + $0xc8] sm:$0xff] }
 0x398   : > { %3972 = vmatprep.mubr.f32.mxu0 %v9880_v27  ;;  %6749 = vmatpush1.bf16.msra.mxu0 %v6748_v53  ;;  %v9950_v53 = vld [vmem:[#allocation2 + $0x98] sm:$0xff] }
 0x399   : > { %3748 = vmatmul.mubr.f32.gmra.mrb[72].mxu1 %v9860_v50  ;;  %6750 = vmatprep.subr.bf16.mxu0 %v8224_v23 }
 0x39a   : > { %3752 = vmatprep.mubr.f32.mxu1 %v9884_v5  ;;  %6805 = vmatpush3.bf16.msra.mxu1 %v6802_v48  ;;  %v6769_v48 = vpack.c.bf16 %v3404_v45, %v3403_v34  ;;  %v9998_v34 = vld [vmem:[#allocation2 + $0xca] sm:$0xff] }
 0x39b   : > { %3973 = vmatmul.mubr.f32.gmra.mrb[72].mxu0 %v9888_v43  ;;  %6807 = vmatprep.subr.bf16.mxu1 %v6806_v11 }
 0x39c   : > { %3977 = vmatprep.mubr.f32.mxu0 %v9891_v16  ;;  %6752 = vmatpush1.bf16.msra.mxu0 %v6751_v44  ;;  %v9961_v44 = vld [vmem:[#allocation2 + $0xa8] sm:$0xff] }
 0x39d   : > { %3753 = vmatmul.mubr.f32.gmra.mrb[74].mxu1 %v9870_v41  ;;  %6753 = vmatprep.subr.bf16.mxu0 %v8224_v23 }
 0x39e   : > { %3757 = vmatprep.mubr.f32.mxu1 %v9895_v25  ;;  %6809 = vmatpush3.bf16.msra.mxu1 %v6806_v11  ;;  %v6772_v11 = vpack.c.bf16 %v3406_v17, %v3405_v8  ;;  %v10003_v8 = vld [vmem:[#allocation2 + $0xc9] sm:$0xff]  ;;  %v10006_v17 = vld [vmem:[#allocation2 + $0xda] sm:$0xff] }
 0x39f   : > { %3978 = vmatmul.mubr.f32.gmra.mrb[74].mxu0 %v9899_v32  ;;  %6811 = vmatprep.subr.bf16.mxu1 %v6810_v63 }
 0x3a0   : > { %3982 = vmatprep.mubr.f32.mxu0 %v9902_v39  ;;  %6755 = vmatpush1.bf16.msra.mxu0 %v6754_v55  ;;  %v9972_v55 = vld [vmem:[#allocation2 + $0xb0] sm:$0xff] }
 0x3a1   : > { %3758 = vmatmul.mubr.f32.gmra.mrb[76].mxu1 %v9880_v27  ;;  %6756 = vmatprep.subr.bf16.mxu0 %v8224_v23 }
 0x3a2   : > { %3762 = vmatprep.mubr.f32.mxu1 %v9906_v18  ;;  %6813 = vmatpush3.bf16.msra.mxu1 %v6810_v63  ;;  %v6775_v63 = vpack.c.bf16 %v3408_v52, %v3407_v33  ;;  %v10010_v33 = vld [vmem:[#allocation2 + $0xd9] sm:$0xff]  ;;  %v7954_v52 = vld [vmem:[#allocation2 + $0xf0] sm:$0xff] }
 0x3a3   : > { %3983 = vmatmul.mubr.f32.gmra.mrb[76].mxu0 %v9910_v59  ;;  %6815 = vmatprep.subr.bf16.mxu1 %v6814_v37 }
 0x3a4   : > { %3987 = vmatprep.mubr.f32.mxu0 %v9913_v47  ;;  %6758 = vmatpush1.bf16.msra.mxu0 %v6757_v38  ;;  %v9983_v38 = vld [vmem:[#allocation2 + $0xc0] sm:$0xff] }
 0x3a5   : > { %3763 = vmatmul.mubr.f32.gmra.mrb[78].mxu1 %v9891_v16  ;;  %6759 = vmatprep.subr.bf16.mxu0 %v8224_v23 }
 0x3a6   : > { %3767 = vmatprep.mubr.f32.mxu1 %v9917_v4  ;;  %6817 = vmatpush3.bf16.msra.mxu1 %v6814_v37  ;;  %v6778_v37 = vpack.c.bf16 %v3410_v58, %v3409_v56  ;;  %v10020_v56 = vld [vmem:[#allocation2 + $0xf2] sm:$0xff] }
 0x3a7   : > { %3988 = vmatmul.mubr.f32.gmra.mrb[78].mxu0 %v9921_v9  ;;  %v7955_v58 = vld [vmem:[#allocation2 + $0xf8] sm:$0xff] }
 0x3a8   : > { %3992 = vmatprep.mubr.f32.mxu0 %v9924_v62  ;;  %6761 = vmatpush1.bf16.msra.mxu0 %v6760_v54  ;;  %v9987_v54 = vld [vmem:[#allocation2 + $0xb1] sm:$0xff] }
 0x3a9   : > { %3768 = vmatmul.mubr.f32.gmra.mrb[80].mxu1 %v9902_v39  ;;  %6762 = vmatprep.subr.bf16.mxu0 %v8224_v23 }
 0x3aa   : > { %3772 = vmatprep.mubr.f32.mxu1 %v9928_v21 }
 0x3ab   : > { %3993 = vmatmul.mubr.f32.gmra.mrb[80].mxu0 %v9932_v57 }
 0x3ac   : > { %3997 = vmatprep.mubr.f32.mxu0 %v9935_v30  ;;  %6764 = vmatpush1.bf16.msra.mxu0 %v6763_v36  ;;  %v3413_v36 = vld [vmem:[#allocation10 + $0x3f0] sm:$0xff] }
 0x3ad   : > { %3773 = vmatmul.mubr.f32.gmra.mrb[82].mxu1 %v9913_v47  ;;  %6765 = vmatprep.subr.bf16.mxu0 %v8224_v23  ;;  %v6784_v45 = vpack.c.bf16 %v3414_v31, %v3413_v36  ;;  %v10034_v36 = vld [vmem:[#allocation2 + $0x10a] sm:$0xff] }
 0x3ae   : > { %3777 = vmatprep.mubr.f32.mxu1 %v9939_v61  ;;  %v7957_v31 = vld [vmem:[#allocation2 + $0x110] sm:$0xff] }
 0x3af   : > { %3998 = vmatmul.mubr.f32.gmra.mrb[82].mxu0 %v9943_v13 }
 0x3b0   : > { %4002 = vmatprep.mubr.f32.mxu0 %v9946_v42  ;;  %6767 = vmatpush1.bf16.msra.mxu0 %v6766_v3  ;;  %v9995_v3 = vld [vmem:[#allocation2 + $0xc1] sm:$0xff] }
 0x3b1   : > { %3778 = vmatmul.mubr.f32.gmra.mrb[84].mxu1 %v9924_v62  ;;  %6768 = vmatprep.subr.bf16.mxu0 %v8224_v23 }
 0x3b2   : > { %3782 = vmatprep.mubr.f32.mxu1 %v9950_v53 }
 0x3b3   : > { %4003 = vmatmul.mubr.f32.gmra.mrb[84].mxu0 %v9954_v35 }
 0x3b4   : > { %4007 = vmatprep.mubr.f32.mxu0 %v9957_v10  ;;  %6770 = vmatpush1.bf16.msra.mxu0 %v6769_v48  ;;  %v7952_v48 = vld [vmem:[#allocation2 + $0xd8] sm:$0xff] }
 0x3b5   : > { %3783 = vmatmul.mubr.f32.gmra.mrb[86].mxu1 %v9935_v30  ;;  %6771 = vmatprep.subr.bf16.mxu0 %v8224_v23 }
 0x3b6   : > { %3787 = vmatprep.mubr.f32.mxu1 %v9961_v44 }
 0x3b7   : > { %4008 = vmatmul.mubr.f32.gmra.mrb[86].mxu0 %v9965_v1 }
 0x3b8   : > { %4012 = vmatprep.mubr.f32.mxu0 %v9968_v40  ;;  %6773 = vmatpush1.bf16.msra.mxu0 %v6772_v11  ;;  %v7953_v11 = vld [vmem:[#allocation2 + $0xe0] sm:$0xff] }
 0x3b9   : > { %3788 = vmatmul.mubr.f32.gmra.mrb[88].mxu1 %v9946_v42  ;;  %6774 = vmatprep.subr.bf16.mxu0 %v8224_v23 }
 0x3ba   : > { %3792 = vmatprep.mubr.f32.mxu1 %v9972_v55 }
 0x3bb   : > { %4013 = vmatmul.mubr.f32.gmra.mrb[88].mxu0 %v9976_v15 }
 0x3bc   : > { %4017 = vmatprep.mubr.f32.mxu0 %v9979_v6  ;;  %6776 = vmatpush1.bf16.msra.mxu0 %v6775_v63  ;;  %v10017_v63 = vld [vmem:[#allocation2 + $0xe1] sm:$0xff] }
 0x3bd   : > { %3793 = vmatmul.mubr.f32.gmra.mrb[90].mxu1 %v9957_v10  ;;  %6777 = vmatprep.subr.bf16.mxu0 %v8224_v23 }
 0x3be   : > { %3797 = vmatprep.mubr.f32.mxu1 %v9983_v38 }
 0x3bf   : > { %4018 = vmatmul.mubr.f32.gmra.mrb[90].mxu0 %v9987_v54 }
 0x3c0   : > { %4022 = vmatprep.mubr.f32.mxu0 %v9990_v26  ;;  %6779 = vmatpush1.bf16.msra.mxu0 %v6778_v37  ;;  %v10024_v37 = vld [vmem:[#allocation2 + $0xf1] sm:$0xff] }
 0x3c1   : > { %3798 = vmatmul.mubr.f32.gmra.mrb[92].mxu1 %v9968_v40  ;;  %6780 = vmatprep.subr.bf16.mxu0 %v8224_v23 }
 0x3c2   : > { %3802 = vmatprep.mubr.f32.mxu1 %v7951_v29  ;;  %v10038_v29 = vld [vmem:[#allocation2 + $0x109] sm:$0xff] }
 0x3c3   : > { %4023 = vmatmul.mubr.f32.gmra.mrb[92].mxu0 %v9995_v3  ;;  %11235 = vst [vmem:[#allocation22_spill] sm:$0xff] %v10038_v29 }
 0x3c4   : > { %4027 = vmatprep.mubr.f32.mxu0 %v9998_v34  ;;  %6782 = vmatpush1.bf16.msra.mxu0 %v6781_v12  ;;  %v10031_v12 = vld [vmem:[#allocation2 + $0xf9] sm:$0xff] }
 0x3c5   : > { %3803 = vmatmul.mubr.f32.gmra.mrb[94].mxu1 %v9979_v6  ;;  %6783 = vmatprep.subr.bf16.mxu0 %v8224_v23  ;;  %v10013_v23 = vld [vmem:[#allocation2 + $0xe2] sm:$0xff]  ;;  %11234 = vst [vmem:[#allocation21_spill] sm:$0xff] %v10031_v12 }
 0x3c6   : > { %3807 = vmatprep.mubr.f32.mxu1 %v7952_v48  ;;  %v7958_v48 = vld [vmem:[#allocation2 + $0x120] sm:$0xff] }
 0x3c7   : > { %4028 = vmatmul.mubr.f32.gmra.mrb[94].mxu0 %v10003_v8 }
 0x3c8   : > { %4032 = vmatprep.mubr.f32.mxu0 %v10006_v17  ;;  %6785 = vmatpush1.bf16.msra.mxu0 %v6784_v45  ;;  %v10041_v45 = vld [vmem:[#allocation2 + $0x112] sm:$0xff] }
 0x3c9   : > { %3808 = vmatmul.mubr.f32.gmra.mrb[96].mxu1 %v9990_v26 }
 0x3ca   : > { %3812 = vmatprep.mubr.f32.mxu1 %v7953_v11  ;;  %v10045_v11 = vld [vmem:[#allocation2 + $0x111] sm:$0xff] }
 0x3cb   : > { %4033 = vmatmul.mubr.f32.gmra.mrb[96].mxu0 %v10010_v33  ;;  %11236 = vst [vmem:[#allocation23_spill] sm:$0xff] %v10045_v11 }
 0x3cc   : > { %4037 = vmatprep.mubr.f32.mxu0 %v10013_v23 }
 0x3cd   : > { %3813 = vmatmul.mubr.f32.gmra.mrb[98].mxu1 %v9998_v34 }
 0x3ce   : > { %3817 = vmatprep.mubr.f32.mxu1 %v7954_v52  ;;  %v10048_v52 = vld [vmem:[#allocation2 + $0x122] sm:$0xff] }
 0x3cf   : > { %4038 = vmatmul.mubr.f32.gmra.mrb[98].mxu0 %v10017_v63 }
 0x3d0   : > { %4042 = vmatprep.mubr.f32.mxu0 %v10020_v56 }
 0x3d1   : > { %3818 = vmatmul.mubr.f32.gmra.mrb[100].mxu1 %v10006_v17 }
 0x3d2   : > { %3822 = vmatprep.mubr.f32.mxu1 %v7955_v58  ;;  %v7959_v58 = vld [vmem:[#allocation2 + $0x128] sm:$0xff] }
 0x3d3   : > { %4043 = vmatmul.mubr.f32.gmra.mrb[100].mxu0 %v10024_v37 }
 0x3d4   : > { %4047 = vmatprep.mubr.f32.mxu0 %v10027_v0 }
 0x3d5   : > { %3823 = vmatmul.mubr.f32.gmra.mrb[102].mxu1 %v10013_v23 }
 0x3d6   : > { %3827 = vmatprep.mubr.f32.mxu1 %v7956_v20  ;;  %v10052_v20 = vld [vmem:[#allocation2 + $0x121] sm:$0xff] }
 0x3d7   : > { %4048 = vmatmul.mubr.f32.gmra.mrb[102].mxu0 %v10031_v12  ;;  %11237 = vst [vmem:[#allocation24_spill] sm:$0xff] %v10052_v20  ;;  %v10123_v12 = vld [vmem:[#allocation2 + $0x18a] sm:$0xff] }
 0x3d8   : > { %4052 = vmatprep.mubr.f32.mxu0 %v10034_v36 }
 0x3d9   : > { %3828 = vmatmul.mubr.f32.gmra.mrb[104].mxu1 %v10020_v56 }
 0x3da   : > { %3832 = vmatprep.mubr.f32.mxu1 %v7957_v31  ;;  %v10055_v31 = vld [vmem:[#allocation2 + $0x12a] sm:$0xff] }
 0x3db   : > { %4053 = vmatmul.mubr.f32.gmra.mrb[104].mxu0 %v10038_v29  ;;  %v10113_v29 = vld [vmem:[#allocation2 + $0x182] sm:$0xff] }
 0x3dc   : > { %4057 = vmatprep.mubr.f32.mxu0 %v10041_v45 }
 0x3dd   : > { %3833 = vmatmul.mubr.f32.gmra.mrb[106].mxu1 %v10027_v0 }
 0x3de   : > { %3837 = vmatprep.mubr.f32.mxu1 %v7958_v48  ;;  %v10060_v48 = vld [vmem:[#allocation2 + $0x129] sm:$0xff] }
 0x3df   : > { %4058 = vmatmul.mubr.f32.gmra.mrb[106].mxu0 %v10045_v11  ;;  %11238 = vst [vmem:[#allocation25_spill] sm:$0xff] %v10060_v48  ;;  %v10063_v11 = vld [vmem:[#allocation2 + $0x13a] sm:$0xff] }
 0x3e0   : > { %4062 = vmatprep.mubr.f32.mxu0 %v10048_v52 }
 0x3e1   : > { %3838 = vmatmul.mubr.f32.gmra.mrb[108].mxu1 %v10034_v36 }
 0x3e2   : > { %3842 = vmatprep.mubr.f32.mxu1 %v7959_v58  ;;  %v10068_v58 = vld [vmem:[#allocation2 + $0x139] sm:$0xff] }
 0x3e3   : > { %4063 = vmatmul.mubr.f32.gmra.mrb[108].mxu0 %v10052_v20  ;;  %11239 = vst [vmem:[#allocation26_spill] sm:$0xff] %v10068_v58  ;;  %v10071_v20 = vld [vmem:[#allocation2 + $0x142] sm:$0xff] }
 0x3e4   : > { %4067 = vmatprep.mubr.f32.mxu0 %v10055_v31 }
 0x3e5   : > { %3843 = vmatmul.mubr.f32.gmra.mrb[110].mxu1 %v10041_v45 }
 0x3e6   : > { %3847 = vmatprep.mubr.f32.mxu1 %v9763_v60  ;;  %v10076_v60 = vld [vmem:[#allocation2 + $0x141] sm:$0xff] }
 0x3e7   : > { %4068 = vmatmul.mubr.f32.gmra.mrb[110].mxu0 %v10060_v48  ;;  %11240 = vst [vmem:[#allocation27_spill] sm:$0xff] %v10076_v60  ;;  %v10079_v48 = vld [vmem:[#allocation2 + $0x152] sm:$0xff] }
 0x3e8   : > { %4072 = vmatprep.mubr.f32.mxu0 %v10063_v11 }
 0x3e9   : > { %3848 = vmatmul.mubr.f32.gmra.mrb[112].mxu1 %v10048_v52 }
 0x3ea   : > { %3852 = vmatprep.mubr.f32.mxu1 %v9800_v46  ;;  %v10084_v46 = vld [vmem:[#allocation2 + $0x151] sm:$0xff] }
 0x3eb   : > { %4073 = vmatmul.mubr.f32.gmra.mrb[112].mxu0 %v10068_v58  ;;  %11241 = vst [vmem:[#allocation28_spill] sm:$0xff] %v10084_v46  ;;  %v10087_v58 = vld [vmem:[#allocation2 + $0x15a] sm:$0xff] }
 0x3ec   : > { %4077 = vmatprep.mubr.f32.mxu0 %v10071_v20 }
 0x3ed   : > { %3853 = vmatmul.mubr.f32.gmra.mrb[114].mxu1 %v10055_v31 }
 0x3ee   : > { %3857 = vmatprep.mubr.f32.mxu1 %v9811_v28  ;;  %v10092_v28 = vld [vmem:[#allocation2 + $0x159] sm:$0xff] }
 0x3ef   : > { %4078 = vmatmul.mubr.f32.gmra.mrb[114].mxu0 %v10076_v60  ;;  %11242 = vst [vmem:[#allocation29_spill] sm:$0xff] %v10092_v28  ;;  %v10095_v60 = vld [vmem:[#allocation2 + $0x16a] sm:$0xff] }
 0x3f0   : > { %4082 = vmatprep.mubr.f32.mxu0 %v10079_v48 }
 0x3f1   : > { %3858 = vmatmul.mubr.f32.gmra.mrb[116].mxu1 %v10063_v11 }
 0x3f2   : > { %3862 = vmatprep.mubr.f32.mxu1 %v9827_v51  ;;  %v10100_v51 = vld [vmem:[#allocation2 + $0x169] sm:$0xff] }
 0x3f3   : > { %4083 = vmatmul.mubr.f32.gmra.mrb[116].mxu0 %v10084_v46  ;;  %11243 = vst [vmem:[#allocation30_spill] sm:$0xff] %v10100_v51  ;;  %v10103_v46 = vld [vmem:[#allocation2 + $0x172] sm:$0xff] }
 0x3f4   : > { %4087 = vmatprep.mubr.f32.mxu0 %v10087_v58 }
 0x3f5   : > { %3863 = vmatmul.mubr.f32.gmra.mrb[118].mxu1 %v10071_v20 }
 0x3f6   : > { %3867 = vmatprep.mubr.f32.mxu1 %v9836_v7  ;;  %v10107_v7 = vld [vmem:[#allocation2 + $0x180] sm:$0xff] }
 0x3f7   : > { %4088 = vmatmul.mubr.f32.gmra.mrb[118].mxu0 %v10092_v28  ;;  %11244 = vst [vmem:[#allocation31_spill] sm:$0xff] %v10107_v7  ;;  %v10110_v28 = vld [vmem:[#allocation2 + $0x171] sm:$0xff] }
 0x3f8   : > { %4092 = vmatprep.mubr.f32.mxu0 %v10095_v60 }
 0x3f9   : > { %3868 = vmatmul.mubr.f32.gmra.mrb[120].mxu1 %v10079_v48 }
 0x3fa   : > { %3872 = vmatprep.mubr.f32.mxu1 %v9841_v2  ;;  %v10117_v2 = vld [vmem:[#allocation2 + $0x188] sm:$0xff] }
 0x3fb   : > { %4093 = vmatmul.mubr.f32.gmra.mrb[120].mxu0 %v10100_v51  ;;  %v10120_v51 = vld [vmem:[#allocation2 + $0x181] sm:$0xff] }
 0x3fc   : > { %4097 = vmatprep.mubr.f32.mxu0 %v10103_v46 }
 0x3fd   : > { %3873 = vmatmul.mubr.f32.gmra.mrb[122].mxu1 %v10087_v58 }
 0x3fe   : > { %3877 = vmatprep.mubr.f32.mxu1 %v10107_v7  ;;  %v10128_v7 = vld [vmem:[#allocation2 + $0x189] sm:$0xff] }
 0x3ff   : > { %4098 = vmatmul.mubr.f32.gmra.mrb[122].mxu0 %v10110_v28 }
 0x400   : > { %4102 = vmatprep.mubr.f32.mxu0 %v10113_v29 }
 0x401   : > { %3878 = vmatmul.mubr.f32.gmra.mrb[124].mxu1 %v10095_v60 }
 0x402   : > { %3882 = vmatprep.mubr.f32.mxu1 %v10117_v2 }
 0x403   : > { %4103 = vmatmul.mubr.f32.gmra.mrb[124].mxu0 %v10120_v51 }
 0x404   : > { %4107 = vmatprep.mubr.f32.mxu0 %v10123_v12 }
 0x405   : > { %3883 = vmatmul.mubr.f32.gmra.mrb[126].mxu1 %v10103_v46 }
 0x406   : > { %6370 = vmatprep.mubr.f32.mxu1 %v9860_v50  ;;  %v2965_v50 = vld [vmem:[#allocation2 + $0x19a] sm:$0xff] }
 0x407   : > { %4108 = vmatmul.mubr.f32.gmra.mrb[126].mxu0 %v10128_v7 }
 0x408   : > { %4177 = vmatprep.mubr.f32.mxu0 %v9867_v49  ;;  %v2966_v49 = vld [vmem:[#allocation2 + $0x1a2] sm:$0xff] }
 0x409   : > { %6371 = vmatmul.mubr.f32.vlgmr.msra.gmra.mrb[128].mxu1 %v9870_v41  ;;  %v2822_v41 = vld [vmem:[#allocation2 + $0xe0] sm:$0xff] }
 0x40a   : > { %6373 = vmatprep.mubr.f32.mxu1 %v9880_v27  ;;  %v2824_v27 = vld [vmem:[#allocation2 + $0xf8] sm:$0xff] }
 0x40b   : > { %4178 = vmatmul.mubr.f32.vlgmr.msra.gmra.mrb[64].mxu0 %v9856_v14  ;;  %v2820_v14 = vld [vmem:[#allocation2 + $0xc8] sm:$0xff] }
 0x40c   : > { %4182 = vmatprep.mubr.f32.mxu0 %v9877_v22  ;;  %v11245_v22 = vld [vmem:[#allocation21_spill] sm:$0xff] }
 0x40d   : > { %6374 = vmatmul.mubr.f32.gmra.mrb[130].mxu1 %v9891_v16  ;;  %v11247_v16 = vld [vmem:[#allocation23_spill] sm:$0xff] }
 0x40e   : > { %6376 = vmatprep.mubr.f32.mxu1 %v9902_v39  ;;  %v2827_v39 = vld [vmem:[#allocation2 + $0x120] sm:$0xff] }
 0x40f   : > { %4183 = vmatmul.mubr.f32.gmra.mrb[66].mxu0 %v9863_v24  ;;  %v2821_v24 = vld [vmem:[#allocation2 + $0xd8] sm:$0xff] }
 0x410   : > { %4187 = vmatprep.mubr.f32.mxu0 %v9888_v43  ;;  %v2825_v43 = vld [vmem:[#allocation2 + $0x108] sm:$0xff] }
 0x411   : > { %6377 = vmatmul.mubr.f32.gmra.mrb[132].mxu1 %v9913_v47 }
 0x412   : > { %6379 = vmatprep.mubr.f32.mxu1 %v9924_v62  ;;  %v11250_v62 = vld [vmem:[#allocation26_spill] sm:$0xff] }
 0x413   : > { %4188 = vmatmul.mubr.f32.gmra.mrb[68].mxu0 %v9873_v19  ;;  %v2823_v19 = vld [vmem:[#allocation2 + $0xf0] sm:$0xff] }
 0x414   : > { %4192 = vmatprep.mubr.f32.mxu0 %v9899_v32  ;;  %v11248_v32 = vld [vmem:[#allocation24_spill] sm:$0xff] }
 0x415   : > { %6380 = vmatmul.mubr.f32.gmra.mrb[134].mxu1 %v9935_v30 }
 0x416   : > { %6382 = vmatprep.mubr.f32.mxu1 %v9946_v42  ;;  %v2830_v42 = vld [vmem:[#allocation2 + $0x140] sm:$0xff] }
 0x417   : > { %4193 = vmatmul.mubr.f32.gmra.mrb[70].mxu0 %v9884_v5  ;;  %v11246_v5 = vld [vmem:[#allocation22_spill] sm:$0xff] }
 0x418   : > { %4197 = vmatprep.mubr.f32.mxu0 %v9910_v59  ;;  %v11249_v59 = vld [vmem:[#allocation25_spill] sm:$0xff] }
 0x419   : > { %6383 = vmatmul.mubr.f32.gmra.mrb[136].mxu1 %v9957_v10 }
 0x41a   : > { %6385 = vmatprep.mubr.f32.mxu1 %v9968_v40  ;;  %v11253_v40 = vld [vmem:[#allocation29_spill] sm:$0xff] }
 0x41b   : > { %4198 = vmatmul.mubr.f32.gmra.mrb[72].mxu0 %v9895_v25  ;;  %v2826_v25 = vld [vmem:[#allocation2 + $0x110] sm:$0xff] }
 0x41c   : > { %4202 = vmatprep.mubr.f32.mxu0 %v9921_v9 }
 0x41d   : > { %6386 = vmatmul.mubr.f32.gmra.mrb[138].mxu1 %v9979_v6 }
 0x41e   : > { %6388 = vmatprep.mubr.f32.mxu1 %v9990_v26  ;;  %v2833_v26 = vld [vmem:[#allocation2 + $0x168] sm:$0xff] }
 0x41f   : > { %4203 = vmatmul.mubr.f32.gmra.mrb[74].mxu0 %v9906_v18 }
 0x420   : > { %4207 = vmatprep.mubr.f32.mxu0 %v9932_v57  ;;  %v2829_v57 = vld [vmem:[#allocation2 + $0x138] sm:$0xff] }
 0x421   : > { %6389 = vmatmul.mubr.f32.gmra.mrb[140].mxu1 %v9998_v34 }
 0x422   : > { %6391 = vmatprep.mubr.f32.mxu1 %v10006_v17 }
 0x423   : > { %4208 = vmatmul.mubr.f32.gmra.mrb[76].mxu0 %v9917_v4  ;;  %v2828_v4 = vld [vmem:[#allocation2 + $0x128] sm:$0xff] }
 0x424   : > { %4212 = vmatprep.mubr.f32.mxu0 %v9943_v13 }
 0x425   : > { %6392 = vmatmul.mubr.f32.gmra.mrb[142].mxu1 %v10013_v23  ;;  %v11255_v23 = vld [vmem:[#allocation31_spill] sm:$0xff] }
 0x426   : > { %6394 = vmatprep.mubr.f32.mxu1 %v10020_v56 }
 0x427   : > { %4213 = vmatmul.mubr.f32.gmra.mrb[78].mxu0 %v9928_v21 }
 0x428   : > { %4217 = vmatprep.mubr.f32.mxu0 %v9954_v35  ;;  %v11252_v35 = vld [vmem:[#allocation28_spill] sm:$0xff] }
 0x429   : > { %6395 = vmatmul.mubr.f32.gmra.mrb[144].mxu1 %v10027_v0 }
 0x42a   : > { %6397 = vmatprep.mubr.f32.mxu1 %v10034_v36  ;;  %v2902_v36 = vld [vmem:[#allocation2 + $0x1a1] sm:$0xff] }
 0x42b   : > { %4218 = vmatmul.mubr.f32.gmra.mrb[80].mxu0 %v9939_v61  ;;  %v11251_v61 = vld [vmem:[#allocation27_spill] sm:$0xff] }
 0x42c   : > { %4222 = vmatprep.mubr.f32.mxu0 %v9965_v1 }
 0x42d   : > { %6398 = vmatmul.mubr.f32.gmra.mrb[146].mxu1 %v10041_v45 }
 0x42e   : > { %6400 = vmatprep.mubr.f32.mxu1 %v10048_v52 }
 0x42f   : > { %4223 = vmatmul.mubr.f32.gmra.mrb[82].mxu0 %v9950_v53 }
 0x430   : > { %4227 = vmatprep.mubr.f32.mxu0 %v9976_v15  ;;  %v2832_v15 = vld [vmem:[#allocation2 + $0x158] sm:$0xff] }
 0x431   : > { %6401 = vmatmul.mubr.f32.gmra.mrb[148].mxu1 %v10055_v31 }
 0x432   : > { %6403 = vmatprep.mubr.f32.mxu1 %v10063_v11 }
 0x433   : > { %4228 = vmatmul.mubr.f32.gmra.mrb[84].mxu0 %v9961_v44  ;;  %v2831_v44 = vld [vmem:[#allocation2 + $0x150] sm:$0xff] }
 0x434   : > { %4232 = vmatprep.mubr.f32.mxu0 %v9987_v54 }
 0x435   : > { %6404 = vmatmul.mubr.f32.gmra.mrb[150].mxu1 %v10071_v20 }
 0x436   : > { %6406 = vmatprep.mubr.f32.mxu1 %v10079_v48 }
 0x437   : > { %4233 = vmatmul.mubr.f32.gmra.mrb[86].mxu0 %v9972_v55 }
 0x438   : > { %4237 = vmatprep.mubr.f32.mxu0 %v9995_v3 }
 0x439   : > { %6407 = vmatmul.mubr.f32.gmra.mrb[152].mxu1 %v10087_v58  ;;  %v5217_v58 = vld [vmem:[#allocation12] sm:$0xff] }
 0x43a   : > { %6409 = vmatprep.mubr.f32.mxu1 %v10095_v60  ;;  %v5218_v60 = vld [vmem:[#allocation12 + $0x8] sm:$0xff] }
 0x43b   : > { %4238 = vmatmul.mubr.f32.gmra.mrb[88].mxu0 %v9983_v38  ;;  %v11254_v38 = vld [vmem:[#allocation30_spill] sm:$0xff] }
 0x43c   : > { %4242 = vmatprep.mubr.f32.mxu0 %v10003_v8  ;;  %v2834_v8 = vld [vmem:[#allocation2 + $0x170] sm:$0xff] }
 0x43d   : > { %6410 = vmatmul.mubr.f32.gmra.mrb[154].mxu1 %v10103_v46  ;;  %v6818_v46 = vpack.c.bf16 %v5218_v60, %v5217_v58 }
 0x43e   : > { %6412 = vmatprep.mubr.f32.mxu1 %v10113_v29  ;;  %v7960_v29 = vld [vmem:[#allocation2] sm:$0xff] }
 0x43f   : > { %4243 = vmatmul.mubr.f32.gmra.mrb[90].mxu0 %v2820_v14  ;;  %6819 = vmatprep.subr.bf16.mxu0 %v6818_v46 }
 0x440   : > { %4247 = vmatprep.mubr.f32.mxu0 %v10010_v33  ;;  %6821 = vmatpush3.bf16.msra.mxu0 %v6818_v46 }
 0x441   : > { %6413 = vmatmul.mubr.f32.gmra.mrb[156].mxu1 %v10123_v12 }
 0x442   : > { %6415 = vmatprep.mubr.f32.mxu1 %v2965_v50 }
 0x443   : > { %4248 = vmatmul.mubr.f32.gmra.mrb[92].mxu0 %v2821_v24 }
 0x444   : > { %4252 = vmatprep.mubr.f32.mxu0 %v10017_v63 }
 0x445   : > { %6416 = vmatmul.mubr.f32.gmra.mrb[158].mxu1 %v2966_v49  ;;  %v5221_v49 = vld [vmem:[#allocation12 + $0x20] sm:$0xff] }
 0x447   : > { %4253 = vmatmul.mubr.f32.gmra.mrb[94].mxu0 %v2822_v41  ;;  %v5222_v41 = vld [vmem:[#allocation12 + $0x28] sm:$0xff] }
 0x448   : > { %4257 = vmatprep.mubr.f32.mxu0 %v10024_v37  ;;  %v2901_v37 = vld [vmem:[#allocation2 + $0x199] sm:$0xff] }
 0x44b   : > { %4258 = vmatmul.mubr.f32.gmra.mrb[96].mxu0 %v2823_v19  ;;  %v6826_v19 = vpack.c.bf16 %v5222_v41, %v5221_v49 }
 0x44c   : > { %4262 = vmatprep.mubr.f32.mxu0 %v11245_v22 }
 0x44f   : > { %4263 = vmatmul.mubr.f32.gmra.mrb[98].mxu0 %v2824_v27 }
 0x450   : > { %4267 = vmatprep.mubr.f32.mxu0 %v11246_v5  ;;  %v5223_v5 = vld [vmem:[#allocation12 + $0x30] sm:$0xff] }
 0x453   : > { %4268 = vmatmul.mubr.f32.gmra.mrb[100].mxu0 %v2825_v43  ;;  %v5224_v43 = vld [vmem:[#allocation12 + $0x38] sm:$0xff] }
 0x454   : > { %4272 = vmatprep.mubr.f32.mxu0 %v11247_v16  ;;  %v6830_v16 = vpack.c.bf16 %v5224_v43, %v5223_v5 }
 0x457   : > { %4273 = vmatmul.mubr.f32.gmra.mrb[102].mxu0 %v2826_v25 }
 0x458   : > { %4277 = vmatprep.mubr.f32.mxu0 %v11248_v32 }
 0x45b   : > { %4278 = vmatmul.mubr.f32.gmra.mrb[104].mxu0 %v2827_v39  ;;  %v5225_v39 = vld [vmem:[#allocation12 + $0x40] sm:$0xff] }
 0x45c   : > { %v10194_v18 = vpop.f32.mrb[64].mxu1  ;;  %4282 = vmatprep.mubr.f32.mxu0 %v11249_v59  ;;  %v5226_v59 = vld [vmem:[#allocation12 + $0x48] sm:$0xff] }
 0x45d   : > { %v3731_v47 = vpop.f32.mrb[65].mxu1 }
 0x45e   : > { %v6834_v47 = vpack.c.bf16 %v5226_v59, %v5225_v39 }
 0x45f   : > { %4283 = vmatmul.mubr.f32.gmra.mrb[106].mxu0 %v2828_v4 }
 0x460   : > { %v10197_v9 = vpop.f32.mrb[66].mxu1  ;;  %4287 = vmatprep.mubr.f32.mxu0 %v11250_v62 }
 0x461   : > { %v3736_v21 = vpop.f32.mrb[67].mxu1 }
 0x462   : > { %v5227_v21 = vld [vmem:[#allocation12 + $0x50] sm:$0xff] }
 0x463   : > { %4288 = vmatmul.mubr.f32.gmra.mrb[108].mxu0 %v2829_v57  ;;  %v5228_v57 = vld [vmem:[#allocation12 + $0x58] sm:$0xff] }
 0x464   : > { %v10200_v30 = vpop.f32.mrb[68].mxu1  ;;  %4292 = vmatprep.mubr.f32.mxu0 %v11251_v61  ;;  %v6838_v61 = vpack.c.bf16 %v5228_v57, %v5227_v21 }
 0x465   : > { %v3741_v13 = vpop.f32.mrb[69].mxu1 }
 0x467   : > { %4293 = vmatmul.mubr.f32.gmra.mrb[110].mxu0 %v2830_v42 }
 0x468   : > { %v10203_v53 = vpop.f32.mrb[70].mxu1  ;;  %4297 = vmatprep.mubr.f32.mxu0 %v11252_v35  ;;  %v5229_v35 = vld [vmem:[#allocation12 + $0x60] sm:$0xff] }
 0x469   : > { %v3746_v10 = vpop.f32.mrb[71].mxu1 }
 0x46a   : > { %v5230_v10 = vld [vmem:[#allocation12 + $0x68] sm:$0xff] }
 0x46b   : > { %4298 = vmatmul.mubr.f32.gmra.mrb[112].mxu0 %v2831_v44  ;;  %v6842_v44 = vpack.c.bf16 %v5230_v10, %v5229_v35 }
 0x46c   : > { %v10206_v1 = vpop.f32.mrb[72].mxu1  ;;  %4302 = vmatprep.mubr.f32.mxu0 %v11253_v40 }
 0x46d   : > { %v3751_v55 = vpop.f32.mrb[73].mxu1 }
 0x46f   : > { %4303 = vmatmul.mubr.f32.gmra.mrb[114].mxu0 %v2832_v15  ;;  %v5231_v15 = vld [vmem:[#allocation12 + $0x70] sm:$0xff] }
 0x470   : > { %v10209_v6 = vpop.f32.mrb[74].mxu1  ;;  %4307 = vmatprep.mubr.f32.mxu0 %v11254_v38  ;;  %v5232_v38 = vld [vmem:[#allocation12 + $0x78] sm:$0xff] }
 0x471   : > { %v3756_v54 = vpop.f32.mrb[75].mxu1 }
 0x472   : > { %v6846_v54 = vpack.c.bf16 %v5232_v38, %v5231_v15 }
 0x473   : > { %4308 = vmatmul.mubr.f32.gmra.mrb[116].mxu0 %v2833_v26 }
 0x474   : > { %v10212_v3 = vpop.f32.mrb[76].mxu1  ;;  %4312 = vmatprep.mubr.f32.mxu0 %v10110_v28 }
 0x475   : > { %v3761_v34 = vpop.f32.mrb[77].mxu1 }
 0x477   : > { %4313 = vmatmul.mubr.f32.gmra.mrb[118].mxu0 %v2834_v8 }
 0x478   : > { %v10215_v17 = vpop.f32.mrb[78].mxu1  ;;  %4317 = vmatprep.mubr.f32.mxu0 %v10120_v51 }
 0x479   : > { %v3766_v33 = vpop.f32.mrb[79].mxu1 }
 0x47b   : > { %4318 = vmatmul.mubr.f32.gmra.mrb[120].mxu0 %v11255_v23 }
 0x47c   : > { %v10219_v63 = vpop.f32.mrb[80].mxu1  ;;  %4322 = vmatprep.mubr.f32.mxu0 %v10128_v7  ;;  %v5219_v7 = vld [vmem:[#allocation12 + $0x10] sm:$0xff] }
 0x47d   : > { %v3771_v56 = vpop.f32.mrb[81].mxu1 }
 0x47f   : > { %4323 = vmatmul.mubr.f32.gmra.mrb[122].mxu0 %v10117_v2  ;;  %v5220_v2 = vld [vmem:[#allocation12 + $0x18] sm:$0xff] }
 0x480   : > { %v10223_v0 = vpop.f32.mrb[82].mxu1  ;;  %4327 = vmatprep.mubr.f32.mxu0 %v2901_v37  ;;  %v6822_v14 = vpack.c.bf16 %v5220_v2, %v5219_v7 }
 0x481   : > { %v3776_v12 = vpop.f32.mrb[83].mxu1 }
 0x482   : > { %6823 = vmatprep.subr.bf16.mxu0 %v6822_v14 }
 0x483   : > { %4328 = vmatmul.mubr.f32.gmra.mrb[124].mxu0 %v7960_v29 }
 0x484   : > { %v10225_v45 = vpop.f32.mrb[84].mxu1  ;;  %4332 = vmatprep.mubr.f32.mxu0 %v2902_v36  ;;  %6825 = vmatpush3.bf16.msra.mxu0 %v6822_v14 }
 0x485   : > { %v3781_v11 = vpop.f32.mrb[85].mxu1  ;;  %6827 = vmatprep.subr.bf16.mxu0 %v6826_v19 }
 0x487   : > { %4333 = vmatmul.mubr.f32.gmra.mrb[126].mxu0 %v7960_v29 }
 0x488   : > { %v10227_v52 = vpop.f32.mrb[86].mxu1  ;;  %6829 = vmatpush3.bf16.msra.mxu0 %v6826_v19 }
 0x489   : > { %v3786_v20 = vpop.f32.mrb[87].mxu1  ;;  %6831 = vmatprep.subr.bf16.mxu0 %v6830_v16 }
 0x48c   : > { %v10229_v31 = vpop.f32.mrb[88].mxu1  ;;  %6833 = vmatpush3.bf16.msra.mxu0 %v6830_v16 }
 0x48d   : > { %v3791_v48 = vpop.f32.mrb[89].mxu1  ;;  %6835 = vmatprep.subr.bf16.mxu0 %v6834_v47 }
 0x490   : > { %v10231_v28 = vpop.f32.mrb[90].mxu1  ;;  %6837 = vmatpush3.bf16.msra.mxu0 %v6834_v47 }
 0x491   : > { %v3796_v51 = vpop.f32.mrb[91].mxu1  ;;  %6839 = vmatprep.subr.bf16.mxu0 %v6838_v61 }
 0x494   : > { %v10233_v50 = vpop.f32.mrb[92].mxu1  ;;  %6841 = vmatpush3.bf16.msra.mxu0 %v6838_v61 }
 0x495   : > { %v3801_v24 = vpop.f32.mrb[93].mxu1  ;;  %6843 = vmatprep.subr.bf16.mxu0 %v6842_v44 }
 0x498   : > { %v10235_v22 = vpop.f32.mrb[94].mxu1  ;;  %6845 = vmatpush3.bf16.msra.mxu0 %v6842_v44 }
 0x499   : > { %v3806_v27 = vpop.f32.mrb[95].mxu1  ;;  %6847 = vmatprep.subr.bf16.mxu0 %v6846_v54 }
 0x49a   : > { %v10272_v27 = vld [vmem:[%s11256_s14] ss:$0 sm:$0xff]  ;;  %s8137_s14 = sshll.u32 %s8225_s19, 4  ;;  %s8138_s14 = int_to_ptr.vmem [resolvable:$false] %s8137_s14 }
 0x49b   : > { %v6850_v43 = vadd.f32 %v10272_v27, %v10194_v18  ;;  %v6854_v18 = vadd.f32 %v10272_v27, %v10200_v30  ;;  %p8140_p13 = scmp.lt.s32.totalorder %s11124_s10, %s8138_s14 }
 0x49c   : > { %v10237_v25 = vpop.f32.mrb[96].mxu1  ;;  %6849 = vmatpush3.bf16.msra.mxu0 %v6846_v54 }
 0x49d   : > { %v3811_v32 = vpop.f32.mrb[97].mxu1 }
 0x4a0   : > { %v10239_v4 = vpop.f32.mrb[98].mxu1 }
 0x4a1   : > { %v3816_v62 = vpop.f32.mrb[99].mxu1 }
 0x4a2   : > { %v6852_v62 = vadd.f32 %v10272_v27, %v10197_v9 }
 0x4a4   : > { %v10241_v13 = vpop.f32.mrb[100].mxu1 }
 0x4a5   : > { %v3821_v42 = vpop.f32.mrb[101].mxu1 }
 0x4a8   : > { %v10243_v40 = vpop.f32.mrb[102].mxu1 }
 0x4a9   : > { %v3826_v55 = vpop.f32.mrb[103].mxu1 }
 0x4ac   : > { %v10245_v26 = vpop.f32.mrb[104].mxu1 }
 0x4ad   : > { %v3831_v34 = vpop.f32.mrb[105].mxu1 }
 0x4b0   : > { %v10247_v8 = vpop.f32.mrb[106].mxu1 }
 0x4b1   : > { %v3836_v33 = vpop.f32.mrb[107].mxu1 }
 0x4b4   : > { %v10249_v23 = vpop.f32.mrb[108].mxu1 }
 0x4b5   : > { %v3841_v56 = vpop.f32.mrb[109].mxu1 }
 0x4b8   : > { %v10251_v37 = vpop.f32.mrb[110].mxu1 }
 0x4b9   : > { %v3846_v12 = vpop.f32.mrb[111].mxu1 }
 0x4ba   : > { %v6856_v12 = vadd.f32 %v10272_v27, %v10203_v53 }
 0x4bc   : > { %v10253_v36 = vpop.f32.mrb[112].mxu1 }
 0x4bd   : > { %v3851_v29 = vpop.f32.mrb[113].mxu1 }
 0x4c0   : > { %v10255_v11 = vpop.f32.mrb[114].mxu1 }
 0x4c1   : > { %v3856_v20 = vpop.f32.mrb[115].mxu1 }
 0x4c4   : > { %v10257_v48 = vpop.f32.mrb[116].mxu1 }
 0x4c5   : > { %v3861_v58 = vpop.f32.mrb[117].mxu1 }
 0x4c8   : > { %v10259_v60 = vpop.f32.mrb[118].mxu1 }
 0x4c9   : > { %v3866_v46 = vpop.f32.mrb[119].mxu1 }
 0x4cc   : > { %v10261_v51 = vpop.f32.mrb[120].mxu1 }
 0x4cd   : > { %v3871_v7 = vpop.f32.mrb[121].mxu1 }
 0x4d0   : > { %v10263_v2 = vpop.f32.mrb[122].mxu1 }
 0x4d1   : > { %v3876_v14 = vpop.f32.mrb[123].mxu1 }
 0x4d4   : > { %v10265_v24 = vpop.f32.mrb[124].mxu1 }
 0x4d5   : > { %v3881_v49 = vpop.f32.mrb[125].mxu1 }
 0x4d8   : > { %v10267_v41 = vpop.f32.mrb[126].mxu1 }
 0x4d9   : > { %v3886_v19 = vpop.f32.mrb[127].mxu1 }
 0x4da   : > { %v6858_v19 = vadd.f32 %v10272_v27, %v10206_v1 }
 0x4dc   : > { %v6372_v5 = vpop.f32.mrb[128].mxu1 }
 0x4dd   : > { %v4404_v16 = vpop.f32.mrb[129].mxu1 }
 0x4de   : > { %v4179_v32 = vpop.f32.mrb[64].mxu0 }
 0x4df   : > { %v6851_v39 = vadd.f32 %v6850_v43, %v4179_v32  ;;  %v4181_v59 = vpop.f32.mrb[65].mxu0 }
 0x4e0   : > { %v6375_v47 = vpop.f32.mrb[130].mxu1 }
 0x4e1   : > { %v10278_v21 = vadd.f32 %v6851_v39, %v4404_v16  ;;  %v4414_v57 = vpop.f32.mrb[131].mxu1 }
 0x4e2   : > { %v4184_v61 = vpop.f32.mrb[66].mxu0 }
 0x4e3   : > { %v4563_v42 = vmin.f32 %v10278_v21, 20.0  ;;  %v6853_v35 = vadd.f32 %v6852_v62, %v4184_v61  ;;  %v4186_v10 = vpop.f32.mrb[67].mxu0  ;;  %v6860_v61 = vadd.f32 %v10272_v27, %v10209_v6 }
 0x4e4   : > { %v6378_v44 = vpop.f32.mrb[132].mxu1 }
 0x4e5   : > { %v4595_v55 = vmul.f32 1.442695, %v4563_v42  ;;  %v10283_v15 = vadd.f32 %v6853_v35, %v6372_v5  ;;  %v4424_v38 = vpop.f32.mrb[133].mxu1 }
 0x4e6   : > { %v4189_v54 = vpop.f32.mrb[68].mxu0 }
 0x4e7   : > { %7563 = vpow2.f32 %v4595_v55  ;;  %v4564_v9 = vmin.f32 %v10283_v15, 20.0  ;;  %v6855_v34 = vadd.f32 %v6854_v18, %v4189_v54  ;;  %v4191_v33 = vpop.f32.mrb[69].mxu0 }
 0x4e8   : > { %v10286_v56 = vpop.f32.mrb[134].mxu1 }
 0x4e9   : > { %v4597_v29 = vmul.f32 1.442695, %v4564_v9  ;;  %v10290_v20 = vadd.f32 %v6855_v34, %v4414_v57  ;;  %v4434_v58 = vpop.f32.mrb[135].mxu1 }
 0x4ea   : > { %v4194_v30 = vpop.f32.mrb[70].mxu0 }
 0x4eb   : > { %7565 = vpow2.f32 %v4597_v29  ;;  %v4565_v46 = vmin.f32 %v10290_v20, 20.0  ;;  %v6857_v7 = vadd.f32 %v6856_v12, %v4194_v30  ;;  %v4196_v14 = vpop.f32.mrb[71].mxu0  ;;  %v6862_v12 = vadd.f32 %v10272_v27, %v10212_v3 }
 0x4ec   : > { %v10293_v49 = vpop.f32.mrb[136].mxu1  ;;  %v6864_v3 = vadd.f32 %v10272_v27, %v10215_v17  ;;  %v10341_v17 = vadd.f32 %v10272_v27, %v10227_v52 }
 0x4ed   : > { %v4599_v5 = vmul.f32 1.442695, %v4565_v46  ;;  %v10297_v43 = vadd.f32 %v6857_v7, %v6375_v47  ;;  %v10299_v16 = vpop.f32.mrb[137].mxu1 }
 0x4ee   : > { %v4199_v53 = vpop.f32.mrb[72].mxu0 }
 0x4ef   : > { %7567 = vpow2.f32 %v4599_v5  ;;  %v4566_v32 = vmin.f32 %v10297_v43, 20.0  ;;  %v6859_v39 = vadd.f32 %v6858_v19, %v4199_v53  ;;  %v4201_v59 = vpop.f32.mrb[73].mxu0 }
 0x4f0   : > { %v10302_v62 = vpop.f32.mrb[138].mxu1 }
 0x4f1   : > { %v7564_v57 = vpop.eup %7563  ;;  %v4601_v42 = vmul.f32 1.442695, %v4566_v32  ;;  %v10306_v35 = vadd.f32 %v6859_v39, %v4424_v38  ;;  %v10308_v1 = vpop.f32.mrb[139].mxu1 }
 0x4f2   : > { %v4659_v47 = vadd.f32 2.0, %v7564_v57  ;;  %v4204_v10 = vpop.f32.mrb[74].mxu0 }
 0x4f3   : > { %7569 = vpow2.f32 %v4601_v42  ;;  %v4567_v18 = vmin.f32 %v10306_v35, 20.0  ;;  %v6861_v55 = vadd.f32 %v6860_v61, %v4204_v10  ;;  %v4206_v54 = vpop.f32.mrb[75].mxu0  ;;  %v6868_v42 = vadd.f32 %v10272_v27, %v10223_v0 }
 0x4f4   : > { %v4691_v9 = vmul.f32 %v7564_v57, %v4659_v47  ;;  %v10311_v34 = vpop.f32.mrb[140].mxu1  ;;  %v10336_v47 = vadd.f32 %v10272_v27, %v10225_v45  ;;  %v10346_v0 = vadd.f32 %v10272_v27, %v10229_v31  ;;  %v10350_v45 = vadd.f32 %v10272_v27, %v10231_v28 }
 0x4f5   : > { %v7566_v33 = vpop.eup %7565  ;;  %v4603_v6 = vmul.f32 1.442695, %v4567_v18  ;;  %v10315_v29 = vadd.f32 %v6861_v55, %v6378_v44  ;;  %v10317_v38 = vpop.f32.mrb[141].mxu1  ;;  %v6866_v44 = vadd.f32 %v10272_v27, %v10219_v63 }
 0x4f6   : > { %v4755_v30 = vadd.f32 2.0, %v4691_v9  ;;  %v4660_v46 = vadd.f32 2.0, %v7566_v33  ;;  %v4209_v7 = vpop.f32.mrb[76].mxu0 }
 0x4f7   : > { %7571 = vpow2.f32 %v4603_v6  ;;  %v4568_v14 = vmin.f32 %v10315_v29, 20.0  ;;  %v6863_v19 = vadd.f32 %v6862_v12, %v4209_v7  ;;  %v4211_v5 = vpop.f32.mrb[77].mxu0  ;;  %v10358_v6 = vadd.f32 %v10272_v27, %v10233_v50 }
 0x4f8   : > { %7573 = vrcp.f32 %v4755_v30  ;;  %v10320_v53 = vmul.f32 %v7566_v33, %v4660_v46  ;;  %v10322_v32 = vpop.f32.mrb[142].mxu1  ;;  %v10362_v30 = vadd.f32 %v10272_v27, %v10235_v22  ;;  %v10371_v7 = vadd.f32 %v10272_v27, %v10237_v25 }
 0x4f9   : > { %v7568_v39 = vpop.eup %7567  ;;  %v4605_v59 = vmul.f32 1.442695, %v4568_v14  ;;  %v10328_v57 = vadd.f32 %v6863_v19, %v4434_v58  ;;  %v10330_v61 = vpop.f32.mrb[143].mxu1  ;;  %v10375_v14 = vadd.f32 %v10272_v27, %v10239_v4  ;;  %v10380_v22 = vadd.f32 %v10272_v27, %v10241_v13 }
 0x4fa   : > { %v4756_v10 = vadd.f32 2.0, %v10320_v53  ;;  %v4661_v18 = vadd.f32 2.0, %v7568_v39  ;;  %v4214_v55 = vpop.f32.mrb[78].mxu0  ;;  %v10385_v25 = vadd.f32 %v10272_v27, %v10243_v40  ;;  %v10389_v4 = vadd.f32 %v10272_v27, %v10245_v26 }
 0x4fb   : > { %7575 = vpow2.f32 %v4605_v59  ;;  %v4569_v63 = vmin.f32 %v10328_v57, 20.0  ;;  %v6865_v58 = vadd.f32 %v6864_v3, %v4214_v55  ;;  %v4216_v54 = vpop.f32.mrb[79].mxu0 }
 0x4fc   : > { %7577 = vrcp.f32 %v4756_v10  ;;  %v10352_v33 = vmul.f32 %v7568_v39, %v4661_v18  ;;  %v10354_v12 = vpop.f32.mrb[144].mxu1  ;;  %v10397_v18 = vadd.f32 %v10272_v27, %v10247_v8  ;;  %v10411_v54 = vadd.f32 %v10272_v27, %v10251_v37  ;;  %v10416_v8 = vld [vmem:[%s11257_s6] ss:$0 sm:$0xff] }
 0x4fd   : > { %v7570_v52 = vpop.eup %7569  ;;  %v4607_v31 = vmul.f32 1.442695, %v4569_v63  ;;  %v10365_v46 = vadd.f32 %v6865_v58, %v10286_v56  ;;  %v10367_v28 = vpop.f32.mrb[145].mxu1  ;;  %v10407_v58 = vadd.f32 %v10272_v27, %v10249_v23  ;;  %v10426_v37 = vadd.f32 %v10272_v27, %v10255_v11 }
 0x4fe   : > { %v4757_v50 = vadd.f32 2.0, %v10352_v33  ;;  %v4662_v19 = vadd.f32 2.0, %v7570_v52  ;;  %v4219_v5 = vpop.f32.mrb[80].mxu0 }
 0x4ff   : > { %7579 = vpow2.f32 %v4607_v31  ;;  %v4570_v56 = vmin.f32 %v10365_v46, 20.0  ;;  %v6867_v39 = vadd.f32 %v6866_v44, %v4219_v5  ;;  %v4221_v3 = vpop.f32.mrb[81].mxu0  ;;  %v4723_v44 = vmul.f32 %v4691_v9, %v10278_v21  ;;  %11258 = vst [vmem:[#allocation21_spill] sm:$0xff] %v10426_v37 }
 0x500   : > { %7581 = vrcp.f32 %v4757_v50  ;;  %v10391_v59 = vmul.f32 %v7570_v52, %v4662_v19  ;;  %v10393_v10 = vpop.f32.mrb[146].mxu1  ;;  %v10422_v19 = vadd.f32 %v10272_v27, %v10253_v36  ;;  %v10438_v36 = vld [vmem:[%s11259_s27] ss:$0 sm:$0xff] }
 0x501   : > { %v7572_v13 = vpop.eup %7571  ;;  %v4609_v55 = vmul.f32 1.442695, %v4570_v56  ;;  %v10401_v40 = vadd.f32 %v6867_v39, %v10299_v16  ;;  %v10403_v63 = vpop.f32.mrb[147].mxu1 }
 0x502   : > { %v7574_v26 = vpop.eup %7573  ;;  %v4758_v21 = vadd.f32 2.0, %v10391_v59  ;;  %v4663_v16 = vadd.f32 2.0, %v7572_v13  ;;  %v4224_v9 = vpop.f32.mrb[82].mxu0 }
 0x503   : > { %v4819_v52 = vmul.f32 %v7574_v26, %v4723_v44  ;;  %7583 = vpow2.f32 %v4609_v55  ;;  %v4571_v31 = vmin.f32 %v10401_v40, 20.0  ;;  %v6869_v50 = vadd.f32 %v6868_v42, %v4224_v9  ;;  %v4226_v23 = vpop.f32.mrb[83].mxu0 }
 0x504   : > { %7585 = vrcp.f32 %v4758_v21  ;;  %v10428_v5 = vmul.f32 %v7572_v13, %v4663_v16  ;;  %v10430_v56 = vpop.f32.mrb[148].mxu1  ;;  %v4724_v42 = vmul.f32 %v10320_v53, %v10283_v15  ;;  %v10447_v26 = vadd.f32 %v10272_v27, %v10257_v48 }
 0x505   : > { %v7576_v39 = vpop.eup %7575  ;;  %v4858_v3 = vmul.f32 %v10416_v8, %v4819_v52  ;;  %v4611_v44 = vmul.f32 1.442695, %v4571_v31  ;;  %v10441_v11 = vadd.f32 %v6869_v50, %v10293_v49  ;;  %v10443_v55 = vpop.f32.mrb[149].mxu1  ;;  %v10451_v21 = vadd.f32 %v10272_v27, %v10259_v60 }
 0x506   : > { %v7578_v13 = vpop.eup %7577  ;;  %11260 = vst [vmem:[#allocation22_spill] sm:$0xff] %v10447_v26  ;;  %v4759_v15 = vadd.f32 2.0, %v10428_v5  ;;  %v4664_v53 = vadd.f32 2.0, %v7576_v39  ;;  %v4229_v16 = vpop.f32.mrb[84].mxu0  ;;  %v10458_v50 = vadd.f32 %v10272_v27, %v10261_v51 }
 0x507   : > { %11261 = vst [vmem:[#allocation23_spill] sm:$0xff] %v10451_v21  ;;  %v4820_v9 = vmul.f32 %v7578_v13, %v4724_v42  ;;  %7587 = vpow2.f32 %v4611_v44  ;;  %v4572_v49 = vmin.f32 %v10441_v11, 20.0  ;;  %v6871_v52 = vadd.f32 %v10336_v47, %v4229_v16  ;;  %v4231_v31 = vpop.f32.mrb[85].mxu0 }
 0x508   : > { %11262 = vst [vmem:[#allocation24_spill] sm:$0xff] %v10458_v50  ;;  %7589 = vrcp.f32 %v4759_v15  ;;  %v10460_v48 = vmul.f32 %v7576_v39, %v4664_v53  ;;  %v10462_v60 = vpop.f32.mrb[150].mxu1  ;;  %v10465_v23 = vadd.f32 %v10438_v36, %v4858_v3  ;;  %v4725_v44 = vmul.f32 %v10352_v33, %v10290_v20 }
 0x509   : > { %v7580_v21 = vpop.eup %7579  ;;  %v4859_v42 = vmul.f32 %v10416_v8, %v4820_v9  ;;  %v4613_v47 = vmul.f32 1.442695, %v4572_v49  ;;  %v10471_v13 = vadd.f32 %v6871_v52, %v10308_v1  ;;  %v10473_v51 = vpop.f32.mrb[151].mxu1  ;;  %v10477_v39 = vadd.f32 %v10272_v27, %v10263_v2 }
 0x50a   : > { %v7582_v15 = vpop.eup %7581  ;;  %v4760_v3 = vadd.f32 2.0, %v10460_v48  ;;  %v4665_v53 = vadd.f32 2.0, %v7580_v21  ;;  %v4234_v16 = vpop.f32.mrb[86].mxu0  ;;  %v4929_v9 = vmin.f32 %v10465_v23, 20.0  ;;  %v10487_v49 = vadd.f32 %v10272_v27, %v10265_v24 }
 0x50b   : > { %11263 = vst [vmem:[#allocation25_spill] sm:$0xff] %v10477_v39  ;;  %v10482_v31 = vadd.f32 %v10438_v36, %v4859_v42  ;;  %v4821_v20 = vmul.f32 %v7582_v15, %v4725_v44  ;;  %7591 = vpow2.f32 %v4613_v47  ;;  %v4573_v1 = vmin.f32 %v10471_v13, 20.0  ;;  %v4236_v33 = vpop.f32.mrb[87].mxu0 }
 0x50c   : > { %11264 = vst [vmem:[#allocation26_spill] sm:$0xff] %v10487_v49  ;;  %7593 = vrcp.f32 %v4760_v3  ;;  %v4697_v2 = vmul.f32 %v7580_v21, %v4665_v53  ;;  %v6873_v52 = vadd.f32 %v10341_v17, %v4234_v16  ;;  %v10490_v39 = vpop.f32.mrb[152].mxu1  ;;  %v4726_v44 = vmul.f32 %v10391_v59, %v10297_v43 }
 0x50d   : > { %11265 = vst [vmem:[#allocation27_spill] sm:$0xff] %v10490_v39  ;;  %v7584_v50 = vpop.eup %7583  ;;  %v4930_v26 = vmin.f32 %v10482_v31, 20.0  ;;  %v4860_v42 = vmul.f32 %v10416_v8, %v4821_v20  ;;  %v4615_v47 = vmul.f32 1.442695, %v4573_v1  ;;  %v10496_v15 = vpop.f32.mrb[153].mxu1 }
 0x50e   : > { %11266 = vst [vmem:[#allocation28_spill] sm:$0xff] %v10496_v15  ;;  %v7586_v33 = vpop.eup %7585  ;;  %v4761_v24 = vadd.f32 2.0, %v4697_v2  ;;  %v4666_v49 = vadd.f32 2.0, %v7584_v50  ;;  %v10499_v21 = vadd.f32 %v6873_v52, %v10302_v62  ;;  %v4239_v17 = vpop.f32.mrb[88].mxu0  ;;  %v4961_v3 = vmul.f32 1.442695, %v4929_v9 }
 0x50f   : > { %v4963_v53 = vmul.f32 1.442695, %v4930_v26  ;;  %v4822_v16 = vmul.f32 %v7586_v33, %v4726_v44  ;;  %7595 = vpow2.f32 %v4615_v47  ;;  %v6875_v39 = vadd.f32 %v10346_v0, %v4239_v17  ;;  %v4241_v20 = vpop.f32.mrb[89].mxu0 }
 0x510   : > { %7597 = vrcp.f32 %v4761_v24  ;;  %v4698_v37 = vmul.f32 %v7584_v50, %v4666_v49  ;;  %v4574_v43 = vmin.f32 %v10499_v21, 20.0  ;;  %v10503_v59 = vpop.f32.mrb[154].mxu1  ;;  %v10506_v1 = vadd.f32 %v10438_v36, %v4860_v42 }
 0x511   : > { %v7588_v15 = vpop.eup %7587  ;;  %7599 = vpow2.f32 %v4963_v53  ;;  %v4861_v62 = vmul.f32 %v10416_v8, %v4822_v16  ;;  %v4727_v26 = vmul.f32 %v10428_v5, %v10306_v35  ;;  %v10512_v9 = vadd.f32 %v6875_v39, %v10317_v38  ;;  %v10514_v0 = vpop.f32.mrb[155].mxu1 }
 0x512   : > { %v7590_v50 = vpop.eup %7589  ;;  %v10518_v49 = vadd.f32 %v10272_v27, %v10267_v41  ;;  %v4762_v52 = vadd.f32 2.0, %v4698_v37  ;;  %v4667_v42 = vadd.f32 2.0, %v7588_v15  ;;  %v4617_v44 = vmul.f32 1.442695, %v4574_v43  ;;  %v4244_v47 = vpop.f32.mrb[90].mxu0 }
 0x513   : > { %v4823_v33 = vmul.f32 %v7590_v50, %v4727_v26  ;;  %v4575_v24 = vmin.f32 %v10512_v9, 20.0  ;;  %v6877_v17 = vadd.f32 %v10350_v45, %v4244_v47  ;;  %v4246_v35 = vpop.f32.mrb[91].mxu0  ;;  %7601 = vpow2.f32 %v4961_v3 }
 0x514   : > { %7603 = vrcp.f32 %v4762_v52  ;;  %v4699_v38 = vmul.f32 %v7588_v15, %v4667_v42  ;;  %v10522_v5 = vpop.f32.mrb[156].mxu1  ;;  %v4931_v39 = vmin.f32 %v10506_v1, 20.0  ;;  %v10526_v41 = vadd.f32 %v10438_v36, %v4861_v62 }
 0x515   : > { %v7592_v27 = vpop.eup %7591  ;;  %v4728_v53 = vmul.f32 %v10460_v48, %v10315_v29  ;;  %7605 = vpow2.f32 %v4617_v44  ;;  %v4619_v16 = vmul.f32 1.442695, %v4575_v24  ;;  %v10531_v20 = vadd.f32 %v6877_v17, %v10311_v34  ;;  %v10533_v45 = vpop.f32.mrb[157].mxu1 }
 0x516   : > { %v7594_v3 = vpop.eup %7593  ;;  %v4729_v15 = vmul.f32 %v4697_v2, %v10328_v57  ;;  %v4763_v43 = vadd.f32 2.0, %v4699_v38  ;;  %v4668_v26 = vadd.f32 2.0, %v7592_v27  ;;  %v4249_v50 = vpop.f32.mrb[92].mxu0  ;;  %v4965_v52 = vmul.f32 1.442695, %v4931_v39 }
 0x517   : > { %v4862_v62 = vmul.f32 %v10416_v8, %v4823_v33  ;;  %7607 = vpow2.f32 %v4619_v16  ;;  %v4576_v42 = vmin.f32 %v10531_v20, 20.0  ;;  %v6879_v29 = vadd.f32 %v10358_v6, %v4249_v50  ;;  %v4251_v48 = vpop.f32.mrb[93].mxu0 }
 0x518   : > { %v4824_v44 = vmul.f32 %v7594_v3, %v4728_v53  ;;  %7609 = vrcp.f32 %v4763_v43  ;;  %v4700_v34 = vmul.f32 %v7592_v27, %v4668_v26  ;;  %v4932_v47 = vmin.f32 %v10526_v41, 20.0  ;;  %v10540_v24 = vpop.f32.mrb[158].mxu1 }
 0x519   : > { %11267 = vst [vmem:[#allocation29_spill] sm:$0xff] %v10540_v24  ;;  %v7596_v57 = vpop.eup %7595  ;;  %v4730_v2 = vmul.f32 %v4698_v37, %v10365_v46  ;;  %v10544_v17 = vmul.f32 %v4699_v38, %v10401_v40  ;;  %v4621_v33 = vmul.f32 1.442695, %v4576_v42  ;;  %v10547_v35 = vadd.f32 %v6879_v29, %v10330_v61  ;;  %v10549_v39 = vpop.f32.mrb[159].mxu1 }
 0x51a   : > { %v7598_v6 = vpop.eup %7597  ;;  %v4764_v53 = vadd.f32 2.0, %v4700_v34  ;;  %v4669_v16 = vadd.f32 2.0, %v7596_v57  ;;  %v4254_v27 = vpop.f32.mrb[94].mxu0  ;;  %7611 = vpow2.f32 %v4965_v52  ;;  %v4967_v3 = vmul.f32 1.442695, %v4932_v47 }
 0x51b   : > { %v7600_v43 = vpop.eup %7599  ;;  %7613 = vpow2.f32 %v4621_v33  ;;  %v4577_v26 = vmin.f32 %v10547_v35, 20.0  ;;  %v6881_v46 = vadd.f32 %v10362_v30, %v4254_v27  ;;  %v4256_v40 = vpop.f32.mrb[95].mxu0  ;;  %v10554_v37 = vadd.f32 %v10438_v36, %v4862_v62 }
 0x51c   : > { %v5026_v61 = vadd.f32 2.0, %v7600_v43  ;;  %v10557_v38 = vmul.f32 %v10416_v8, %v4824_v44  ;;  %7615 = vrcp.f32 %v4764_v53  ;;  %v4701_v50 = vmul.f32 %v7596_v57, %v4669_v16 }
 0x51d   : > { %v7602_v42 = vpop.eup %7601  ;;  %v4825_v29 = vmul.f32 %v7598_v6, %v4729_v15  ;;  %v4732_v52 = vmul.f32 %v4700_v34, %v10441_v11  ;;  %v4623_v48 = vmul.f32 1.442695, %v4577_v26  ;;  %v10561_v47 = vadd.f32 %v6881_v46, %v10322_v32 }
 0x51e   : > { %v7604_v33 = vpop.eup %7603  ;;  %v5058_v30 = vmul.f32 %v7600_v43, %v5026_v61  ;;  %v4765_v27 = vadd.f32 2.0, %v4701_v50  ;;  %v4259_v40 = vpop.f32.mrb[96].mxu0  ;;  %v5025_v62 = vadd.f32 2.0, %v7602_v42  ;;  %7617 = vpow2.f32 %v4967_v3 }
 0x51f   : > { %v7606_v24 = vpop.eup %7605  ;;  %7619 = vpow2.f32 %v4623_v48  ;;  %v4578_v44 = vmin.f32 %v10561_v47, 20.0  ;;  %v6883_v57 = vadd.f32 %v10371_v7, %v4259_v40  ;;  %v4261_v53 = vpop.f32.mrb[97].mxu0  ;;  %v4933_v15 = vmin.f32 %v10554_v37, 20.0 }
 0x520   : > { %v5122_v11 = vadd.f32 2.0, %v5058_v30  ;;  %v4826_v34 = vmul.f32 %v7604_v33, %v4730_v2  ;;  %7621 = vrcp.f32 %v4765_v27  ;;  %v4670_v32 = vadd.f32 2.0, %v7606_v24 }
 0x521   : > { %v7608_v6 = vpop.eup %7607  ;;  %v10567_v16 = vmul.f32 %v10416_v8, %v4825_v29  ;;  %v4625_v43 = vmul.f32 1.442695, %v4578_v44  ;;  %v10570_v3 = vadd.f32 %v6883_v57, %v10367_v28  ;;  %v5057_v26 = vmul.f32 %v7602_v42, %v5025_v62 }
 0x522   : > { %v7610_v46 = vpop.eup %7609  ;;  %7623 = vrcp.f32 %v5122_v11  ;;  %v4733_v7 = vmul.f32 %v4701_v50, %v10471_v13  ;;  %v4702_v61 = vmul.f32 %v7606_v24, %v4670_v32  ;;  %v4671_v48 = vadd.f32 2.0, %v7608_v6  ;;  %v4264_v40 = vpop.f32.mrb[98].mxu0 }
 0x523   : > { %v10574_v2 = vmul.f32 %v5058_v30, %v10482_v31  ;;  %7625 = vpow2.f32 %v4625_v43  ;;  %v4579_v33 = vmin.f32 %v10570_v3, 20.0  ;;  %v6885_v29 = vadd.f32 %v10375_v14, %v4264_v40  ;;  %v4266_v27 = vpop.f32.mrb[99].mxu0 }
 0x524   : > { %v7612_v44 = vpop.eup %7611  ;;  %v10579_v28 = vmul.f32 %v10416_v8, %v4826_v34  ;;  %v4766_v42 = vadd.f32 2.0, %v4702_v61  ;;  %v4703_v62 = vmul.f32 %v7608_v6, %v4671_v48  ;;  %v10581_v57 = vmul.f32 1.442695, %v4933_v15 }
 0x525   : > { %v7614_v13 = vpop.eup %7613  ;;  %v4827_v24 = vmul.f32 %v7610_v46, %v10544_v17  ;;  %v4627_v50 = vmul.f32 1.442695, %v4579_v33  ;;  %v10585_v31 = vadd.f32 %v6885_v29, %v10354_v12  ;;  %v5121_v30 = vadd.f32 2.0, %v5057_v26 }
 0x526   : > { %v7616_v53 = vpop.eup %7615  ;;  %v10588_v14 = vmul.f32 %v4702_v61, %v10499_v21  ;;  %7627 = vrcp.f32 %v4766_v42  ;;  %v4767_v11 = vadd.f32 2.0, %v4703_v62  ;;  %v4672_v34 = vadd.f32 2.0, %v7614_v13  ;;  %v4269_v32 = vpop.f32.mrb[100].mxu0 }
 0x527   : > { %7629 = vpow2.f32 %v4627_v50  ;;  %v4580_v15 = vmin.f32 %v10585_v31, 20.0  ;;  %v6887_v6 = vadd.f32 %v10380_v22, %v4269_v32  ;;  %v4271_v43 = vpop.f32.mrb[101].mxu0  ;;  %v10593_v17 = vmul.f32 %v5057_v26, %v10465_v23 }
 0x528   : > { %v7618_v12 = vpop.eup %7617  ;;  %v4828_v46 = vmul.f32 %v7616_v53, %v4732_v52  ;;  %7631 = vrcp.f32 %v4767_v11  ;;  %v4704_v48 = vmul.f32 %v7614_v13, %v4672_v34  ;;  %v5027_v40 = vadd.f32 2.0, %v7612_v44 }
 0x529   : > { %v7620_v21 = vpop.eup %7619  ;;  %v10596_v61 = vmul.f32 %v10416_v8, %v4827_v24  ;;  %v4629_v33 = vmul.f32 1.442695, %v4580_v15  ;;  %v10599_v29 = vadd.f32 %v6887_v6, %v10403_v63  ;;  %7633 = vrcp.f32 %v5121_v30 }
 0x52a   : > { %v7622_v27 = vpop.eup %7621  ;;  %v4735_v22 = vmul.f32 %v4703_v62, %v10512_v9  ;;  %v4768_v42 = vadd.f32 2.0, %v4704_v48  ;;  %v4673_v23 = vadd.f32 2.0, %v7620_v21  ;;  %v4274_v26 = vpop.f32.mrb[102].mxu0  ;;  %v5059_v50 = vmul.f32 %v7612_v44, %v5027_v40 }
 0x52b   : > { %7635 = vpow2.f32 %v4629_v33  ;;  %v4581_v52 = vmin.f32 %v10599_v29, 20.0  ;;  %v6889_v13 = vadd.f32 %v10385_v25, %v4274_v26  ;;  %v4276_v53 = vpop.f32.mrb[103].mxu0  ;;  %v5028_v24 = vadd.f32 2.0, %v7618_v12 }
 0x52c   : > { %v7624_v11 = vpop.eup %7623  ;;  %v10605_v34 = vmul.f32 %v10416_v8, %v4828_v46  ;;  %v4829_v63 = vmul.f32 %v7622_v27, %v4733_v7  ;;  %v4705_v30 = vmul.f32 %v7620_v21, %v4673_v23  ;;  %v5123_v32 = vadd.f32 2.0, %v5059_v50 }
 0x52d   : > { %v7626_v15 = vpop.eup %7625  ;;  %v10608_v9 = vmul.f32 %v4704_v48, %v10531_v20  ;;  %7637 = vrcp.f32 %v4768_v42  ;;  %v4631_v44 = vmul.f32 1.442695, %v4581_v52  ;;  %v10611_v62 = vadd.f32 %v6889_v13, %v10393_v10 }
 0x52e   : > { %v4769_v6 = vadd.f32 2.0, %v4705_v30  ;;  %v4674_v25 = vadd.f32 2.0, %v7626_v15  ;;  %v4279_v43 = vpop.f32.mrb[104].mxu0  ;;  %v5091_v40 = vmul.f32 %v5059_v50, %v10506_v1  ;;  %7639 = vrcp.f32 %v5123_v32 }
 0x52f   : > { %7641 = vpow2.f32 %v4631_v44  ;;  %v4582_v7 = vmin.f32 %v10611_v62, 20.0  ;;  %v6891_v46 = vadd.f32 %v10389_v4, %v4279_v43  ;;  %v4281_v21 = vpop.f32.mrb[105].mxu0  ;;  %v5060_v33 = vmul.f32 %v7618_v12, %v5028_v24 }
 0x530   : > { %v7628_v20 = vpop.eup %7627  ;;  %v10617_v48 = vmul.f32 %v10416_v8, %v4829_v63  ;;  %7643 = vrcp.f32 %v4769_v6  ;;  %v4706_v10 = vmul.f32 %v7626_v15, %v4674_v25  ;;  %v5186_v27 = vmul.f32 %v7624_v11, %v10574_v2 }
 0x531   : > { %v7630_v42 = vpop.eup %7629  ;;  %v10621_v23 = vmul.f32 %v4705_v30, %v10547_v35  ;;  %v4633_v1 = vmul.f32 1.442695, %v4582_v7  ;;  %v10624_v26 = vadd.f32 %v6891_v46, %v10443_v55  ;;  %v10628_v4 = vadd.f32 %v10438_v36, %v10557_v38 }
 0x532   : > { %v7632_v12 = vpop.eup %7631  ;;  %v4770_v50 = vadd.f32 2.0, %v4706_v10  ;;  %v4675_v52 = vadd.f32 2.0, %v7630_v42  ;;  %v4284_v13 = vpop.f32.mrb[106].mxu0  ;;  %v5124_v53 = vadd.f32 2.0, %v5060_v33  ;;  %v10632_v2 = vadd.f32 %v10438_v36, %v10567_v16 }
 0x533   : > { %v7634_v24 = vpop.eup %7633  ;;  %v4830_v35 = vmul.f32 %v7628_v20, %v10588_v14  ;;  %7645 = vpow2.f32 %v4633_v1  ;;  %v4583_v55 = vmin.f32 %v10624_v26, 20.0  ;;  %v4286_v11 = vpop.f32.mrb[107].mxu0  ;;  %v10637_v63 = vmul.f32 %v5060_v33, %v10526_v41 }
 0x534   : > { %7647 = vrcp.f32 %v4770_v50  ;;  %v4707_v38 = vmul.f32 %v7630_v42, %v4675_v52  ;;  %v5185_v30 = vmul.f32 %v7634_v24, %v10593_v17  ;;  %v6893_v32 = vadd.f32 %v10397_v18, %v4284_v13 }
 0x535   : > { %v7636_v15 = vpop.eup %7635  ;;  %v4831_v44 = vmul.f32 %v7632_v12, %v4735_v22  ;;  %v4635_v16 = vmul.f32 1.442695, %v4583_v55  ;;  %7649 = vrcp.f32 %v5124_v53  ;;  %v4934_v6 = vmin.f32 %v10628_v4, 20.0 }
 0x536   : > { %v4738_v14 = vmul.f32 %v4706_v10, %v10561_v47  ;;  %v4771_v25 = vadd.f32 2.0, %v4707_v38  ;;  %v4676_v43 = vadd.f32 2.0, %v7636_v15  ;;  %6450 = vmatprep.mubr.f32.mxu0 %v5185_v30  ;;  %v10644_v41 = vadd.f32 %v6893_v32, %v10430_v56  ;;  %v4289_v7 = vpop.f32.mrb[108].mxu0 }
 0x537   : > { %v7638_v46 = vpop.eup %7637  ;;  %v10647_v17 = vmul.f32 %v10416_v8, %v4830_v35  ;;  %7651 = vpow2.f32 %v4635_v16  ;;  %6451 = vmatmul.mubr.f32.vlgmr.msra.gmra.mrb[32].mxu0 %v5186_v27  ;;  %v6895_v18 = vadd.f32 %v10407_v58, %v4289_v7  ;;  %v4291_v22 = vpop.f32.mrb[109].mxu0  ;;  %v4971_v21 = vmul.f32 1.442695, %v4934_v6 }
 0x538   : > { %v7640_v33 = vpop.eup %7639  ;;  %7653 = vrcp.f32 %v4771_v25  ;;  %v4708_v47 = vmul.f32 %v7636_v15, %v4676_v43  ;;  %v4584_v20 = vmin.f32 %v10644_v41, 20.0  ;;  %v4935_v10 = vmin.f32 %v10632_v2, 20.0 }
 0x539   : > { %v7642_v56 = vpop.eup %7641  ;;  %v10653_v42 = vmul.f32 %v10416_v8, %v4831_v44  ;;  %v5187_v1 = vmul.f32 %v7640_v33, %v5091_v40  ;;  %v10656_v12 = vadd.f32 %v6895_v18, %v10473_v51  ;;  %7655 = vpow2.f32 %v10581_v57 }
 0x53a   : > { %v7644_v58 = vpop.eup %7643  ;;  %v4832_v27 = vmul.f32 %v7638_v46, %v10608_v9  ;;  %v4772_v50 = vadd.f32 2.0, %v4708_v47  ;;  %v4677_v52 = vadd.f32 2.0, %v7642_v56  ;;  %v4637_v13 = vmul.f32 1.442695, %v4584_v20  ;;  %v4294_v53 = vpop.f32.mrb[110].mxu0  ;;  %v11268_v20 = vld [vmem:[#allocation28_spill] sm:$0xff] }
 0x53b   : > { %v4739_v24 = vmul.f32 %v4707_v38, %v10570_v3  ;;  %6453 = vmatprep.mubr.f32.mxu0 %v5187_v1  ;;  %v4585_v35 = vmin.f32 %v10656_v12, 20.0  ;;  %v6897_v55 = vadd.f32 %v10411_v54, %v4294_v53  ;;  %v4296_v40 = vpop.f32.mrb[111].mxu0  ;;  %7657 = vpow2.f32 %v4971_v21 }
 0x53c   : > { %7659 = vrcp.f32 %v4772_v50  ;;  %v4709_v51 = vmul.f32 %v7642_v56, %v4677_v52  ;;  %v4973_v11 = vmul.f32 1.442695, %v4935_v10  ;;  %v10665_v57 = vadd.f32 %v10438_v36, %v10579_v28  ;;  %v11269_v50 = vld [vmem:[#allocation21_spill] sm:$0xff] }
 0x53d   : > { %v7646_v9 = vpop.eup %7645  ;;  %v4833_v30 = vmul.f32 %v7644_v58, %v10621_v23  ;;  %7661 = vpow2.f32 %v4637_v13  ;;  %v4639_v32 = vmul.f32 1.442695, %v4585_v35  ;;  %v10669_v3 = vadd.f32 %v6897_v55, %v10462_v60 }
 0x53e   : > { %v7648_v38 = vpop.eup %7647  ;;  %v10672_v54 = vmul.f32 %v10416_v8, %v4832_v27  ;;  %v4773_v15 = vadd.f32 2.0, %v4709_v51  ;;  %v4678_v44 = vadd.f32 2.0, %v7646_v9  ;;  %v4299_v16 = vpop.f32.mrb[112].mxu0  ;;  %7663 = vpow2.f32 %v4973_v11  ;;  %v11270_v11 = vld [vmem:[#allocation27_spill] sm:$0xff] }
 0x53f   : > { %v7650_v6 = vpop.eup %7649  ;;  %v4740_v28 = vmul.f32 %v4708_v47, %v10585_v31  ;;  %7665 = vpow2.f32 %v4639_v32  ;;  %v4586_v25 = vmin.f32 %v10669_v3, 20.0  ;;  %v6899_v23 = vadd.f32 %v10422_v19, %v4299_v16  ;;  %v4301_v43 = vpop.f32.mrb[113].mxu0 }
 0x540   : > { %7667 = vrcp.f32 %v4773_v15  ;;  %v4710_v60 = vmul.f32 %v7646_v9, %v4678_v44  ;;  %v5188_v7 = vmul.f32 %v7650_v6, %v10637_v63  ;;  %v4936_v46 = vmin.f32 %v10665_v57, 20.0  ;;  %v11271_v6 = vld [vmem:[#allocation22_spill] sm:$0xff] }
 0x541   : > { %v7652_v18 = vpop.eup %7651  ;;  %v10680_v22 = vmul.f32 %v10416_v8, %v4833_v30  ;;  %v4834_v21 = vmul.f32 %v7648_v38, %v4738_v14  ;;  %v4641_v33 = vmul.f32 1.442695, %v4586_v25  ;;  %v10683_v31 = vadd.f32 %v6899_v23, %v11268_v20 }
 0x542   : > { %v7654_v47 = vpop.eup %7653  ;;  %v4741_v10 = vmul.f32 %v4709_v51, %v10599_v29  ;;  %v4774_v19 = vadd.f32 2.0, %v4710_v60  ;;  %v4679_v56 = vadd.f32 2.0, %v7652_v18  ;;  %6454 = vmatmul.mubr.f32.gmra.mrb[34].mxu0 %v5188_v7  ;;  %v4304_v1 = vpop.f32.mrb[114].mxu0  ;;  %v4975_v58 = vmul.f32 1.442695, %v4936_v46 }
 0x543   : > { %v7656_v63 = vpop.eup %7655  ;;  %7669 = vpow2.f32 %v4641_v33  ;;  %v4587_v27 = vmin.f32 %v10683_v31, 20.0  ;;  %v6901_v52 = vadd.f32 %v11269_v50, %v4304_v1  ;;  %v4306_v13 = vpop.f32.mrb[115].mxu0  ;;  %v10690_v14 = vadd.f32 %v10438_v36, %v10596_v61 }
 0x544   : > { %v4835_v53 = vmul.f32 %v7654_v47, %v4739_v24  ;;  %7671 = vrcp.f32 %v4774_v19  ;;  %v4711_v35 = vmul.f32 %v7652_v18, %v4679_v56  ;;  %v5029_v29 = vadd.f32 2.0, %v7656_v63 }
 0x545   : > { %v7658_v55 = vpop.eup %7657  ;;  %v10693_v40 = vmul.f32 %v10416_v8, %v4834_v21  ;;  %v4643_v51 = vmul.f32 1.442695, %v4587_v27  ;;  %v10696_v9 = vadd.f32 %v6901_v52, %v11270_v11  ;;  %7673 = vpow2.f32 %v4975_v58 }
 0x546   : > { %v7660_v30 = vpop.eup %7659  ;;  %v4742_v32 = vmul.f32 %v4710_v60, %v10611_v62  ;;  %v4775_v38 = vadd.f32 2.0, %v4711_v35  ;;  %v5061_v15 = vmul.f32 %v7656_v63, %v5029_v29  ;;  %v5030_v61 = vadd.f32 2.0, %v7658_v55  ;;  %v4309_v44 = vpop.f32.mrb[116].mxu0 }
 0x547   : > { %v7662_v24 = vpop.eup %7661  ;;  %7675 = vpow2.f32 %v4643_v51  ;;  %v4588_v16 = vmin.f32 %v10696_v9, 20.0  ;;  %v6903_v25 = vadd.f32 %v11271_v6, %v4309_v44  ;;  %v4311_v23 = vpop.f32.mrb[117].mxu0  ;;  %v4937_v43 = vmin.f32 %v10690_v14, 20.0 }
 0x548   : > { %v7664_v7 = vpop.eup %7663  ;;  %v10703_v46 = vmul.f32 %v10416_v8, %v4835_v53  ;;  %7677 = vrcp.f32 %v4775_v38  ;;  %v4680_v18 = vadd.f32 2.0, %v7662_v24  ;;  %v5125_v62 = vadd.f32 2.0, %v5061_v15 }
 0x549   : > { %v7666_v60 = vpop.eup %7665  ;;  %v4836_v21 = vmul.f32 %v7660_v30, %v4740_v28  ;;  %v5062_v33 = vmul.f32 %v7658_v55, %v5030_v61  ;;  %v4645_v20 = vmul.f32 1.442695, %v4588_v16  ;;  %v5031_v47 = vadd.f32 2.0, %v7664_v7  ;;  %v11272_v30 = vld [vmem:[#allocation23_spill] sm:$0xff] }
 0x54a   : > { %v7668_v19 = vpop.eup %7667  ;;  %v4712_v56 = vmul.f32 %v7662_v24, %v4680_v18  ;;  %v4681_v1 = vadd.f32 2.0, %v7666_v60  ;;  %7679 = vrcp.f32 %v5125_v62  ;;  %v10706_v58 = vadd.f32 %v6903_v25, %v10514_v0  ;;  %v4314_v63 = vpop.f32.mrb[118].mxu0 }
 0x54b   : > { %v4837_v27 = vmul.f32 %v7668_v19, %v4741_v10  ;;  %v4743_v50 = vmul.f32 %v4711_v35, %v10624_v26  ;;  %v5126_v52 = vadd.f32 2.0, %v5062_v33  ;;  %7681 = vpow2.f32 %v4645_v20  ;;  %v4316_v13 = vpop.f32.mrb[119].mxu0 }
 0x54c   : > { %v4776_v53 = vadd.f32 2.0, %v4712_v56  ;;  %v4713_v29 = vmul.f32 %v7666_v60, %v4681_v1  ;;  %v5093_v28 = vmul.f32 %v5061_v15, %v10554_v37  ;;  %v5063_v55 = vmul.f32 %v7664_v7, %v5031_v47 }
 0x54d   : > { %v7670_v51 = vpop.eup %7669  ;;  %v10711_v11 = vmul.f32 %v10416_v8, %v4836_v21  ;;  %7683 = vrcp.f32 %v5126_v52  ;;  %v4589_v0 = vmin.f32 %v10706_v58, 20.0  ;;  %v6905_v38 = vadd.f32 %v11272_v30, %v4314_v63  ;;  %v11273_v21 = vld [vmem:[#allocation24_spill] sm:$0xff] }
 0x54e   : > { %v7672_v10 = vpop.eup %7671  ;;  %7685 = vrcp.f32 %v4776_v53  ;;  %v4777_v26 = vadd.f32 2.0, %v4713_v29  ;;  %v4682_v35 = vadd.f32 2.0, %v7670_v51  ;;  %v5094_v61 = vmul.f32 %v5062_v33, %v10628_v4  ;;  %v4319_v44 = vpop.f32.mrb[120].mxu0 }
 0x54f   : > { %v7674_v24 = vpop.eup %7673  ;;  %v10717_v37 = vmul.f32 %v10416_v8, %v4837_v27  ;;  %v10720_v15 = vmul.f32 %v4712_v56, %v10644_v41  ;;  %v5127_v16 = vadd.f32 2.0, %v5063_v55  ;;  %v4647_v6 = vmul.f32 1.442695, %v4589_v0  ;;  %v4321_v25 = vpop.f32.mrb[121].mxu0 }
 0x550   : > { %7687 = vrcp.f32 %v4777_v26  ;;  %v4714_v23 = vmul.f32 %v7670_v51, %v4682_v35  ;;  %v5032_v7 = vadd.f32 2.0, %v7674_v24  ;;  %v10723_v18 = vadd.f32 %v6905_v38, %v10503_v59  ;;  %v11274_v35 = vld [vmem:[#allocation25_spill] sm:$0xff] }
 0x551   : > { %v7676_v62 = vpop.eup %7675  ;;  %v4838_v60 = vmul.f32 %v7672_v10, %v4742_v32  ;;  %7689 = vrcp.f32 %v5127_v16  ;;  %v4977_v4 = vmul.f32 1.442695, %v4937_v43  ;;  %v6907_v33 = vadd.f32 %v11273_v21, %v4319_v44 }
 0x552   : > { %v7678_v20 = vpop.eup %7677  ;;  %v4745_v47 = vmul.f32 %v4713_v29, %v10656_v12  ;;  %v4778_v41 = vadd.f32 2.0, %v4714_v23  ;;  %v4683_v19 = vadd.f32 2.0, %v7676_v62  ;;  %7691 = vpow2.f32 %v4647_v6  ;;  %v4324_v56 = vpop.f32.mrb[122].mxu0 }
 0x553   : > { %v5095_v1 = vmul.f32 %v5063_v55, %v10632_v2  ;;  %v5064_v63 = vmul.f32 %v7674_v24, %v5032_v7  ;;  %v4590_v27 = vmin.f32 %v10723_v18, 20.0  ;;  %7693 = vpow2.f32 %v4977_v4  ;;  %v4326_v59 = vpop.f32.mrb[123].mxu0 }
 0x554   : > { %v7680_v52 = vpop.eup %7679  ;;  %7695 = vrcp.f32 %v4778_v41  ;;  %v4715_v32 = vmul.f32 %v7676_v62, %v4683_v19  ;;  %v10730_v43 = vadd.f32 %v6907_v33, %v10533_v45  ;;  %v10734_v12 = vadd.f32 %v10438_v36, %v10605_v34  ;;  %v11275_v41 = vld [vmem:[#allocation26_spill] sm:$0xff] }
 0x555   : > { %v7682_v13 = vpop.eup %7681  ;;  %v10737_v53 = vmul.f32 %v10416_v8, %v4838_v60  ;;  %v4839_v2 = vmul.f32 %v7678_v20, %v4743_v50  ;;  %v5189_v29 = vmul.f32 %v7680_v52, %v5093_v28  ;;  %v5128_v55 = vadd.f32 2.0, %v5064_v63 }
 0x556   : > { %v4746_v51 = vmul.f32 %v4714_v23, %v10669_v3  ;;  %v4779_v0 = vadd.f32 2.0, %v4715_v32  ;;  %v4684_v30 = vadd.f32 2.0, %v7682_v13  ;;  %v4649_v38 = vmul.f32 1.442695, %v4590_v27  ;;  %v4329_v10 = vpop.f32.mrb[124].mxu0 }
 0x557   : > { %v7684_v26 = vpop.eup %7683  ;;  %6456 = vmatprep.mubr.f32.mxu0 %v5189_v29  ;;  %7697 = vrcp.f32 %v5128_v55  ;;  %v4591_v45 = vmin.f32 %v10730_v43, 20.0  ;;  %v4938_v34 = vmin.f32 %v10734_v12, 20.0  ;;  %v6909_v44 = vadd.f32 %v11274_v35, %v4324_v56  ;;  %v4331_v24 = vpop.f32.mrb[125].mxu0 }
 0x558   : > { %v7686_v16 = vpop.eup %7685  ;;  %7699 = vrcp.f32 %v4779_v0  ;;  %v5190_v50 = vmul.f32 %v7684_v26, %v5094_v61  ;;  %v4716_v28 = vmul.f32 %v7682_v13, %v4684_v30  ;;  %v10745_v3 = vadd.f32 %v10438_v36, %v10617_v48 }
 0x559   : > { %v10748_v6 = vmul.f32 %v10416_v8, %v4839_v2  ;;  %7701 = vpow2.f32 %v4649_v38  ;;  %v4651_v25 = vmul.f32 1.442695, %v4591_v45  ;;  %v4979_v23 = vmul.f32 1.442695, %v4938_v34 }
 0x55a   : > { %v7688_v7 = vpop.eup %7687  ;;  %6457 = vmatmul.mubr.f32.gmra.mrb[36].mxu0 %v5190_v50  ;;  %v4780_v62 = vadd.f32 2.0, %v4716_v28  ;;  %v5096_v60 = vmul.f32 %v5064_v63, %v10665_v57  ;;  %v10752_v4 = vadd.f32 %v6909_v44, %v10522_v5  ;;  %v4939_v61 = vmin.f32 %v10745_v3, 20.0  ;;  %v4334_v21 = vpop.f32.mrb[126].mxu0 }
 0x55b   : > { %v7690_v33 = vpop.eup %7689  ;;  %v4840_v48 = vmul.f32 %v7686_v16, %v10720_v15  ;;  %v4747_v20 = vmul.f32 %v4715_v32, %v10683_v31  ;;  %7703 = vpow2.f32 %v4651_v25  ;;  %v6911_v19 = vadd.f32 %v11275_v41, %v4329_v10  ;;  %v4336_v56 = vpop.f32.mrb[127].mxu0 }
 0x55c   : > { %v7692_v27 = vpop.eup %7691  ;;  %7705 = vrcp.f32 %v4780_v62  ;;  %v5191_v59 = vmul.f32 %v7690_v33, %v5095_v1  ;;  %v4592_v57 = vmin.f32 %v10752_v4, 20.0  ;;  %v4981_v63 = vmul.f32 1.442695, %v4939_v61 }
 0x55d   : > { %v7694_v5 = vpop.eup %7693  ;;  %v4841_v52 = vmul.f32 %v7688_v7, %v4745_v47  ;;  %v4685_v13 = vadd.f32 2.0, %v7692_v27  ;;  %7707 = vpow2.f32 %v4979_v23  ;;  %v10761_v2 = vadd.f32 %v10438_v36, %v10647_v17 }
 0x55e   : > { %v7696_v15 = vpop.eup %7695  ;;  %6459 = vmatprep.mubr.f32.mxu0 %v5191_v59  ;;  %v5033_v31 = vadd.f32 2.0, %v7694_v5  ;;  %v4653_v32 = vmul.f32 1.442695, %v4592_v57  ;;  %7709 = vpow2.f32 %v4981_v63  ;;  %v10764_v29 = vadd.f32 %v6911_v19, %v10549_v39 }
 0x55f   : > { %v4842_v1 = vmul.f32 %v7696_v15, %v4746_v51  ;;  %v4717_v55 = vmul.f32 %v7692_v27, %v4685_v13  ;;  %v4940_v0 = vmin.f32 %v10761_v2, 20.0  ;;  %v6913_v47 = vadd.f32 %v10518_v49, %v4334_v21  ;;  %v10780_v49 = vld [vmem:[%s11257_s6] ss:$0 sm:$0xff] }
 0x560   : > { %v5065_v30 = vmul.f32 %v7694_v5, %v5033_v31  ;;  %7711 = vpow2.f32 %v4653_v32  ;;  %v4593_v38 = vmin.f32 %v10764_v29, 20.0  ;;  %v10771_v17 = vadd.f32 %v10438_v36, %v10653_v42 }
 0x561   : > { %v7698_v10 = vpop.eup %7697  ;;  %v10774_v26 = vmul.f32 %v10416_v8, %v4840_v48  ;;  %v4748_v39 = vmul.f32 %v4716_v28, %v10696_v9  ;;  %v4781_v51 = vadd.f32 2.0, %v4717_v55  ;;  %v4983_v45 = vmul.f32 1.442695, %v4940_v0  ;;  %v11276_v9 = vld [vmem:[#allocation29_spill] sm:$0xff] }
 0x562   : > { %v7700_v34 = vpop.eup %7699  ;;  %v10783_v35 = vmul.f32 %v10780_v49, %v4841_v52  ;;  %v5192_v44 = vmul.f32 %v7698_v10, %v5096_v60  ;;  %v5129_v42 = vadd.f32 2.0, %v5065_v30  ;;  %v4655_v24 = vmul.f32 1.442695, %v4593_v38 }
 0x563   : > { %v7702_v16 = vpop.eup %7701  ;;  %v10786_v8 = vmul.f32 %v10780_v49, %v4842_v1  ;;  %7713 = vrcp.f32 %v4781_v51  ;;  %v10789_v50 = vadd.f32 %v6913_v47, %v11276_v9  ;;  %v4941_v28 = vmin.f32 %v10771_v17, 20.0 }
 0x564   : > { %6460 = vmatmul.mubr.f32.gmra.mrb[38].mxu0 %v5192_v44  ;;  %v4686_v25 = vadd.f32 2.0, %v7702_v16  ;;  %7715 = vrcp.f32 %v5129_v42  ;;  %v10794_v23 = vadd.f32 %v10438_v36, %v10672_v54  ;;  %v10798_v7 = vadd.f32 %v10438_v36, %v10680_v22 }
 0x565   : > { %v7704_v62 = vpop.eup %7703  ;;  %v4843_v60 = vmul.f32 %v7700_v34, %v4747_v20  ;;  %7717 = vpow2.f32 %v4983_v45  ;;  %v4594_v61 = vmin.f32 %v10789_v50, 20.0  ;;  %v4985_v21 = vmul.f32 1.442695, %v4941_v28 }
 0x566   : > { %v7706_v33 = vpop.eup %7705  ;;  %v4718_v48 = vmul.f32 %v7702_v16, %v4686_v25  ;;  %v4687_v41 = vadd.f32 2.0, %v7704_v62  ;;  %7719 = vpow2.f32 %v4655_v24  ;;  %v4942_v19 = vmin.f32 %v10794_v23, 20.0 }
 0x567   : > { %v7708_v56 = vpop.eup %7707  ;;  %v4749_v54 = vmul.f32 %v4717_v55, %v10706_v58  ;;  %v4657_v27 = vmul.f32 1.442695, %v4594_v61  ;;  %7721 = vpow2.f32 %v4985_v21  ;;  %v4943_v36 = vmin.f32 %v10798_v7, 20.0 }
 0x568   : > { %v7710_v22 = vpop.eup %7709  ;;  %v4782_v59 = vadd.f32 2.0, %v4718_v48  ;;  %v5097_v20 = vmul.f32 %v5065_v30, %v10690_v14  ;;  %v4719_v57 = vmul.f32 %v7704_v62, %v4687_v41  ;;  %v5034_v63 = vadd.f32 2.0, %v7708_v56  ;;  %v10812_v30 = vld [vmem:[%s11259_s27] ss:$0 sm:$0xff] }
 0x569   : > { %v4844_v5 = vmul.f32 %v7706_v33, %v4748_v39  ;;  %v5035_v52 = vadd.f32 2.0, %v7710_v22  ;;  %7723 = vpow2.f32 %v4657_v27  ;;  %v4987_v13 = vmul.f32 1.442695, %v4942_v19 }
 0x56a   : > { %v7712_v15 = vpop.eup %7711  ;;  %v10806_v31 = vmul.f32 %v10780_v49, %v4843_v60  ;;  %7725 = vrcp.f32 %v4782_v59  ;;  %v4783_v58 = vadd.f32 2.0, %v4719_v57  ;;  %v5066_v32 = vmul.f32 %v7708_v56, %v5034_v63 }
 0x56b   : > { %v4688_v1 = vadd.f32 2.0, %v7712_v15  ;;  %v5067_v55 = vmul.f32 %v7710_v22, %v5035_v52  ;;  %7727 = vpow2.f32 %v4987_v13  ;;  %v4989_v0 = vmul.f32 1.442695, %v4943_v36 }
 0x56c   : > { %v4750_v47 = vmul.f32 %v4718_v48, %v10723_v18  ;;  %7729 = vrcp.f32 %v4783_v58  ;;  %v5130_v14 = vadd.f32 2.0, %v5066_v32  ;;  %v10816_v38 = vadd.f32 %v10812_v30, %v10693_v40 }
 0x56d   : > { %v7714_v10 = vpop.eup %7713  ;;  %v10819_v39 = vmul.f32 %v10780_v49, %v4844_v5  ;;  %v4720_v51 = vmul.f32 %v7712_v15, %v4688_v1  ;;  %v5131_v45 = vadd.f32 2.0, %v5067_v55  ;;  %7731 = vpow2.f32 %v4989_v0 }
 0x56e   : > { %v7716_v34 = vpop.eup %7715  ;;  %v4751_v18 = vmul.f32 %v4719_v57, %v10730_v43  ;;  %7733 = vrcp.f32 %v5130_v14  ;;  %v4944_v44 = vmin.f32 %v10816_v38, 20.0  ;;  %v10825_v42 = vadd.f32 %v10812_v30, %v10703_v46 }
 0x56f   : > { %v7718_v24 = vpop.eup %7717  ;;  %v4845_v40 = vmul.f32 %v7714_v10, %v4749_v54  ;;  %v5193_v16 = vmul.f32 %v7716_v34, %v5097_v20  ;;  %v4784_v9 = vadd.f32 2.0, %v4720_v51  ;;  %7735 = vrcp.f32 %v5131_v45 }
 0x570   : > { %v7720_v28 = vpop.eup %7719  ;;  %v5098_v25 = vmul.f32 %v5066_v32, %v10734_v12  ;;  %v5036_v62 = vadd.f32 2.0, %v7718_v24  ;;  %v4991_v60 = vmul.f32 1.442695, %v4944_v44  ;;  %v4945_v61 = vmin.f32 %v10825_v42, 20.0 }
 0x571   : > { %v7722_v43 = vpop.eup %7721  ;;  %6462 = vmatprep.mubr.f32.mxu0 %v5193_v16  ;;  %7737 = vrcp.f32 %v4784_v9  ;;  %v4689_v21 = vadd.f32 2.0, %v7720_v28  ;;  %v10831_v46 = vadd.f32 %v10812_v30, %v10711_v11  ;;  %v10835_v33 = vadd.f32 %v10812_v30, %v10717_v37 }
 0x572   : > { %v5068_v48 = vmul.f32 %v7718_v24, %v5036_v62  ;;  %v5037_v41 = vadd.f32 2.0, %v7722_v43  ;;  %7739 = vpow2.f32 %v4991_v60  ;;  %v4993_v12 = vmul.f32 1.442695, %v4945_v61 }
 0x573   : > { %v7724_v19 = vpop.eup %7723  ;;  %v10838_v56 = vmul.f32 %v10780_v49, %v4845_v40  ;;  %v4752_v54 = vmul.f32 %v4720_v51, %v10752_v4  ;;  %v5099_v27 = vmul.f32 %v5067_v55, %v10745_v3  ;;  %v4721_v36 = vmul.f32 %v7720_v28, %v4689_v21 }
 0x574   : > { %v7726_v22 = vpop.eup %7725  ;;  %v5132_v11 = vadd.f32 2.0, %v5068_v48  ;;  %v4690_v59 = vadd.f32 2.0, %v7724_v19  ;;  %v5069_v20 = vmul.f32 %v7722_v43, %v5037_v41  ;;  %v4946_v37 = vmin.f32 %v10831_v46, 20.0 }
 0x575   : > { %v7728_v57 = vpop.eup %7727  ;;  %v4785_v63 = vadd.f32 2.0, %v4721_v36  ;;  %7741 = vpow2.f32 %v4993_v12  ;;  %v4947_v5 = vmin.f32 %v10835_v33, 20.0  ;;  %v10846_v52 = vadd.f32 %v10812_v30, %v10737_v53 }
 0x576   : > { %v7730_v13 = vpop.eup %7729  ;;  %v5100_v4 = vmul.f32 %v5068_v48, %v10761_v2  ;;  %7743 = vrcp.f32 %v5132_v11  ;;  %v4722_v3 = vmul.f32 %v7724_v19, %v4690_v59  ;;  %v5133_v15 = vadd.f32 2.0, %v5069_v20 }
 0x577   : > { %v7732_v58 = vpop.eup %7731  ;;  %v4846_v32 = vmul.f32 %v7726_v22, %v4750_v47  ;;  %v10850_v1 = vmul.f32 %v4721_v36, %v10764_v29  ;;  %7745 = vrcp.f32 %v4785_v63  ;;  %v5038_v55 = vadd.f32 2.0, %v7728_v57 }
 0x578   : > { %v7734_v0 = vpop.eup %7733  ;;  %v4847_v14 = vmul.f32 %v7730_v13, %v4751_v18  ;;  %v4786_v10 = vadd.f32 2.0, %v4722_v3  ;;  %7747 = vrcp.f32 %v5133_v15  ;;  %v5039_v51 = vadd.f32 2.0, %v7732_v58 }
 0x579   : > { %v7736_v53 = vpop.eup %7735  ;;  %v5194_v45 = vmul.f32 %v7734_v0, %v5098_v25  ;;  %v5101_v34 = vmul.f32 %v5069_v20, %v10771_v17  ;;  %v5070_v2 = vmul.f32 %v7728_v57, %v5038_v55  ;;  %v4995_v44 = vmul.f32 1.442695, %v4946_v37 }
 0x57a   : > { %v5195_v24 = vmul.f32 %v7736_v53, %v5099_v27  ;;  %7749 = vrcp.f32 %v4786_v10  ;;  %v5071_v40 = vmul.f32 %v7732_v58, %v5039_v51  ;;  %v4997_v47 = vmul.f32 1.442695, %v4947_v5 }
 0x57b   : > { %v7738_v16 = vpop.eup %7737  ;;  %v10854_v29 = vmul.f32 %v10780_v49, %v4846_v32  ;;  %6463 = vmatmul.mubr.f32.gmra.mrb[40].mxu0 %v5194_v45  ;;  %v5134_v9 = vadd.f32 2.0, %v5070_v2  ;;  %7751 = vpow2.f32 %v4995_v44  ;;  %v4948_v18 = vmin.f32 %v10846_v52, 20.0 }
 0x57c   : > { %v7740_v28 = vpop.eup %7739  ;;  %v10858_v25 = vmul.f32 %v10780_v49, %v4847_v14  ;;  %6465 = vmatprep.mubr.f32.mxu0 %v5195_v24  ;;  %v4754_v17 = vmul.f32 %v4722_v3, %v10789_v50  ;;  %v5135_v62 = vadd.f32 2.0, %v5071_v40  ;;  %7753 = vpow2.f32 %v4997_v47 }
 0x57d   : > { %7755 = vrcp.f32 %v5134_v9  ;;  %v5040_v60 = vadd.f32 2.0, %v7740_v28  ;;  %v4999_v61 = vmul.f32 1.442695, %v4948_v18  ;;  %v10863_v43 = vadd.f32 %v10812_v30, %v10748_v6 }
 0x57e   : > { %v4848_v21 = vmul.f32 %v7738_v16, %v4752_v54  ;;  %7757 = vrcp.f32 %v5135_v62  ;;  %v10867_v48 = vadd.f32 %v10812_v30, %v10774_v26  ;;  %v10871_v41 = vadd.f32 %v10812_v30, %v10783_v35 }
 0x57f   : > { %v7742_v50 = vpop.eup %7741  ;;  %v5072_v12 = vmul.f32 %v7740_v28, %v5040_v60  ;;  %7759 = vpow2.f32 %v4999_v61  ;;  %v4949_v19 = vmin.f32 %v10863_v43, 20.0  ;;  %v10876_v27 = vadd.f32 %v10812_v30, %v10786_v8 }
 0x580   : > { %v7744_v6 = vpop.eup %7743  ;;  %v5041_v54 = vadd.f32 2.0, %v7742_v50  ;;  %v4950_v36 = vmin.f32 %v10867_v48, 20.0  ;;  %v4951_v26 = vmin.f32 %v10871_v41, 20.0  ;;  %v10882_v22 = vadd.f32 %v10812_v30, %v10806_v31 }
 0x581   : > { %v7746_v35 = vpop.eup %7745  ;;  %v5196_v11 = vmul.f32 %v7744_v6, %v5100_v4  ;;  %v5102_v59 = vmul.f32 %v5070_v2, %v10794_v23  ;;  %v5136_v20 = vadd.f32 2.0, %v5072_v12  ;;  %v5001_v37 = vmul.f32 1.442695, %v4949_v19 }
 0x582   : > { %v7748_v57 = vpop.eup %7747  ;;  %v5103_v8 = vmul.f32 %v5071_v40, %v10798_v7  ;;  %v5073_v63 = vmul.f32 %v7742_v50, %v5041_v54  ;;  %v5003_v5 = vmul.f32 1.442695, %v4950_v36  ;;  %v5005_v13 = vmul.f32 1.442695, %v4951_v26 }
 0x583   : > { %6466 = vmatmul.mubr.f32.gmra.mrb[42].mxu0 %v5196_v11  ;;  %v5197_v3 = vmul.f32 %v7748_v57, %v5101_v34  ;;  %7761 = vrcp.f32 %v5136_v20  ;;  %v4952_v15 = vmin.f32 %v10876_v27, 20.0  ;;  %v4953_v31 = vmin.f32 %v10882_v22, 20.0 }
 0x584   : > { %v7750_v58 = vpop.eup %7749  ;;  %v4887_v4 = vmul.f32 %v10780_v49, %v4848_v21  ;;  %v5104_v23 = vmul.f32 %v5072_v12, %v10816_v38  ;;  %v5137_v32 = vadd.f32 2.0, %v5073_v63  ;;  %7763 = vpow2.f32 %v5001_v37 }
 0x585   : > { %v7752_v55 = vpop.eup %7751  ;;  %v4849_v7 = vmul.f32 %v7746_v35, %v10850_v1  ;;  %6468 = vmatprep.mubr.f32.mxu0 %v5197_v3  ;;  %7765 = vpow2.f32 %v5003_v5  ;;  %v5007_v0 = vmul.f32 1.442695, %v4952_v15  ;;  %v5009_v14 = vmul.f32 1.442695, %v4953_v31 }
 0x586   : > { %v7754_v10 = vpop.eup %7753  ;;  %7767 = vrcp.f32 %v5137_v32  ;;  %v5042_v51 = vadd.f32 2.0, %v7752_v55  ;;  %v10893_v53 = vadd.f32 %v10812_v30, %v10819_v39  ;;  %v10897_v45 = vadd.f32 %v10812_v30, %v10838_v56 }
 0x587   : > { %v7756_v38 = vpop.eup %7755  ;;  %v4850_v34 = vmul.f32 %v7750_v58, %v4754_v17  ;;  %v5043_v2 = vadd.f32 2.0, %v7754_v10  ;;  %7769 = vpow2.f32 %v5005_v13  ;;  %v10901_v1 = vadd.f32 %v10812_v30, %v10854_v29 }
 0x588   : > { %v7758_v44 = vpop.eup %7757  ;;  %v5198_v24 = vmul.f32 %v7756_v38, %v5102_v59  ;;  %v5074_v40 = vmul.f32 %v7752_v55, %v5042_v51  ;;  %7771 = vpow2.f32 %v5007_v0  ;;  %v4954_v47 = vmin.f32 %v10893_v53, 20.0 }
 0x589   : > { %v7760_v39 = vpop.eup %7759  ;;  %v5199_v16 = vmul.f32 %v7758_v44, %v5103_v8  ;;  %v5075_v9 = vmul.f32 %v7754_v10, %v5043_v2  ;;  %7773 = vpow2.f32 %v5009_v14  ;;  %v4955_v56 = vmin.f32 %v10897_v45, 20.0 }
 0x58a   : > { %v4888_v18 = vmul.f32 %v10780_v49, %v4849_v7  ;;  %6469 = vmatmul.mubr.f32.gmra.mrb[44].mxu0 %v5198_v24  ;;  %v5138_v28 = vadd.f32 2.0, %v5074_v40  ;;  %v5044_v17 = vadd.f32 2.0, %v7760_v39  ;;  %v5011_v62 = vmul.f32 1.442695, %v4954_v47 }
 0x58b   : > { %v4889_v29 = vmul.f32 %v10780_v49, %v4850_v34  ;;  %6471 = vmatprep.mubr.f32.mxu0 %v5199_v16  ;;  %v5139_v60 = vadd.f32 2.0, %v5075_v9  ;;  %v5013_v61 = vmul.f32 1.442695, %v4955_v56  ;;  %v4956_v21 = vmin.f32 %v10901_v1, 20.0 }
 0x58c   : > { %7775 = vrcp.f32 %v5138_v28  ;;  %v5076_v50 = vmul.f32 %v7760_v39, %v5044_v17  ;;  %v10910_v12 = vadd.f32 %v10812_v30, %v10858_v25  ;;  %v10913_v19 = vadd.f32 %v10812_v30, %v4887_v4 }
 0x58d   : > { %v7762_v6 = vpop.eup %7761  ;;  %v5105_v54 = vmul.f32 %v5073_v63, %v10825_v42  ;;  %7777 = vrcp.f32 %v5139_v60  ;;  %v5015_v36 = vmul.f32 1.442695, %v4956_v21  ;;  %v10917_v11 = vadd.f32 %v10812_v30, %v4888_v18 }
 0x58e   : > { %v7764_v49 = vpop.eup %7763  ;;  %v5200_v26 = vmul.f32 %v7762_v6, %v5104_v23  ;;  %v5140_v35 = vadd.f32 2.0, %v5076_v50  ;;  %7779 = vpow2.f32 %v5011_v62  ;;  %v4957_v25 = vmin.f32 %v10910_v12, 20.0 }
 0x58f   : > { %v7766_v59 = vpop.eup %7765  ;;  %v5045_v20 = vadd.f32 2.0, %v7764_v49  ;;  %7781 = vpow2.f32 %v5013_v61  ;;  %v4958_v37 = vmin.f32 %v10913_v19, 20.0  ;;  %v10922_v8 = vadd.f32 %v10812_v30, %v4889_v29 }
 0x590   : > { %v7768_v57 = vpop.eup %7767  ;;  %6472 = vmatmul.mubr.f32.gmra.mrb[46].mxu0 %v5200_v26  ;;  %7783 = vrcp.f32 %v5140_v35  ;;  %v5046_v42 = vadd.f32 2.0, %v7766_v59  ;;  %v5017_v3 = vmul.f32 1.442695, %v4957_v25  ;;  %v4959_v4 = vmin.f32 %v10917_v11, 20.0 }
 0x591   : > { %v7770_v63 = vpop.eup %7769  ;;  %v5201_v5 = vmul.f32 %v7768_v57, %v5105_v54  ;;  %v5077_v13 = vmul.f32 %v7764_v49, %v5045_v20  ;;  %7785 = vpow2.f32 %v5015_v36  ;;  %v5019_v7 = vmul.f32 1.442695, %v4958_v37 }
 0x592   : > { %v7772_v15 = vpop.eup %7771  ;;  %v5078_v31 = vmul.f32 %v7766_v59, %v5046_v42  ;;  %v5047_v58 = vadd.f32 2.0, %v7770_v63  ;;  %7787 = vpow2.f32 %v5017_v3  ;;  %v4960_v10 = vmin.f32 %v10922_v8, 20.0 }
 0x593   : > { %v7774_v23 = vpop.eup %7773  ;;  %6474 = vmatprep.mubr.f32.mxu0 %v5201_v5  ;;  %v5141_v32 = vadd.f32 2.0, %v5077_v13  ;;  %v5048_v55 = vadd.f32 2.0, %v7772_v15  ;;  %v5106_v51 = vmul.f32 %v5074_v40, %v10831_v46  ;;  %v5107_v2 = vmul.f32 %v5075_v9, %v10835_v33 }
 0x594   : > { %v5142_v0 = vadd.f32 2.0, %v5078_v31  ;;  %v5079_v14 = vmul.f32 %v7770_v63, %v5047_v58  ;;  %v5049_v30 = vadd.f32 2.0, %v7774_v23  ;;  %v5021_v56 = vmul.f32 1.442695, %v4959_v4 }
 0x595   : > { %7789 = vrcp.f32 %v5141_v32  ;;  %v5080_v38 = vmul.f32 %v7772_v15, %v5048_v55  ;;  %v5023_v62 = vmul.f32 1.442695, %v4960_v10  ;;  %v5108_v46 = vmul.f32 %v5076_v50, %v10846_v52 }
 0x596   : > { %v7776_v34 = vpop.eup %7775  ;;  %7791 = vrcp.f32 %v5142_v0  ;;  %v5143_v44 = vadd.f32 2.0, %v5079_v14  ;;  %v5081_v24 = vmul.f32 %v7774_v23, %v5049_v30  ;;  %v5109_v26 = vmul.f32 %v5077_v13, %v10863_v43 }
 0x597   : > { %v7778_v47 = vpop.eup %7777  ;;  %v5202_v39 = vmul.f32 %v7776_v34, %v5106_v51  ;;  %v5144_v16 = vadd.f32 2.0, %v5080_v38  ;;  %7793 = vpow2.f32 %v5019_v7  ;;  %v5110_v20 = vmul.f32 %v5078_v31, %v10867_v48 }
 0x598   : > { %v7780_v18 = vpop.eup %7779  ;;  %v5203_v28 = vmul.f32 %v7778_v47, %v5107_v2  ;;  %7795 = vrcp.f32 %v5143_v44  ;;  %v5145_v17 = vadd.f32 2.0, %v5081_v24  ;;  %v5111_v5 = vmul.f32 %v5079_v14, %v10871_v41 }
 0x599   : > { %v7782_v29 = vpop.eup %7781  ;;  %6475 = vmatmul.mubr.f32.gmra.mrb[48].mxu0 %v5202_v39  ;;  %7797 = vrcp.f32 %v5144_v16  ;;  %v5050_v40 = vadd.f32 2.0, %v7780_v18  ;;  %v5112_v43 = vmul.f32 %v5080_v38, %v10876_v27  ;;  %v5113_v48 = vmul.f32 %v5081_v24, %v10882_v22 }
 0x59a   : > { %v7784_v33 = vpop.eup %7783  ;;  %6477 = vmatprep.mubr.f32.mxu0 %v5203_v28  ;;  %7799 = vrcp.f32 %v5145_v17  ;;  %v5051_v9 = vadd.f32 2.0, %v7782_v29 }
 0x59b   : > { %v7786_v60 = vpop.eup %7785  ;;  %v5204_v61 = vmul.f32 %v7784_v33, %v5108_v46  ;;  %v5082_v21 = vmul.f32 %v7780_v18, %v5050_v40  ;;  %7801 = vpow2.f32 %v5021_v56 }
 0x59c   : > { %v5083_v6 = vmul.f32 %v7782_v29, %v5051_v9  ;;  %v5052_v54 = vadd.f32 2.0, %v7786_v60  ;;  %7803 = vpow2.f32 %v5023_v62  ;;  %v7788_v36 = vpop.eup %7787 }
 0x59d   : > { %6478 = vmatmul.mubr.f32.gmra.mrb[50].mxu0 %v5204_v61  ;;  %v5146_v49 = vadd.f32 2.0, %v5082_v21  ;;  %v5053_v50 = vadd.f32 2.0, %v7788_v36  ;;  %v5114_v10 = vmul.f32 %v5082_v21, %v10893_v53 }
 0x59e   : > { %v5147_v35 = vadd.f32 2.0, %v5083_v6  ;;  %v5084_v52 = vmul.f32 %v7786_v60, %v5052_v54  ;;  %v5115_v22 = vmul.f32 %v5083_v6, %v10897_v45 }
 0x59f   : > { %v7790_v59 = vpop.eup %7789  ;;  %7805 = vrcp.f32 %v5146_v49  ;;  %v5085_v3 = vmul.f32 %v7788_v36, %v5053_v50 }
 0x5a0   : > { %v7792_v25 = vpop.eup %7791  ;;  %v5205_v37 = vmul.f32 %v7790_v59, %v5109_v26  ;;  %7807 = vrcp.f32 %v5147_v35  ;;  %v5148_v57 = vadd.f32 2.0, %v5084_v52  ;;  %v5116_v39 = vmul.f32 %v5084_v52, %v10901_v1 }
 0x5a1   : > { %v7794_v42 = vpop.eup %7793  ;;  %v5206_v63 = vmul.f32 %v7792_v25, %v5110_v20  ;;  %v5149_v31 = vadd.f32 2.0, %v5085_v3  ;;  %v5117_v53 = vmul.f32 %v5085_v3, %v10910_v12  ;;  %v10944_v12 = vld [vmem:[%s11277_s22] ss:$0 sm:$0xff]  ;;  %s8139_s22 = scalar_lea.vmem %s8138_s14, 8192 }
 0x5a2   : > { %v7796_v15 = vpop.eup %7795  ;;  %6480 = vmatprep.mubr.f32.mxu0 %v5205_v37  ;;  %7809 = vrcp.f32 %v5148_v57  ;;  %v5054_v13 = vadd.f32 2.0, %v7794_v42  ;;  %p8141_p0 = scmp.lt.s32.totalorder %s8139_s22, %s8133_s18 }
 0x5a3   : > { %v7798_v58 = vpop.eup %7797  ;;  %6481 = vmatmul.mubr.f32.gmra.mrb[52].mxu0 %v5206_v63  ;;  %v5207_v4 = vmul.f32 %v7796_v15, %v5111_v5  ;;  %7811 = vrcp.f32 %v5149_v31 }
 0x5a4   : > { %v7800_v23 = vpop.eup %7799  ;;  %v5208_v32 = vmul.f32 %v7798_v58, %v5112_v43  ;;  %v5086_v55 = vmul.f32 %v7794_v42, %v5054_v13  ;;  %p8142_p2 = por %p8141_p0, %p8140_p13 }
 0x5a5   : > { %v7802_v7 = vpop.eup %7801  ;;  %6483 = vmatprep.mubr.f32.mxu0 %v5207_v4  ;;  %v5209_v0 = vmul.f32 %v7800_v23, %v5113_v48 }
 0x5a6   : > { %v7804_v41 = vpop.eup %7803  ;;  %v5150_v14 = vadd.f32 2.0, %v5086_v55  ;;  %v5055_v30 = vadd.f32 2.0, %v7802_v7  ;;  %v5118_v45 = vmul.f32 %v5086_v55, %v10913_v19  ;;  %p8143_p8 = pnand %p8142_p2, %p8136_p1 }
 0x5a7   : > { %6484 = vmatmul.mubr.f32.gmra.mrb[54].mxu0 %v5208_v32  ;;  %v5056_v27 = vadd.f32 2.0, %v7804_v41 }
 0x5a8   : > { %6486 = vmatprep.mubr.f32.mxu0 %v5209_v0  ;;  %7813 = vrcp.f32 %v5150_v14  ;;  %v5087_v51 = vmul.f32 %v7802_v7, %v5055_v30 }
 0x5a9   : > { %v7806_v38 = vpop.eup %7805  ;;  %v5088_v34 = vmul.f32 %v7804_v41, %v5056_v27 }
 0x5aa   : > { %v7808_v2 = vpop.eup %7807  ;;  %v5210_v44 = vmul.f32 %v7806_v38, %v5114_v10  ;;  %v5151_v24 = vadd.f32 2.0, %v5087_v51  ;;  %v5119_v1 = vmul.f32 %v5087_v51, %v10917_v11 }
 0x5ab   : > { %v5211_v47 = vmul.f32 %v7808_v2, %v5115_v22  ;;  %v5152_v16 = vadd.f32 2.0, %v5088_v34  ;;  %v5120_v40 = vmul.f32 %v5088_v34, %v10922_v8 }
 0x5ac   : > { %v7810_v56 = vpop.eup %7809  ;;  %6487 = vmatmul.mubr.f32.gmra.mrb[56].mxu0 %v5210_v44  ;;  %7815 = vrcp.f32 %v5151_v24 }
 0x5ad   : > { %6489 = vmatprep.mubr.f32.mxu0 %v5211_v47  ;;  %v5212_v18 = vmul.f32 %v7810_v56, %v5116_v39  ;;  %7817 = vrcp.f32 %v5152_v16  ;;  %v7812_v28 = vpop.eup %7811 }
 0x5ae   : > { %v5213_v17 = vmul.f32 %v7812_v28, %v5117_v53 }
 0x5b0   : > { %6490 = vmatmul.mubr.f32.gmra.mrb[58].mxu0 %v5212_v18 }
 0x5b1   : > { %6492 = vmatprep.mubr.f32.mxu0 %v5213_v17 }
 0x5b2   : > { %v7814_v62 = vpop.eup %7813 }
 0x5b3   : > { %v5214_v29 = vmul.f32 %v7814_v62, %v5118_v45 }
 0x5b5   : > { %6493 = vmatmul.mubr.f32.gmra.mrb[60].mxu0 %v5214_v29 }
 0x5b6   : > { %v7816_v46 = vpop.eup %7815 }
 0x5b7   : > { %v7818_v33 = vpop.eup %7817  ;;  %v5215_v9 = vmul.f32 %v7816_v46, %v5119_v1 }
 0x5b8   : > { %v5216_v60 = vmul.f32 %v7818_v33, %v5120_v40 }
 0x5b9   : > { %6495 = vmatprep.mubr.f32.mxu0 %v5215_v9 }
 0x5ba   : > { %6496 = vmatmul.mubr.f32.gmra.mrb[62].mxu0 %v5216_v60 }
 0x60a   : > { %v6452_v19 = vpop.f32.mrb[32].mxu0 }
 0x60b   : > { %v5466_v61 = vadd.f32 %v6452_v19, %v10944_v12  ;;  %v5299_v21 = vpop.f32.mrb[33].mxu0 }
 0x60c   : > { %v5465_v6 = vadd.f32 %v10944_v12, %v5299_v21 }
 0x60d   : > { %v5498_v11 = vmin.f32 %v5466_v61, 20.0 }
 0x60e   : > { %v5497_v54 = vmin.f32 %v5465_v6, 20.0 }
 0x60f   : > { %v5531_v36 = vmul.f32 1.442695, %v5498_v11 }
 0x610   : > { %v5529_v8 = vmul.f32 1.442695, %v5497_v54 }
 0x611   : > { %7819 = vpow2.f32 %v5531_v36 }
 0x612   : > { %7821 = vpow2.f32 %v5529_v8 }
 0x615   : > { %v6455_v49 = vpop.f32.mrb[34].mxu0 }
 0x616   : > { %v5468_v26 = vadd.f32 %v6455_v49, %v10944_v12  ;;  %v5309_v35 = vpop.f32.mrb[35].mxu0 }
 0x617   : > { %v5467_v52 = vadd.f32 %v10944_v12, %v5309_v35 }
 0x618   : > { %v5500_v50 = vmin.f32 %v5468_v26, 20.0 }
 0x619   : > { %v5499_v59 = vmin.f32 %v5467_v52, 20.0 }
 0x61a   : > { %v5535_v20 = vmul.f32 1.442695, %v5500_v50 }
 0x61b   : > { %v7820_v25 = vpop.eup %7819  ;;  %v5533_v37 = vmul.f32 1.442695, %v5499_v59 }
 0x61c   : > { %v7822_v57 = vpop.eup %7821  ;;  %v5594_v42 = vadd.f32 2.0, %v7820_v25  ;;  %7823 = vpow2.f32 %v5535_v20 }
 0x61d   : > { %v5593_v63 = vadd.f32 2.0, %v7822_v57  ;;  %7825 = vpow2.f32 %v5533_v37 }
 0x61e   : > { %v5626_v5 = vmul.f32 %v7820_v25, %v5594_v42 }
 0x61f   : > { %v5625_v3 = vmul.f32 %v7822_v57, %v5593_v63 }
 0x620   : > { %v5690_v15 = vadd.f32 2.0, %v5626_v5  ;;  %v5658_v32 = vmul.f32 %v5626_v5, %v5466_v61 }
 0x621   : > { %v5689_v43 = vadd.f32 2.0, %v5625_v3  ;;  %v5657_v0 = vmul.f32 %v5625_v3, %v5465_v6 }
 0x622   : > { %7827 = vrcp.f32 %v5690_v15 }
 0x623   : > { %7829 = vrcp.f32 %v5689_v43 }
 0x626   : > { %v7824_v13 = vpop.eup %7823 }
 0x627   : > { %v7826_v58 = vpop.eup %7825  ;;  %v5596_v4 = vadd.f32 2.0, %v7824_v13 }
 0x628   : > { %v5595_v48 = vadd.f32 2.0, %v7826_v58 }
 0x629   : > { %v5628_v31 = vmul.f32 %v7824_v13, %v5596_v4 }
 0x62a   : > { %v5627_v23 = vmul.f32 %v7826_v58, %v5595_v48 }
 0x62b   : > { %v5692_v55 = vadd.f32 2.0, %v5628_v31  ;;  %v5660_v47 = vmul.f32 %v5628_v31, %v5468_v26 }
 0x62c   : > { %v7828_v7 = vpop.eup %7827  ;;  %v5691_v41 = vadd.f32 2.0, %v5627_v23  ;;  %v5659_v16 = vmul.f32 %v5627_v23, %v5467_v52 }
 0x62d   : > { %v7830_v14 = vpop.eup %7829  ;;  %v5754_v30 = vmul.f32 %v7828_v7, %v5658_v32  ;;  %7831 = vrcp.f32 %v5692_v55  ;;  %v6458_v27 = vpop.f32.mrb[36].mxu0 }
 0x62e   : > { %v5753_v10 = vmul.f32 %v7830_v14, %v5657_v0  ;;  %7833 = vrcp.f32 %v5691_v41  ;;  %v5470_v51 = vadd.f32 %v6458_v27, %v10944_v12  ;;  %v5319_v38 = vpop.f32.mrb[37].mxu0 }
 0x62f   : > { %5786 = vst [vmem:[%s10953_s25 + $0x8] sm:$0xff] %v5754_v30  ;;  %v5469_v22 = vadd.f32 %v10944_v12, %v5319_v38 }
 0x630   : > { %5785 = vst [vmem:[%s10953_s25] sm:$0xff] %v5753_v10  ;;  %v5502_v34 = vmin.f32 %v5470_v51, 20.0 }
 0x631   : > { %v5501_v2 = vmin.f32 %v5469_v22, 20.0 }
 0x632   : > { %v5539_v44 = vmul.f32 1.442695, %v5502_v34 }
 0x633   : > { %v5537_v24 = vmul.f32 1.442695, %v5501_v2 }
 0x634   : > { %7835 = vpow2.f32 %v5539_v44 }
 0x635   : > { %7837 = vpow2.f32 %v5537_v24 }
 0x637   : > { %v7832_v39 = vpop.eup %7831  ;;  %v6461_v56 = vpop.f32.mrb[38].mxu0 }
 0x638   : > { %v7834_v18 = vpop.eup %7833  ;;  %v5756_v53 = vmul.f32 %v7832_v39, %v5660_v47  ;;  %v5472_v28 = vadd.f32 %v6461_v56, %v10944_v12  ;;  %v5329_v17 = vpop.f32.mrb[39].mxu0 }
 0x639   : > { %v5755_v45 = vmul.f32 %v7834_v18, %v5659_v16  ;;  %v5471_v62 = vadd.f32 %v10944_v12, %v5329_v17 }
 0x63a   : > { %5788 = vst [vmem:[%s10953_s25 + $0x18] sm:$0xff] %v5756_v53  ;;  %v5504_v29 = vmin.f32 %v5472_v28, 20.0 }
 0x63b   : > { %5787 = vst [vmem:[%s10953_s25 + $0x10] sm:$0xff] %v5755_v45  ;;  %v5503_v1 = vmin.f32 %v5471_v62, 20.0 }
 0x63c   : > { %v5543_v46 = vmul.f32 1.442695, %v5504_v29 }
 0x63d   : > { %v5541_v40 = vmul.f32 1.442695, %v5503_v1 }
 0x63e   : > { %v7836_v33 = vpop.eup %7835  ;;  %7839 = vpow2.f32 %v5543_v46 }
 0x63f   : > { %v7838_v9 = vpop.eup %7837  ;;  %v5598_v60 = vadd.f32 2.0, %v7836_v33  ;;  %7841 = vpow2.f32 %v5541_v40 }
 0x640   : > { %v5597_v19 = vadd.f32 2.0, %v7838_v9 }
 0x641   : > { %v5630_v61 = vmul.f32 %v7836_v33, %v5598_v60 }
 0x642   : > { %v5629_v21 = vmul.f32 %v7838_v9, %v5597_v19 }
 0x643   : > { %v5694_v6 = vadd.f32 2.0, %v5630_v61  ;;  %v5662_v50 = vmul.f32 %v5630_v61, %v5470_v51 }
 0x644   : > { %v5693_v11 = vadd.f32 2.0, %v5629_v21  ;;  %v5661_v37 = vmul.f32 %v5629_v21, %v5469_v22 }
 0x645   : > { %7843 = vrcp.f32 %v5694_v6 }
 0x646   : > { %7845 = vrcp.f32 %v5693_v11 }
 0x648   : > { %v7840_v54 = vpop.eup %7839 }
 0x649   : > { %v7842_v36 = vpop.eup %7841  ;;  %v5600_v8 = vadd.f32 2.0, %v7840_v54 }
 0x64a   : > { %v5599_v49 = vadd.f32 2.0, %v7842_v36 }
 0x64b   : > { %v5632_v26 = vmul.f32 %v7840_v54, %v5600_v8 }
 0x64c   : > { %v5631_v35 = vmul.f32 %v7842_v36, %v5599_v49 }
 0x64d   : > { %v5696_v52 = vadd.f32 2.0, %v5632_v26  ;;  %v5664_v32 = vmul.f32 %v5632_v26, %v5472_v28 }
 0x64e   : > { %v5695_v59 = vadd.f32 2.0, %v5631_v35  ;;  %v6464_v20 = vpop.f32.mrb[40].mxu0  ;;  %v5663_v0 = vmul.f32 %v5631_v35, %v5471_v62 }
 0x64f   : > { %v7844_v25 = vpop.eup %7843  ;;  %7847 = vrcp.f32 %v5696_v52  ;;  %v10963_v57 = vadd.f32 %v6464_v20, %v10944_v12  ;;  %v5339_v42 = vpop.f32.mrb[41].mxu0 }
 0x650   : > { %v7846_v63 = vpop.eup %7845  ;;  %v5758_v5 = vmul.f32 %v7844_v25, %v5662_v50  ;;  %7849 = vrcp.f32 %v5695_v59  ;;  %v10966_v3 = vadd.f32 %v10944_v12, %v5339_v42 }
 0x651   : > { %v5757_v15 = vmul.f32 %v7846_v63, %v5661_v37  ;;  %v5506_v43 = vmin.f32 %v10963_v57, 20.0 }
 0x652   : > { %5790 = vst [vmem:[%s10953_s25 + $0x28] sm:$0xff] %v5758_v5  ;;  %v5505_v13 = vmin.f32 %v10966_v3, 20.0 }
 0x653   : > { %5789 = vst [vmem:[%s10953_s25 + $0x20] sm:$0xff] %v5757_v15  ;;  %v5547_v58 = vmul.f32 1.442695, %v5506_v43 }
 0x654   : > { %v5545_v4 = vmul.f32 1.442695, %v5505_v13 }
 0x655   : > { %7851 = vpow2.f32 %v5547_v58 }
 0x656   : > { %7853 = vpow2.f32 %v5545_v4  ;;  %v6467_v48 = vpop.f32.mrb[42].mxu0 }
 0x657   : > { %v10973_v31 = vadd.f32 %v6467_v48, %v10944_v12  ;;  %v5349_v23 = vpop.f32.mrb[43].mxu0 }
 0x658   : > { %v10976_v55 = vadd.f32 %v10944_v12, %v5349_v23 }
 0x659   : > { %v7848_v7 = vpop.eup %7847  ;;  %v5508_v41 = vmin.f32 %v10973_v31, 20.0 }
 0x65a   : > { %v7850_v14 = vpop.eup %7849  ;;  %v5760_v30 = vmul.f32 %v7848_v7, %v5664_v32  ;;  %v5507_v27 = vmin.f32 %v10976_v55, 20.0 }
 0x65b   : > { %v5759_v10 = vmul.f32 %v7850_v14, %v5663_v0  ;;  %v5551_v51 = vmul.f32 1.442695, %v5508_v41 }
 0x65c   : > { %5792 = vst [vmem:[%s10953_s25 + $0x38] sm:$0xff] %v5760_v30  ;;  %v5549_v38 = vmul.f32 1.442695, %v5507_v27 }
 0x65d   : > { %5791 = vst [vmem:[%s10953_s25 + $0x30] sm:$0xff] %v5759_v10  ;;  %7855 = vpow2.f32 %v5551_v51  ;;  %v6470_v22 = vpop.f32.mrb[44].mxu0 }
 0x65e   : > { %7857 = vpow2.f32 %v5549_v38  ;;  %v10983_v34 = vadd.f32 %v6470_v22, %v10944_v12  ;;  %v5359_v2 = vpop.f32.mrb[45].mxu0 }
 0x65f   : > { %v7852_v44 = vpop.eup %7851  ;;  %v10986_v24 = vadd.f32 %v10944_v12, %v5359_v2 }
 0x660   : > { %v7854_v47 = vpop.eup %7853  ;;  %v5602_v39 = vadd.f32 2.0, %v7852_v44  ;;  %v5510_v16 = vmin.f32 %v10983_v34, 20.0 }
 0x661   : > { %v5601_v56 = vadd.f32 2.0, %v7854_v47  ;;  %v5509_v18 = vmin.f32 %v10986_v24, 20.0 }
 0x662   : > { %v5634_v53 = vmul.f32 %v7852_v44, %v5602_v39  ;;  %v5555_v28 = vmul.f32 1.442695, %v5510_v16 }
 0x663   : > { %v5633_v17 = vmul.f32 %v7854_v47, %v5601_v56  ;;  %v5553_v45 = vmul.f32 1.442695, %v5509_v18  ;;  %v6473_v62 = vpop.f32.mrb[46].mxu0 }
 0x664   : > { %v5698_v29 = vadd.f32 2.0, %v5634_v53  ;;  %7859 = vpow2.f32 %v5555_v28  ;;  %v10991_v1 = vadd.f32 %v6473_v62, %v10944_v12  ;;  %v5369_v46 = vpop.f32.mrb[47].mxu0  ;;  %v5666_v37 = vmul.f32 %v5634_v53, %v10963_v57 }
 0x665   : > { %v5697_v40 = vadd.f32 2.0, %v5633_v17  ;;  %7861 = vpow2.f32 %v5553_v45  ;;  %v10994_v33 = vadd.f32 %v10944_v12, %v5369_v46  ;;  %v5665_v15 = vmul.f32 %v5633_v17, %v10966_v3 }
 0x666   : > { %7863 = vrcp.f32 %v5698_v29  ;;  %v5512_v9 = vmin.f32 %v10991_v1, 20.0 }
 0x667   : > { %v7856_v60 = vpop.eup %7855  ;;  %7865 = vrcp.f32 %v5697_v40  ;;  %v5511_v19 = vmin.f32 %v10994_v33, 20.0 }
 0x668   : > { %v7858_v61 = vpop.eup %7857  ;;  %v5604_v21 = vadd.f32 2.0, %v7856_v60  ;;  %v5559_v6 = vmul.f32 1.442695, %v5512_v9 }
 0x669   : > { %v5603_v11 = vadd.f32 2.0, %v7858_v61  ;;  %v5557_v54 = vmul.f32 1.442695, %v5511_v19 }
 0x66a   : > { %v5636_v36 = vmul.f32 %v7856_v60, %v5604_v21  ;;  %7867 = vpow2.f32 %v5559_v6 }
 0x66b   : > { %v5635_v8 = vmul.f32 %v7858_v61, %v5603_v11  ;;  %7869 = vpow2.f32 %v5557_v54 }
 0x66c   : > { %v5700_v49 = vadd.f32 2.0, %v5636_v36  ;;  %v6476_v26 = vpop.f32.mrb[48].mxu0  ;;  %v5668_v56 = vmul.f32 %v5636_v36, %v10973_v31 }
 0x66d   : > { %v5699_v35 = vadd.f32 2.0, %v5635_v8  ;;  %v10999_v52 = vadd.f32 %v6476_v26, %v10944_v12  ;;  %v5379_v50 = vpop.f32.mrb[49].mxu0  ;;  %v5667_v45 = vmul.f32 %v5635_v8, %v10976_v55 }
 0x66e   : > { %v7860_v59 = vpop.eup %7859  ;;  %7871 = vrcp.f32 %v5700_v49  ;;  %v11002_v20 = vadd.f32 %v10944_v12, %v5379_v50 }
 0x66f   : > { %v7862_v25 = vpop.eup %7861  ;;  %7873 = vrcp.f32 %v5699_v35  ;;  %v5606_v42 = vadd.f32 2.0, %v7860_v59  ;;  %v5514_v63 = vmin.f32 %v10999_v52, 20.0 }
 0x670   : > { %v7864_v5 = vpop.eup %7863  ;;  %v5605_v43 = vadd.f32 2.0, %v7862_v25  ;;  %v5513_v13 = vmin.f32 %v11002_v20, 20.0  ;;  %v6479_v58 = vpop.f32.mrb[50].mxu0 }
 0x671   : > { %v7866_v4 = vpop.eup %7865  ;;  %v5762_v48 = vmul.f32 %v7864_v5, %v5666_v37  ;;  %v5638_v23 = vmul.f32 %v7860_v59, %v5606_v42  ;;  %v5563_v32 = vmul.f32 1.442695, %v5514_v63  ;;  %v11009_v7 = vadd.f32 %v6479_v58, %v10944_v12  ;;  %v5389_v57 = vpop.f32.mrb[51].mxu0 }
 0x672   : > { %v5761_v0 = vmul.f32 %v7866_v4, %v5665_v15  ;;  %v5637_v41 = vmul.f32 %v7862_v25, %v5605_v43  ;;  %v5561_v14 = vmul.f32 1.442695, %v5513_v13  ;;  %v11012_v30 = vadd.f32 %v10944_v12, %v5389_v57 }
 0x673   : > { %5794 = vst [vmem:[%s10953_s25 + $0x48] sm:$0xff] %v5762_v48  ;;  %v5702_v3 = vadd.f32 2.0, %v5638_v23  ;;  %7875 = vpow2.f32 %v5563_v32  ;;  %v5516_v27 = vmin.f32 %v11009_v7, 20.0  ;;  %v5670_v35 = vmul.f32 %v5638_v23, %v10983_v34 }
 0x674   : > { %v7868_v10 = vpop.eup %7867  ;;  %5793 = vst [vmem:[%s10953_s25 + $0x40] sm:$0xff] %v5761_v0  ;;  %v5701_v51 = vadd.f32 2.0, %v5637_v41  ;;  %7877 = vpow2.f32 %v5561_v14  ;;  %v5515_v38 = vmin.f32 %v11012_v30, 20.0  ;;  %v5669_v37 = vmul.f32 %v5637_v41, %v10986_v24 }
 0x675   : > { %v7870_v22 = vpop.eup %7869  ;;  %7879 = vrcp.f32 %v5702_v3  ;;  %v5608_v2 = vadd.f32 2.0, %v7868_v10  ;;  %v5567_v44 = vmul.f32 1.442695, %v5516_v27 }
 0x676   : > { %7881 = vrcp.f32 %v5701_v51  ;;  %v5607_v47 = vadd.f32 2.0, %v7870_v22  ;;  %v5565_v39 = vmul.f32 1.442695, %v5515_v38  ;;  %v6482_v16 = vpop.f32.mrb[52].mxu0 }
 0x677   : > { %v5640_v18 = vmul.f32 %v7868_v10, %v5608_v2  ;;  %7883 = vpow2.f32 %v5567_v44  ;;  %v11020_v53 = vadd.f32 %v6482_v16, %v10944_v12  ;;  %v5399_v28 = vpop.f32.mrb[53].mxu0 }
 0x678   : > { %v7872_v17 = vpop.eup %7871  ;;  %v5639_v62 = vmul.f32 %v7870_v22, %v5607_v47  ;;  %7885 = vpow2.f32 %v5565_v39  ;;  %v11024_v29 = vadd.f32 %v10944_v12, %v5399_v28 }
 0x679   : > { %v7874_v46 = vpop.eup %7873  ;;  %v5764_v40 = vmul.f32 %v7872_v17, %v5668_v56  ;;  %v5704_v9 = vadd.f32 2.0, %v5640_v18  ;;  %v5518_v31 = vmin.f32 %v11020_v53, 20.0  ;;  %v5672_v0 = vmul.f32 %v5640_v18, %v10991_v1 }
 0x67a   : > { %v5763_v60 = vmul.f32 %v7874_v46, %v5667_v45  ;;  %v5703_v19 = vadd.f32 2.0, %v5639_v62  ;;  %v5517_v61 = vmin.f32 %v11024_v29, 20.0  ;;  %v6485_v21 = vpop.f32.mrb[54].mxu0  ;;  %v5671_v3 = vmul.f32 %v5639_v62, %v10994_v33 }
 0x67b   : > { %5796 = vst [vmem:[%s10953_s25 + $0x58] sm:$0xff] %v5764_v40  ;;  %7887 = vrcp.f32 %v5704_v9  ;;  %v5571_v6 = vmul.f32 1.442695, %v5518_v31  ;;  %v11030_v55 = vadd.f32 %v6485_v21, %v10944_v12  ;;  %v5409_v11 = vpop.f32.mrb[55].mxu0 }
 0x67c   : > { %5795 = vst [vmem:[%s10953_s25 + $0x50] sm:$0xff] %v5763_v60  ;;  %7889 = vrcp.f32 %v5703_v19  ;;  %v5569_v54 = vmul.f32 1.442695, %v5517_v61  ;;  %v11034_v36 = vadd.f32 %v10944_v12, %v5409_v11 }
 0x67d   : > { %v7876_v8 = vpop.eup %7875  ;;  %7891 = vpow2.f32 %v5571_v6  ;;  %v5520_v49 = vmin.f32 %v11030_v55, 20.0 }
 0x67e   : > { %v7878_v26 = vpop.eup %7877  ;;  %v5610_v50 = vadd.f32 2.0, %v7876_v8  ;;  %7893 = vpow2.f32 %v5569_v54  ;;  %v5519_v59 = vmin.f32 %v11034_v36, 20.0 }
 0x67f   : > { %v7880_v25 = vpop.eup %7879  ;;  %v5609_v42 = vadd.f32 2.0, %v7878_v26  ;;  %v5575_v63 = vmul.f32 1.442695, %v5520_v49  ;;  %v6488_v5 = vpop.f32.mrb[56].mxu0 }
 0x680   : > { %v7882_v15 = vpop.eup %7881  ;;  %v5766_v43 = vmul.f32 %v7880_v25, %v5670_v35  ;;  %v5642_v13 = vmul.f32 %v7876_v8, %v5610_v50  ;;  %v5573_v58 = vmul.f32 1.442695, %v5519_v59  ;;  %v11041_v4 = vadd.f32 %v6488_v5, %v10944_v12  ;;  %v5419_v34 = vpop.f32.mrb[57].mxu0 }
 0x681   : > { %v7884_v48 = vpop.eup %7883  ;;  %v5765_v23 = vmul.f32 %v7882_v15, %v5669_v37  ;;  %v5641_v32 = vmul.f32 %v7878_v26, %v5609_v42  ;;  %7895 = vpow2.f32 %v5575_v63  ;;  %v11044_v57 = vadd.f32 %v10944_v12, %v5419_v34 }
 0x682   : > { %v7886_v24 = vpop.eup %7885  ;;  %5798 = vst [vmem:[%s10953_s25 + $0x68] sm:$0xff] %v5766_v43  ;;  %v5706_v41 = vadd.f32 2.0, %v5642_v13  ;;  %v5612_v14 = vadd.f32 2.0, %v7884_v48  ;;  %7897 = vpow2.f32 %v5573_v58  ;;  %v5522_v51 = vmin.f32 %v11041_v4, 20.0 }
 0x683   : > { %5797 = vst [vmem:[%s10953_s25 + $0x60] sm:$0xff] %v5765_v23  ;;  %v5705_v27 = vadd.f32 2.0, %v5641_v32  ;;  %v5611_v10 = vadd.f32 2.0, %v7886_v24  ;;  %v6491_v38 = vpop.f32.mrb[58].mxu0  ;;  %v5521_v2 = vmin.f32 %v11044_v57, 20.0  ;;  %v5674_v25 = vmul.f32 %v5642_v13, %v10999_v52 }
 0x684   : > { %7899 = vrcp.f32 %v5706_v41  ;;  %v11051_v22 = vmul.f32 %v7884_v48, %v5612_v14  ;;  %v11055_v44 = vadd.f32 %v6491_v38, %v10944_v12  ;;  %v5429_v1 = vpop.f32.mrb[59].mxu0  ;;  %v5579_v33 = vmul.f32 1.442695, %v5522_v51 }
 0x685   : > { %v7888_v47 = vpop.eup %7887  ;;  %7901 = vrcp.f32 %v5705_v27  ;;  %v11057_v39 = vmul.f32 %v7886_v24, %v5611_v10  ;;  %v11060_v16 = vadd.f32 %v10944_v12, %v5429_v1  ;;  %v5577_v17 = vmul.f32 1.442695, %v5521_v2 }
 0x686   : > { %v7890_v56 = vpop.eup %7889  ;;  %v5768_v18 = vmul.f32 %v7888_v47, %v5672_v0  ;;  %v5708_v28 = vadd.f32 2.0, %v11051_v22  ;;  %7903 = vpow2.f32 %v5579_v33  ;;  %v5524_v31 = vmin.f32 %v11055_v44, 20.0 }
 0x687   : > { %v7892_v45 = vpop.eup %7891  ;;  %v5767_v62 = vmul.f32 %v7890_v56, %v5671_v3  ;;  %v5707_v46 = vadd.f32 2.0, %v11057_v39  ;;  %v5523_v60 = vmin.f32 %v11060_v16, 20.0  ;;  %v5673_v63 = vmul.f32 %v5641_v32, %v11002_v20 }
 0x688   : > { %v7894_v40 = vpop.eup %7893  ;;  %5800 = vst [vmem:[%s10953_s25 + $0x78] sm:$0xff] %v5768_v18  ;;  %7905 = vrcp.f32 %v5708_v28  ;;  %v5614_v9 = vadd.f32 2.0, %v7892_v45  ;;  %v6494_v19 = vpop.f32.mrb[60].mxu0  ;;  %v5583_v54 = vmul.f32 1.442695, %v5524_v31  ;;  %v5676_v3 = vmul.f32 %v11051_v22, %v11009_v7 }
 0x689   : > { %5799 = vst [vmem:[%s10953_s25 + $0x70] sm:$0xff] %v5767_v62  ;;  %7907 = vrcp.f32 %v5707_v46  ;;  %v5613_v61 = vadd.f32 2.0, %v7894_v40  ;;  %v11069_v21 = vadd.f32 %v6494_v19, %v10944_v12  ;;  %v5439_v6 = vpop.f32.mrb[61].mxu0  ;;  %v5581_v8 = vmul.f32 1.442695, %v5523_v60 }
 0x68a   : > { %v5646_v11 = vmul.f32 %v7892_v45, %v5614_v9  ;;  %7909 = vpow2.f32 %v5577_v17  ;;  %v11073_v50 = vadd.f32 %v10944_v12, %v5439_v6  ;;  %v5675_v2 = vmul.f32 %v11057_v39, %v11012_v30 }
 0x68b   : > { %v7896_v49 = vpop.eup %7895  ;;  %v5645_v26 = vmul.f32 %v7894_v40, %v5613_v61  ;;  %v5526_v35 = vmin.f32 %v11069_v21, 20.0  ;;  %7911 = vpow2.f32 %v5583_v54 }
 0x68c   : > { %v7898_v59 = vpop.eup %7897  ;;  %v5710_v37 = vadd.f32 2.0, %v5646_v11  ;;  %v5616_v42 = vadd.f32 2.0, %v7896_v49  ;;  %7913 = vpow2.f32 %v5581_v8  ;;  %v5525_v23 = vmin.f32 %v11073_v50, 20.0 }
 0x68d   : > { %v5709_v5 = vadd.f32 2.0, %v5645_v26  ;;  %v5615_v15 = vadd.f32 2.0, %v7898_v59  ;;  %v6497_v43 = vpop.f32.mrb[62].mxu0  ;;  %v5587_v48 = vmul.f32 1.442695, %v5526_v35  ;;  %v5677_v60 = vmul.f32 %v5645_v26, %v11024_v29 }
 0x68e   : > { %v7900_v58 = vpop.eup %7899  ;;  %7915 = vrcp.f32 %v5710_v37  ;;  %v5648_v34 = vmul.f32 %v7896_v49, %v5616_v42  ;;  %v5449_v24 = vpop.f32.mrb[63].mxu0  ;;  %v11079_v41 = vadd.f32 %v6497_v43, %v10944_v12  ;;  %v5585_v10 = vmul.f32 1.442695, %v5525_v23 }
 0x68f   : > { %v7902_v0 = vpop.eup %7901  ;;  %v5770_v52 = vmul.f32 %v7900_v58, %v5674_v25  ;;  %7917 = vrcp.f32 %v5709_v5  ;;  %v5647_v13 = vmul.f32 %v7898_v59, %v5615_v15  ;;  %v11089_v47 = vadd.f32 %v10944_v12, %v5449_v24 }
 0x690   : > { %v5769_v20 = vmul.f32 %v7902_v0, %v5673_v63  ;;  %v5712_v32 = vadd.f32 2.0, %v5648_v34  ;;  %7919 = vpow2.f32 %v5587_v48  ;;  %v7904_v14 = vpop.eup %7903  ;;  %v5528_v51 = vmin.f32 %v11079_v41, 20.0 }
 0x691   : > { %5802 = vst [vmem:[%s10953_s25 + $0x88] sm:$0xff] %v5770_v52  ;;  %v5711_v27 = vadd.f32 2.0, %v5647_v13  ;;  %v5618_v1 = vadd.f32 2.0, %v7904_v14  ;;  %v5527_v17 = vmin.f32 %v11089_v47, 20.0  ;;  %v5678_v12 = vmul.f32 %v5646_v11, %v11020_v53 }
 0x692   : > { %v7906_v38 = vpop.eup %7905  ;;  %5801 = vst [vmem:[%s10953_s25 + $0x80] sm:$0xff] %v5769_v20  ;;  %7921 = vrcp.f32 %v5712_v32  ;;  %v5591_v7 = vmul.f32 1.442695, %v5528_v51  ;;  %v5680_v25 = vmul.f32 %v5648_v34, %v11030_v55  ;;  %v5679_v26 = vmul.f32 %v5647_v13, %v11034_v36 }
 0x693   : > { %v7908_v33 = vpop.eup %7907  ;;  %v5772_v56 = vmul.f32 %v7906_v38, %v5676_v3  ;;  %7923 = vrcp.f32 %v5711_v27  ;;  %v5650_v28 = vmul.f32 %v7904_v14, %v5618_v1  ;;  %v5589_v62 = vmul.f32 1.442695, %v5527_v17 }
 0x694   : > { %v7910_v22 = vpop.eup %7909  ;;  %v5771_v18 = vmul.f32 %v7908_v33, %v5675_v2  ;;  %7925 = vpow2.f32 %v5585_v10 }
 0x695   : > { %5804 = vst [vmem:[%s10953_s25 + $0x98] sm:$0xff] %v5772_v56  ;;  %v5617_v45 = vadd.f32 2.0, %v7910_v22  ;;  %7927 = vpow2.f32 %v5591_v7  ;;  %v7912_v30 = vpop.eup %7911  ;;  %v5714_v39 = vadd.f32 2.0, %v5650_v28  ;;  %v5682_v23 = vmul.f32 %v5650_v28, %v11041_v4 }
 0x696   : > { %5803 = vst [vmem:[%s10953_s25 + $0x90] sm:$0xff] %v5771_v18  ;;  %v7914_v46 = vpop.eup %7913  ;;  %v5620_v9 = vadd.f32 2.0, %v7912_v30 }
 0x697   : > { %v5649_v40 = vmul.f32 %v7910_v22, %v5617_v45  ;;  %7929 = vrcp.f32 %v5714_v39  ;;  %v5619_v19 = vadd.f32 2.0, %v7914_v46 }
 0x698   : > { %v7916_v31 = vpop.eup %7915  ;;  %v5652_v8 = vmul.f32 %v7912_v30, %v5620_v9  ;;  %7931 = vpow2.f32 %v5589_v62 }
 0x699   : > { %v7918_v61 = vpop.eup %7917  ;;  %v5774_v6 = vmul.f32 %v7916_v31, %v5678_v12  ;;  %v5713_v54 = vadd.f32 2.0, %v5649_v40  ;;  %v5651_v59 = vmul.f32 %v7914_v46, %v5619_v19  ;;  %v5681_v32 = vmul.f32 %v5649_v40, %v11044_v57 }
 0x69a   : > { %v7920_v49 = vpop.eup %7919  ;;  %v5773_v35 = vmul.f32 %v7918_v61, %v5677_v60  ;;  %v5716_v53 = vadd.f32 2.0, %v5652_v8  ;;  %v5684_v4 = vmul.f32 %v5652_v8, %v11055_v44 }
 0x69b   : > { %5806 = vst [vmem:[%s10953_s25 + $0xa8] sm:$0xff] %v5774_v6  ;;  %7933 = vrcp.f32 %v5713_v54  ;;  %v5622_v11 = vadd.f32 2.0, %v7920_v49  ;;  %v5715_v37 = vadd.f32 2.0, %v5651_v59  ;;  %v5683_v38 = vmul.f32 %v5651_v59, %v11060_v16 }
 0x69c   : > { %v7922_v29 = vpop.eup %7921  ;;  %5805 = vst [vmem:[%s10953_s25 + $0xa0] sm:$0xff] %v5773_v35  ;;  %7935 = vrcp.f32 %v5716_v53 }
 0x69d   : > { %v7924_v42 = vpop.eup %7923  ;;  %v5776_v63 = vmul.f32 %v7922_v29, %v5680_v25  ;;  %v5654_v5 = vmul.f32 %v7920_v49, %v5622_v11  ;;  %7937 = vrcp.f32 %v5715_v37 }
 0x69e   : > { %v7926_v15 = vpop.eup %7925  ;;  %v5775_v43 = vmul.f32 %v7924_v42, %v5679_v26 }
 0x69f   : > { %v7928_v58 = vpop.eup %7927  ;;  %5808 = vst [vmem:[%s10953_s25 + $0xb8] sm:$0xff] %v5776_v63  ;;  %v5718_v55 = vadd.f32 2.0, %v5654_v5  ;;  %v5621_v34 = vadd.f32 2.0, %v7926_v15  ;;  %v5686_v7 = vmul.f32 %v5654_v5, %v11069_v21 }
 0x6a0   : > { %5807 = vst [vmem:[%s10953_s25 + $0xb0] sm:$0xff] %v5775_v43  ;;  %v5624_v48 = vadd.f32 2.0, %v7928_v58 }
 0x6a1   : > { %7939 = vrcp.f32 %v5718_v55  ;;  %v5653_v24 = vmul.f32 %v7926_v15, %v5621_v34  ;;  %v7930_v36 = vpop.eup %7929 }
 0x6a2   : > { %v5656_v0 = vmul.f32 %v7928_v58, %v5624_v48  ;;  %v5778_v52 = vmul.f32 %v7930_v36, %v5682_v23  ;;  %v7932_v20 = vpop.eup %7931 }
 0x6a3   : > { %v5717_v13 = vadd.f32 2.0, %v5653_v24  ;;  %v5623_v27 = vadd.f32 2.0, %v7932_v20  ;;  %v5685_v16 = vmul.f32 %v5653_v24, %v11073_v50 }
 0x6a4   : > { %v5720_v14 = vadd.f32 2.0, %v5656_v0  ;;  %5810 = vst [vmem:[%s10953_s25 + $0xc8] sm:$0xff] %v5778_v52  ;;  %v5688_v28 = vmul.f32 %v5656_v0, %v11079_v41 }
 0x6a5   : > { %v7934_v3 = vpop.eup %7933  ;;  %7941 = vrcp.f32 %v5717_v13  ;;  %v5655_v2 = vmul.f32 %v7932_v20, %v5623_v27 }
 0x6a6   : > { %v5777_v10 = vmul.f32 %v7934_v3, %v5681_v32  ;;  %7943 = vrcp.f32 %v5720_v14  ;;  %v7936_v51 = vpop.eup %7935 }
 0x6a7   : > { %v7938_v1 = vpop.eup %7937  ;;  %v5780_v33 = vmul.f32 %v7936_v51, %v5684_v4  ;;  %v5719_v56 = vadd.f32 2.0, %v5655_v2  ;;  %v5687_v21 = vmul.f32 %v5655_v2, %v11089_v47 }
 0x6a8   : > { %5809 = vst [vmem:[%s10953_s25 + $0xc0] sm:$0xff] %v5777_v10  ;;  %v5779_v57 = vmul.f32 %v7938_v1, %v5683_v38 }
 0x6a9   : > { %5812 = vst [vmem:[%s10953_s25 + $0xd8] sm:$0xff] %v5780_v33  ;;  %7945 = vrcp.f32 %v5719_v56 }
 0x6aa   : > { %5811 = vst [vmem:[%s10953_s25 + $0xd0] sm:$0xff] %v5779_v57 }
 0x6ab   : > { %v7940_v22 = vpop.eup %7939 }
 0x6ac   : > { %v5782_v44 = vmul.f32 %v7940_v22, %v5686_v7 }
 0x6ae   : > { %5814 = vst [vmem:[%s10953_s25 + $0xe8] sm:$0xff] %v5782_v44 }
 0x6af   : > { %v7942_v18 = vpop.eup %7941 }
 0x6b0   : > { %v7944_v17 = vpop.eup %7943  ;;  %v5781_v45 = vmul.f32 %v7942_v18, %v5685_v16 }
 0x6b1   : > { %v5784_v30 = vmul.f32 %v7944_v17, %v5688_v28 }
 0x6b2   : > { %5813 = vst [vmem:[%s10953_s25 + $0xe0] sm:$0xff] %v5781_v45 }
 0x6b3   : > { %5816 = vst [vmem:[%s10953_s25 + $0xf8] sm:$0xff] %v5784_v30  ;;  %v7946_v39 = vpop.eup %7945 }
 0x6b4   : > { %v5783_v50 = vmul.f32 %v7946_v39, %v5687_v21 }
 0x6b6   : > { %5815 = vst [vmem:[%s10953_s25 + $0xf0] sm:$0xff] %v5783_v50 }
 0x6b7   : > { %8146 = shalt.err (!%p8143_p8)
}
 0x6b8   : > { %s8147_s25 = scalar_lea.hbm %s11122_s26, 4096  ;;  %s8151_s23 = scalar_lea.hbm %s11278_s20, 8192 }
 0x6b9   : > { %p8148_p6 = scmp.ne.s32.totalorder %s11122_s26, %s8147_s25  ;;  %p8152_p3 = scmp.lt.u32.totalorder %s11122_s26, %s11278_s20 }
 0x6ba   : > { %p8153_p5 = scmp.lt.u32.totalorder %s8151_s23, %s8147_s25  ;;  %p8155_p7 = scmp.lt.u32.totalorder %s8147_s25, %s11122_s26 }
 0x6bb   : > { %p8149_p10 = pnand %p8148_p6, %p11279_p4 }
 0x6bc   : > { %p8154_p9 = por %p8153_p5, %p8152_p3 }
 0x6bd   : > { %p8150_p11 = pneg %p8149_p10 }
 0x6be   : > { %p8156_p12 = por %p8155_p7, %p8154_p9 }
 0x6c0   : > { %p8157_p1 = pnand %p8156_p12, %p8150_p11 }
 0x6c2   : > { %8160 = shalt.err (!%p8157_p1)
}
 0x6c3   : > { %s8226_s18 = smov 128   ;;  %s8227_s22 = smov 8  }
 0x6c4   : > { %7096 = dma.vmem_to_hbm [thread:$0]  (%p11279_p4), %s11124_s10, 4096, %s11122_s26, %s5818_s13, %s8226_s18, %s8226_s18, %s8227_s22  }
 0x6c5 PF: > { %s5846_s28 = sand.u32 1, %s8199_s29   ;;  %p11280_p13 = scmp.ne.s32.totalorder %s11224_s7, 0 }
 0x6c6   : > { %p11281_p0 = scmp.ge.s32.totalorder %s8211_s16, 2  ;;  %s5847_s25 = scalar_lea.sflag [#allocation6], %s5846_s28 }
 0x6c8   : > { %p7119_p2 = pnand %p11281_p0, %p11280_p13 }
 0x6ca   : > { %8194 = dma.done.wait (!%p7119_p2), %s5847_s25, 4096  }
 0x6cb   : > { %8196 = vsyncadd (!%p7119_p2), %s5847_s25, 4294963200  ;;  %p30_p8 = scmp.ge.s32.totalorder %s8473_s21, 4   ;;  %s11282_s29 = smov %s8203_s30 }
 0x6cc   : > { %s11283_s30 = smov %s8207_s15  ;;  %s11284_s15 = smov %s8485_s5 }
 0x6cd   : > { %s11285_s16 = smov %s8473_s21  ;;  %32 = sbr.rel (!%p30_p8) target bundleno = 17 (0x11), region = 144 }
 0x6d4   :  { %5852 = vsyncpa [#allocation5], 1 }
 0x6d5   :  { %5854 = vsyncpa [#allocation5 + $0x1], 1 }
 0x6d6   :  { %5855 = vsyncpa [#allocation8], 1 }
 0x6d7   :  { %5856 = vsyncpa [#allocation11], 1 }
 0x6d8   :  { %5857 = vsyncpa [#allocation14], 1 }
 0x6d9   :  { %5858 = vsyncpa [#allocation6], 1 }
 0x6da   :  { %5860 = vsyncpa [#allocation6 + $0x1], 1 }

</bundles_post_ra>
